<compile_context>
chip_gen: v7x
topology: tpu7x:2x2x1
jax: 0.10.0
libtpu: 0.0.40
codegen_flags: <defaults>
</compile_context>

<pallas_src>
import functools

import jax
import jax.numpy as jnp
import numpy as np
from jax import lax
from jax.experimental import pallas as pl
from jax.experimental.pallas import tpu as pltpu


def _resblock_kernel(x_ref, w1_ref, a1_ref, b1_ref, w2_ref, a2_ref, b2_ref,
                     wext_ref, bext_ref, wsq_ref, bsq_ref, out_ref,
                     pad_ref, patch_ref, *, Nb, H, W, C):
    M = Nb * H * W

    # ---- zero only the 1-pixel border ring of the halo scratch ------------
    # Done every step (4 thin strip stores, cheap) so the kernel stays correct
    # even when the grid axis is sharded across TensorCores ('parallel');
    # the interior is fully overwritten below.
    zrow = jnp.zeros((Nb, 1, W + 2, C), pad_ref.dtype)
    pad_ref[:, 0:1, :, :] = zrow
    pad_ref[:, H + 1:H + 2, :, :] = zrow
    zcol = jnp.zeros((Nb, H + 2, 1, C), pad_ref.dtype)
    pad_ref[:, :, 0:1, :] = zcol
    pad_ref[:, :, W + 1:W + 2, :] = zcol

    def build_patches():
        # 9 shifted taps copied ref-slice -> ref-slice into the bf16 patch
        # scratch (no full-pad value load, no jnp.concatenate copy).
        # Column order (dy, dx, cin) matches the HWIO -> (9C, C) weight
        # reshape done wrapper-side.
        for k, (dy, dx) in enumerate((dy, dx) for dy in range(3)
                                     for dx in range(3)):
            patch_ref[:, :, :, k * C:(k + 1) * C] = \
                pad_ref[:, dy:dy + H, dx:dx + W, :]

    # ---- conv1: single (M, 9C) x (9C, C) bf16 matmul, f32 acc, BN + ReLU --
    x = x_ref[...]                                             # (Nb,H,W,C) f32
    pad_ref[:, 1:H + 1, 1:W + 1, :] = x.astype(pad_ref.dtype)
    build_patches()
    p1 = patch_ref[...].reshape(M, 9 * C)                      # bf16
    h1 = jnp.dot(p1, w1_ref[...], preferred_element_type=jnp.float32)
    h1 = jnp.maximum(h1 * a1_ref[...] + b1_ref[...], 0.0)      # (M, C) f32

    # ---- conv2: reuse the same halo scratch (border still zero) -----------
    pad_ref[:, 1:H + 1, 1:W + 1, :] = \
        h1.reshape(Nb, H, W, C).astype(pad_ref.dtype)
    build_patches()
    p2 = patch_ref[...].reshape(M, 9 * C)                      # bf16
    h2 = jnp.dot(p2, w2_ref[...], preferred_element_type=jnp.float32)
    h2 = h2 * a2_ref[...] + b2_ref[...]                        # (M, C) f32

    # ---- SE block, batched over the Nb images of this grid step (f32) -----
    h2_img = h2.reshape(Nb, H * W, C)
    pooled = jnp.mean(h2_img, axis=1)                          # (Nb, C)
    e = jnp.maximum(jnp.dot(pooled, wext_ref[...],
                            preferred_element_type=jnp.float32)
                    + bext_ref[...], 0.0)                      # (Nb, se)
    s = jnp.dot(e, wsq_ref[...],
                preferred_element_type=jnp.float32) + bsq_ref[...]  # (Nb, 2C)
    gammas = jax.nn.sigmoid(s[:, :C])[:, None, :]              # (Nb, 1, C)
    betas = s[:, C:][:, None, :]                               # (Nb, 1, C)

    identity = x.reshape(Nb, H * W, C)
    o = jnp.maximum(gammas * h2_img + betas + identity, 0.0)
    out_ref[...] = o.reshape(Nb, H, W, C).astype(out_ref.dtype)


def _vmem_capacity_bytes():
    """Physical VMEM of the current chip generation (fallback: 128 MiB)."""
    try:
        return int(pltpu.get_tpu_info().vmem_capacity_bytes)
    except Exception:
        return 128 << 20


def _pick_batch_block(N, H, W, C, *, vmem_budget_bytes, target_rows=2048):
    """Images per grid step: enough matmul rows to amortize per-step overhead
    and feed the MXU / SE FCs, bounded by a conservative per-image VMEM
    working-set estimate, and capped at N//2 so there are always >=2 grid
    steps (lets the auto-pipeline overlap DMA with compute, and keeps both
    v7x TensorCores busy under 'parallel' sharding)."""
    per_img = H * W * C * 4 * 4                 # f32 x/out blocks, 2x-buffered
    per_img += (H + 2) * (W + 2) * C * 2        # bf16 halo scratch
    per_img += H * W * 9 * C * 2 * 2            # bf16 patch scratch + load
    per_img += H * W * C * 4 * 3                # f32 h1 / h2 / o values
    per_img = int(per_img * 1.5)                # Mosaic temporaries slack
    cap = min(max(1, N // 2),                               # >=2 grid steps
              max(1, vmem_budget_bytes // per_img),
              max(1, -(-target_rows // (H * W))))   # ceil(target_rows / HW)
    divs = [d for d in range(1, cap + 1) if N % d == 0]
    even_grid = [d for d in divs if (N // d) % 2 == 0]      # v7x: 2 TCs/chip
    return max(even_grid) if even_grid else max(divs)


def resblock_pallas(x_nhwc, params, *, batch_block=None):
    """x_nhwc: (N, H, W, C) float32. Returns (N, H, W, C) float32."""
    N, H, W, C = x_nhwc.shape
    se = params["w_ext"].shape[1]

    vmem_cap = _vmem_capacity_bytes()
    vmem_limit = min(vmem_cap * 3 // 4, 100 << 20)   # ~48 MiB v7x, ~96 MiB v6e
    nb = batch_block or _pick_batch_block(N, H, W, C,
                                          vmem_budget_bytes=vmem_cap // 5)

    # Conv weights (3,3,Cin,Cout) HWIO -> (9*Cin, Cout) bf16, matching the
    # kernel's im2col column order (dy, dx, cin).  Done once, wrapper-side.
    w1 = params["w1"].reshape(9 * C, C).astype(jnp.bfloat16)
    w2 = params["w2"].reshape(9 * C, C).astype(jnp.bfloat16)

    kernel = functools.partial(_resblock_kernel, Nb=nb, H=H, W=W, C=C)
    full = lambda shape: pl.BlockSpec(shape, lambda n: (0,) * len(shape))

    flops = 2 * (2 * N * H * W * (9 * C) * C)            # two conv matmuls
    flops += 2 * N * C * se + 2 * N * se * (2 * C)        # SE FCs
    flops += 10 * N * H * W * C                           # affines/gate/relu
    cost = pl.CostEstimate(
        flops=int(flops),
        transcendentals=int(N * C),                       # sigmoid exp
        bytes_accessed=int(2 * N * H * W * C * 4          # x in, out
                           + 2 * 9 * C * C * 2            # bf16 conv weights
                           + C * se * 4 + se * 2 * C * 4  # SE weights
                           + (4 * C + se + 2 * C) * 4))   # affines / biases

    return pl.pallas_call(
        kernel,
        out_shape=jax.ShapeDtypeStruct((N, H, W, C), jnp.float32),
        grid_spec=pltpu.PrefetchScalarGridSpec(
            num_scalar_prefetch=0,
            grid=(N // nb,),
            in_specs=[
                pl.BlockSpec((nb, H, W, C), lambda n: (n, 0, 0, 0)),  # x
                full((9 * C, C)),      # w1 (im2col layout, bf16)
                full((1, C)),          # a1 (BN1 scale)
                full((1, C)),          # b1 (BN1 shift, conv bias folded)
                full((9 * C, C)),      # w2 (bf16)
                full((1, C)),          # a2
                full((1, C)),          # b2
                full((C, se)),         # w_ext
                full((1, se)),         # b_ext
                full((se, 2 * C)),     # w_sq
                full((1, 2 * C)),      # b_sq
            ],
            out_specs=pl.BlockSpec((nb, H, W, C), lambda n: (n, 0, 0, 0)),
            scratch_shapes=[
                pltpu.VMEM((nb, H + 2, W + 2, C), jnp.bfloat16),   # halo
                pltpu.VMEM((nb, H, W, 9 * C), jnp.bfloat16),       # im2col
            ],
        ),
        compiler_params=pltpu.CompilerParams(
            dimension_semantics=("parallel",),
            vmem_limit_bytes=int(vmem_limit)),
        cost_estimate=cost,
    )(x_nhwc, w1, params["a1"], params["b1"], w2, params["a2"], params["b2"],
      params["w_ext"], params["b_ext"], params["w_sq"], params["b_sq"])


def make_params(key, C, se):
    """Deterministic synthetic parameters; BN folded to per-channel affine."""
    ks = jax.random.split(key, 16)
    eps = 1e-5

    def conv_bn(k0, k1, k2, k3, k4, k5):
        w = jax.random.normal(k0, (3, 3, C, C), jnp.float32) * np.sqrt(
            2.0 / (C * 9))                                    # kaiming fan_out
        cb = jax.random.normal(k1, (C,), jnp.float32) * 0.1
        gamma = 1.0 + 0.1 * jax.random.normal(k2, (C,), jnp.float32)
        beta = 0.1 * jax.random.normal(k3, (C,), jnp.float32)
        mean = 0.1 * jax.random.normal(k4, (C,), jnp.float32)
        var = jnp.abs(1.0 + 0.1 * jax.random.normal(k5, (C,), jnp.float32))
        scale = gamma / jnp.sqrt(var + eps)                   # BN eval fold
        shift = (cb - mean) * scale + beta
        return w, scale.reshape(1, C), shift.reshape(1, C)

    w1, a1, b1 = conv_bn(*ks[0:6])
    w2, a2, b2 = conv_bn(*ks[6:12])

    w_ext = jax.random.normal(ks[12], (C, se), jnp.float32) * np.sqrt(1.0 / C)
    b_ext = (0.1 * jax.random.normal(ks[13], (se,), jnp.float32)).reshape(1, se)
    w_sq = jax.random.normal(ks[14], (se, 2 * C), jnp.float32) * np.sqrt(1.0 / se)
    b_sq = (0.1 * jax.random.normal(ks[15], (2 * C,), jnp.float32)).reshape(1, 2 * C)

    return dict(w1=w1, a1=a1, b1=b1, w2=w2, a2=a2, b2=b2,
                w_ext=w_ext, b_ext=b_ext, w_sq=w_sq, b_sq=b_sq)


def resblock_reference(x, p):
    """Pure-JAX NHWC reference matching the PyTorch forward (eval-mode BN)."""
    dn = ("NHWC", "HWIO", "NHWC")
    c1 = lax.conv_general_dilated(x, p["w1"], (1, 1), "SAME",
                                  dimension_numbers=dn)
    h1 = jax.nn.relu(c1 * p["a1"][0] + p["b1"][0])
    c2 = lax.conv_general_dilated(h1, p["w2"], (1, 1), "SAME",
                                  dimension_numbers=dn)
    h2 = c2 * p["a2"][0] + p["b2"][0]
    pooled = h2.mean(axis=(1, 2))                              # (N, C)
    e = jax.nn.relu(pooled @ p["w_ext"] + p["b_ext"][0])
    s = e @ p["w_sq"] + p["b_sq"][0]                           # (N, 2C)
    C = x.shape[-1]
    gammas = s[:, :C][:, None, None, :]
    betas = s[:, C:][:, None, None, :]
    out = jax.nn.sigmoid(gammas) * h2 + betas + x
    return jax.nn.relu(out)


if __name__ == "__main__":
    N, C, H, W, SE = 2, 4, 16, 16, 8
    key = jax.random.PRNGKey(0)
    kx, kp = jax.random.split(key)
    x = jax.random.normal(kx, (N, H, W, C), jnp.float32)       # NHWC input
    params = make_params(kp, C, SE)

    out = resblock_pallas(x, params)
    out = jax.block_until_ready(out)

    ref = resblock_reference(x, params)
    # bf16 MXU operands with f32 accumulation -> loosened tolerance.
    np.testing.assert_allclose(np.asarray(out), np.asarray(ref),
                               rtol=2e-2, atol=2e-2)
    print("KERNEL_OK")
</pallas_src>

<mosaic_0001>
module attributes {stable_mosaic.version = 11 : i64} {
  func.func @_resblock_kernel(%arg0: i32, %arg1: memref<1x16x16x4xf32, #tpu.memory_space<vmem>>, %arg2: memref<36x4xbf16, #tpu.memory_space<vmem>>, %arg3: memref<1x4xf32, #tpu.memory_space<vmem>>, %arg4: memref<1x4xf32, #tpu.memory_space<vmem>>, %arg5: memref<36x4xbf16, #tpu.memory_space<vmem>>, %arg6: memref<1x4xf32, #tpu.memory_space<vmem>>, %arg7: memref<1x4xf32, #tpu.memory_space<vmem>>, %arg8: memref<4x8xf32, #tpu.memory_space<vmem>>, %arg9: memref<1x8xf32, #tpu.memory_space<vmem>>, %arg10: memref<8x8xf32, #tpu.memory_space<vmem>>, %arg11: memref<1x8xf32, #tpu.memory_space<vmem>>, %arg12: memref<1x16x16x4xf32, #tpu.memory_space<vmem>>, %arg13: memref<1x18x18x4xbf16, #tpu.memory_space<vmem>>, %arg14: memref<1x16x16x36xbf16, #tpu.memory_space<vmem>>) attributes {dimension_semantics = [#tpu.dimension_semantics<parallel>], iteration_bounds = array<i64: 2>, scalar_prefetch = 0 : i64, scratch_operands = 2 : i64, tpu.core_type = #tpu.core_type<tc>, window_params = [{transform_indices = @transform_0, window_bounds = array<i64: 1, 16, 16, 4>}, {pipeline_mode = #tpu.pipeline_mode<synchronous>, transform_indices = @transform_1, window_bounds = array<i64: 36, 4>}, {pipeline_mode = #tpu.pipeline_mode<synchronous>, transform_indices = @transform_2, window_bounds = array<i64: 1, 4>}, {pipeline_mode = #tpu.pipeline_mode<synchronous>, transform_indices = @transform_3, window_bounds = array<i64: 1, 4>}, {pipeline_mode = #tpu.pipeline_mode<synchronous>, transform_indices = @transform_4, window_bounds = array<i64: 36, 4>}, {pipeline_mode = #tpu.pipeline_mode<synchronous>, transform_indices = @transform_5, window_bounds = array<i64: 1, 4>}, {pipeline_mode = #tpu.pipeline_mode<synchronous>, transform_indices = @transform_6, window_bounds = array<i64: 1, 4>}, {pipeline_mode = #tpu.pipeline_mode<synchronous>, transform_indices = @transform_7, window_bounds = array<i64: 4, 8>}, {pipeline_mode = #tpu.pipeline_mode<synchronous>, transform_indices = @transform_8, window_bounds = array<i64: 1, 8>}, {pipeline_mode = #tpu.pipeline_mode<synchronous>, transform_indices = @transform_9, window_bounds = array<i64: 8, 8>}, {pipeline_mode = #tpu.pipeline_mode<synchronous>, transform_indices = @transform_10, window_bounds = array<i64: 1, 8>}, {transform_indices = @transform_11, window_bounds = array<i64: 1, 16, 16, 4>}]} {
    %cst = arith.constant 0.000000e+00 : bf16
    %0 = vector.broadcast %cst : bf16 to vector<1x1x18x4xbf16>
    %c0 = arith.constant 0 : index
    %c0_0 = arith.constant 0 : index
    %c0_1 = arith.constant 0 : index
    %c0_2 = arith.constant 0 : index
    %1 = vector.load %arg13[%c0, %c0_0, %c0_1, %c0_2] : memref<1x18x18x4xbf16, #tpu.memory_space<vmem>>, vector<1x1x18x4xbf16>
    tpu.vector_store %arg13[%c0, %c0_0, %c0_1, %c0_2], %0 {strides = array<i32>} : memref<1x18x18x4xbf16, #tpu.memory_space<vmem>>, vector<1x1x18x4xbf16>,
    %c0_3 = arith.constant 0 : index
    %c17 = arith.constant 17 : index
    %c0_4 = arith.constant 0 : index
    %c0_5 = arith.constant 0 : index
    %2 = vector.load %arg13[%c0_3, %c17, %c0_4, %c0_5] : memref<1x18x18x4xbf16, #tpu.memory_space<vmem>>, vector<1x1x18x4xbf16>
    tpu.vector_store %arg13[%c0_3, %c17, %c0_4, %c0_5], %0 {strides = array<i32>} : memref<1x18x18x4xbf16, #tpu.memory_space<vmem>>, vector<1x1x18x4xbf16>,
    %cst_6 = arith.constant 0.000000e+00 : bf16
    %3 = vector.broadcast %cst_6 : bf16 to vector<1x18x1x4xbf16>
    %c0_7 = arith.constant 0 : index
    %c0_8 = arith.constant 0 : index
    %c0_9 = arith.constant 0 : index
    %c0_10 = arith.constant 0 : index
    %4 = vector.load %arg13[%c0_7, %c0_8, %c0_9, %c0_10] : memref<1x18x18x4xbf16, #tpu.memory_space<vmem>>, vector<1x18x1x4xbf16>
    tpu.vector_store %arg13[%c0_7, %c0_8, %c0_9, %c0_10], %3 {strides = array<i32>} : memref<1x18x18x4xbf16, #tpu.memory_space<vmem>>, vector<1x18x1x4xbf16>,
    %c0_11 = arith.constant 0 : index
    %c0_12 = arith.constant 0 : index
    %c17_13 = arith.constant 17 : index
    %c0_14 = arith.constant 0 : index
    %5 = vector.load %arg13[%c0_11, %c0_12, %c17_13, %c0_14] : memref<1x18x18x4xbf16, #tpu.memory_space<vmem>>, vector<1x18x1x4xbf16>
    tpu.vector_store %arg13[%c0_11, %c0_12, %c17_13, %c0_14], %3 {strides = array<i32>} : memref<1x18x18x4xbf16, #tpu.memory_space<vmem>>, vector<1x18x1x4xbf16>,
    %c0_15 = arith.constant 0 : index
    %c0_16 = arith.constant 0 : index
    %c0_17 = arith.constant 0 : index
    %c0_18 = arith.constant 0 : index
    %6 = vector.load %arg1[%c0_15, %c0_16, %c0_17, %c0_18] : memref<1x16x16x4xf32, #tpu.memory_space<vmem>>, vector<1x16x16x4xf32>
    %7 = arith.truncf %6 : vector<1x16x16x4xf32> to vector<1x16x16x4xbf16>
    %c0_19 = arith.constant 0 : index
    %c1 = arith.constant 1 : index
    %c1_20 = arith.constant 1 : index
    %c0_21 = arith.constant 0 : index
    %8 = vector.load %arg13[%c0_19, %c1, %c1_20, %c0_21] : memref<1x18x18x4xbf16, #tpu.memory_space<vmem>>, vector<1x16x16x4xbf16>
    tpu.vector_store %arg13[%c0_19, %c1, %c1_20, %c0_21], %7 {strides = array<i32>} : memref<1x18x18x4xbf16, #tpu.memory_space<vmem>>, vector<1x16x16x4xbf16>,
    %c0_22 = arith.constant 0 : index
    %c0_23 = arith.constant 0 : index
    %c0_24 = arith.constant 0 : index
    %c0_25 = arith.constant 0 : index
    %9 = vector.load %arg13[%c0_22, %c0_23, %c0_24, %c0_25] : memref<1x18x18x4xbf16, #tpu.memory_space<vmem>>, vector<1x16x16x4xbf16>
    %c0_26 = arith.constant 0 : index
    %c0_27 = arith.constant 0 : index
    %c0_28 = arith.constant 0 : index
    %c0_29 = arith.constant 0 : index
    %10 = vector.load %arg14[%c0_26, %c0_27, %c0_28, %c0_29] : memref<1x16x16x36xbf16, #tpu.memory_space<vmem>>, vector<1x16x16x4xbf16>
    tpu.vector_store %arg14[%c0_26, %c0_27, %c0_28, %c0_29], %9 {strides = array<i32>} : memref<1x16x16x36xbf16, #tpu.memory_space<vmem>>, vector<1x16x16x4xbf16>,
    %c0_30 = arith.constant 0 : index
    %c0_31 = arith.constant 0 : index
    %c1_32 = arith.constant 1 : index
    %c0_33 = arith.constant 0 : index
    %11 = vector.load %arg13[%c0_30, %c0_31, %c1_32, %c0_33] : memref<1x18x18x4xbf16, #tpu.memory_space<vmem>>, vector<1x16x16x4xbf16>
    %c0_34 = arith.constant 0 : index
    %c0_35 = arith.constant 0 : index
    %c0_36 = arith.constant 0 : index
    %c4 = arith.constant 4 : index
    %12 = vector.load %arg14[%c0_34, %c0_35, %c0_36, %c4] : memref<1x16x16x36xbf16, #tpu.memory_space<vmem>>, vector<1x16x16x4xbf16>
    tpu.vector_store %arg14[%c0_34, %c0_35, %c0_36, %c4], %11 {strides = array<i32>} : memref<1x16x16x36xbf16, #tpu.memory_space<vmem>>, vector<1x16x16x4xbf16>,
    %c0_37 = arith.constant 0 : index
    %c0_38 = arith.constant 0 : index
    %c2 = arith.constant 2 : index
    %c0_39 = arith.constant 0 : index
    %13 = vector.load %arg13[%c0_37, %c0_38, %c2, %c0_39] : memref<1x18x18x4xbf16, #tpu.memory_space<vmem>>, vector<1x16x16x4xbf16>
    %c0_40 = arith.constant 0 : index
    %c0_41 = arith.constant 0 : index
    %c0_42 = arith.constant 0 : index
    %c8 = arith.constant 8 : index
    %14 = vector.load %arg14[%c0_40, %c0_41, %c0_42, %c8] : memref<1x16x16x36xbf16, #tpu.memory_space<vmem>>, vector<1x16x16x4xbf16>
    tpu.vector_store %arg14[%c0_40, %c0_41, %c0_42, %c8], %13 {strides = array<i32>} : memref<1x16x16x36xbf16, #tpu.memory_space<vmem>>, vector<1x16x16x4xbf16>,
    %c0_43 = arith.constant 0 : index
    %c1_44 = arith.constant 1 : index
    %c0_45 = arith.constant 0 : index
    %c0_46 = arith.constant 0 : index
    %15 = vector.load %arg13[%c0_43, %c1_44, %c0_45, %c0_46] : memref<1x18x18x4xbf16, #tpu.memory_space<vmem>>, vector<1x16x16x4xbf16>
    %c0_47 = arith.constant 0 : index
    %c0_48 = arith.constant 0 : index
    %c0_49 = arith.constant 0 : index
    %c12 = arith.constant 12 : index
    %16 = vector.load %arg14[%c0_47, %c0_48, %c0_49, %c12] : memref<1x16x16x36xbf16, #tpu.memory_space<vmem>>, vector<1x16x16x4xbf16>
    tpu.vector_store %arg14[%c0_47, %c0_48, %c0_49, %c12], %15 {strides = array<i32>} : memref<1x16x16x36xbf16, #tpu.memory_space<vmem>>, vector<1x16x16x4xbf16>,
    %c0_50 = arith.constant 0 : index
    %c1_51 = arith.constant 1 : index
    %c1_52 = arith.constant 1 : index
    %c0_53 = arith.constant 0 : index
    %17 = vector.load %arg13[%c0_50, %c1_51, %c1_52, %c0_53] : memref<1x18x18x4xbf16, #tpu.memory_space<vmem>>, vector<1x16x16x4xbf16>
    %c0_54 = arith.constant 0 : index
    %c0_55 = arith.constant 0 : index
    %c0_56 = arith.constant 0 : index
    %c16 = arith.constant 16 : index
    %18 = vector.load %arg14[%c0_54, %c0_55, %c0_56, %c16] : memref<1x16x16x36xbf16, #tpu.memory_space<vmem>>, vector<1x16x16x4xbf16>
    tpu.vector_store %arg14[%c0_54, %c0_55, %c0_56, %c16], %17 {strides = array<i32>} : memref<1x16x16x36xbf16, #tpu.memory_space<vmem>>, vector<1x16x16x4xbf16>,
    %c0_57 = arith.constant 0 : index
    %c1_58 = arith.constant 1 : index
    %c2_59 = arith.constant 2 : index
    %c0_60 = arith.constant 0 : index
    %19 = vector.load %arg13[%c0_57, %c1_58, %c2_59, %c0_60] : memref<1x18x18x4xbf16, #tpu.memory_space<vmem>>, vector<1x16x16x4xbf16>
    %c0_61 = arith.constant 0 : index
    %c0_62 = arith.constant 0 : index
    %c0_63 = arith.constant 0 : index
    %c20 = arith.constant 20 : index
    %20 = vector.load %arg14[%c0_61, %c0_62, %c0_63, %c20] : memref<1x16x16x36xbf16, #tpu.memory_space<vmem>>, vector<1x16x16x4xbf16>
    tpu.vector_store %arg14[%c0_61, %c0_62, %c0_63, %c20], %19 {strides = array<i32>} : memref<1x16x16x36xbf16, #tpu.memory_space<vmem>>, vector<1x16x16x4xbf16>,
    %c0_64 = arith.constant 0 : index
    %c2_65 = arith.constant 2 : index
    %c0_66 = arith.constant 0 : index
    %c0_67 = arith.constant 0 : index
    %21 = vector.load %arg13[%c0_64, %c2_65, %c0_66, %c0_67] : memref<1x18x18x4xbf16, #tpu.memory_space<vmem>>, vector<1x16x16x4xbf16>
    %c0_68 = arith.constant 0 : index
    %c0_69 = arith.constant 0 : index
    %c0_70 = arith.constant 0 : index
    %c24 = arith.constant 24 : index
    %22 = vector.load %arg14[%c0_68, %c0_69, %c0_70, %c24] : memref<1x16x16x36xbf16, #tpu.memory_space<vmem>>, vector<1x16x16x4xbf16>
    tpu.vector_store %arg14[%c0_68, %c0_69, %c0_70, %c24], %21 {strides = array<i32>} : memref<1x16x16x36xbf16, #tpu.memory_space<vmem>>, vector<1x16x16x4xbf16>,
    %c0_71 = arith.constant 0 : index
    %c2_72 = arith.constant 2 : index
    %c1_73 = arith.constant 1 : index
    %c0_74 = arith.constant 0 : index
    %23 = vector.load %arg13[%c0_71, %c2_72, %c1_73, %c0_74] : memref<1x18x18x4xbf16, #tpu.memory_space<vmem>>, vector<1x16x16x4xbf16>
    %c0_75 = arith.constant 0 : index
    %c0_76 = arith.constant 0 : index
    %c0_77 = arith.constant 0 : index
    %c28 = arith.constant 28 : index
    %24 = vector.load %arg14[%c0_75, %c0_76, %c0_77, %c28] : memref<1x16x16x36xbf16, #tpu.memory_space<vmem>>, vector<1x16x16x4xbf16>
    tpu.vector_store %arg14[%c0_75, %c0_76, %c0_77, %c28], %23 {strides = array<i32>} : memref<1x16x16x36xbf16, #tpu.memory_space<vmem>>, vector<1x16x16x4xbf16>,
    %c0_78 = arith.constant 0 : index
    %c2_79 = arith.constant 2 : index
    %c2_80 = arith.constant 2 : index
    %c0_81 = arith.constant 0 : index
    %25 = vector.load %arg13[%c0_78, %c2_79, %c2_80, %c0_81] : memref<1x18x18x4xbf16, #tpu.memory_space<vmem>>, vector<1x16x16x4xbf16>
    %c0_82 = arith.constant 0 : index
    %c0_83 = arith.constant 0 : index
    %c0_84 = arith.constant 0 : index
    %c32 = arith.constant 32 : index
    %26 = vector.load %arg14[%c0_82, %c0_83, %c0_84, %c32] : memref<1x16x16x36xbf16, #tpu.memory_space<vmem>>, vector<1x16x16x4xbf16>
    tpu.vector_store %arg14[%c0_82, %c0_83, %c0_84, %c32], %25 {strides = array<i32>} : memref<1x16x16x36xbf16, #tpu.memory_space<vmem>>, vector<1x16x16x4xbf16>,
    %c0_85 = arith.constant 0 : index
    %c0_86 = arith.constant 0 : index
    %c0_87 = arith.constant 0 : index
    %c0_88 = arith.constant 0 : index
    %27 = vector.load %arg14[%c0_85, %c0_86, %c0_87, %c0_88] : memref<1x16x16x36xbf16, #tpu.memory_space<vmem>>, vector<1x16x16x36xbf16>
    %28 = vector.shape_cast %27 : vector<1x16x16x36xbf16> to vector<256x36xbf16>
    %c0_89 = arith.constant 0 : index
    %c0_90 = arith.constant 0 : index
    %29 = vector.load %arg2[%c0_89, %c0_90] : memref<36x4xbf16, #tpu.memory_space<vmem>>, vector<36x4xbf16>
    %cst_91 = arith.constant dense<0.000000e+00> : vector<256x4xf32>
    %30 = tpu.matmul %28, %29, %cst_91 {dimension_numbers = #tpu.dot_dimension_numbers<[1], [0], [0], [1], [0, 0, 1, 1], [], []>} : vector<256x36xbf16>, vector<36x4xbf16>, vector<256x4xf32> -> vector<256x4xf32>
    %c0_92 = arith.constant 0 : index
    %c0_93 = arith.constant 0 : index
    %31 = vector.load %arg3[%c0_92, %c0_93] : memref<1x4xf32, #tpu.memory_space<vmem>>, vector<1x4xf32>
    %32 = vector.broadcast %31 : vector<1x4xf32> to vector<256x4xf32>
    %33 = arith.mulf %30, %32 : vector<256x4xf32>
    %c0_94 = arith.constant 0 : index
    %c0_95 = arith.constant 0 : index
    %34 = vector.load %arg4[%c0_94, %c0_95] : memref<1x4xf32, #tpu.memory_space<vmem>>, vector<1x4xf32>
    %35 = vector.broadcast %34 : vector<1x4xf32> to vector<256x4xf32>
    %36 = arith.addf %33, %35 : vector<256x4xf32>
    %cst_96 = arith.constant 0.000000e+00 : f32
    %37 = vector.broadcast %cst_96 : f32 to vector<256x4xf32>
    %38 = arith.maximumf %36, %37 : vector<256x4xf32>
    %39 = vector.shape_cast %38 : vector<256x4xf32> to vector<1x16x16x4xf32>
    %40 = arith.truncf %39 : vector<1x16x16x4xf32> to vector<1x16x16x4xbf16>
    %c0_97 = arith.constant 0 : index
    %c1_98 = arith.constant 1 : index
    %c1_99 = arith.constant 1 : index
    %c0_100 = arith.constant 0 : index
    %41 = vector.load %arg13[%c0_97, %c1_98, %c1_99, %c0_100] : memref<1x18x18x4xbf16, #tpu.memory_space<vmem>>, vector<1x16x16x4xbf16>
    tpu.vector_store %arg13[%c0_97, %c1_98, %c1_99, %c0_100], %40 {strides = array<i32>} : memref<1x18x18x4xbf16, #tpu.memory_space<vmem>>, vector<1x16x16x4xbf16>,
    %c0_101 = arith.constant 0 : index
    %c0_102 = arith.constant 0 : index
    %c0_103 = arith.constant 0 : index
    %c0_104 = arith.constant 0 : index
    %42 = vector.load %arg13[%c0_101, %c0_102, %c0_103, %c0_104] : memref<1x18x18x4xbf16, #tpu.memory_space<vmem>>, vector<1x16x16x4xbf16>
    %c0_105 = arith.constant 0 : index
    %c0_106 = arith.constant 0 : index
    %c0_107 = arith.constant 0 : index
    %c0_108 = arith.constant 0 : index
    %43 = vector.load %arg14[%c0_105, %c0_106, %c0_107, %c0_108] : memref<1x16x16x36xbf16, #tpu.memory_space<vmem>>, vector<1x16x16x4xbf16>
    tpu.vector_store %arg14[%c0_105, %c0_106, %c0_107, %c0_108], %42 {strides = array<i32>} : memref<1x16x16x36xbf16, #tpu.memory_space<vmem>>, vector<1x16x16x4xbf16>,
    %c0_109 = arith.constant 0 : index
    %c0_110 = arith.constant 0 : index
    %c1_111 = arith.constant 1 : index
    %c0_112 = arith.constant 0 : index
    %44 = vector.load %arg13[%c0_109, %c0_110, %c1_111, %c0_112] : memref<1x18x18x4xbf16, #tpu.memory_space<vmem>>, vector<1x16x16x4xbf16>
    %c0_113 = arith.constant 0 : index
    %c0_114 = arith.constant 0 : index
    %c0_115 = arith.constant 0 : index
    %c4_116 = arith.constant 4 : index
    %45 = vector.load %arg14[%c0_113, %c0_114, %c0_115, %c4_116] : memref<1x16x16x36xbf16, #tpu.memory_space<vmem>>, vector<1x16x16x4xbf16>
    tpu.vector_store %arg14[%c0_113, %c0_114, %c0_115, %c4_116], %44 {strides = array<i32>} : memref<1x16x16x36xbf16, #tpu.memory_space<vmem>>, vector<1x16x16x4xbf16>,
    %c0_117 = arith.constant 0 : index
    %c0_118 = arith.constant 0 : index
    %c2_119 = arith.constant 2 : index
    %c0_120 = arith.constant 0 : index
    %46 = vector.load %arg13[%c0_117, %c0_118, %c2_119, %c0_120] : memref<1x18x18x4xbf16, #tpu.memory_space<vmem>>, vector<1x16x16x4xbf16>
    %c0_121 = arith.constant 0 : index
    %c0_122 = arith.constant 0 : index
    %c0_123 = arith.constant 0 : index
    %c8_124 = arith.constant 8 : index
    %47 = vector.load %arg14[%c0_121, %c0_122, %c0_123, %c8_124] : memref<1x16x16x36xbf16, #tpu.memory_space<vmem>>, vector<1x16x16x4xbf16>
    tpu.vector_store %arg14[%c0_121, %c0_122, %c0_123, %c8_124], %46 {strides = array<i32>} : memref<1x16x16x36xbf16, #tpu.memory_space<vmem>>, vector<1x16x16x4xbf16>,
    %c0_125 = arith.constant 0 : index
    %c1_126 = arith.constant 1 : index
    %c0_127 = arith.constant 0 : index
    %c0_128 = arith.constant 0 : index
    %48 = vector.load %arg13[%c0_125, %c1_126, %c0_127, %c0_128] : memref<1x18x18x4xbf16, #tpu.memory_space<vmem>>, vector<1x16x16x4xbf16>
    %c0_129 = arith.constant 0 : index
    %c0_130 = arith.constant 0 : index
    %c0_131 = arith.constant 0 : index
    %c12_132 = arith.constant 12 : index
    %49 = vector.load %arg14[%c0_129, %c0_130, %c0_131, %c12_132] : memref<1x16x16x36xbf16, #tpu.memory_space<vmem>>, vector<1x16x16x4xbf16>
    tpu.vector_store %arg14[%c0_129, %c0_130, %c0_131, %c12_132], %48 {strides = array<i32>} : memref<1x16x16x36xbf16, #tpu.memory_space<vmem>>, vector<1x16x16x4xbf16>,
    %c0_133 = arith.constant 0 : index
    %c1_134 = arith.constant 1 : index
    %c1_135 = arith.constant 1 : index
    %c0_136 = arith.constant 0 : index
    %50 = vector.load %arg13[%c0_133, %c1_134, %c1_135, %c0_136] : memref<1x18x18x4xbf16, #tpu.memory_space<vmem>>, vector<1x16x16x4xbf16>
    %c0_137 = arith.constant 0 : index
    %c0_138 = arith.constant 0 : index
    %c0_139 = arith.constant 0 : index
    %c16_140 = arith.constant 16 : index
    %51 = vector.load %arg14[%c0_137, %c0_138, %c0_139, %c16_140] : memref<1x16x16x36xbf16, #tpu.memory_space<vmem>>, vector<1x16x16x4xbf16>
    tpu.vector_store %arg14[%c0_137, %c0_138, %c0_139, %c16_140], %50 {strides = array<i32>} : memref<1x16x16x36xbf16, #tpu.memory_space<vmem>>, vector<1x16x16x4xbf16>,
    %c0_141 = arith.constant 0 : index
    %c1_142 = arith.constant 1 : index
    %c2_143 = arith.constant 2 : index
    %c0_144 = arith.constant 0 : index
    %52 = vector.load %arg13[%c0_141, %c1_142, %c2_143, %c0_144] : memref<1x18x18x4xbf16, #tpu.memory_space<vmem>>, vector<1x16x16x4xbf16>
    %c0_145 = arith.constant 0 : index
    %c0_146 = arith.constant 0 : index
    %c0_147 = arith.constant 0 : index
    %c20_148 = arith.constant 20 : index
    %53 = vector.load %arg14[%c0_145, %c0_146, %c0_147, %c20_148] : memref<1x16x16x36xbf16, #tpu.memory_space<vmem>>, vector<1x16x16x4xbf16>
    tpu.vector_store %arg14[%c0_145, %c0_146, %c0_147, %c20_148], %52 {strides = array<i32>} : memref<1x16x16x36xbf16, #tpu.memory_space<vmem>>, vector<1x16x16x4xbf16>,
    %c0_149 = arith.constant 0 : index
    %c2_150 = arith.constant 2 : index
    %c0_151 = arith.constant 0 : index
    %c0_152 = arith.constant 0 : index
    %54 = vector.load %arg13[%c0_149, %c2_150, %c0_151, %c0_152] : memref<1x18x18x4xbf16, #tpu.memory_space<vmem>>, vector<1x16x16x4xbf16>
    %c0_153 = arith.constant 0 : index
    %c0_154 = arith.constant 0 : index
    %c0_155 = arith.constant 0 : index
    %c24_156 = arith.constant 24 : index
    %55 = vector.load %arg14[%c0_153, %c0_154, %c0_155, %c24_156] : memref<1x16x16x36xbf16, #tpu.memory_space<vmem>>, vector<1x16x16x4xbf16>
    tpu.vector_store %arg14[%c0_153, %c0_154, %c0_155, %c24_156], %54 {strides = array<i32>} : memref<1x16x16x36xbf16, #tpu.memory_space<vmem>>, vector<1x16x16x4xbf16>,
    %c0_157 = arith.constant 0 : index
    %c2_158 = arith.constant 2 : index
    %c1_159 = arith.constant 1 : index
    %c0_160 = arith.constant 0 : index
    %56 = vector.load %arg13[%c0_157, %c2_158, %c1_159, %c0_160] : memref<1x18x18x4xbf16, #tpu.memory_space<vmem>>, vector<1x16x16x4xbf16>
    %c0_161 = arith.constant 0 : index
    %c0_162 = arith.constant 0 : index
    %c0_163 = arith.constant 0 : index
    %c28_164 = arith.constant 28 : index
    %57 = vector.load %arg14[%c0_161, %c0_162, %c0_163, %c28_164] : memref<1x16x16x36xbf16, #tpu.memory_space<vmem>>, vector<1x16x16x4xbf16>
    tpu.vector_store %arg14[%c0_161, %c0_162, %c0_163, %c28_164], %56 {strides = array<i32>} : memref<1x16x16x36xbf16, #tpu.memory_space<vmem>>, vector<1x16x16x4xbf16>,
    %c0_165 = arith.constant 0 : index
    %c2_166 = arith.constant 2 : index
    %c2_167 = arith.constant 2 : index
    %c0_168 = arith.constant 0 : index
    %58 = vector.load %arg13[%c0_165, %c2_166, %c2_167, %c0_168] : memref<1x18x18x4xbf16, #tpu.memory_space<vmem>>, vector<1x16x16x4xbf16>
    %c0_169 = arith.constant 0 : index
    %c0_170 = arith.constant 0 : index
    %c0_171 = arith.constant 0 : index
    %c32_172 = arith.constant 32 : index
    %59 = vector.load %arg14[%c0_169, %c0_170, %c0_171, %c32_172] : memref<1x16x16x36xbf16, #tpu.memory_space<vmem>>, vector<1x16x16x4xbf16>
    tpu.vector_store %arg14[%c0_169, %c0_170, %c0_171, %c32_172], %58 {strides = array<i32>} : memref<1x16x16x36xbf16, #tpu.memory_space<vmem>>, vector<1x16x16x4xbf16>,
    %c0_173 = arith.constant 0 : index
    %c0_174 = arith.constant 0 : index
    %c0_175 = arith.constant 0 : index
    %c0_176 = arith.constant 0 : index
    %60 = vector.load %arg14[%c0_173, %c0_174, %c0_175, %c0_176] : memref<1x16x16x36xbf16, #tpu.memory_space<vmem>>, vector<1x16x16x36xbf16>
    %61 = vector.shape_cast %60 : vector<1x16x16x36xbf16> to vector<256x36xbf16>
    %c0_177 = arith.constant 0 : index
    %c0_178 = arith.constant 0 : index
    %62 = vector.load %arg5[%c0_177, %c0_178] : memref<36x4xbf16, #tpu.memory_space<vmem>>, vector<36x4xbf16>
    %cst_179 = arith.constant dense<0.000000e+00> : vector<256x4xf32>
    %63 = tpu.matmul %61, %62, %cst_179 {dimension_numbers = #tpu.dot_dimension_numbers<[1], [0], [0], [1], [0, 0, 1, 1], [], []>} : vector<256x36xbf16>, vector<36x4xbf16>, vector<256x4xf32> -> vector<256x4xf32>
    %c0_180 = arith.constant 0 : index
    %c0_181 = arith.constant 0 : index
    %64 = vector.load %arg6[%c0_180, %c0_181] : memref<1x4xf32, #tpu.memory_space<vmem>>, vector<1x4xf32>
    %65 = vector.broadcast %64 : vector<1x4xf32> to vector<256x4xf32>
    %66 = arith.mulf %63, %65 : vector<256x4xf32>
    %c0_182 = arith.constant 0 : index
    %c0_183 = arith.constant 0 : index
    %67 = vector.load %arg7[%c0_182, %c0_183] : memref<1x4xf32, #tpu.memory_space<vmem>>, vector<1x4xf32>
    %68 = vector.broadcast %67 : vector<1x4xf32> to vector<256x4xf32>
    %69 = arith.addf %66, %68 : vector<256x4xf32>
    %70 = vector.shape_cast %69 : vector<256x4xf32> to vector<1x256x4xf32>
    %cst_184 = arith.constant dense<0.000000e+00> : vector<1x4xf32>
    %71 = vector.multi_reduction <add>, %70, %cst_184 [1] : vector<1x256x4xf32> to vector<1x4xf32>
    %cst_185 = arith.constant 2.560000e+02 : f32
    %72 = vector.broadcast %cst_185 : f32 to vector<1x4xf32>
    %73 = arith.divf %71, %72 : vector<1x4xf32>
    %c0_186 = arith.constant 0 : index
    %c0_187 = arith.constant 0 : index
    %74 = vector.load %arg8[%c0_186, %c0_187] : memref<4x8xf32, #tpu.memory_space<vmem>>, vector<4x8xf32>
    %cst_188 = arith.constant dense<0.000000e+00> : vector<1x8xf32>
    %75 = tpu.matmul %73, %74, %cst_188 {dimension_numbers = #tpu.dot_dimension_numbers<[1], [0], [0], [1], [0, 0, 1, 1], [], []>} : vector<1x4xf32>, vector<4x8xf32>, vector<1x8xf32> -> vector<1x8xf32>
    %c0_189 = arith.constant 0 : index
    %c0_190 = arith.constant 0 : index
    %76 = vector.load %arg9[%c0_189, %c0_190] : memref<1x8xf32, #tpu.memory_space<vmem>>, vector<1x8xf32>
    %77 = arith.addf %75, %76 : vector<1x8xf32>
    %cst_191 = arith.constant 0.000000e+00 : f32
    %78 = vector.broadcast %cst_191 : f32 to vector<1x8xf32>
    %79 = arith.maximumf %77, %78 : vector<1x8xf32>
    %c0_192 = arith.constant 0 : index
    %c0_193 = arith.constant 0 : index
    %80 = vector.load %arg10[%c0_192, %c0_193] : memref<8x8xf32, #tpu.memory_space<vmem>>, vector<8x8xf32>
    %cst_194 = arith.constant dense<0.000000e+00> : vector<1x8xf32>
    %81 = tpu.matmul %79, %80, %cst_194 {dimension_numbers = #tpu.dot_dimension_numbers<[1], [0], [0], [1], [0, 0, 1, 1], [], []>} : vector<1x8xf32>, vector<8x8xf32>, vector<1x8xf32> -> vector<1x8xf32>
    %c0_195 = arith.constant 0 : index
    %c0_196 = arith.constant 0 : index
    %82 = vector.load %arg11[%c0_195, %c0_196] : memref<1x8xf32, #tpu.memory_space<vmem>>, vector<1x8xf32>
    %83 = arith.addf %81, %82 : vector<1x8xf32>
    %84 = vector.extract_strided_slice %83 {offsets = [0, 0], sizes = [1, 4], strides = [1, 1]} : vector<1x8xf32> to vector<1x4xf32>
    %85 = arith.negf %84 : vector<1x4xf32>
    %86 = math.exp %85 : vector<1x4xf32>
    %cst_197 = arith.constant 1.000000e+00 : f32
    %87 = vector.broadcast %cst_197 : f32 to vector<1x4xf32>
    %88 = arith.addf %87, %86 : vector<1x4xf32>
    %89 = arith.divf %87, %88 : vector<1x4xf32>
    %90 = vector.shape_cast %89 : vector<1x4xf32> to vector<1x1x4xf32>
    %91 = vector.extract_strided_slice %83 {offsets = [0, 4], sizes = [1, 4], strides = [1, 1]} : vector<1x8xf32> to vector<1x4xf32>
    %92 = vector.shape_cast %91 : vector<1x4xf32> to vector<1x1x4xf32>
    %93 = vector.shape_cast %6 : vector<1x16x16x4xf32> to vector<1x256x4xf32>
    %94 = vector.broadcast %90 : vector<1x1x4xf32> to vector<1x256x4xf32>
    %95 = arith.mulf %94, %70 : vector<1x256x4xf32>
    %96 = vector.broadcast %92 : vector<1x1x4xf32> to vector<1x256x4xf32>
    %97 = arith.addf %95, %96 : vector<1x256x4xf32>
    %98 = arith.addf %97, %93 : vector<1x256x4xf32>
    %cst_198 = arith.constant 0.000000e+00 : f32
    %99 = vector.broadcast %cst_198 : f32 to vector<1x256x4xf32>
    %100 = arith.maximumf %98, %99 : vector<1x256x4xf32>
    %101 = vector.shape_cast %100 : vector<1x256x4xf32> to vector<1x16x16x4xf32>
    %c0_199 = arith.constant 0 : index
    %c0_200 = arith.constant 0 : index
    %c0_201 = arith.constant 0 : index
    %c0_202 = arith.constant 0 : index
    %102 = vector.load %arg12[%c0_199, %c0_200, %c0_201, %c0_202] : memref<1x16x16x4xf32, #tpu.memory_space<vmem>>, vector<1x16x16x4xf32>
    tpu.vector_store %arg12[%c0_199, %c0_200, %c0_201, %c0_202], %101 {strides = array<i32>} : memref<1x16x16x4xf32, #tpu.memory_space<vmem>>, vector<1x16x16x4xf32>,
    return
  }
  func.func @transform_0(%arg0: i32) -> (i32, i32, i32, i32) {
    %c0_i32 = arith.constant 0 : i32
    %c0_i32_0 = arith.constant 0 : i32
    %c0_i32_1 = arith.constant 0 : i32
    %c0_i32_2 = arith.constant 0 : i32
    return %arg0, %c0_i32, %c0_i32_0, %c0_i32_1 : i32, i32, i32, i32
  }
  func.func @transform_1(%arg0: i32) -> (i32, i32) {
    %c0_i32 = arith.constant 0 : i32
    %c0_i32_0 = arith.constant 0 : i32
    %c0_i32_1 = arith.constant 0 : i32
    return %c0_i32, %c0_i32_0 : i32, i32
  }
  func.func @transform_2(%arg0: i32) -> (i32, i32) {
    %c0_i32 = arith.constant 0 : i32
    %c0_i32_0 = arith.constant 0 : i32
    %c0_i32_1 = arith.constant 0 : i32
    return %c0_i32, %c0_i32_0 : i32, i32
  }
  func.func @transform_3(%arg0: i32) -> (i32, i32) {
    %c0_i32 = arith.constant 0 : i32
    %c0_i32_0 = arith.constant 0 : i32
    %c0_i32_1 = arith.constant 0 : i32
    return %c0_i32, %c0_i32_0 : i32, i32
  }
  func.func @transform_4(%arg0: i32) -> (i32, i32) {
    %c0_i32 = arith.constant 0 : i32
    %c0_i32_0 = arith.constant 0 : i32
    %c0_i32_1 = arith.constant 0 : i32
    return %c0_i32, %c0_i32_0 : i32, i32
  }
  func.func @transform_5(%arg0: i32) -> (i32, i32) {
    %c0_i32 = arith.constant 0 : i32
    %c0_i32_0 = arith.constant 0 : i32
    %c0_i32_1 = arith.constant 0 : i32
    return %c0_i32, %c0_i32_0 : i32, i32
  }
  func.func @transform_6(%arg0: i32) -> (i32, i32) {
    %c0_i32 = arith.constant 0 : i32
    %c0_i32_0 = arith.constant 0 : i32
    %c0_i32_1 = arith.constant 0 : i32
    return %c0_i32, %c0_i32_0 : i32, i32
  }
  func.func @transform_7(%arg0: i32) -> (i32, i32) {
    %c0_i32 = arith.constant 0 : i32
    %c0_i32_0 = arith.constant 0 : i32
    %c0_i32_1 = arith.constant 0 : i32
    return %c0_i32, %c0_i32_0 : i32, i32
  }
  func.func @transform_8(%arg0: i32) -> (i32, i32) {
    %c0_i32 = arith.constant 0 : i32
    %c0_i32_0 = arith.constant 0 : i32
    %c0_i32_1 = arith.constant 0 : i32
    return %c0_i32, %c0_i32_0 : i32, i32
  }
  func.func @transform_9(%arg0: i32) -> (i32, i32) {
    %c0_i32 = arith.constant 0 : i32
    %c0_i32_0 = arith.constant 0 : i32
    %c0_i32_1 = arith.constant 0 : i32
    return %c0_i32, %c0_i32_0 : i32, i32
  }
  func.func @transform_10(%arg0: i32) -> (i32, i32) {
    %c0_i32 = arith.constant 0 : i32
    %c0_i32_0 = arith.constant 0 : i32
    %c0_i32_1 = arith.constant 0 : i32
    return %c0_i32, %c0_i32_0 : i32, i32
  }
  func.func @transform_11(%arg0: i32) -> (i32, i32, i32, i32) {
    %c0_i32 = arith.constant 0 : i32
    %c0_i32_0 = arith.constant 0 : i32
    %c0_i32_1 = arith.constant 0 : i32
    %c0_i32_2 = arith.constant 0 : i32
    return %arg0, %c0_i32, %c0_i32_0, %c0_i32_1 : i32, i32, i32, i32
  }
}

</mosaic_0001>

<bundles_post_ra>
// kernel: tpu_custom_call.1
= control target key start
LH: loop header
LB: loop body
LE: loop exit
PB: predicated region body
PF: predicated region fallthrough
CT: control target
= control target key end

     0   :  { %s12763_s0 = inlined_call_operand.hbm [shape: f32[2,16,16,4], index: 0, kind: input, shape index: {}]   ;;  %s12764_s1 = inlined_call_operand.hbm [shape: bf16[36,4], index: 1, kind: input, shape index: {}]   ;;  %s12765_s2 = inlined_call_operand.hbm [shape: f32[1,4], index: 2, kind: input, shape index: {}]   ;;  %s12766_s3 = inlined_call_operand.hbm [shape: f32[1,4], index: 3, kind: input, shape index: {}]   ;;  %s12767_s4 = inlined_call_operand.hbm [shape: bf16[36,4], index: 4, kind: input, shape index: {}]   ;;  %s12768_s5 = inlined_call_operand.hbm [shape: f32[1,4], index: 5, kind: input, shape index: {}]   ;;  %s12769_s6 = inlined_call_operand.hbm [shape: f32[1,4], index: 6, kind: input, shape index: {}]   ;;  %s12770_s7 = inlined_call_operand.hbm [shape: f32[4,8], index: 7, kind: input, shape index: {}]   ;;  %s12771_s8 = inlined_call_operand.hbm [shape: f32[1,8], index: 8, kind: input, shape index: {}]   ;;  %s12772_s9 = inlined_call_operand.hbm [shape: f32[8,8], index: 9, kind: input, shape index: {}]   ;;  %s12773_s10 = inlined_call_operand.hbm [shape: f32[1,8], index: 10, kind: input, shape index: {}]   ;;  %s12774_s11 = inlined_call_operand.hbm [shape: f32[2,16,16,4], index: 11, kind: output, shape index: {}]  }
   0x1   :  { %12789 = sst [smem:[#allocation31_spill]] %s12763_s0 }
   0x2   :  { %12790 = sst [smem:[#allocation32_spill]] %s12764_s1 }
   0x3   :  { %12791 = sst [smem:[#allocation33_spill]] %s12774_s11 }
   0x4   :  { %16 = vsyncpa [#allocation5], 0 }
   0x5   :  { %18 = vsyncpa [#allocation5 + $0x1], 0 }
   0x6   :  { %19 = vsyncpa [#allocation8], 0 }
   0x7   :  { %20 = vsyncpa [#allocation11], 0 }
   0x8   :  { %21 = vsyncpa [#allocation14], 0 }
   0x9   :  { %22 = vsyncpa [#allocation17], 0 }
   0xa   :  { %23 = vsyncpa [#allocation20], 0 }
   0xb   :  { %24 = vsyncpa [#allocation6], 0 }
   0xc   :  { %26 = vsyncpa [#allocation6 + $0x1], 0  ;;  %s10344_s17 = smov 0   ;;  %s10346_s18 = smov 0  }
   0xd   :  { %s10348_s19 = smov 0   ;;  %s10350_s20 = smov 0  }
   0xe LB: > { %s10255_s21 = smov [#allocation7]   ;;  %s10365_s23 = sadd.s32 4294967295, %s10253_s20   ;;  %s10253_s20 = sphi %s10350_s20, %s13031_s20   ;;  %s10249_s19 = sphi %s10348_s19, %s13030_s19   ;;  %s10245_s18 = sphi %s10346_s18, %s13029_s18   ;;  %s10241_s17 = sphi %s10344_s17, %s13028_s17  }
   0xf   : > { %s311_s22 = sshll.u32 %s10255_s21, 4  ;;  %p8348_p0 = scmp.ge.s32.totalorder %s10253_s20, 1  ;;  %s10370_s22 = int_to_ptr.vmem [resolvable:$true] %s311_s22 }
  0x10   : > { %p12779_p1 = scmp.eq.s32.totalorder %s10365_s23, 0  ;;  %p299_p2 = scmp.lt.s32.totalorder %s10253_s20, 3 }
  0x11   : > { %s10256_s25 = smov [#allocation10]   ;;  %s10257_s28 = smov [#allocation13]  }
  0x12   : > { %p10372_p3 = pnand %p8348_p0, %p299_p2  ;;  %s336_s26 = sshll.u32 %s10256_s25, 4  ;;  %s10385_s26 = int_to_ptr.vmem [resolvable:$true] %s336_s26 }
  0x13   : > { %s360_s29 = sshll.u32 %s10257_s28, 4  ;;  %s12795_s1 = sld [smem:[#allocation32_spill]]  ;;  %s10387_s29 = int_to_ptr.vmem [resolvable:$true] %s360_s29 }
  0x14   : > { %s12792_s24 = scalar_select %p10372_p3, 1, 0 }
  0x15   : > { %p9211_p5 = pneg %p10372_p3 }
  0x16   : > { %12793 = sst [smem:[#allocation30_spill]] %s12792_s24 }
  0x17   : > { %p10381_p6 = pnand %p9211_p5, %p12779_p1 }
  0x19   : > { %s9857_s13 = scalar_lea.hbm %s12795_s1, 320  ;;  %p10397_p8 = pneg %p10381_p6 }
  0x1a   : > { %p9858_p7 = scmp.ne.s32.totalorder %s12795_s1, %s9857_s13  ;;  %p9864_p11 = scmp.lt.u32.totalorder %s9857_s13, %s12795_s1 }
  0x1c   : > { %p9860_p9 = pnand %p10397_p8, %p9858_p7 }
  0x1e   : > { %p9861_p10 = pneg %p9860_p9 }
  0x20   : > { %p9866_p12 = pnand %p9864_p11, %p9861_p10 }
  0x22   : > { %9869 = shalt.err (!%p9866_p12)
}
  0x23   : > { %s9870_s28 = scalar_lea.vmem %s10370_s22, 320  ;;  %p9878_p5 = scmp.lt.s32.totalorder %s10370_s22, %s10370_s22 }
  0x24   : > { %p9871_p13 = scmp.ne.s32.totalorder %s10370_s22, %s9870_s28  ;;  %p9879_p4 = scmp.lt.s32.totalorder %s9870_s28, %s9870_s28 }
  0x26   : > { %p9873_p0 = pnand %p9871_p13, %p10397_p8  ;;  %p9880_p7 = por %p9879_p4, %p9878_p5 }
  0x28   : > { %p9874_p2 = pneg %p9873_p0 }
  0x2a   : > { %p9881_p9 = pnand %p9880_p7, %p9874_p2 }
  0x2c   : > { %9884 = shalt.err (!%p9881_p9)
}
  0x2d   : > { %s12778_s30 = smov 64   ;;  %s10259_s12 = smov 4  }
  0x2e   : > { %9214 = dma.hbm_to_vmem [thread:$0]  (!%p10381_p6), %s12795_s1, 320, %s10370_s22, [#allocation8], %s12778_s30, %s12778_s30, %s10259_s12  }
  0x2f   : > { %s9885_s25 = scalar_lea.hbm %s12766_s3, 16 }
  0x30   : > { %p9886_p4 = scmp.ne.s32.totalorder %s12766_s3, %s9885_s25  ;;  %p9892_p12 = scmp.lt.u32.totalorder %s9885_s25, %s12766_s3 }
  0x32   : > { %p9888_p10 = pnand %p9886_p4, %p10397_p8 }
  0x34   : > { %p9889_p11 = pneg %p9888_p10 }
  0x36   : > { %p9894_p13 = pnand %p9892_p12, %p9889_p11 }
  0x38   : > { %9897 = shalt.err (!%p9894_p13)
}
  0x39   : > { %s9898_s22 = scalar_lea.vmem %s10385_s26, 16  ;;  %s9905_s11 = scalar_lea.vmem %s10385_s26, 32 }
  0x3a   : > { %p9899_p0 = scmp.ne.s32.totalorder %s10385_s26, %s9898_s22  ;;  %p9906_p7 = scmp.lt.s32.totalorder %s10385_s26, %s10385_s26 }
  0x3b   : > { %p9907_p9 = scmp.lt.s32.totalorder %s9905_s11, %s9898_s22 }
  0x3c   : > { %p9901_p2 = pnand %p9899_p0, %p10397_p8 }
  0x3d   : > { %p9908_p4 = por %p9907_p9, %p9906_p7 }
  0x3e   : > { %p9902_p5 = pneg %p9901_p2 }
  0x40   : > { %p9909_p10 = pnand %p9908_p4, %p9902_p5 }
  0x42   : > { %9912 = shalt.err (!%p9909_p10)
}
  0x43   : > { %9220 = dma.hbm_to_vmem [thread:$0]  (!%p10381_p6), %s12766_s3, 16, %s10385_s26, [#allocation11]  }
  0x44   : > { %s9913_s15 = scalar_lea.hbm %s12768_s5, 16 }
  0x45   : > { %p9914_p11 = scmp.ne.s32.totalorder %s12768_s5, %s9913_s15  ;;  %p9920_p0 = scmp.lt.u32.totalorder %s9913_s15, %s12768_s5 }
  0x47   : > { %p9916_p12 = pnand %p9914_p11, %p10397_p8 }
  0x49   : > { %p9917_p13 = pneg %p9916_p12 }
  0x4b   : > { %p9922_p2 = pnand %p9920_p0, %p9917_p13 }
  0x4d   : > { %9925 = shalt.err (!%p9922_p2)
}
  0x4e   : > { %s9926_s26 = scalar_lea.vmem %s10387_s29, 16  ;;  %s9933_s11 = scalar_lea.vmem %s10387_s29, 32 }
  0x4f   : > { %p9927_p5 = scmp.ne.s32.totalorder %s10387_s29, %s9926_s26  ;;  %p9934_p4 = scmp.lt.s32.totalorder %s10387_s29, %s10387_s29 }
  0x50   : > { %p9935_p10 = scmp.lt.s32.totalorder %s9933_s11, %s9926_s26 }
  0x51   : > { %p9929_p7 = pnand %p9927_p5, %p10397_p8 }
  0x52   : > { %p9936_p11 = por %p9935_p10, %p9934_p4 }
  0x53   : > { %p9930_p9 = pneg %p9929_p7 }
  0x55   : > { %p9937_p12 = pnand %p9936_p11, %p9930_p9 }
  0x57   : > { %9940 = shalt.err (!%p9937_p12)
}
  0x58   : > { %9226 = dma.hbm_to_vmem [thread:$0]  (!%p10381_p6), %s12768_s5, 16, %s10387_s29, [#allocation14]  }
  0x59   : > { %s10260_s13 = smov [#allocation16]   ;;  %s10261_s15 = smov [#allocation19]  }
  0x5a   : > { %s382_s14 = sshll.u32 %s10260_s13, 4  ;;  %s404_s21 = sshll.u32 %s10261_s15, 4  ;;  %s383_s14 = int_to_ptr.vmem [resolvable:$true] %s382_s14  ;;  %s405_s21 = int_to_ptr.vmem [resolvable:$true] %s404_s21 }
  0x5b   : > { %s9941_s22 = scalar_lea.hbm %s12770_s7, 64 }
  0x5c   : > { %p9942_p13 = scmp.ne.s32.totalorder %s12770_s7, %s9941_s22  ;;  %p9948_p5 = scmp.lt.u32.totalorder %s9941_s22, %s12770_s7 }
  0x5e   : > { %p9944_p0 = pnand %p9942_p13, %p10397_p8 }
  0x60   : > { %p9945_p2 = pneg %p9944_p0 }
  0x62   : > { %p9950_p7 = pnand %p9948_p5, %p9945_p2 }
  0x64   : > { %9953 = shalt.err (!%p9950_p7)
}
  0x65   : > { %s9954_s29 = scalar_lea.vmem %s383_s14, 64  ;;  %p9962_p11 = scmp.lt.s32.totalorder %s383_s14, %s383_s14 }
  0x66   : > { %p9955_p9 = scmp.ne.s32.totalorder %s383_s14, %s9954_s29  ;;  %p9963_p12 = scmp.lt.s32.totalorder %s9954_s29, %s9954_s29 }
  0x68   : > { %p9957_p4 = pnand %p9955_p9, %p10397_p8  ;;  %p9964_p1 = por %p9963_p12, %p9962_p11 }
  0x6a   : > { %p9958_p10 = pneg %p9957_p4 }
  0x6c   : > { %p9965_p3 = pnand %p9964_p1, %p9958_p10 }
  0x6e   : > { %9968 = shalt.err (!%p9965_p3)
}
  0x6f   : > { %9232 = dma.hbm_to_vmem [thread:$0]  (!%p10381_p6), %s12770_s7, 64, %s383_s14, [#allocation17]  }
  0x70   : > { %s9969_s25 = scalar_lea.hbm %s12772_s9, 128 }
  0x71   : > { %p9970_p13 = scmp.ne.s32.totalorder %s12772_s9, %s9969_s25  ;;  %p9976_p3 = scmp.lt.u32.totalorder %s9969_s25, %s12772_s9 }
  0x73   : > { %p9972_p0 = pnand %p9970_p13, %p10397_p8 }
  0x75   : > { %p9973_p1 = pneg %p9972_p0 }
  0x77   : > { %p9978_p2 = pnand %p9976_p3, %p9973_p1 }
  0x79   : > { %9981 = shalt.err (!%p9978_p2)
}
  0x7a   : > { %s9982_s0 = scalar_lea.vmem %s405_s21, 128  ;;  %p9990_p4 = scmp.lt.s32.totalorder %s405_s21, %s405_s21 }
  0x7b   : > { %p9983_p5 = scmp.ne.s32.totalorder %s405_s21, %s9982_s0  ;;  %p9991_p10 = scmp.lt.s32.totalorder %s9982_s0, %s9982_s0 }
  0x7d   : > { %p9985_p7 = pnand %p9983_p5, %p10397_p8  ;;  %p9992_p11 = por %p9991_p10, %p9990_p4 }
  0x7f   : > { %p9986_p9 = pneg %p9985_p7 }
  0x81   : > { %p9993_p12 = pnand %p9992_p11, %p9986_p9 }
  0x83   : > { %9996 = shalt.err (!%p9993_p12)
}
  0x84   : > { %9238 = dma.hbm_to_vmem [thread:$0]  (!%p10381_p6), %s12772_s9, 128, %s405_s21, [#allocation20]  }
  0x85   : > { %s10262_s24 = smov [#allocation9]   ;;  %s10263_s30 = smov [#allocation12]  }
  0x86   : > { %s325_s13 = sshll.u32 %s10262_s24, 4  ;;  %s346_s15 = sshll.u32 %s10263_s30, 4  ;;  %s326_s13 = int_to_ptr.vmem [resolvable:$true] %s325_s13  ;;  %s347_s15 = int_to_ptr.vmem [resolvable:$true] %s346_s15 }
  0x87   : > { %s9997_s22 = scalar_lea.hbm %s12765_s2, 16 }
  0x88   : > { %p9998_p13 = scmp.ne.s32.totalorder %s12765_s2, %s9997_s22  ;;  %p10004_p3 = scmp.lt.u32.totalorder %s9997_s22, %s12765_s2 }
  0x8a   : > { %p10000_p0 = pnand %p9998_p13, %p10397_p8 }
  0x8c   : > { %p10001_p1 = pneg %p10000_p0 }
  0x8e   : > { %p10006_p2 = pnand %p10004_p3, %p10001_p1 }
  0x90   : > { %10009 = shalt.err (!%p10006_p2)
}
  0x91   : > { %s10010_s21 = scalar_lea.vmem %s326_s13, 16  ;;  %s10017_s29 = scalar_lea.vmem %s326_s13, 32 }
  0x92   : > { %p10011_p5 = scmp.ne.s32.totalorder %s326_s13, %s10010_s21  ;;  %p10018_p4 = scmp.lt.s32.totalorder %s326_s13, %s326_s13 }
  0x93   : > { %p10019_p10 = scmp.lt.s32.totalorder %s10017_s29, %s10010_s21 }
  0x94   : > { %p10013_p7 = pnand %p10011_p5, %p10397_p8 }
  0x95   : > { %p10020_p11 = por %p10019_p10, %p10018_p4 }
  0x96   : > { %p10014_p9 = pneg %p10013_p7 }
  0x98   : > { %p10021_p12 = pnand %p10020_p11, %p10014_p9 }
  0x9a   : > { %10024 = shalt.err (!%p10021_p12)
}
  0x9b   : > { %9217 = dma.hbm_to_vmem [thread:$0]  (!%p10381_p6), %s12765_s2, 16, %s326_s13, [#allocation8]  }
  0x9c   : > { %s10025_s22 = scalar_lea.hbm %s12767_s4, 320 }
  0x9d   : > { %p10026_p13 = scmp.ne.s32.totalorder %s12767_s4, %s10025_s22  ;;  %p10032_p3 = scmp.lt.u32.totalorder %s10025_s22, %s12767_s4 }
  0x9f   : > { %p10028_p0 = pnand %p10026_p13, %p10397_p8 }
  0xa1   : > { %p10029_p1 = pneg %p10028_p0 }
  0xa3   : > { %p10034_p2 = pnand %p10032_p3, %p10029_p1 }
  0xa5   : > { %10037 = shalt.err (!%p10034_p2)
}
  0xa6   : > { %s10038_s21 = scalar_lea.vmem %s347_s15, 320  ;;  %p10046_p4 = scmp.lt.s32.totalorder %s347_s15, %s347_s15 }
  0xa7   : > { %p10039_p5 = scmp.ne.s32.totalorder %s347_s15, %s10038_s21  ;;  %p10047_p10 = scmp.lt.s32.totalorder %s10038_s21, %s10038_s21 }
  0xa9   : > { %p10041_p7 = pnand %p10039_p5, %p10397_p8  ;;  %p10048_p11 = por %p10047_p10, %p10046_p4 }
  0xab   : > { %p10042_p9 = pneg %p10041_p7 }
  0xad   : > { %p10049_p12 = pnand %p10048_p11, %p10042_p9 }
  0xaf   : > { %10052 = shalt.err (!%p10049_p12)
}
  0xb0   : > { %s12797_s13 = smov 64   ;;  %s10264_s30 = smov [#allocation15]  }
  0xb1   : > { %9223 = dma.hbm_to_vmem [thread:$0]  (!%p10381_p6), %s12767_s4, 320, %s347_s15, [#allocation11], %s12797_s13, %s12797_s13, %s10259_s12  }
  0xb2   : > { %s371_s25 = sshll.u32 %s10264_s30, 4  ;;  %s10265_s28 = smov [#allocation18]   ;;  %s372_s25 = int_to_ptr.vmem [resolvable:$true] %s371_s25 }
  0xb3   : > { %s393_s22 = sshll.u32 %s10265_s28, 4  ;;  %s10053_s0 = scalar_lea.hbm %s12769_s6, 16  ;;  %s394_s22 = int_to_ptr.vmem [resolvable:$true] %s393_s22 }
  0xb4   : > { %p10054_p13 = scmp.ne.s32.totalorder %s12769_s6, %s10053_s0  ;;  %p10060_p3 = scmp.lt.u32.totalorder %s10053_s0, %s12769_s6 }
  0xb6   : > { %p10056_p0 = pnand %p10054_p13, %p10397_p8 }
  0xb8   : > { %p10057_p1 = pneg %p10056_p0 }
  0xba   : > { %p10062_p2 = pnand %p10060_p3, %p10057_p1 }
  0xbc   : > { %10065 = shalt.err (!%p10062_p2)
}
  0xbd   : > { %s10066_s12 = scalar_lea.vmem %s372_s25, 16  ;;  %s10073_s15 = scalar_lea.vmem %s372_s25, 32 }
  0xbe   : > { %p10067_p5 = scmp.ne.s32.totalorder %s372_s25, %s10066_s12  ;;  %p10074_p4 = scmp.lt.s32.totalorder %s372_s25, %s372_s25 }
  0xbf   : > { %p10075_p10 = scmp.lt.s32.totalorder %s10073_s15, %s10066_s12 }
  0xc0   : > { %p10069_p7 = pnand %p10067_p5, %p10397_p8 }
  0xc1   : > { %p10076_p11 = por %p10075_p10, %p10074_p4 }
  0xc2   : > { %p10070_p9 = pneg %p10069_p7 }
  0xc4   : > { %p10077_p12 = pnand %p10076_p11, %p10070_p9 }
  0xc6   : > { %10080 = shalt.err (!%p10077_p12)
}
  0xc7   : > { %9229 = dma.hbm_to_vmem [thread:$0]  (!%p10381_p6), %s12769_s6, 16, %s372_s25, [#allocation14]  }
  0xc8   : > { %s10081_s28 = scalar_lea.hbm %s12771_s8, 16 }
  0xc9   : > { %p10082_p13 = scmp.ne.s32.totalorder %s12771_s8, %s10081_s28  ;;  %p10088_p3 = scmp.lt.u32.totalorder %s10081_s28, %s12771_s8 }
  0xcb   : > { %p10084_p0 = pnand %p10082_p13, %p10397_p8 }
  0xcd   : > { %p10085_p1 = pneg %p10084_p0 }
  0xcf   : > { %p10090_p2 = pnand %p10088_p3, %p10085_p1 }
  0xd1   : > { %10093 = shalt.err (!%p10090_p2)
}
  0xd2   : > { %s10094_s21 = scalar_lea.vmem %s394_s22, 16  ;;  %s10101_s25 = scalar_lea.vmem %s394_s22, 32 }
  0xd3   : > { %p10095_p5 = scmp.ne.s32.totalorder %s394_s22, %s10094_s21  ;;  %p10102_p4 = scmp.lt.s32.totalorder %s394_s22, %s394_s22 }
  0xd4   : > { %p10103_p10 = scmp.lt.s32.totalorder %s10101_s25, %s10094_s21 }
  0xd5   : > { %p10097_p7 = pnand %p10095_p5, %p10397_p8 }
  0xd6   : > { %p10104_p11 = por %p10103_p10, %p10102_p4 }
  0xd7   : > { %p10098_p9 = pneg %p10097_p7 }
  0xd9   : > { %p10105_p12 = pnand %p10104_p11, %p10098_p9 }
  0xdb   : > { %10108 = shalt.err (!%p10105_p12)
}
  0xdc   : > { %9235 = dma.hbm_to_vmem [thread:$0]  (!%p10381_p6), %s12771_s8, 16, %s394_s22, [#allocation17]  }
  0xdd   : > { %s10266_s15 = smov [#allocation21]   ;;  %s10109_s30 = scalar_lea.hbm %s12773_s10, 16 }
  0xde   : > { %s415_s13 = sshll.u32 %s10266_s15, 4  ;;  %p10110_p13 = scmp.ne.s32.totalorder %s12773_s10, %s10109_s30  ;;  %s416_s13 = int_to_ptr.vmem [resolvable:$true] %s415_s13 }
  0xdf   : > { %p10116_p3 = scmp.lt.u32.totalorder %s10109_s30, %s12773_s10 }
  0xe0   : > { %p10112_p0 = pnand %p10110_p13, %p10397_p8 }
  0xe2   : > { %p10113_p1 = pneg %p10112_p0 }
  0xe4   : > { %p10118_p2 = pnand %p10116_p3, %p10113_p1 }
  0xe6   : > { %10121 = shalt.err (!%p10118_p2)
}
  0xe7   : > { %s10122_s22 = scalar_lea.vmem %s416_s13, 16  ;;  %s10129_s14 = scalar_lea.vmem %s416_s13, 32 }
  0xe8   : > { %p10123_p5 = scmp.ne.s32.totalorder %s416_s13, %s10122_s22  ;;  %p10130_p4 = scmp.lt.s32.totalorder %s416_s13, %s416_s13 }
  0xe9   : > { %p10131_p10 = scmp.lt.s32.totalorder %s10129_s14, %s10122_s22 }
  0xea   : > { %p10125_p7 = pnand %p10123_p5, %p10397_p8 }
  0xeb   : > { %p10132_p11 = por %p10131_p10, %p10130_p4 }
  0xec   : > { %p10126_p9 = pneg %p10125_p7 }
  0xee   : > { %p10133_p12 = pnand %p10132_p11, %p10126_p9 }
  0xf0   : > { %10136 = shalt.err (!%p10133_p12)
}
  0xf1   : > { %9241 = dma.hbm_to_vmem [thread:$0]  (!%p10381_p6), %s12773_s10, 16, %s416_s13, [#allocation20]  }
  0xf2   : > { %s8347_s16 = sadd.s32 4294967294, %s10253_s20   ;;  %s10600_s27 = sadd.s32 1, %s10253_s20  }
  0xf3   : > { %s36_s29 = ssub.s32 %s10253_s20, %s10600_s27  ;;  %s39_s12 = sadd.s32 1, %s10249_s19 }
  0xf4   : > { %p37_p8 = scmp.eq.s32.totalorder %s36_s29, 0  ;;  %p46_p13 = scmp.ne.s32.totalorder %s10249_s19, %s10245_s18 }
  0xf5   : > { %p47_p0 = scmp.eq.s32.totalorder %s10253_s20, 0  ;;  %p52_p1 = scmp.ne.s32.totalorder %s10245_s18, %s10241_s17 }
  0xf6   : > { %s10611_s15 = scalar_select %p37_p8, %s10249_s19, %s39_s12  }
  0xf7   : > { %p10613_p3 = por %p47_p0, %p46_p13  ;;  %p12799_p2 = scmp.eq.s32.totalorder %s10365_s23, 0 }
  0xf8   : > { %p286_p5 = scmp.eq.s32.totalorder %s10365_s23, 1  ;;  %p292_p7 = scmp.eq.s32.totalorder %s8347_s16, 1 }
  0xf9   : > { %p10619_p6 = por %p12799_p2, %p52_p1  ;;  %p9260_p9 = scmp.lt.s32.totalorder %s10253_s20, 2 }
  0xfa   : > { %s426_s1 = sand.u32 1, %s10249_s19   ;;  %p10626_p4 = por %p286_p5, %p46_p13 }
  0xfb   : > { %p10630_p10 = por %p292_p7, %p52_p1  ;;  %s8360_s26 = sshll.u32 %s426_s1, 8 }
  0xfc   : > { %s12801_s30 = scalar_select %p10626_p4, 1, 0 }
  0xfd   : > { %s12802_s28 = scalar_select %p10630_p10, 1, 0 }
  0xfe   : > { %s8971_s11 = sshll.u32 %s10253_s20, 12  ;;  %s12803_s14 = sld [smem:[#allocation31_spill]] }
  0xff   : > { %s430_s25 = scalar_lea.vmem [#allocation4], %s8360_s26  ;;  %p10644_p11 = pnand %p9260_p9, %p10613_p3 }
 0x100   : > { %s437_s16 = sshll.u32 %s430_s25, 4  ;;  %s10648_s12 = scalar_lea.sflag [#allocation5], %s426_s1  ;;  %s10640_s16 = int_to_ptr.vmem [resolvable:$true] %s437_s16 }
 0x101   : > { %p10139_p8 = pneg %p10644_p11 }
 0x104   : > { %s10638_s21 = scalar_lea.hbm %s12803_s14, %s8971_s11  ;;  %s10142_s24 = scalar_lea.hbm %s12803_s14, 8192 }
 0x105   : > { %s10137_s0 = scalar_lea.hbm %s10638_s21, 4096  ;;  %p10143_p1 = scmp.lt.u32.totalorder %s10638_s21, %s12803_s14 }
 0x106   : > { %p10138_p12 = scmp.ne.s32.totalorder %s10638_s21, %s10137_s0  ;;  %p10144_p3 = scmp.lt.u32.totalorder %s10142_s24, %s10137_s0 }
 0x107   : > { %p10146_p5 = scmp.lt.u32.totalorder %s10137_s0, %s10638_s21 }
 0x108   : > { %p10140_p13 = pnand %p10139_p8, %p10138_p12  ;;  %p10145_p2 = por %p10144_p3, %p10143_p1 }
 0x10a   : > { %p10141_p0 = pneg %p10140_p13  ;;  %p10147_p7 = por %p10146_p5, %p10145_p2 }
 0x10c   : > { %p10148_p9 = pnand %p10147_p7, %p10141_p0 }
 0x10e   : > { %10151 = shalt.err (!%p10148_p9)
}
 0x10f   : > { %s10152_s1 = scalar_lea.vmem %s10640_s16, 4096  ;;  %s10267_s26 = smov [#allocation4]  }
 0x110   : > { %p10153_p12 = scmp.ne.s32.totalorder %s10640_s16, %s10152_s1  ;;  %s10157_s11 = sshll.u32 %s10267_s26, 4  ;;  %s10158_s11 = int_to_ptr.vmem [resolvable:$false] %s10157_s11 }
 0x111   : > { %s10159_s22 = scalar_lea.vmem %s10158_s11, 8192  ;;  %p10160_p4 = scmp.lt.s32.totalorder %s10640_s16, %s10158_s11 }
 0x112   : > { %p10155_p13 = pnand %p10153_p12, %p10139_p8  ;;  %p10161_p1 = scmp.lt.s32.totalorder %s10159_s22, %s10152_s1 }
 0x114   : > { %p10156_p10 = pneg %p10155_p13  ;;  %p10162_p3 = por %p10161_p1, %p10160_p4 }
 0x116   : > { %p10163_p2 = pnand %p10162_p3, %p10156_p10 }
 0x118   : > { %10166 = shalt.err (!%p10163_p2)
}
 0x119   : > { %s10268_s0 = smov 128   ;;  %s10269_s24 = smov 8  }
 0x11a   : > { %9245 = dma.hbm_to_vmem [thread:$0]  (!%p10644_p11), %s10638_s21, 4096, %s10640_s16, %s10648_s12, %s10268_s0, %s10268_s0, %s10269_s24  }
 0x11b   : > { %s12805_s25 = sld [smem:[#allocation30_spill]] }
 0x121   : > { %p12806_p8 = scmp.ne.s32.totalorder %s12805_s25, 0 }
 0x122   : > { %s10679_s26 = sand.u32 (!%p12806_p8), 1, %s10245_s18  }
 0x123   : > { %449 = sbr.rel (%p12806_p8) target bundleno = 2020 (0x7e4), region = 64  ;;  %s8364_s1 = sshll.u32 (!%p12806_p8), %s10679_s26, 8 }
 0x124   : > { %s452_s11 = scalar_lea.sflag (!%p12806_p8), [#allocation5], %s10679_s26  ;;  %s10685_s22 = scalar_lea.vmem (!%p12806_p8), [#allocation4], %s8364_s1 }
 0x12a   : > { %10212 = dma.done.wait (%p10619_p6), %s452_s11, 4096  }
 0x12b   : > { %10214 = vsyncadd (%p10619_p6), %s452_s11, 4294963200  ;;  %p12807_p4 = scmp.eq.s32.totalorder %s10365_s23, 0 }
 0x12d   : > { %10216 = dma.done.wait (%p12807_p4), [#allocation8], 336   ;;  %p12808_p10 = pmov %p12807_p4 }
 0x12e   : > { %p12809_p11 = pmov %p12807_p4 }
 0x12f   : > { %10218 = vsyncadd (%p12808_p10), [#allocation8], 4294966960 }
 0x130   : > { %10220 = dma.done.wait (%p12809_p11), [#allocation11], 336   ;;  %p12810_p0 = pmov %p12807_p4 }
 0x132   : > { %10222 = vsyncadd (%p12810_p0), [#allocation11], 4294966960  ;;  %p12811_p5 = pmov %p12810_p0 }
 0x133   : > { %p12812_p7 = pmov %p12810_p0 }
 0x134   : > { %10224 = dma.done.wait (%p12811_p5), [#allocation14], 32  }
 0x135   : > { %10226 = vsyncadd (%p12812_p7), [#allocation14], 4294967264  ;;  %p12813_p6 = pmov %p12810_p0 }
 0x136   : > { %p12814_p9 = pmov %p12810_p0 }
 0x137   : > { %10228 = dma.done.wait (%p12813_p6), [#allocation17], 80  }
 0x138   : > { %10230 = vsyncadd (%p12814_p9), [#allocation17], 4294967216  ;;  %p12815_p12 = pmov %p12810_p0 }
 0x139   : > { %p12816_p13 = pmov %p12810_p0 }
 0x13a   : > { %10232 = dma.done.wait (%p12815_p12), [#allocation20], 144  }
 0x13b   : > { %10234 = vsyncadd (%p12816_p13), [#allocation20], 4294967152  ;;  %vm12788_vm0 = vcmask 27648   ;;  %vm538_vm1 = vcmask 24576   ;;  %v10270_v0 = vmov 0   ;;  %v657_v4 = vld [vmem:[%s10685_s22] sm:$0xff] }
 0x13c   : > { %536 = vst.msk [vmem:[#allocation2] sm:$0xf] %vm12788_vm0, %v10270_v0  ;;  %537 = vst.msk [vmem:[#allocation2 + $0x4] sm:$0xf] %vm12788_vm0, %v10270_v0  ;;  %vm545_vm2 = vsmask.f32 256  ;;  %v8972_v8 = vpack.c.bf16 %v657_v4, %v657_v4 }
 0x13d   : > { %539 = vst.msk [vmem:[#allocation2 + $0x8] sm:$0x1] %vm538_vm1, %v10270_v0  ;;  %543 = vst.msk [vmem:[#allocation2 + $0xd4] sm:$0x1] %vm538_vm1, %v10270_v0  ;;  %vm601_vm3 = vsmask.f32 7938 }
 0x13e   : > { %541 = vst.msk [vmem:[#allocation2 + $0xcc] sm:$0xf] %vm12788_vm0, %v10270_v0  ;;  %542 = vst.msk [vmem:[#allocation2 + $0xd0] sm:$0xf] %vm12788_vm0, %v10270_v0  ;;  %v550_v3 = vld [vmem:[#allocation2 + $0xc] sm:$0x1] }
 0x13f   : > { %vm10716_vm4 = vmand %vm538_vm1, %vm545_vm2  ;;  %v658_v5 = vld [vmem:[%s10685_s22 + $0x8] sm:$0xff]  ;;  %vm785_vm6 = vsmask.f32 4368  ;;  %v788_v14 = vshrl.u32 %v8972_v8, 16  ;;  %v553_v17 = vld [vmem:[#allocation2 + $0x18] sm:$0x1] }
 0x140   : > { %vm10721_vm5 = vmand %vm538_vm1, %vm601_vm3  ;;  %v8973_v9 = vpack.c.bf16 %v658_v5, %v658_v5  ;;  %v551_v13 = vsel %vm10716_vm4, 0, %v550_v3  ;;  %v659_v18 = vld [vmem:[%s10685_s22 + $0x10] sm:$0xff]  ;;  %v660_v19 = vld [vmem:[%s10685_s22 + $0x18] sm:$0xff]  ;;  %v554_v22 = vsel %vm10716_vm4, 0, %v553_v17  ;;  %v791_v25 = vshll.u32 %v8972_v8, 16  ;;  %s10271_s13 = smov 8  }
 0x141   : > { %552 = vst [vmem:[#allocation2 + $0xc] sm:$0x1] %v551_v13  ;;  %v790_v20 = vrot.slane %v788_v14, 7  ;;  %v556_v23 = vld [vmem:[#allocation2 + $0x24] sm:$0x1]  ;;  %vm10743_vm7 = vmor %vm545_vm2, %vm785_vm6  ;;  %v8974_v26 = vpack.c.bf16 %v659_v18, %v659_v18  ;;  %v8975_v27 = vpack.c.bf16 %v660_v19, %v660_v19  ;;  %vm1977_vm9 = vcmask 1046528  }
 0x142   : > { %v796_v15 = vshrl.u32 %v8973_v9, 16  ;;  %v799_v16 = vshll.u32 %v8973_v9, 16  ;;  %555 = vst [vmem:[#allocation2 + $0x18] sm:$0x1] %v554_v22  ;;  %v557_v28 = vsel %vm10716_vm4, 0, %v556_v23  ;;  %v661_v36 = vld [vmem:[%s10685_s22 + $0x20] sm:$0xff]  ;;  %vm10762_vm10 = vmand %vm12788_vm0, %vm601_vm3 }
 0x143   : > { %v547_v6 = vld [vmem:[#allocation2] sm:$0x1]  ;;  %v10731_v12 = vld [vmem:[#allocation2] sm:$0xfe]   ;;  %v606_v29 = vld [vmem:[#allocation2 + $0x14] sm:$0x1]  ;;  %v793_v44 = vor.u32 %v791_v25, %v790_v20  ;;  %v8976_v49 = vpack.c.bf16 %v661_v36, %v661_v36 }
 0x144   : > { %v603_v7 = vld [vmem:[#allocation2 + $0x8] sm:$0x1]  ;;  %v548_v10 = vsel %vm10716_vm4, 0, %v547_v6  ;;  %v10737_v21 = vrot.slane %v796_v15, 7  ;;  %vm12787_vm8 = vsmask.f32 7424 }
 0x145   : > { %v604_v11 = vsel %vm10721_vm5, 0, %v603_v7  ;;  %549 = vst [vmem:[#allocation2] sm:$0x1] %v548_v10  ;;  %v794_v30 = vrot.slane %v790_v20, 4  ;;  %558 = vst [vmem:[#allocation2 + $0x24] sm:$0x1] %v557_v28 }
 0x146   : > { %605 = vst [vmem:[#allocation2 + $0x8] sm:$0x1] %v604_v11  ;;  %v801_v31 = vor.u32 %v799_v16, %v10737_v21  ;;  %v1978_v32 = vrot.slane %v10731_v12, 1  ;;  %v805_v33 = vshrl.u32 %v8974_v26, 16  ;;  %v808_v34 = vshll.u32 %v8974_v26, 16  ;;  %v662_v37 = vld [vmem:[%s10685_s22 + $0x28] sm:$0xff] }
 0x147   : > { %v813_v35 = vshrl.u32 %v8975_v27, 16  ;;  %v803_v39 = vrot.slane %v10737_v21, 4  ;;  %v816_v40 = vshll.u32 %v8975_v27, 16  ;;  %v607_v41 = vsel %vm10721_vm5, 0, %v606_v29  ;;  %v663_v42 = vld [vmem:[%s10685_s22 + $0x30] sm:$0xff]  ;;  %v664_v6 = vld [vmem:[%s10685_s22 + $0x38] sm:$0xff] }
 0x148   : > { %v802_v38 = vsel %vm10743_vm7, %v794_v30, %v801_v31  ;;  %v807_v45 = vrot.slane %v805_v33, 7  ;;  %608 = vst [vmem:[#allocation2 + $0x14] sm:$0x1] %v607_v41  ;;  %v8977_v50 = vpack.c.bf16 %v662_v37, %v662_v37  ;;  %v609_v56 = vld [vmem:[#allocation2 + $0x20] sm:$0x1]  ;;  %v10770_v62 = vpack.c.bf16 %v663_v42, %v663_v42  ;;  %s10272_s21 = smov 4  }
 0x149   : > { %1113 = vst.msk [vmem:[#allocation2 + $0x10] sm:$0xf] %vm12788_vm0, %v802_v38  ;;  %v10766_v48 = vrot.slane %v813_v35, 7  ;;  %v1110_v58 = vld [vmem:[#allocation2 + $0xc] sm:$0xf]  ;;  %v822_v9 = vshrl.u32 %v8976_v49, 16  ;;  %v8979_v21 = vpack.c.bf16 %v664_v6, %v664_v6 }
 0x14a   : > { %v810_v54 = vor.u32 %v808_v34, %v807_v45  ;;  %v811_v55 = vrot.slane %v807_v45, 4  ;;  %v1117_v61 = vld [vmem:[#allocation2 + $0x18] sm:$0xf]  ;;  %v1111_v3 = vsel %vm10762_vm10, %v793_v44, %v1110_v58  ;;  %v612_v5 = vld [vmem:[#allocation2 + $0x2c] sm:$0x1]  ;;  %v825_v10 = vshll.u32 %v8976_v49, 16 }
 0x14b   : > { %v818_v59 = vor.u32 %v816_v40, %v10766_v48  ;;  %v820_v60 = vrot.slane %v10766_v48, 4  ;;  %1112 = vst [vmem:[#allocation2 + $0xc] sm:$0xf] %v1111_v3  ;;  %v559_v11 = vld [vmem:[#allocation2 + $0x30] sm:$0x1]  ;;  %v830_v14 = vshrl.u32 %v8977_v50, 16 }
 0x14c   : > { %v9331_v43 = vld [vmem:[#allocation2] sm:$0xff]   ;;  %v1118_v4 = vsel %vm10762_vm10, %v810_v54, %v1117_v61  ;;  %v833_v15 = vshll.u32 %v8977_v50, 16  ;;  %v615_v17 = vld [vmem:[#allocation2 + $0x38] sm:$0x1]  ;;  %v824_v18 = vrot.slane %v822_v9, 7  ;;  %v610_v20 = vsel %vm10721_vm5, 0, %v609_v56 }
 0x14d   : > { %v9332_v47 = vld [vmem:[#allocation2 + $0x8] ss:$0 sps:$4 sm:$0x11]   ;;  %v1545_v51 = vshrl.u32 %v9331_v43, 16  ;;  %v1547_v52 = vshll.u32 %v9331_v43, 16  ;;  %v819_v8 = vsel %vm10743_vm7, %v811_v55, %v818_v59  ;;  %v10785_v23 = vrot.slane %v830_v14, 7 }
 0x14e   : > { %v9334_v53 = vld [vmem:[#allocation2 + $0x8] ss:$0 sps:$4 sm:$0x11]   ;;  %v1552_v57 = vshll.u32 %v9332_v47, 16  ;;  %1119 = vst [vmem:[#allocation2 + $0x18] sm:$0xf] %v1118_v4  ;;  %v827_v27 = vor.u32 %v825_v10, %v824_v18 }
 0x14f   : > { %v1549_v63 = vrot.slane %v1547_v52, 1  ;;  %v1979_v0 = vrot.slane %v9334_v53, 1  ;;  %1120 = vst.msk [vmem:[#allocation2 + $0x1c] sm:$0xf] %vm12788_vm0, %v819_v8  ;;  %v1124_v16 = vld [vmem:[#allocation2 + $0x24] sm:$0xf]  ;;  %v835_v30 = vor.u32 %v833_v15, %v10785_v23 }
 0x150   : > { %v1554_v7 = vrot.slane %v1552_v57, 1  ;;  %v1114_v19 = vld [vmem:[#allocation2 + $0x14] sm:$0x1]  ;;  %611 = vst [vmem:[#allocation2 + $0x20] sm:$0x1] %v610_v20  ;;  %v613_v26 = vsel %vm10721_vm5, 0, %v612_v5  ;;  %v1125_v34 = vsel %vm10762_vm10, %v827_v27, %v1124_v16 }
 0x151   : > { %v1550_v12 = vor.u32 %v1549_v63, %v1545_v51  ;;  %v1980_v13 = vsel %vm1977_vm9, %v1978_v32, %v1979_v0  ;;  %v1115_v25 = vsel %vm10716_vm4, %v803_v39, %v1114_v19  ;;  %v828_v28 = vrot.slane %v824_v18, 4  ;;  %614 = vst [vmem:[#allocation2 + $0x2c] sm:$0x1] %v613_v26  ;;  %1126 = vst [vmem:[#allocation2 + $0x24] sm:$0xf] %v1125_v34  ;;  %s10273_s16 = smov 12  }
 0x152   : > { %2026 = vrot.lane.b32.xlu1 %v1980_v13, %s10271_s13  ;;  %1116 = vst [vmem:[#allocation2 + $0x14] sm:$0x1] %v1115_v25  ;;  %v560_v29 = vsel %vm10716_vm4, 0, %v559_v11  ;;  %v837_v31 = vrot.slane %v10785_v23, 4  ;;  %v839_v32 = vshrl.u32 %v10770_v62, 16  ;;  %v842_v33 = vshll.u32 %v10770_v62, 16 }
 0x153   : > { %v1555_v22 = vsel %vm12787_vm8, %v1550_v12, %v1554_v7  ;;  %561 = vst [vmem:[#allocation2 + $0x30] sm:$0x1] %v560_v29  ;;  %v847_v35 = vshrl.u32 %v8979_v21, 16  ;;  %v850_v36 = vshll.u32 %v8979_v21, 16  ;;  %v616_v37 = vsel %vm10721_vm5, 0, %v615_v17  ;;  %v9335_v38 = vld [vmem:[#allocation2 + $0xc] sm:$0xff]  }
 0x154   : > { %1736 = vrot.lane.b32.xlu0 %v1555_v22, %s10272_s21  ;;  %v836_v39 = vsel %vm10743_vm7, %v828_v28, %v835_v30  ;;  %v10804_v40 = vrot.slane %v839_v32, 7  ;;  %617 = vst [vmem:[#allocation2 + $0x38] sm:$0x1] %v616_v37  ;;  %v9339_v45 = vld [vmem:[#allocation2 + $0xc] sm:$0xfe]   ;;  %s10274_s29 = smov 24  }
 0x155   : > { %1127 = vst.msk [vmem:[#allocation2 + $0x28] sm:$0xf] %vm12788_vm0, %v836_v39  ;;  %v10807_v42 = vrot.slane %v847_v35, 7  ;;  %v9341_v47 = vld [vmem:[#allocation2 + $0xc] sm:$0xfe]   ;;  %v2877_v52 = vrot.slane %v9339_v45, 1 }
 0x156   : > { %v9336_v41 = vld [vmem:[#allocation2 + $0x18] sm:$0xff]   ;;  %v845_v44 = vrot.slane %v10804_v40, 4  ;;  %v1981_v56 = vrot.slane %v9341_v47, 1  ;;  %s10275_s12 = smov 20   ;;  %v9351_v11 = vld [vmem:[#allocation2 + $0xc] sm:$0xff]   ;;  %s10276_s0 = smov 32  }
 0x157   : > { %v9337_v43 = vld [vmem:[#allocation2 + $0x18] sm:$0xff]   ;;  %2205 = vrot.lane.b32.xlu1 %v9336_v41, %s10273_s16  ;;  %v852_v49 = vor.u32 %v850_v36, %v10807_v42  ;;  %v1121_v57 = vld [vmem:[#allocation2 + $0x20] sm:$0x1]  ;;  %v1557_v14 = vshrl.u32 %v9351_v11, 16  ;;  %v1559_v15 = vshll.u32 %v9351_v11, 16  ;;  %v9355_v26 = vld [vmem:[#allocation2 + $0xc] sm:$0xff]  }
 0x158   : > { %2203 = vrot.lane.b32.xlu0 %v9335_v38, %s10273_s16  ;;  %v9349_v51 = vld [vmem:[#allocation2 + $0x18] sm:$0xff]   ;;  %v1122_v59 = vsel %vm10716_vm4, %v820_v60, %v1121_v57  ;;  %v1128_v7 = vld [vmem:[#allocation2 + $0x2c] sm:$0x1]  ;;  %v2445_v39 = vshrl.u32 %v9355_v26, 16  ;;  %s10277_s24 = smov 16   ;;  %s10278_s25 = smov 28  }
 0x159   : > { %v9340_v50 = vld [vmem:[#allocation2 + $0x14] ss:$0 sps:$4 sm:$0x11]   ;;  %v853_v54 = vsel %vm10743_vm7, %v845_v44, %v852_v49  ;;  %v2457_v61 = vshrl.u32 %v9349_v51, 16  ;;  %1123 = vst [vmem:[#allocation2 + $0x20] sm:$0x1] %v1122_v59  ;;  %v1129_v60 = vsel %vm10716_vm4, %v837_v31, %v1128_v7 }
 0x15a   : > { %v9342_v53 = vld [vmem:[#allocation2 + $0x14] ss:$0 sps:$4 sm:$0x11]   ;;  %v2878_v55 = vrot.slane %v9340_v50, 1  ;;  %1134 = vst.msk [vmem:[#allocation2 + $0x34] sm:$0xf] %vm12788_vm0, %v853_v54 }
 0x15b   : > { %v1982_v58 = vrot.slane %v9342_v53, 1  ;;  %v9343_v3 = vld [vmem:[#allocation2 + $0x18] sm:$0xfe]   ;;  %v2459_v4 = vshll.u32 %v9349_v51, 16  ;;  %1130 = vst [vmem:[#allocation2 + $0x2c] sm:$0x1] %v1129_v60 }
 0x15c   : > { %3103 = vrot.lane.b32.xlu0 %v9337_v43, %s10274_s29  ;;  %v9338_v63 = vld [vmem:[#allocation2 + $0x24] sm:$0xff]   ;;  %v2879_v0 = vsel %vm1977_vm9, %v2877_v52, %v2878_v55  ;;  %v9345_v5 = vld [vmem:[#allocation2 + $0x18] sm:$0xfe]   ;;  %v3777_v6 = vrot.slane %v9343_v3, 1  ;;  %v1561_v19 = vrot.slane %v1559_v15, 1  ;;  %v2447_v44 = vshll.u32 %v9355_v26, 16 }
 0x15d   : > { %3105 = vrot.lane.b32.xlu1 %v9338_v63, %s10274_s29  ;;  %v2461_v8 = vrot.slane %v2459_v4, 1  ;;  %v1983_v48 = vsel %vm1977_vm9, %v1981_v56, %v1982_v58  ;;  %v2880_v9 = vrot.slane %v9345_v5, 1  ;;  %v9347_v10 = vld [vmem:[#allocation2 + $0x24] sm:$0xfe]   ;;  %v9357_v45 = vld [vmem:[#allocation2 + $0x18] sm:$0xff]   ;;  %vm12786_vm11 = vcmask 31744  }
 0x15e   : > { %v3780_v12 = vrot.slane %v9347_v10, 1  ;;  %v9352_v13 = vld [vmem:[#allocation2 + $0x14] ss:$0 sps:$4 sm:$0x11]   ;;  %v9353_v25 = vld [vmem:[#allocation2 + $0x24] sm:$0xff]   ;;  %v1562_v32 = vor.u32 %v1561_v19, %v1557_v14  ;;  %v9359_v51 = vld [vmem:[#allocation2 + $0x18] sm:$0xff]  }
 0x15f   : > { %v1564_v17 = vshll.u32 %v9352_v13, 16  ;;  %v2462_v29 = vor.u32 %v2461_v8, %v2457_v61  ;;  %v3357_v35 = vshrl.u32 %v9353_v25, 16  ;;  %v3359_v38 = vshll.u32 %v9353_v25, 16  ;;  %v9356_v43 = vld [vmem:[#allocation2 + $0x14] ss:$0 sps:$4 sm:$0x11]  }
 0x160   : > { %2925 = vrot.lane.b32.xlu0 %v2879_v0, %s10275_s12  ;;  %v9344_v16 = vld [vmem:[#allocation2 + $0x20] ss:$0 sps:$4 sm:$0x11]   ;;  %v2449_v53 = vrot.slane %v2447_v44, 1  ;;  %v2452_v54 = vshll.u32 %v9356_v43, 16  ;;  %v1569_v55 = vshrl.u32 %v9357_v45, 16 }
 0x161   : > { %2028 = vrot.lane.b32.xlu1 %v1983_v48, %s10271_s13  ;;  %v9346_v18 = vld [vmem:[#allocation2 + $0x20] ss:$0 sps:$4 sm:$0x11]   ;;  %v3778_v20 = vrot.slane %v9344_v16, 1  ;;  %v1566_v23 = vrot.slane %v1564_v17, 1  ;;  %v3361_v50 = vrot.slane %v3359_v38, 1 }
 0x162   : > { %v9350_v21 = vld [vmem:[#allocation2 + $0x20] ss:$0 sps:$4 sm:$0x11]   ;;  %v2881_v22 = vrot.slane %v9346_v18, 1  ;;  %v1571_v59 = vshll.u32 %v9357_v45, 16  ;;  %v2450_v61 = vor.u32 %v2449_v53, %v2445_v39  ;;  %v2454_v63 = vrot.slane %v2452_v54, 1 }
 0x163   : > { %v3779_v27 = vsel %vm1977_vm9, %v3777_v6, %v3778_v20  ;;  %v9348_v28 = vld [vmem:[#allocation2 + $0x2c] ss:$0 sps:$4 sm:$0x11]   ;;  %v2464_v30 = vshll.u32 %v9350_v21, 16  ;;  %v1567_v56 = vsel %vm12787_vm8, %v1562_v32, %v1566_v23  ;;  %v3362_v57 = vor.u32 %v3361_v50, %v3357_v35  ;;  %v9361_v11 = vld [vmem:[#allocation2 + $0x24] sm:$0xff]   ;;  %v665_v14 = vld [vmem:[%s10685_s22 + $0x40] sm:$0xff] }
 0x164   : > { %3825 = vrot.lane.b32.xlu0 %v3779_v27, %s10276_s0  ;;  %v2882_v31 = vsel %vm1977_vm9, %v2880_v9, %v2881_v22  ;;  %v9354_v34 = vld [vmem:[#allocation2 + $0x2c] ss:$0 sps:$4 sm:$0x11]   ;;  %v3781_v36 = vrot.slane %v9348_v28, 1  ;;  %v3345_v0 = vshrl.u32 %v9359_v51, 16  ;;  %v1573_v4 = vrot.slane %v1571_v59, 1 }
 0x165   : > { %2927 = vrot.lane.b32.xlu1 %v2882_v31, %s10275_s12  ;;  %v2466_v37 = vrot.slane %v2464_v30, 1  ;;  %v3364_v41 = vshll.u32 %v9354_v34, 16  ;;  %v9358_v58 = vld [vmem:[#allocation2 + $0x20] ss:$0 sps:$4 sm:$0x11]   ;;  %v3347_v7 = vshll.u32 %v9359_v51, 16  ;;  %v2455_v8 = vsel %vm12787_vm8, %v2450_v61, %v2454_v63 }
 0x166   : > { %v3782_v47 = vsel %vm1977_vm9, %v3780_v12, %v3781_v36  ;;  %v1576_v5 = vshll.u32 %v9358_v58, 16  ;;  %v9360_v6 = vld [vmem:[#allocation2 + $0x20] ss:$0 sps:$4 sm:$0x11]   ;;  %v1574_v48 = vor.u32 %v1573_v4, %v1569_v55  ;;  %v562_v12 = vld [vmem:[#allocation2 + $0x3c] sm:$0x1]  ;;  %v844_v28 = vor.u32 %v842_v33, %v10804_v40 }
 0x167   : > { %v2467_v49 = vsel %vm12787_vm8, %v2462_v29, %v2466_v37  ;;  %v3366_v52 = vrot.slane %v3364_v41, 1  ;;  %v3349_v60 = vrot.slane %v3347_v7, 1  ;;  %v3352_v10 = vshll.u32 %v9360_v6, 16  ;;  %v9362_v13 = vld [vmem:[#allocation2 + $0x2c] ss:$0 sps:$4 sm:$0x11]  }
 0x168   : > { %3827 = vrot.lane.b32.xlu0 %v3782_v47, %s10276_s0  ;;  %v1578_v9 = vrot.slane %v1576_v5, 1  ;;  %v1581_v18 = vshrl.u32 %v9361_v11, 16  ;;  %v9363_v19 = vld [vmem:[#allocation2 + $0x18] sm:$0xfe]   ;;  %v666_v20 = vld [vmem:[%s10685_s22 + $0x48] sm:$0xff]  ;;  %v1583_v21 = vshll.u32 %v9361_v11, 16  ;;  %v8980_v30 = vpack.c.bf16 %v665_v14, %v665_v14 }
 0x169   : > { %2638 = vrot.lane.b32.xlu1 %v2467_v49, %s10277_s24  ;;  %v3367_v3 = vsel %vm12787_vm8, %v3362_v57, %v3366_v52  ;;  %v3350_v16 = vor.u32 %v3349_v60, %v3345_v0  ;;  %v3354_v17 = vrot.slane %v3352_v10, 1  ;;  %v1588_v22 = vshll.u32 %v9362_v13, 16  ;;  %v9364_v23 = vld [vmem:[#allocation2 + $0x20] ss:$0 sps:$4 sm:$0x11]   ;;  %v9369_v29 = vld [vmem:[#allocation2 + $0x24] sm:$0xff]  }
 0x16a   : > { %v1579_v15 = vsel %vm12787_vm8, %v1574_v48, %v1578_v9  ;;  %v854_v25 = vrot.slane %v10807_v42, 4  ;;  %v1984_v27 = vrot.slane %v9363_v19, 1  ;;  %v1585_v31 = vrot.slane %v1583_v21, 1  ;;  %v9365_v36 = vld [vmem:[#allocation2 + $0x24] sm:$0xfe]   ;;  %s10281_s11 = smov 124  }
 0x16b   : > { %v3355_v26 = vsel %vm12787_vm8, %v3350_v16, %v3354_v17  ;;  %v1590_v32 = vrot.slane %v1588_v22, 1  ;;  %v1985_v34 = vrot.slane %v9364_v23, 1  ;;  %v563_v35 = vsel %vm10716_vm4, 0, %v562_v12  ;;  %v9366_v37 = vld [vmem:[#allocation2 + $0x2c] ss:$0 sps:$4 sm:$0x11]  }
 0x16c   : > { %1738 = vrot.lane.b32.xlu0 %v1567_v56, %s10272_s21  ;;  %v2469_v42 = vshrl.u32 %v9369_v29, 16  ;;  %564 = vst [vmem:[#allocation2 + $0x3c] sm:$0x1] %v563_v35  ;;  %v1586_v38 = vor.u32 %v1585_v31, %v1581_v18  ;;  %v1131_v39 = vld [vmem:[#allocation2 + $0x30] sm:$0xf]  ;;  %v8981_v41 = vpack.c.bf16 %v666_v20, %v666_v20  ;;  %v1987_v33 = vrot.slane %v9365_v36, 1 }
 0x16d   : > { %3538 = vrot.lane.b32.xlu1 %v3367_v3, %s10278_s25  ;;  %v1986_v62 = vsel %vm1977_vm9, %v1984_v27, %v1985_v34  ;;  %v1988_v40 = vrot.slane %v9366_v37, 1  ;;  %v1132_v43 = vsel %vm10762_vm10, %v844_v28, %v1131_v39  ;;  %v9367_v45 = vld [vmem:[#allocation2 + $0x24] sm:$0xff]   ;;  %v2471_v47 = vshll.u32 %v9369_v29, 16  ;;  %v9370_v50 = vld [vmem:[#allocation2 + $0x2c] ss:$0 sps:$4 sm:$0x11]  }
 0x16e   : > { %v1591_v44 = vsel %vm12787_vm8, %v1586_v38, %v1590_v32  ;;  %1133 = vst [vmem:[#allocation2 + $0x30] sm:$0xf] %v1132_v43  ;;  %v856_v49 = vshrl.u32 %v8980_v30, 16  ;;  %v1135_v51 = vld [vmem:[#allocation2 + $0x38] sm:$0x1]  ;;  %v859_v52 = vshll.u32 %v8980_v30, 16 }
 0x16f   : > { %v618_v53 = vld [vmem:[#allocation2 + $0x44] sm:$0x1]  ;;  %v1989_v54 = vsel %vm1977_vm9, %v1987_v33, %v1988_v40  ;;  %v2473_v55 = vrot.slane %v2471_v47, 1  ;;  %v1136_v56 = vsel %vm10716_vm4, %v854_v25, %v1135_v51  ;;  %v2476_v58 = vshll.u32 %v9370_v50, 16  ;;  %v565_v61 = vld [vmem:[#allocation2 + $0x48] sm:$0x1] }
 0x170   : > { %2636 = vrot.lane.b32.xlu0 %v2455_v8, %s10277_s24  ;;  %v858_v57 = vrot.slane %v856_v49, 7  ;;  %1137 = vst [vmem:[#allocation2 + $0x38] sm:$0x1] %v1136_v56  ;;  %v864_v59 = vshrl.u32 %v8981_v41, 16  ;;  %v9373_v0 = vld [vmem:[#allocation2 + $0x24] sm:$0xfe]  }
 0x171   : > { %1740 = vrot.lane.b32.xlu1 %v1579_v15, %s10272_s21  ;;  %v2474_v63 = vor.u32 %v2473_v55, %v2469_v42  ;;  %v9374_v3 = vld [vmem:[#allocation2 + $0x2c] ss:$0 sps:$4 sm:$0x11]   ;;  %v2478_v5 = vrot.slane %v2476_v58, 1  ;;  %v2883_v7 = vrot.slane %v9373_v0, 1  ;;  %v867_v48 = vshll.u32 %v8981_v41, 16 }
 0x172   : > { %v861_v4 = vor.u32 %v859_v52, %v858_v57  ;;  %v866_v6 = vrot.slane %v864_v59, 7  ;;  %v862_v8 = vrot.slane %v858_v57, 4  ;;  %v619_v60 = vsel %vm10721_vm5, 0, %v618_v53  ;;  %v667_v19 = vld [vmem:[%s10685_s22 + $0x50] sm:$0xff]  ;;  %p13024_p3 = scmp.ne.s32.totalorder %s12801_s30, 0 }
 0x173   : > { %v1138_v9 = vld [vmem:[#allocation2 + $0x3c] sm:$0xf]  ;;  %v2479_v11 = vsel %vm12787_vm8, %v2474_v63, %v2478_v5  ;;  %v2884_v12 = vrot.slane %v9374_v3, 1  ;;  %620 = vst [vmem:[#allocation2 + $0x44] sm:$0x1] %v619_v60  ;;  %v566_v17 = vsel %vm10716_vm4, 0, %v565_v61  ;;  %v10880_v42 = vpack.c.bf16 %v667_v19, %v667_v19 }
 0x174   : > { %3536 = vrot.lane.b32.xlu0 %v3355_v26, %s10278_s25  ;;  %v1139_v13 = vsel %vm10762_vm10, %v861_v4, %v1138_v9  ;;  %v869_v16 = vor.u32 %v867_v48, %v866_v6  ;;  %v871_v18 = vrot.slane %v866_v6, 4  ;;  %567 = vst [vmem:[#allocation2 + $0x48] sm:$0x1] %v566_v17  ;;  %v668_v60 = vld [vmem:[%s10685_s22 + $0x58] sm:$0xff]  ;;  %vm12782_vm12 = vcmask 64544  }
 0x175   : > { %1742 = vrot.lane.b32.xlu1 %v1591_v44, %s10272_s21  ;;  %v9368_v10 = vld [vmem:[#allocation2 + $0x30] sm:$0xff]   ;;  %1140 = vst [vmem:[#allocation2 + $0x3c] sm:$0xf] %v1139_v13  ;;  %v2885_v25 = vsel %vm1977_vm9, %v2883_v7, %v2884_v12  ;;  %v873_v50 = vshrl.u32 %v10880_v42, 16  ;;  %vm2074_vm13 = vcmask 97344   ;;  %vm2251_vm14 = vcmask 130144  }
 0x176   : > { %v9371_v14 = vld [vmem:[#allocation2 + $0x30] sm:$0xff]   ;;  %v870_v22 = vsel %vm10743_vm7, %v862_v8, %v869_v16  ;;  %vm2684_vm15 = vcmask 162944   ;;  %vm2973_vm1 = vcmask 195744   ;;  %vm3151_vm2 = vcmask 228544  }
 0x177   : > { %v9375_v15 = vld [vmem:[#allocation2 + $0x30] sm:$0xfe]   ;;  %v9372_v20 = vld [vmem:[#allocation2 + $0x38] ss:$0 sps:$4 sm:$0x11]   ;;  %v2481_v21 = vshrl.u32 %v9371_v14, 16 }
 0x178   : > { %2030 = vrot.lane.b32.xlu0 %v1986_v62, %s10271_s13  ;;  %v2483_v23 = vshll.u32 %v9371_v14, 16  ;;  %v9376_v26 = vld [vmem:[#allocation2 + $0x38] ss:$0 sps:$4 sm:$0x11]   ;;  %1141 = vst.msk [vmem:[#allocation2 + $0x40] sm:$0xf] %vm12788_vm0, %v870_v22 }
 0x179   : > { %2032 = vrot.lane.b32.xlu1 %v1989_v54, %s10271_s13  ;;  %v2488_v27 = vshll.u32 %v9372_v20, 16  ;;  %v2886_v28 = vrot.slane %v9375_v15, 1  ;;  %v9377_v29 = vld [vmem:[#allocation2 + $0x30] sm:$0xff]   ;;  %v2887_v31 = vrot.slane %v9376_v26, 1  ;;  %vm12785_vm3 = vcmask 261344  }
 0x17a   : > { %v2485_v30 = vrot.slane %v2483_v23, 1  ;;  %v9379_v32 = vld [vmem:[#allocation2 + $0x30] sm:$0xff]   ;;  %v9380_v34 = vld [vmem:[#allocation2 + $0x38] ss:$0 sps:$4 sm:$0x11]   ;;  %vm12783_vm6 = vcmask 294144  }
 0x17b   : > { %v2490_v35 = vrot.slane %v2488_v27, 1  ;;  %v1142_v36 = vld [vmem:[#allocation2 + $0x44] sm:$0x1]  ;;  %v9385_v37 = vld [vmem:[#allocation2 + $0x30] sm:$0xff]   ;;  %v3369_v39 = vshrl.u32 %v9379_v32, 16  ;;  %v3371_v41 = vshll.u32 %v9379_v32, 16  ;;  %v2888_v47 = vsel %vm1977_vm9, %v2886_v28, %v2887_v31 }
 0x17c   : > { %2207 = vrot.lane.b32.xlu0 %v9367_v45, %s10273_s16  ;;  %v2486_v38 = vor.u32 %v2485_v30, %v2481_v21  ;;  %v3376_v62 = vshll.u32 %v9380_v34, 16  ;;  %v1143_v33 = vsel %vm10716_vm4, %v871_v18, %v1142_v36  ;;  %v9383_v44 = vld [vmem:[#allocation2 + $0x30] sm:$0xfe]   ;;  %v9384_v45 = vld [vmem:[#allocation2 + $0x38] ss:$0 sps:$4 sm:$0x11]   ;;  %v8983_v28 = vpack.c.bf16 %v668_v60, %v668_v60 }
 0x17d   : > { %2209 = vrot.lane.b32.xlu1 %v9368_v10, %s10273_s16  ;;  %v3373_v43 = vrot.slane %v3371_v41, 1  ;;  %1144 = vst [vmem:[#allocation2 + $0x44] sm:$0x1] %v1143_v33  ;;  %v3783_v53 = vrot.slane %v9383_v44, 1  ;;  %v3784_v54 = vrot.slane %v9384_v45, 1  ;;  %v1595_v55 = vshll.u32 %v9385_v37, 16 }
 0x17e   : > { %v2491_v40 = vsel %vm12787_vm8, %v2486_v38, %v2490_v35  ;;  %v3378_v49 = vrot.slane %v3376_v62, 1  ;;  %v9386_v59 = vld [vmem:[#allocation2 + $0x38] ss:$0 sps:$4 sm:$0x11]   ;;  %v1593_v61 = vshrl.u32 %v9385_v37, 16  ;;  %v876_v41 = vshll.u32 %v10880_v42, 16 }
 0x17f   : > { %v3374_v51 = vor.u32 %v3373_v43, %v3369_v39  ;;  %v9381_v52 = vld [vmem:[#allocation2 + $0x3c] sm:$0xff]   ;;  %v3785_v5 = vsel %vm1977_vm9, %v3783_v53, %v3784_v54  ;;  %v1600_v6 = vshll.u32 %v9386_v59, 16  ;;  %v1597_v8 = vrot.slane %v1595_v55, 1  ;;  %v9391_v22 = vld [vmem:[#allocation2 + $0x30] sm:$0xfe]  }
 0x180   : > { %2640 = vrot.lane.b32.xlu0 %v2479_v11, %s10277_s24  ;;  %v9378_v56 = vld [vmem:[#allocation2 + $0x3c] sm:$0xff]   ;;  %v3383_v58 = vshll.u32 %v9381_v52, 16  ;;  %v3381_v63 = vshrl.u32 %v9381_v52, 16  ;;  %v9392_v23 = vld [vmem:[#allocation2 + $0x38] ss:$0 sps:$4 sm:$0x11]  }
 0x181   : > { %2642 = vrot.lane.b32.xlu1 %v2491_v40, %s10277_s24  ;;  %v3379_v57 = vsel %vm12787_vm8, %v3374_v51, %v3378_v49  ;;  %v9387_v0 = vld [vmem:[#allocation2 + $0x3c] sm:$0xfe]   ;;  %v1602_v13 = vrot.slane %v1600_v6, 1  ;;  %v1598_v18 = vor.u32 %v1597_v8, %v1593_v61  ;;  %v1990_v31 = vrot.slane %v9391_v22, 1  ;;  %v621_v35 = vld [vmem:[#allocation2 + $0x50] sm:$0x1] }
 0x182   : > { %v9389_v3 = vld [vmem:[#allocation2 + $0x3c] sm:$0xff]   ;;  %v3385_v4 = vrot.slane %v3383_v58, 1  ;;  %v3786_v9 = vrot.slane %v9387_v0, 1  ;;  %v1991_v32 = vrot.slane %v9392_v23, 1  ;;  %v568_v62 = vld [vmem:[#allocation2 + $0x54] sm:$0x1] }
 0x183   : > { %v1605_v15 = vshrl.u32 %v9389_v3, 16  ;;  %v1607_v16 = vshll.u32 %v9389_v3, 16  ;;  %v669_v30 = vld [vmem:[%s10685_s22 + $0x60] sm:$0xff]  ;;  %v1603_v36 = vsel %vm12787_vm8, %v1598_v18, %v1602_v13  ;;  %v1145_v44 = vld [vmem:[#allocation2 + $0x48] sm:$0xf]  ;;  %v881_v49 = vshrl.u32 %v8983_v28, 16 }
 0x184   : > { %2929 = vrot.lane.b32.xlu0 %v2885_v25, %s10275_s12  ;;  %v9382_v7 = vld [vmem:[#allocation2 + $0x44] ss:$0 sps:$4 sm:$0x11]   ;;  %v3386_v10 = vor.u32 %v3385_v4, %v3381_v63  ;;  %v9397_v25 = vld [vmem:[#allocation2 + $0x3c] sm:$0xff]   ;;  %v1992_v33 = vsel %vm1977_vm9, %v1990_v31, %v1991_v32  ;;  %v8984_v54 = vpack.c.bf16 %v669_v30, %v669_v30  ;;  %v622_v59 = vsel %vm10721_vm5, 0, %v621_v35  ;;  %v671_v61 = vld [vmem:[%s10685_s22 + $0x70] sm:$0xff] }
 0x185   : > { %2931 = vrot.lane.b32.xlu1 %v2888_v47, %s10275_s12  ;;  %v9388_v48 = vld [vmem:[#allocation2 + $0x44] ss:$0 sps:$4 sm:$0x11]   ;;  %v3388_v11 = vshll.u32 %v9382_v7, 16  ;;  %v1609_v21 = vrot.slane %v1607_v16, 1  ;;  %v9395_v39 = vld [vmem:[#allocation2 + $0x3c] sm:$0xff]   ;;  %v10917_v8 = vpack.c.bf16 %v671_v61, %v671_v61 }
 0x186   : > { %v9390_v12 = vld [vmem:[#allocation2 + $0x44] ss:$0 sps:$4 sm:$0x11]   ;;  %v3787_v14 = vrot.slane %v9388_v48, 1  ;;  %v9393_v34 = vld [vmem:[#allocation2 + $0x3c] sm:$0xfe]  }
 0x187   : > { %v3390_v17 = vrot.slane %v3388_v11, 1  ;;  %v1612_v19 = vshll.u32 %v9390_v12, 16  ;;  %v1610_v37 = vor.u32 %v1609_v21, %v1605_v15  ;;  %v9394_v38 = vld [vmem:[#allocation2 + $0x44] ss:$0 sps:$4 sm:$0x11]   ;;  %v1993_v40 = vrot.slane %v9393_v34, 1 }
 0x188   : > { %3107 = vrot.lane.b32.xlu0 %v9377_v29, %s10274_s29  ;;  %v3788_v20 = vsel %vm1977_vm9, %v3786_v9, %v3787_v14  ;;  %v875_v29 = vrot.slane %v873_v50, 7  ;;  %v1994_v45 = vrot.slane %v9394_v38, 1  ;;  %v884_v50 = vshll.u32 %v8983_v28, 16  ;;  %v670_v51 = vld [vmem:[%s10685_s22 + $0x68] sm:$0xff]  ;;  %623 = vst [vmem:[#allocation2 + $0x50] sm:$0x1] %v622_v59 }
 0x189   : > { %3109 = vrot.lane.b32.xlu1 %v9378_v56, %s10274_s29  ;;  %v3391_v26 = vsel %vm12787_vm8, %v3386_v10, %v3390_v17  ;;  %v1614_v27 = vrot.slane %v1612_v19, 1  ;;  %v2493_v52 = vshrl.u32 %v9397_v25, 16  ;;  %v2495_v53 = vshll.u32 %v9397_v25, 16  ;;  %v9398_v58 = vld [vmem:[#allocation2 + $0x44] ss:$0 sps:$4 sm:$0x11]  }
 0x18a   : > { %v879_v43 = vrot.slane %v875_v29, 4  ;;  %v878_v47 = vor.u32 %v876_v41, %v875_v29  ;;  %v8985_v42 = vpack.c.bf16 %v670_v51, %v670_v51  ;;  %v883_v56 = vrot.slane %v881_v49, 7  ;;  %v9401_v7 = vld [vmem:[#allocation2 + $0x3c] sm:$0xfe]   ;;  %v624_v16 = vld [vmem:[#allocation2 + $0x5c] sm:$0x1] }
 0x18b   : > { %v1615_v55 = vsel %vm12787_vm8, %v1610_v37, %v1614_v27  ;;  %v1995_v63 = vsel %vm1977_vm9, %v1993_v40, %v1994_v45  ;;  %v2497_v0 = vrot.slane %v2495_v53, 1  ;;  %v569_v3 = vsel %vm10716_vm4, 0, %v568_v62  ;;  %v9402_v9 = vld [vmem:[#allocation2 + $0x44] ss:$0 sps:$4 sm:$0x11]   ;;  %v672_v17 = vld [vmem:[%s10685_s22 + $0x78] sm:$0xff] }
 0x18c   : > { %3540 = vrot.lane.b32.xlu0 %v3379_v57, %s10278_s25  ;;  %v1146_v57 = vsel %vm10762_vm10, %v878_v47, %v1145_v44  ;;  %v886_v4 = vor.u32 %v884_v50, %v883_v56  ;;  %v2500_v6 = vshll.u32 %v9398_v58, 16  ;;  %570 = vst [vmem:[#allocation2 + $0x54] sm:$0x1] %v569_v3  ;;  %v890_v60 = vshrl.u32 %v8984_v54, 16  ;;  %v571_v22 = vld [vmem:[#allocation2 + $0x60] sm:$0x1] }
 0x18d   : > { %3542 = vrot.lane.b32.xlu1 %v3391_v26, %s10278_s25  ;;  %1147 = vst [vmem:[#allocation2 + $0x48] sm:$0xf] %v1146_v57  ;;  %v2498_v48 = vor.u32 %v2497_v0, %v2493_v52  ;;  %v893_v10 = vshll.u32 %v8984_v54, 16  ;;  %v898_v11 = vshrl.u32 %v8985_v42, 16  ;;  %v2889_v14 = vrot.slane %v9401_v7, 1 }
 0x18e   : > { %v887_v12 = vsel %vm10743_vm7, %v879_v43, %v886_v4  ;;  %v2502_v13 = vrot.slane %v2500_v6, 1  ;;  %v901_v15 = vshll.u32 %v8985_v42, 16  ;;  %v2890_v18 = vrot.slane %v9402_v9, 1 }
 0x18f   : > { %1148 = vst.msk [vmem:[#allocation2 + $0x4c] sm:$0xf] %vm12788_vm0, %v887_v12  ;;  %v892_v19 = vrot.slane %v890_v60, 7  ;;  %v625_v21 = vsel %vm10721_vm5, 0, %v624_v16  ;;  %v572_v25 = vsel %vm10716_vm4, 0, %v571_v22  ;;  %v907_v26 = vshrl.u32 %v10917_v8, 16 }
 0x190   : > { %3829 = vrot.lane.b32.xlu0 %v3785_v5, %s10276_s0  ;;  %v888_v5 = vrot.slane %v883_v56, 4  ;;  %v2503_v23 = vsel %vm12787_vm8, %v2498_v48, %v2502_v13  ;;  %626 = vst [vmem:[#allocation2 + $0x5c] sm:$0x1] %v625_v21  ;;  %573 = vst [vmem:[#allocation2 + $0x60] sm:$0x1] %v572_v25  ;;  %v2891_v31 = vsel %vm1977_vm9, %v2889_v14, %v2890_v18  ;;  %v910_v53 = vshll.u32 %v10917_v8, 16 }
 0x191   : > { %1744 = vrot.lane.b32.xlu1 %v1603_v36, %s10272_s21  ;;  %v895_v27 = vor.u32 %v893_v10, %v892_v19  ;;  %v896_v28 = vrot.slane %v892_v19, 4  ;;  %v1149_v30 = vld [vmem:[#allocation2 + $0x50] sm:$0x1]  ;;  %v8987_v32 = vpack.c.bf16 %v672_v17, %v672_v17  ;;  %v10937_v36 = vrot.slane %v907_v26, 7 }
 0x192   : > { %v1150_v34 = vsel %vm10716_vm4, %v888_v5, %v1149_v30 }
 0x193   : > { %1151 = vst [vmem:[#allocation2 + $0x50] sm:$0x1] %v1150_v34  ;;  %v1152_v37 = vld [vmem:[#allocation2 + $0x54] sm:$0xf]  ;;  %v913_v41 = vrot.slane %v10937_v36, 4  ;;  %v918_v44 = vshll.u32 %v8987_v32, 16 }
 0x194   : > { %3831 = vrot.lane.b32.xlu0 %v3788_v20, %s10276_s0  ;;  %v900_v20 = vrot.slane %v898_v11, 7 }
 0x195   : > { %1746 = vrot.lane.b32.xlu1 %v1615_v55, %s10272_s21 }
 0x196   : > { %v903_v29 = vor.u32 %v901_v15, %v900_v20  ;;  %v905_v38 = vrot.slane %v900_v20, 4  ;;  %v9396_v62 = vld [vmem:[#allocation2 + $0x48] sm:$0xff]  }
 0x197   : > { %v9399_v40 = vld [vmem:[#allocation2 + $0x48] sm:$0xff]   ;;  %v1156_v52 = vld [vmem:[#allocation2 + $0x5c] sm:$0x1] }
 0x198   : > { %2034 = vrot.lane.b32.xlu0 %v1992_v33, %s10271_s13  ;;  %v904_v35 = vsel %vm10743_vm7, %v896_v28, %v903_v29  ;;  %v915_v33 = vshrl.u32 %v8987_v32, 16  ;;  %v9403_v43 = vld [vmem:[#allocation2 + $0x48] sm:$0xfe]   ;;  %v2505_v49 = vshrl.u32 %v9399_v40, 16  ;;  %v2507_v50 = vshll.u32 %v9399_v40, 16 }
 0x199   : > { %2036 = vrot.lane.b32.xlu1 %v1995_v63, %s10271_s13  ;;  %1155 = vst.msk [vmem:[#allocation2 + $0x58] sm:$0xf] %vm12788_vm0, %v904_v35  ;;  %v9405_v45 = vld [vmem:[#allocation2 + $0x48] sm:$0xff]   ;;  %v1157_v54 = vsel %vm10716_vm4, %v905_v38, %v1156_v52  ;;  %v2892_v59 = vrot.slane %v9403_v43, 1 }
 0x19a   : > { %v10945_v47 = vrot.slane %v915_v33, 7  ;;  %v9407_v51 = vld [vmem:[#allocation2 + $0x48] sm:$0xff]   ;;  %v9400_v56 = vld [vmem:[#allocation2 + $0x50] ss:$0 sps:$4 sm:$0x11]   ;;  %v2509_v57 = vrot.slane %v2507_v50, 1 }
 0x19b   : > { %v9411_v42 = vld [vmem:[#allocation2 + $0x48] sm:$0xfe]   ;;  %1158 = vst [vmem:[#allocation2 + $0x5c] sm:$0x1] %v1157_v54  ;;  %v2512_v0 = vshll.u32 %v9400_v56, 16  ;;  %v3393_v3 = vshrl.u32 %v9407_v51, 16 }
 0x19c   : > { %2211 = vrot.lane.b32.xlu0 %v9395_v39, %s10273_s16  ;;  %v1153_v39 = vsel %vm10762_vm10, %v895_v27, %v1152_v37  ;;  %v920_v55 = vor.u32 %v918_v44, %v10945_v47  ;;  %v9404_v58 = vld [vmem:[#allocation2 + $0x50] ss:$0 sps:$4 sm:$0x11]   ;;  %v2510_v63 = vor.u32 %v2509_v57, %v2505_v49  ;;  %v3395_v7 = vshll.u32 %v9407_v51, 16  ;;  %v9413_v10 = vld [vmem:[#allocation2 + $0x48] sm:$0xff]  }
 0x19d   : > { %1154 = vst [vmem:[#allocation2 + $0x54] sm:$0xf] %v1153_v39  ;;  %2213 = vrot.lane.b32.xlu1 %v9396_v62, %s10273_s16  ;;  %v2893_v4 = vrot.slane %v9404_v58, 1  ;;  %v9408_v5 = vld [vmem:[#allocation2 + $0x50] ss:$0 sps:$4 sm:$0x11]   ;;  %v912_v58 = vor.u32 %v910_v53, %v10937_v36 }
 0x19e   : > { %v921_v61 = vsel %vm10743_vm7, %v913_v41, %v920_v55  ;;  %v2514_v6 = vrot.slane %v2512_v0, 1  ;;  %v3400_v48 = vshll.u32 %v9408_v5, 16  ;;  %v3789_v60 = vrot.slane %v9411_v42, 1  ;;  %v9412_v13 = vld [vmem:[#allocation2 + $0x50] ss:$0 sps:$4 sm:$0x11]  }
 0x19f   : > { %1162 = vst.msk [vmem:[#allocation2 + $0x64] sm:$0xf] %vm12788_vm0, %v921_v61  ;;  %v3397_v12 = vrot.slane %v3395_v7, 1  ;;  %v2894_v14 = vsel %vm1977_vm9, %v2892_v59, %v2893_v4  ;;  %v3790_v20 = vrot.slane %v9412_v13, 1  ;;  %v1619_v25 = vshll.u32 %v9413_v10, 16  ;;  %v9433_v59 = vld [vmem:[#allocation2] sm:$0xff]  }
 0x1a0   : > { %2644 = vrot.lane.b32.xlu0 %v2503_v23, %s10277_s24  ;;  %v2515_v11 = vsel %vm12787_vm8, %v2510_v63, %v2514_v6  ;;  %v3402_v15 = vrot.slane %v3400_v48, 1  ;;  %v9414_v21 = vld [vmem:[#allocation2 + $0x50] ss:$0 sps:$4 sm:$0x11]   ;;  %v1617_v30 = vshrl.u32 %v9413_v10, 16  ;;  %v922_v50 = vrot.slane %v10945_v47, 4 }
 0x1a1   : > { %2646 = vrot.lane.b32.xlu1 %v2515_v11, %s10277_s24  ;;  %v3398_v17 = vor.u32 %v3397_v12, %v3393_v3  ;;  %v1624_v29 = vshll.u32 %v9414_v21, 16  ;;  %v3791_v37 = vsel %vm1977_vm9, %v3789_v60, %v3790_v20  ;;  %v9419_v49 = vld [vmem:[#allocation2 + $0x48] sm:$0xfe]   ;;  %v9420_v42 = vld [vmem:[#allocation2 + $0x50] ss:$0 sps:$4 sm:$0x11]  }
 0x1a2   : > { %v9410_v16 = vld [vmem:[#allocation2 + $0x5c] ss:$0 sps:$4 sm:$0x11]   ;;  %v627_v55 = vld [vmem:[#allocation2 + $0x68] sm:$0x1]  ;;  %v1996_v57 = vrot.slane %v9419_v49, 1 }
 0x1a3   : > { %v3412_v23 = vshll.u32 %v9410_v16, 16  ;;  %v3403_v27 = vsel %vm12787_vm8, %v3398_v17, %v3402_v15  ;;  %v9416_v38 = vld [vmem:[#allocation2 + $0x5c] ss:$0 sps:$4 sm:$0x11]   ;;  %v1626_v62 = vrot.slane %v1624_v29, 1  ;;  %v1997_v61 = vrot.slane %v9420_v42, 1 }
 0x1a4   : > { %2933 = vrot.lane.b32.xlu0 %v2891_v31, %s10275_s12  ;;  %v9409_v9 = vld [vmem:[#allocation2 + $0x54] sm:$0xff]   ;;  %v1621_v31 = vrot.slane %v1619_v25, 1  ;;  %v9418_v41 = vld [vmem:[#allocation2 + $0x5c] ss:$0 sps:$4 sm:$0x11]   ;;  %v3793_v33 = vrot.slane %v9416_v38, 1 }
 0x1a5   : > { %v3405_v18 = vshrl.u32 %v9409_v9, 16  ;;  %v3407_v19 = vshll.u32 %v9409_v9, 16  ;;  %v9406_v22 = vld [vmem:[#allocation2 + $0x54] sm:$0xff]   ;;  %2935 = vrot.lane.b32.xlu1 %v2894_v14, %s10275_s12  ;;  %v3414_v35 = vrot.slane %v3412_v23, 1  ;;  %v1159_v4 = vld [vmem:[#allocation2 + $0x60] sm:$0xf]  ;;  %v1998_v6 = vsel %vm1977_vm9, %v1996_v57, %v1997_v61 }
 0x1a6   : > { %v9417_v26 = vld [vmem:[#allocation2 + $0x54] sm:$0xff]   ;;  %v1622_v44 = vor.u32 %v1621_v31, %v1617_v30  ;;  %v9422_v0 = vld [vmem:[#allocation2 + $0x5c] ss:$0 sps:$4 sm:$0x11]   ;;  %v1160_v8 = vsel %vm10762_vm10, %v912_v58, %v1159_v4  ;;  %v628_v53 = vsel %vm10721_vm5, 0, %v627_v55  ;;  %1351 = vst.msk [vmem:[#allocation3] sm:$0xff] %vm12786_vm11, %v9433_v59 }
 0x1a7   : > { %v3409_v28 = vrot.slane %v3407_v19, 1  ;;  %v9415_v32 = vld [vmem:[#allocation2 + $0x54] sm:$0xfe]   ;;  %v1629_v40 = vshrl.u32 %v9417_v26, 16  ;;  %v1631_v43 = vshll.u32 %v9417_v26, 16  ;;  %v2000_v48 = vrot.slane %v9422_v0, 1 }
 0x1a8   : > { %3111 = vrot.lane.b32.xlu0 %v9405_v45, %s10274_s29  ;;  %v3792_v39 = vrot.slane %v9415_v32, 1  ;;  %v1636_v45 = vshll.u32 %v9418_v41, 16  ;;  %v9421_v63 = vld [vmem:[#allocation2 + $0x54] sm:$0xfe]   ;;  %v1627_v3 = vsel %vm12787_vm8, %v1622_v44, %v1626_v62  ;;  %v574_v11 = vld [vmem:[#allocation2 + $0x6c] sm:$0x1] }
 0x1a9   : > { %v3410_v34 = vor.u32 %v3409_v28, %v3405_v18  ;;  %3113 = vrot.lane.b32.xlu1 %v9406_v22, %s10274_s29  ;;  %v1633_v54 = vrot.slane %v1631_v43, 1  ;;  %v1999_v7 = vrot.slane %v9421_v63, 1  ;;  %v9423_v60 = vld [vmem:[#allocation2 + $0x54] sm:$0xff]   ;;  %1161 = vst [vmem:[#allocation2 + $0x60] sm:$0xf] %v1160_v8  ;;  %v575_v23 = vsel %vm10716_vm4, 0, %v574_v11 }
 0x1aa   : > { %v3794_v52 = vsel %vm1977_vm9, %v3792_v39, %v3793_v33  ;;  %v1638_v56 = vrot.slane %v1636_v45, 1  ;;  %v9425_v36 = vld [vmem:[#allocation2 + $0x54] sm:$0xff]   ;;  %v9426_v12 = vld [vmem:[#allocation2 + $0x5c] ss:$0 sps:$4 sm:$0x11]   ;;  %v674_v28 = vld [vmem:[%s10685_s22 + $0x88] sm:$0xff] }
 0x1ab   : > { %v3415_v51 = vsel %vm12787_vm8, %v3410_v34, %v3414_v35  ;;  %v1634_v5 = vor.u32 %v1633_v54, %v1629_v40  ;;  %629 = vst [vmem:[#allocation2 + $0x68] sm:$0x1] %v628_v53  ;;  %v2517_v13 = vshrl.u32 %v9425_v36, 16  ;;  %v2519_v14 = vshll.u32 %v9425_v36, 16  ;;  %v9429_v17 = vld [vmem:[#allocation2 + $0x54] sm:$0xfe]  }
 0x1ac   : > { %3544 = vrot.lane.b32.xlu0 %v3403_v27, %s10278_s25  ;;  %v2524_v16 = vshll.u32 %v9426_v12, 16  ;;  %v9430_v19 = vld [vmem:[#allocation2 + $0x5c] ss:$0 sps:$4 sm:$0x11]   ;;  %v2895_v22 = vrot.slane %v9429_v17, 1  ;;  %v2001_v30 = vsel %vm1977_vm9, %v1999_v7, %v2000_v48  ;;  %v8989_v32 = vpack.c.bf16 %v674_v28, %v674_v28  ;;  %v675_v61 = vld [vmem:[%s10685_s22 + $0x90] sm:$0xff] }
 0x1ad   : > { %3546 = vrot.lane.b32.xlu1 %v3415_v51, %s10278_s25  ;;  %v1639_v15 = vsel %vm12787_vm8, %v1634_v5, %v1638_v56  ;;  %v2521_v18 = vrot.slane %v2519_v14, 1  ;;  %v2896_v26 = vrot.slane %v9430_v19, 1  ;;  %576 = vst [vmem:[#allocation2 + $0x6c] sm:$0x1] %v575_v23  ;;  %v673_v27 = vld [vmem:[%s10685_s22 + $0x80] sm:$0xff]  ;;  %v11015_v4 = vpack.c.bf16 %v675_v61, %v675_v61 }
 0x1ae   : > { %v2526_v21 = vrot.slane %v2524_v16, 1  ;;  %v8988_v31 = vpack.c.bf16 %v673_v27, %v673_v27  ;;  %v630_v34 = vld [vmem:[#allocation2 + $0x74] sm:$0x1] }
 0x1af   : > { %v2522_v25 = vor.u32 %v2521_v18, %v2517_v13  ;;  %v631_v38 = vsel %vm10721_vm5, 0, %v630_v34  ;;  %v2897_v47 = vsel %vm1977_vm9, %v2895_v22, %v2896_v26  ;;  %v941_v17 = vshrl.u32 %v11015_v4, 16 }
 0x1b0   : > { %3833 = vrot.lane.b32.xlu0 %v3791_v37, %s10276_s0  ;;  %v9427_v41 = vld [vmem:[#allocation2 + $0x60] sm:$0xff]   ;;  %v924_v62 = vshrl.u32 %v8988_v31, 16  ;;  %632 = vst [vmem:[#allocation2 + $0x74] sm:$0x1] %v631_v38  ;;  %v927_v43 = vshll.u32 %v8988_v31, 16 }
 0x1b1   : > { %1748 = vrot.lane.b32.xlu1 %v1627_v3, %s10272_s21  ;;  %v2527_v35 = vsel %vm12787_vm8, %v2522_v25, %v2526_v21  ;;  %v9424_v33 = vld [vmem:[#allocation2 + $0x60] sm:$0xff]   ;;  %v2531_v45 = vshll.u32 %v9427_v41, 16  ;;  %v2529_v63 = vshrl.u32 %v9427_v41, 16 }
 0x1b2   : > { %v1163_v37 = vld [vmem:[#allocation2 + $0x68] sm:$0x1]  ;;  %v11003_v40 = vld [vmem:[#allocation2 + $0x60] sm:$0xfe]   ;;  %v926_v49 = vrot.slane %v924_v62, 7 }
 0x1b3   : > { %v1164_v39 = vsel %vm10716_vm4, %v922_v50, %v1163_v37  ;;  %v932_v50 = vshrl.u32 %v8989_v32, 16  ;;  %v9434_v51 = vld [vmem:[#allocation2 + $0x60] sm:$0xff]   ;;  %v2533_v5 = vrot.slane %v2531_v45, 1 }
 0x1b4   : > { %3835 = vrot.lane.b32.xlu0 %v3794_v52, %s10276_s0  ;;  %1165 = vst [vmem:[#allocation2 + $0x68] sm:$0x1] %v1164_v39  ;;  %v935_v52 = vshll.u32 %v8989_v32, 16  ;;  %v9436_v54 = vld [vmem:[#allocation2 + $0x60] sm:$0xff]   ;;  %v929_v55 = vor.u32 %v927_v43, %v926_v49  ;;  %v930_v56 = vrot.slane %v926_v49, 4 }
 0x1b5   : > { %1750 = vrot.lane.b32.xlu1 %v1639_v15, %s10272_s21  ;;  %v934_v57 = vrot.slane %v932_v50, 7  ;;  %v1166_v58 = vld [vmem:[#allocation2 + $0x6c] sm:$0xf]  ;;  %v11010_v59 = vld [vmem:[#allocation2 + $0x60] sm:$0xff]   ;;  %v3419_v0 = vshll.u32 %v9436_v54, 16  ;;  %v2534_v18 = vor.u32 %v2533_v5, %v2529_v63 }
 0x1b6   : > { %v9440_v3 = vld [vmem:[#allocation2 + $0x60] sm:$0xfe]   ;;  %v1167_v48 = vsel %vm10762_vm10, %v929_v55, %v1166_v58  ;;  %v1643_v14 = vshll.u32 %v11010_v59, 16  ;;  %v1641_v28 = vshrl.u32 %v11010_v59, 16  ;;  %v944_v55 = vshll.u32 %v11015_v4, 16 }
 0x1b7   : > { %v939_v7 = vrot.slane %v934_v57, 4  ;;  %1168 = vst [vmem:[#allocation2 + $0x6c] sm:$0xf] %v1167_v48  ;;  %v3421_v8 = vrot.slane %v3419_v0, 1  ;;  %v1170_v36 = vld [vmem:[#allocation2 + $0x74] sm:$0x1] }
 0x1b8   : > { %2038 = vrot.lane.b32.xlu0 %v1998_v6, %s10271_s13  ;;  %v937_v6 = vor.u32 %v935_v52, %v934_v57  ;;  %v3795_v53 = vrot.slane %v9440_v3, 1  ;;  %v9448_v31 = vld [vmem:[#allocation2 + $0x60] sm:$0xfe]   ;;  %v1645_v38 = vrot.slane %v1643_v14, 1 }
 0x1b9   : > { %2040 = vrot.lane.b32.xlu1 %v2001_v30, %s10271_s13  ;;  %v1171_v13 = vsel %vm10716_vm4, %v939_v7, %v1170_v36 }
 0x1ba   : > { %v938_v12 = vsel %vm10743_vm7, %v930_v56, %v937_v6  ;;  %1172 = vst [vmem:[#allocation2 + $0x74] sm:$0x1] %v1171_v13 }
 0x1bb   : > { %v9428_v11 = vld [vmem:[#allocation2 + $0x68] ss:$0 sps:$4 sm:$0x11]   ;;  %1169 = vst.msk [vmem:[#allocation2 + $0x70] sm:$0xf] %vm12788_vm0, %v938_v12 }
 0x1bc   : > { %2215 = vrot.lane.b32.xlu0 %v9423_v60, %s10273_s16  ;;  %v3417_v60 = vshrl.u32 %v9436_v54, 16  ;;  %v9432_v16 = vld [vmem:[#allocation2 + $0x68] ss:$0 sps:$4 sm:$0x11]   ;;  %v2536_v19 = vshll.u32 %v9428_v11, 16  ;;  %v676_v54 = vld [vmem:[%s10685_s22 + $0x98] sm:$0xff] }
 0x1bd   : > { %2217 = vrot.lane.b32.xlu1 %v9424_v33, %s10273_s16  ;;  %v2899_v21 = vrot.slane %v9432_v16, 1  ;;  %v9441_v22 = vld [vmem:[#allocation2 + $0x68] ss:$0 sps:$4 sm:$0x11]   ;;  %v2002_v33 = vrot.slane %v9448_v31, 1  ;;  %v8991_v13 = vpack.c.bf16 %v676_v54, %v676_v54 }
 0x1be   : > { %v2538_v23 = vrot.slane %v2536_v19, 1  ;;  %v3422_v25 = vor.u32 %v3421_v8, %v3417_v60  ;;  %v9443_v27 = vld [vmem:[#allocation2 + $0x68] ss:$0 sps:$4 sm:$0x11]  }
 0x1bf   : > { %v1648_v39 = vshll.u32 %v9443_v27, 16  ;;  %v9449_v12 = vld [vmem:[#allocation2 + $0x68] ss:$0 sps:$4 sm:$0x11]   ;;  %v577_v27 = vld [vmem:[#allocation2 + $0x78] sm:$0x1] }
 0x1c0   : > { %2648 = vrot.lane.b32.xlu0 %v2527_v35, %s10277_s24  ;;  %v2539_v32 = vsel %vm12787_vm8, %v2534_v18, %v2538_v23  ;;  %v3796_v35 = vrot.slane %v9441_v22, 1 }
 0x1c1   : > { %2650 = vrot.lane.b32.xlu1 %v2539_v32, %s10277_s24  ;;  %v1650_v59 = vrot.slane %v1648_v39, 1  ;;  %v9445_v63 = vld [vmem:[#allocation2 + $0x74] ss:$0 sps:$4 sm:$0x11]   ;;  %v9454_v39 = vld [vmem:[#allocation2 + $0xc] sm:$0xff]  }
 0x1c2   : > { %v9435_v43 = vld [vmem:[#allocation2 + $0x6c] sm:$0xff]   ;;  %v3797_v50 = vsel %vm1977_vm9, %v3795_v53, %v3796_v35  ;;  %v3799_v60 = vrot.slane %v9445_v63, 1  ;;  %v9447_v8 = vld [vmem:[#allocation2 + $0x74] ss:$0 sps:$4 sm:$0x11]   ;;  %v578_v35 = vsel %vm10716_vm4, 0, %v577_v27 }
 0x1c3   : > { %v9438_v45 = vld [vmem:[#allocation2 + $0x6c] sm:$0xff]   ;;  %v1660_v16 = vshll.u32 %v9447_v8, 16  ;;  %579 = vst [vmem:[#allocation2 + $0x78] sm:$0x1] %v578_v35  ;;  %1352 = vst.msk [vmem:[#allocation3 + $0x8] sm:$0xff] %vm12786_vm11, %v9454_v39  ;;  %v677_v8 = vld [vmem:[%s10685_s22 + $0xa0] sm:$0xff] }
 0x1c4   : > { %v2027_v10 = vpop.permute.xlu1 %2026  ;;  %2937 = vrot.lane.b32.xlu0 %v2897_v47, %s10275_s12  ;;  %v9439_v47 = vld [vmem:[#allocation2 + $0x74] ss:$0 sps:$4 sm:$0x11]   ;;  %v3429_v56 = vshrl.u32 %v9438_v45, 16  ;;  %v3431_v57 = vshll.u32 %v9438_v45, 16 }
 0x1c5   : > { %v3436_v58 = vshll.u32 %v9439_v47, 16  ;;  %v9444_v61 = vld [vmem:[#allocation2 + $0x6c] sm:$0xfe]  }
 0x1c6   : > { %v1737_v9 = vpop.permute.xlu0 %1736  ;;  %v3433_v3 = vrot.slane %v3431_v57, 1  ;;  %v3798_v6 = vrot.slane %v9444_v61, 1  ;;  %v633_v61 = vld [vmem:[#allocation2 + $0x80] sm:$0x1] }
 0x1c7   : > { %1785 = vst.msk [vmem:[#allocation3] sm:$0xff] %vm12782_vm12, %v1737_v9  ;;  %v2898_v9 = vrot.slane %v11003_v40, 1  ;;  %v11041_v40 = vrot.slane %v941_v17, 7  ;;  %v3438_v5 = vrot.slane %v3436_v58, 1  ;;  %v11057_v17 = vld [vmem:[#allocation2 + $0x6c] sm:$0xfe]  }
 0x1c8   : > { %2075 = vst.msk [vmem:[#allocation3] sm:$0xff] %vm2074_vm13, %v2027_v10  ;;  %3115 = vrot.lane.b32.xlu0 %v9434_v51, %s10274_s29  ;;  %v9446_v51 = vld [vmem:[#allocation2 + $0x6c] sm:$0xff]   ;;  %v3434_v53 = vor.u32 %v3433_v3, %v3429_v56  ;;  %v3800_v14 = vsel %vm1977_vm9, %v3798_v6, %v3799_v60  ;;  %v9456_v56 = vld [vmem:[#allocation2 + $0x74] ss:$0 sps:$4 sm:$0x11]   ;;  %v9462_v58 = vld [vmem:[#allocation7] sm:$0xff]  }
 0x1c9   : > { %v10990_v29 = vpop.permute.xlu1 %2205  ;;  %v2900_v41 = vsel %vm1977_vm9, %v2898_v9, %v2899_v21  ;;  %v1653_v0 = vshrl.u32 %v9446_v51, 16  ;;  %v1655_v7 = vshll.u32 %v9446_v51, 16  ;;  %v1646_v9 = vor.u32 %v1645_v38, %v1641_v28  ;;  %v11062_v21 = vld [vmem:[#allocation2 + $0x74] ss:$0 sps:$4 sm:$0x11]   ;;  %9079 = vmatprep.subr.bf16.mxu0 %v9462_v58 }
 0x1ca   : > { %v2204_v20 = vpop.permute.xlu0 %2203  ;;  %2939 = vrot.lane.b32.xlu1 %v2900_v41, %s10275_s12  ;;  %v947_v18 = vrot.slane %v11041_v40, 4  ;;  %v3439_v19 = vsel %vm12787_vm8, %v3434_v53, %v3438_v5  ;;  %v2006_v32 = vrot.slane %v11062_v21, 1  ;;  %v949_v38 = vshrl.u32 %v8991_v13, 16  ;;  %9080 = vmatpush3.bf16.msra.mxu0 %v9462_v58  ;;  %v9461_v5 = vld [vmem:[#allocation2 + $0x74] ss:$0 sps:$4 sm:$0x11]  }
 0x1cb   : > { %2252 = vst.msk [vmem:[#allocation3] sm:$0xff] %vm2251_vm14, %v2204_v20  ;;  %v9437_v20 = vld [vmem:[#allocation2 + $0x68] ss:$0 sps:$4 sm:$0x11]   ;;  %v1657_v11 = vrot.slane %v1655_v7, 1  ;;  %v1651_v23 = vsel %vm12787_vm8, %v1646_v9, %v1650_v59  ;;  %v2548_v4 = vshll.u32 %v9456_v56, 16 }
 0x1cc   : > { %v3424_v26 = vshll.u32 %v9437_v20, 16  ;;  %v2003_v20 = vrot.slane %v9449_v12, 1  ;;  %v11072_v45 = vrot.slane %v949_v38, 7  ;;  %v2902_v60 = vrot.slane %v9461_v5, 1  ;;  %v9476_v58 = vld [vmem:[#allocation2] sm:$0xff]  }
 0x1cd   : > { %v1658_v41 = vor.u32 %v1657_v11, %v1653_v0  ;;  %v9460_v0 = vld [vmem:[#allocation2 + $0x6c] sm:$0xfe]   ;;  %v2550_v3 = vrot.slane %v2548_v4, 1  ;;  %v8992_v11 = vpack.c.bf16 %v677_v8, %v677_v8 }
 0x1ce   : > { %v11005_v44 = vpop.permute.xlu0 %3103  ;;  %v3426_v34 = vrot.slane %v3424_v26, 1  ;;  %3117 = vrot.lane.b32.xlu1 %v9435_v43, %s10274_s29  ;;  %v2005_v26 = vrot.slane %v11057_v17, 1  ;;  %v2004_v31 = vsel %vm1977_vm9, %v2002_v33, %v2003_v20  ;;  %v9455_v43 = vld [vmem:[#allocation2 + $0x6c] sm:$0xff]   ;;  %v9459_v33 = vld [vmem:[#allocation2 + $0x18] sm:$0xff]   ;;  %v956_v54 = vrot.slane %v11072_v45, 4 }
 0x1cf   : > { %v11008_v42 = vpop.permute.xlu1 %3105  ;;  %v2543_v57 = vshll.u32 %v9455_v43, 16  ;;  %1353 = vst.msk [vmem:[#allocation3 + $0x10] sm:$0xff] %vm12786_vm11, %v9459_v33  ;;  %v2901_v7 = vrot.slane %v9460_v0, 1  ;;  %v961_v17 = vshll.u32 %v8992_v11, 16 }
 0x1d0   : > { %v3427_v62 = vsel %vm12787_vm8, %v3422_v25, %v3426_v34  ;;  %v1662_v25 = vrot.slane %v1660_v16, 1  ;;  %v9452_v34 = vld [vmem:[#allocation2 + $0x6c] sm:$0xff]   ;;  %v958_v16 = vshrl.u32 %v8992_v11, 16 }
 0x1d1   : > { %3548 = vrot.lane.b32.xlu0 %v3427_v62, %s10278_s25  ;;  %v952_v62 = vshll.u32 %v8991_v13, 16  ;;  %v2545_v63 = vrot.slane %v2543_v57, 1  ;;  %v2903_v12 = vsel %vm1977_vm9, %v2901_v7, %v2902_v60  ;;  %v678_v13 = vld [vmem:[%s10685_s22 + $0xa8] sm:$0xff] }
 0x1d2   : > { %v11020_v10 = vpop.permute.xlu0 %2925  ;;  %3550 = vrot.lane.b32.xlu1 %v3439_v19, %s10278_s25  ;;  %v1663_v59 = vsel %vm12787_vm8, %v1658_v41, %v1662_v25  ;;  %v960_v25 = vrot.slane %v958_v16, 7 }
 0x1d3   : > { %v11027_v15 = vpop.permute.xlu1 %2028  ;;  %v954_v51 = vor.u32 %v952_v62, %v11072_v45 }
 0x1d4   : > { %v964_v38 = vrot.slane %v960_v25, 4 }
 0x1d5   : > { %3837 = vrot.lane.b32.xlu0 %v3797_v50, %s10276_s0  ;;  %v2541_v50 = vshrl.u32 %v9455_v43, 16 }
 0x1d6   : > { %v11033_v30 = vpop.permute.xlu0 %3825  ;;  %1752 = vrot.lane.b32.xlu1 %v1651_v23, %s10272_s21 }
 0x1d7   : > { %v11036_v37 = vpop.permute.xlu1 %2927 }
 0x1d9   : > { %3839 = vrot.lane.b32.xlu0 %v3800_v14, %s10276_s0  ;;  %v8993_v14 = vpack.c.bf16 %v678_v13, %v678_v13 }
 0x1da   : > { %v11044_v49 = vpop.permute.xlu0 %3827  ;;  %1754 = vrot.lane.b32.xlu1 %v1663_v59, %s10272_s21 }
 0x1db   : > { %v11047_v52 = vpop.permute.xlu1 %2638  ;;  %v969_v27 = vshll.u32 %v8993_v14, 16 }
 0x1dd   : > { %2042 = vrot.lane.b32.xlu0 %v2004_v31, %s10271_s13 }
 0x1de   : > { %v1739_v48 = vpop.permute.xlu0 %1738 }
 0x1df   : > { %v11053_v36 = vpop.permute.xlu1 %3538  ;;  %1786 = vst.msk [vmem:[#allocation3 + $0x8] sm:$0xff] %vm12782_vm12, %v1739_v48 }
 0x1e0   : > { %2076 = vst.msk [vmem:[#allocation3 + $0x8] sm:$0xff] %vm2074_vm13, %v11027_v15 }
 0x1e1   : > { %2253 = vst.msk [vmem:[#allocation3 + $0x8] sm:$0xff] %vm2251_vm14, %v10990_v29  ;;  %2219 = vrot.lane.b32.xlu0 %v9452_v34, %s10273_s16  ;;  %v9465_v29 = vld [vmem:[#allocation2 + $0x24] sm:$0xff]   ;;  %v963_v34 = vor.u32 %v961_v17, %v960_v25 }
 0x1e2   : > { %v2637_v22 = vpop.permute.xlu0 %2636  ;;  %2686 = vst.msk [vmem:[#allocation3 + $0x8] sm:$0xff] %vm2684_vm15, %v11047_v52  ;;  %v1173_v52 = vld [vmem:[#allocation2 + $0x78] sm:$0xf] }
 0x1e3   : > { %v1741_v28 = vpop.permute.xlu1 %1740  ;;  %2685 = vst.msk [vmem:[#allocation3] sm:$0xff] %vm2684_vm15, %v2637_v22 }
 0x1e4   : > { %2974 = vst.msk [vmem:[#allocation3] sm:$0xff] %vm2973_vm1, %v11020_v10  ;;  %v946_v10 = vor.u32 %v944_v55, %v11041_v40  ;;  %v634_v40 = vsel %vm10721_vm5, 0, %v633_v61  ;;  %2975 = vst.msk [vmem:[#allocation3 + $0x8] sm:$0xff] %vm2973_vm1, %v11036_v37  ;;  %v2007_v37 = vsel %vm1977_vm9, %v2005_v26, %v2006_v32  ;;  %v966_v26 = vshrl.u32 %v8993_v14, 16 }
 0x1e5   : > { %3152 = vst.msk [vmem:[#allocation3] sm:$0xff] %vm3151_vm2, %v11005_v44  ;;  %v955_v44 = vsel %vm10743_vm7, %v947_v18, %v954_v51  ;;  %635 = vst [vmem:[#allocation2 + $0x80] sm:$0x1] %v634_v40  ;;  %2044 = vrot.lane.b32.xlu1 %v2007_v37, %s10271_s13  ;;  %v9471_v18 = vld [vmem:[#allocation7 + $0x10] ss:$0 sps:$4 sm:$0x33]  }
 0x1e6   : > { %v3537_v47 = vpop.permute.xlu0 %3536  ;;  %1787 = vst.msk [vmem:[#allocation3 + $0x10] sm:$0xff] %vm12782_vm12, %v1741_v28  ;;  %v1174_v6 = vsel %vm10762_vm10, %v946_v10, %v1173_v52  ;;  %v636_v28 = vld [vmem:[#allocation2 + $0x8c] sm:$0x1]  ;;  %v968_v39 = vrot.slane %v966_v26, 7 }
 0x1e7   : > { %3585 = vst.msk [vmem:[#allocation3] sm:$0xff] %vm12785_vm3, %v3537_v47  ;;  %v1743_v15 = vpop.permute.xlu1 %1742  ;;  %1175 = vst [vmem:[#allocation2 + $0x78] sm:$0xf] %v1174_v6  ;;  %v637_v43 = vsel %vm10721_vm5, 0, %v636_v28 }
 0x1e8   : > { %3874 = vst.msk [vmem:[#allocation3] sm:$0xff] %vm12783_vm6, %v11033_v30  ;;  %v2546_v30 = vor.u32 %v2545_v63, %v2541_v50  ;;  %v971_v50 = vor.u32 %v969_v27, %v968_v39  ;;  %638 = vst [vmem:[#allocation2 + $0x8c] sm:$0x1] %v637_v43  ;;  %v973_v56 = vrot.slane %v968_v39, 4 }
 0x1e9   : > { %1176 = vst.msk [vmem:[#allocation2 + $0x7c] sm:$0xf] %vm12788_vm0, %v955_v44 }
 0x1ea   : > { %v2031_v55 = vpop.permute.xlu0 %2030  ;;  %3153 = vst.msk [vmem:[#allocation3 + $0x8] sm:$0xff] %vm3151_vm2, %v11008_v42  ;;  %v9467_v42 = vld [vmem:[#allocation7 + $0x8] sm:$0xff]   ;;  %v2551_v9 = vsel %vm12787_vm8, %v2546_v30, %v2550_v3  ;;  %v972_v10 = vsel %vm10743_vm7, %v964_v38, %v971_v50  ;;  %v679_v50 = vld [vmem:[%s10685_s22 + $0xb0] sm:$0xff] }
 0x1eb   : > { %2077 = vst.msk [vmem:[#allocation3 + $0x10] sm:$0xff] %vm2074_vm13, %v2031_v55  ;;  %v2033_v48 = vpop.permute.xlu1 %2032  ;;  %2652 = vrot.lane.b32.xlu0 %v2551_v9, %s10277_s24  ;;  %9081 = vmatprep.subr.bf16.mxu0 %v9467_v42 }
 0x1ec   : > { %1354 = vst.msk [vmem:[#allocation3 + $0x18] sm:$0xff] %vm12786_vm11, %v9465_v29  ;;  %9082 = vmatpush3.bf16.msra.mxu0 %v9467_v42  ;;  %v1177_v21 = vld [vmem:[#allocation2 + $0x80] sm:$0x1] }
 0x1ed   : > { %3586 = vst.msk [vmem:[#allocation3 + $0x8] sm:$0xff] %vm12785_vm3, %v11053_v36  ;;  %v580_v36 = vld [vmem:[#allocation2 + $0x84] sm:$0x1]  ;;  %v1178_v23 = vsel %vm10716_vm4, %v956_v54, %v1177_v21 }
 0x1ee   : > { %1788 = vst.msk [vmem:[#allocation3 + $0x18] sm:$0xff] %vm12782_vm12, %v1743_v15  ;;  %v2208_v53 = vpop.permute.xlu0 %2207  ;;  %vm12784_vm12 = vcmask 1041408   ;;  %1179 = vst [vmem:[#allocation2 + $0x80] sm:$0x1] %v1178_v23 }
 0x1ef   : > { %3875 = vst.msk [vmem:[#allocation3 + $0x8] sm:$0xff] %vm12783_vm6, %v11044_v49  ;;  %v581_v49 = vsel %vm10716_vm4, 0, %v580_v36  ;;  %vm3926_vm6 = vcmask 293888   ;;  %v2210_v19 = vpop.permute.xlu1 %2209  ;;  %v3890_v20 = vld [vmem:[#allocation3] sm:$0xff]  ;;  %2941 = vrot.lane.b32.xlu0 %v2903_v12, %s10275_s12  ;;  %9165 = vmatprep.subr.msk.bf16.mxu0 %vm12784_vm12, %v9471_v18  ;;  %v3977_v31 = vsel %vm12784_vm12, %v9471_v18, 0  ;;  %vm12825_vm12 = vcmask 294144  }
 0x1f0   : > { %2078 = vst.msk [vmem:[#allocation3 + $0x18] sm:$0xff] %vm2074_vm13, %v2033_v48  ;;  %582 = vst [vmem:[#allocation2 + $0x84] sm:$0x1] %v581_v49  ;;  %9085 = vmatprep.mubr.msk.bf16.mxu0 %vm3926_vm6, %v3890_v20  ;;  %v9453_v32 = vld [vmem:[#allocation2 + $0x78] sm:$0xff]   ;;  %9084 = vmatpush3.bf16.msra.mxu0 %v3977_v31 }
 0x1f1   : > { %2254 = vst.msk [vmem:[#allocation3 + $0x10] sm:$0xff] %vm2251_vm14, %v2208_v53  ;;  %2255 = vst.msk [vmem:[#allocation3 + $0x18] sm:$0xff] %vm2251_vm14, %v2210_v19  ;;  %v9457_v35 = vld [vmem:[#allocation2 + $0x78] sm:$0xff]   ;;  %2221 = vrot.lane.b32.xlu1 %v9453_v32, %s10273_s16  ;;  %v1184_v53 = vld [vmem:[#allocation2 + $0x8c] sm:$0x1] }
 0x1f2   : > { %v2641_v22 = vpop.permute.xlu0 %2640  ;;  %v9466_v62 = vld [vmem:[#allocation2 + $0x78] sm:$0xff]   ;;  %v2553_v45 = vshrl.u32 %v9457_v35, 16  ;;  %v2555_v33 = vshll.u32 %v9457_v35, 16  ;;  %1183 = vst.msk [vmem:[#allocation2 + $0x88] sm:$0xf] %vm12788_vm0, %v972_v10  ;;  %v1185_v36 = vsel %vm10716_vm4, %v973_v56, %v1184_v53 }
 0x1f3   : > { %2687 = vst.msk [vmem:[#allocation3 + $0x10] sm:$0xff] %vm2684_vm15, %v2641_v22  ;;  %v9463_v47 = vld [vmem:[#allocation2 + $0x78] sm:$0xfe]   ;;  %3119 = vrot.lane.b32.xlu0 %v9466_v62, %s10274_s29  ;;  %v2643_v4 = vpop.permute.xlu1 %2642  ;;  %1186 = vst [vmem:[#allocation2 + $0x8c] sm:$0x1] %v1185_v36 }
 0x1f4   : > { %v9469_v54 = vld [vmem:[#allocation2 + $0x78] sm:$0xff]   ;;  %v2557_v59 = vrot.slane %v2555_v33, 1  ;;  %4906 = vst.msk [vmem:[#allocation3] sm:$0xff] %vm12786_vm11, %v9476_v58  ;;  %v2904_v37 = vrot.slane %v9463_v47, 1 }
 0x1f5   : > { %v3441_v61 = vshrl.u32 %v9469_v54, 16  ;;  %v3443_v15 = vshll.u32 %v9469_v54, 16  ;;  %v9474_v44 = vld [vmem:[#allocation2 + $0x78] sm:$0xfe]   ;;  %2688 = vst.msk [vmem:[#allocation3 + $0x18] sm:$0xff] %vm2684_vm15, %v2643_v4 }
 0x1f6   : > { %v2930_v41 = vpop.permute.xlu0 %2929  ;;  %v11153_v63 = vld [vmem:[#allocation2 + $0x78] sm:$0xff]   ;;  %v9458_v29 = vld [vmem:[#allocation2 + $0x80] ss:$0 sps:$4 sm:$0x11]   ;;  %v2558_v30 = vor.u32 %v2557_v59, %v2553_v45  ;;  %v3801_v11 = vrot.slane %v9474_v44, 1 }
 0x1f7   : > { %2976 = vst.msk [vmem:[#allocation3 + $0x10] sm:$0xff] %vm2973_vm1, %v2930_v41  ;;  %v1180_v51 = vld [vmem:[#allocation2 + $0x84] sm:$0xf]  ;;  %v9464_v0 = vld [vmem:[#allocation2 + $0x80] ss:$0 sps:$4 sm:$0x11]   ;;  %v2932_v7 = vpop.permute.xlu1 %2931 }
 0x1f8   : > { %v1181_v57 = vsel %vm10762_vm10, %v963_v34, %v1180_v51  ;;  %v3891_v55 = vld [vmem:[#allocation3 + $0x8] sm:$0xff]  ;;  %v3445_v52 = vrot.slane %v3443_v15, 1  ;;  %v2560_v3 = vshll.u32 %v9458_v29, 16  ;;  %v2905_v9 = vrot.slane %v9464_v0, 1  ;;  %2977 = vst.msk [vmem:[#allocation3 + $0x18] sm:$0xff] %vm2973_vm1, %v2932_v7 }
 0x1f9   : > { %1182 = vst [vmem:[#allocation2 + $0x84] sm:$0xf] %v1181_v57  ;;  %9086 = vmatmul.mubr.msk.bf16.vlgmr.msra.gmra.mrb[0].mxu0 %vm3926_vm6, %v3891_v55  ;;  %v9470_v5 = vld [vmem:[#allocation2 + $0x80] ss:$0 sps:$4 sm:$0x11]   ;;  %v1667_v12 = vshll.u32 %v11153_v63, 16 }
 0x1fa   : > { %v3108_v40 = vpop.permute.xlu0 %3107  ;;  %v9475_v6 = vld [vmem:[#allocation2 + $0x80] ss:$0 sps:$4 sm:$0x11]   ;;  %v2562_v48 = vrot.slane %v2560_v3, 1  ;;  %v3446_v60 = vor.u32 %v3445_v52, %v3441_v61  ;;  %v3448_v8 = vshll.u32 %v9470_v5, 16  ;;  %v1665_v16 = vshrl.u32 %v11153_v63, 16 }
 0x1fb   : > { %3154 = vst.msk [vmem:[#allocation3 + $0x10] sm:$0xff] %vm3151_vm2, %v3108_v40  ;;  %v3802_v14 = vrot.slane %v9475_v6, 1  ;;  %v3110_v17 = vpop.permute.xlu1 %3109  ;;  %v2906_v19 = vsel %vm1977_vm9, %v2904_v37, %v2905_v9  ;;  %v1669_v22 = vrot.slane %v1667_v12, 1  ;;  %v9478_v25 = vld [vmem:[#allocation2 + $0x80] ss:$0 sps:$4 sm:$0x11]  }
 0x1fc   : > { %v2563_v49 = vsel %vm12787_vm8, %v2558_v30, %v2562_v48  ;;  %v3450_v13 = vrot.slane %v3448_v8, 1  ;;  %3155 = vst.msk [vmem:[#allocation3 + $0x18] sm:$0xff] %vm3151_vm2, %v3110_v17  ;;  %v1672_v32 = vshll.u32 %v9478_v25, 16  ;;  %v9473_v43 = vld [vmem:[#allocation2 + $0x8c] ss:$0 sps:$4 sm:$0x11]   ;;  %v8994_v30 = vpack.c.bf16 %v679_v50, %v679_v50 }
 0x1fd   : > { %2654 = vrot.lane.b32.xlu1 %v2563_v49, %s10277_s24  ;;  %v3803_v31 = vsel %vm1977_vm9, %v3801_v11, %v3802_v14  ;;  %v9480_v33 = vld [vmem:[#allocation2 + $0x8c] ss:$0 sps:$4 sm:$0x11]   ;;  %v3460_v54 = vshll.u32 %v9473_v43, 16  ;;  %v1670_v15 = vor.u32 %v1669_v22, %v1665_v16  ;;  %v9483_v63 = vld [vmem:[#allocation2 + $0x78] sm:$0xfe]  }
 0x1fe   : > { %v3541_v42 = vpop.permute.xlu0 %3540  ;;  %v3451_v20 = vsel %vm12787_vm8, %v3446_v60, %v3450_v13  ;;  %v1674_v45 = vrot.slane %v1672_v32, 1  ;;  %v9482_v56 = vld [vmem:[#allocation2 + $0x8c] ss:$0 sps:$4 sm:$0x11]   ;;  %v3805_v58 = vrot.slane %v9480_v33, 1  ;;  %v2008_v0 = vrot.slane %v9483_v63, 1 }
 0x1ff   : > { %3587 = vst.msk [vmem:[#allocation3 + $0x10] sm:$0xff] %vm12785_vm3, %v3541_v42  ;;  %3552 = vrot.lane.b32.xlu0 %v3451_v20, %s10278_s25  ;;  %v3543_v62 = vpop.permute.xlu1 %3542  ;;  %v3462_v61 = vrot.slane %v3460_v54, 1  ;;  %v1684_v44 = vshll.u32 %v9482_v56, 16  ;;  %v9484_v40 = vld [vmem:[#allocation2 + $0x80] ss:$0 sps:$4 sm:$0x11]  }
 0x200   : > { %v9472_v21 = vld [vmem:[#allocation2 + $0x84] sm:$0xff]   ;;  %3588 = vst.msk [vmem:[#allocation3 + $0x18] sm:$0xff] %vm12785_vm3, %v3543_v62  ;;  %v2009_v5 = vrot.slane %v9484_v40, 1  ;;  %v9486_v37 = vld [vmem:[#allocation2 + $0x8c] ss:$0 sps:$4 sm:$0x11]   ;;  %v1675_v7 = vsel %vm12787_vm8, %v1670_v15, %v1674_v45 }
 0x201   : > { %v9468_v23 = vld [vmem:[#allocation2 + $0x84] sm:$0xff]   ;;  %v3453_v27 = vshrl.u32 %v9472_v21, 16  ;;  %v3455_v28 = vshll.u32 %v9472_v21, 16  ;;  %2943 = vrot.lane.b32.xlu1 %v2906_v19, %s10275_s12  ;;  %v1686_v55 = vrot.slane %v1684_v44, 1  ;;  %v583_v60 = vld [vmem:[#allocation2 + $0x90] sm:$0x1] }
 0x202   : > { %v3830_v18 = vpop.permute.xlu0 %3829  ;;  %v9481_v26 = vld [vmem:[#allocation2 + $0x84] sm:$0xff]   ;;  %v680_v8 = vld [vmem:[%s10685_s22 + $0xb8] sm:$0xff]  ;;  %v2010_v53 = vsel %vm1977_vm9, %v2008_v0, %v2009_v5  ;;  %v2012_v36 = vrot.slane %v9486_v37, 1  ;;  %v584_v11 = vsel %vm10716_vm4, 0, %v583_v60  ;;  %v975_v49 = vshrl.u32 %v8994_v30, 16  ;;  %v9498_v20 = vld [vmem:[#allocation2 + $0x3c] sm:$0xff]  }
 0x203   : > { %3876 = vst.msk [vmem:[#allocation3 + $0x10] sm:$0xff] %vm12825_vm12, %v3830_v18  ;;  %v9479_v34 = vld [vmem:[#allocation2 + $0x84] sm:$0xfe]   ;;  %v1677_v35 = vshrl.u32 %v9481_v26, 16  ;;  %v3457_v39 = vrot.slane %v3455_v28, 1  ;;  %v1679_v41 = vshll.u32 %v9481_v26, 16  ;;  %3841 = vrot.lane.b32.xlu0 %v3803_v31, %s10276_s0  ;;  %v1745_v10 = vpop.permute.xlu1 %1744  ;;  %v8995_v12 = vpack.c.bf16 %v680_v8, %v680_v8 }
 0x204   : > { %v3804_v47 = vrot.slane %v9479_v34, 1  ;;  %v9485_v52 = vld [vmem:[#allocation2 + $0x84] sm:$0xfe]   ;;  %585 = vst [vmem:[#allocation2 + $0x90] sm:$0x1] %v584_v11  ;;  %v978_v13 = vshll.u32 %v8994_v30, 16 }
 0x205   : > { %3121 = vrot.lane.b32.xlu1 %v9468_v23, %s10274_s29  ;;  %v3458_v51 = vor.u32 %v3457_v39, %v3453_v27  ;;  %v1681_v59 = vrot.slane %v1679_v41, 1  ;;  %v2011_v48 = vrot.slane %v9485_v52, 1  ;;  %v9487_v9 = vld [vmem:[#allocation2 + $0x84] sm:$0xff]   ;;  %v9493_v16 = vld [vmem:[#allocation2 + $0x30] sm:$0xff]   ;;  %v983_v17 = vshrl.u32 %v8995_v12, 16  ;;  %v681_v28 = vld [vmem:[%s10685_s22 + $0xc0] sm:$0xff] }
 0x206   : > { %v3832_v38 = vpop.permute.xlu0 %3831  ;;  %v3806_v4 = vsel %vm1977_vm9, %v3804_v47, %v3805_v58  ;;  %v9489_v14 = vld [vmem:[#allocation2 + $0x84] sm:$0xff]   ;;  %v986_v18 = vshll.u32 %v8995_v12, 16  ;;  %v9490_v19 = vld [vmem:[#allocation2 + $0x8c] ss:$0 sps:$4 sm:$0x11]   ;;  %v977_v23 = vrot.slane %v975_v49, 7  ;;  %v11203_v39 = vpack.c.bf16 %v681_v28, %v681_v28 }
 0x207   : > { %3877 = vst.msk [vmem:[#allocation3 + $0x18] sm:$0xff] %vm12825_vm12, %v3832_v38  ;;  %v3463_v29 = vsel %vm12787_vm8, %v3458_v51, %v3462_v61  ;;  %3843 = vrot.lane.b32.xlu0 %v3806_v4, %s10276_s0  ;;  %v1747_v6 = vpop.permute.xlu1 %1746  ;;  %v1682_v42 = vor.u32 %v1681_v59, %v1677_v35  ;;  %v2565_v25 = vshrl.u32 %v9489_v14, 16  ;;  %v2567_v26 = vshll.u32 %v9489_v14, 16  ;;  %v639_v27 = vld [vmem:[#allocation2 + $0x98] sm:$0x1]  ;;  %v682_v38 = vld [vmem:[%s10685_s22 + $0xc8] sm:$0xff] }
 0x208   : > { %1355 = vst.msk [vmem:[#allocation3 + $0x20] sm:$0xff] %vm12786_vm11, %v9493_v16  ;;  %v11196_v32 = vrot.slane %v983_v17, 7  ;;  %v2572_v34 = vshll.u32 %v9490_v19, 16  ;;  %v640_v35 = vsel %vm10721_vm5, 0, %v639_v27  ;;  %vm12826_vm12 = vcmask 64544   ;;  %1356 = vst.msk [vmem:[#allocation3 + $0x28] sm:$0xff] %vm12786_vm11, %v9498_v20 }
 0x209   : > { %3554 = vrot.lane.b32.xlu1 %v3463_v29, %s10278_s25  ;;  %v1687_v22 = vsel %vm12787_vm8, %v1682_v42, %v1686_v55  ;;  %1789 = vst.msk [vmem:[#allocation3 + $0x20] sm:$0xff] %vm12826_vm12, %v1745_v10  ;;  %v980_v41 = vor.u32 %v978_v13, %v977_v23  ;;  %v981_v62 = vrot.slane %v977_v23, 4  ;;  %v2569_v43 = vrot.slane %v2567_v26, 1  ;;  %641 = vst [vmem:[#allocation2 + $0x98] sm:$0x1] %v640_v35  ;;  %v683_v60 = vld [vmem:[%s10685_s22 + $0xd0] sm:$0xff] }
 0x20a   : > { %v11180_v57 = vpop.permute.xlu0 %2034  ;;  %vm12827_vm3 = vmmov %vm12826_vm12  ;;  %v988_v45 = vor.u32 %v986_v18, %v11196_v32  ;;  %v990_v33 = vrot.slane %v11196_v32, 4  ;;  %v2574_v47 = vrot.slane %v2572_v34, 1  ;;  %v8997_v50 = vpack.c.bf16 %v682_v38, %v682_v38  ;;  %v9494_v58 = vld [vmem:[#allocation2 + $0x84] sm:$0xfe]   ;;  %v586_v40 = vld [vmem:[#allocation2 + $0x9c] sm:$0x1] }
 0x20b   : > { %2046 = vrot.lane.b32.xlu0 %v2010_v53, %s10271_s13  ;;  %v2037_v31 = vpop.permute.xlu1 %2036  ;;  %1790 = vst.msk [vmem:[#allocation3 + $0x28] sm:$0xff] %vm12827_vm3, %v1747_v6  ;;  %v2013_v54 = vsel %vm1977_vm9, %v2011_v48, %v2012_v36  ;;  %v2570_v56 = vor.u32 %v2569_v43, %v2565_v25  ;;  %v9495_v59 = vld [vmem:[#allocation2 + $0x8c] ss:$0 sps:$4 sm:$0x11]   ;;  %v1187_v61 = vld [vmem:[#allocation2 + $0x90] sm:$0xf]  ;;  %v11244_v14 = vpack.c.bf16 %v683_v60, %v683_v60 }
 0x20c   : > { %2079 = vst.msk [vmem:[#allocation3 + $0x20] sm:$0xff] %vm2074_vm13, %v11180_v57  ;;  %2080 = vst.msk [vmem:[#allocation3 + $0x28] sm:$0xff] %vm2074_vm13, %v2037_v31  ;;  %v992_v57 = vshrl.u32 %v11203_v39, 16  ;;  %v989_v10 = vsel %vm10743_vm7, %v981_v62, %v988_v45  ;;  %v1188_v15 = vsel %vm10762_vm10, %v980_v41, %v1187_v61  ;;  %v2907_v63 = vrot.slane %v9494_v58, 1  ;;  %v3892_v29 = vld [vmem:[#allocation3 + $0x10] sm:$0xff]  ;;  %v684_v8 = vld [vmem:[%s10685_s22 + $0xd8] sm:$0xff] }
 0x20d   : > { %1756 = vrot.lane.b32.xlu1 %v1675_v7, %s10272_s21  ;;  %1190 = vst.msk [vmem:[#allocation2 + $0x94] sm:$0xf] %vm12788_vm0, %v989_v10  ;;  %v2575_v44 = vsel %vm12787_vm8, %v2570_v56, %v2574_v47  ;;  %v2908_v4 = vrot.slane %v9495_v59, 1  ;;  %1189 = vst [vmem:[#allocation2 + $0x90] sm:$0xf] %v1188_v15  ;;  %v587_v52 = vsel %vm10716_vm4, 0, %v586_v40  ;;  %9089 = vmatprep.mubr.msk.bf16.mxu0 %vm3926_vm6, %v3892_v29 }
 0x20e   : > { %v2212_v3 = vpop.permute.xlu0 %2211  ;;  %v3893_v0 = vld [vmem:[#allocation3 + $0x18] sm:$0xff]  ;;  %v994_v30 = vrot.slane %v992_v57, 7  ;;  %v1000_v5 = vshrl.u32 %v8997_v50, 16  ;;  %v642_v37 = vld [vmem:[#allocation2 + $0xa4] sm:$0x1]  ;;  %v1003_v7 = vshll.u32 %v8997_v50, 16  ;;  %v8999_v16 = vpack.c.bf16 %v684_v8, %v684_v8 }
 0x20f   : > { %2223 = vrot.lane.b32.xlu0 %v9487_v9, %s10273_s16  ;;  %2256 = vst.msk [vmem:[#allocation3 + $0x20] sm:$0xff] %vm2251_vm14, %v2212_v3  ;;  %v2214_v55 = vpop.permute.xlu1 %2213  ;;  %v995_v3 = vshll.u32 %v11203_v39, 16  ;;  %v2909_v6 = vsel %vm1977_vm9, %v2907_v63, %v2908_v4  ;;  %588 = vst [vmem:[#allocation2 + $0x9c] sm:$0x1] %v587_v52  ;;  %v643_v42 = vsel %vm10721_vm5, 0, %v642_v37  ;;  %9090 = vmatmul.mubr.msk.bf16.gmra.mrb[4].mxu0 %vm3926_vm6, %v3893_v0  ;;  %v9523_v49 = vld [vmem:[#allocation2 + $0x48] sm:$0xff]  }
 0x210   : > { %2257 = vst.msk [vmem:[#allocation3 + $0x28] sm:$0xff] %vm2251_vm14, %v2214_v55  ;;  %v589_v9 = vld [vmem:[#allocation2 + $0xa8] sm:$0x1]  ;;  %v1191_v53 = vld [vmem:[#allocation2 + $0x98] sm:$0x1]  ;;  %v998_v36 = vrot.slane %v994_v30, 4 }
 0x211   : > { %1758 = vrot.lane.b32.xlu1 %v1687_v22, %s10272_s21  ;;  %v11236_v11 = vrot.slane %v1000_v5, 7  ;;  %644 = vst [vmem:[#allocation2 + $0xa4] sm:$0x1] %v643_v42  ;;  %v590_v12 = vsel %vm10716_vm4, 0, %v589_v9  ;;  %v1192_v13 = vsel %vm10716_vm4, %v990_v33, %v1191_v53  ;;  %v645_v17 = vld [vmem:[#allocation2 + $0xb0] sm:$0x1]  ;;  %v997_v28 = vor.u32 %v995_v3, %v994_v30 }
 0x212   : > { %v2645_v21 = vpop.permute.xlu0 %2644  ;;  %591 = vst [vmem:[#allocation2 + $0xa8] sm:$0x1] %v590_v12  ;;  %1193 = vst [vmem:[#allocation2 + $0x98] sm:$0x1] %v1192_v13  ;;  %v646_v19 = vsel %vm10721_vm5, 0, %v645_v17  ;;  %v1017_v22 = vshrl.u32 %v8999_v16, 16 }
 0x213   : > { %2689 = vst.msk [vmem:[#allocation3 + $0x20] sm:$0xff] %vm2684_vm15, %v2645_v21  ;;  %2656 = vrot.lane.b32.xlu0 %v2575_v44, %s10277_s24  ;;  %v1005_v18 = vor.u32 %v1003_v7, %v11236_v11  ;;  %v1007_v20 = vrot.slane %v11236_v11, 4  ;;  %v1009_v21 = vshrl.u32 %v11244_v14, 16  ;;  %v1020_v23 = vshll.u32 %v8999_v16, 16  ;;  %647 = vst [vmem:[#allocation2 + $0xb0] sm:$0x1] %v646_v19  ;;  %v2647_v39 = vpop.permute.xlu1 %2646 }
 0x214   : > { %1357 = vst.msk [vmem:[#allocation3 + $0x30] sm:$0xff] %vm12786_vm11, %v9523_v49  ;;  %v9528_v25 = vld [vmem:[#allocation2 + $0x54] sm:$0xff]   ;;  %v11259_v35 = vrot.slane %v1017_v22, 7  ;;  %vm12828_vm3 = vcmask 261344   ;;  %v1012_v60 = vshll.u32 %v11244_v14, 16  ;;  %vm12829_vm12 = vcmask 294144  }
 0x215   : > { %2048 = vrot.lane.b32.xlu1 %v2013_v54, %s10271_s13  ;;  %v1006_v26 = vsel %vm10743_vm7, %v998_v36, %v1005_v18  ;;  %v9488_v27 = vld [vmem:[#allocation2 + $0x90] sm:$0xff]   ;;  %v11256_v31 = vrot.slane %v1009_v21, 7  ;;  %1358 = vst.msk [vmem:[#allocation3 + $0x38] sm:$0xff] %vm12786_vm11, %v9528_v25 }
 0x216   : > { %v2934_v51 = vpop.permute.xlu0 %2933  ;;  %1197 = vst.msk [vmem:[#allocation2 + $0xa0] sm:$0xf] %vm12788_vm0, %v1006_v26  ;;  %v9491_v32 = vld [vmem:[#allocation2 + $0x90] sm:$0xff]   ;;  %v1194_v33 = vld [vmem:[#allocation2 + $0x9c] sm:$0xf]  ;;  %v1022_v50 = vor.u32 %v1020_v23, %v11259_v35 }
 0x217   : > { %2978 = vst.msk [vmem:[#allocation3 + $0x20] sm:$0xff] %vm2973_vm1, %v2934_v51  ;;  %2945 = vrot.lane.b32.xlu0 %v2909_v6, %s10275_s12  ;;  %v9496_v34 = vld [vmem:[#allocation2 + $0x90] sm:$0xfe]   ;;  %v1015_v41 = vrot.slane %v11256_v31, 4  ;;  %v2577_v62 = vshrl.u32 %v9491_v32, 16  ;;  %v2579_v43 = vshll.u32 %v9491_v32, 16  ;;  %v1195_v54 = vsel %vm10762_vm10, %v997_v28, %v1194_v33  ;;  %v2936_v15 = vpop.permute.xlu1 %2935 }
 0x218   : > { %v9499_v38 = vld [vmem:[#allocation2 + $0x90] sm:$0xff]   ;;  %v2910_v45 = vrot.slane %v9496_v34, 1  ;;  %2690 = vst.msk [vmem:[#allocation3 + $0x28] sm:$0xff] %vm2684_vm15, %v2647_v39  ;;  %1196 = vst [vmem:[#allocation2 + $0x9c] sm:$0xf] %v1195_v54 }
 0x219   : > { %2225 = vrot.lane.b32.xlu1 %v9488_v27, %s10273_s16  ;;  %v9501_v47 = vld [vmem:[#allocation2 + $0x90] sm:$0xff]   ;;  %v9492_v51 = vld [vmem:[#allocation2 + $0x98] ss:$0 sps:$4 sm:$0x11]   ;;  %v2581_v58 = vrot.slane %v2579_v43, 1  ;;  %v1023_v57 = vsel %vm10743_vm7, %v1015_v41, %v1022_v50  ;;  %2979 = vst.msk [vmem:[#allocation3 + $0x28] sm:$0xff] %vm2973_vm1, %v2936_v15 }
 0x21a   : > { %v3112_v48 = vpop.permute.xlu0 %3111  ;;  %v11268_v56 = vld [vmem:[#allocation2 + $0x90] sm:$0xff]   ;;  %v9497_v59 = vld [vmem:[#allocation2 + $0x98] ss:$0 sps:$4 sm:$0x11]   ;;  %v2584_v10 = vshll.u32 %v9492_v51, 16  ;;  %v3465_v61 = vshrl.u32 %v9501_v47, 16 }
 0x21b   : > { %3156 = vst.msk [vmem:[#allocation3 + $0x20] sm:$0xff] %vm3151_vm2, %v3112_v48  ;;  %3123 = vrot.lane.b32.xlu0 %v9499_v38, %s10274_s29  ;;  %v2582_v63 = vor.u32 %v2581_v58, %v2577_v62  ;;  %v2911_v4 = vrot.slane %v9497_v59, 1  ;;  %v3467_v40 = vshll.u32 %v9501_v47, 16  ;;  %v9502_v55 = vld [vmem:[#allocation2 + $0x98] ss:$0 sps:$4 sm:$0x11]   ;;  %v3114_v6 = vpop.permute.xlu1 %3113 }
 0x21c   : > { %1204 = vst.msk [vmem:[#allocation2 + $0xac] sm:$0xf] %vm12788_vm0, %v1023_v57  ;;  %v2586_v29 = vrot.slane %v2584_v10, 1  ;;  %v1198_v0 = vld [vmem:[#allocation2 + $0xa4] sm:$0x1]  ;;  %v3472_v5 = vshll.u32 %v9502_v55, 16  ;;  %v1014_v55 = vor.u32 %v1012_v60, %v11256_v31 }
 0x21d   : > { %v3469_v52 = vrot.slane %v3467_v40, 1  ;;  %v1199_v30 = vsel %vm10716_vm4, %v1007_v20, %v1198_v0  ;;  %v1691_v37 = vshll.u32 %v11268_v56, 16  ;;  %v9505_v48 = vld [vmem:[#allocation2 + $0x90] sm:$0xfe]   ;;  %3157 = vst.msk [vmem:[#allocation3 + $0x28] sm:$0xff] %vm3151_vm2, %v3114_v6  ;;  %v2912_v8 = vsel %vm1977_vm9, %v2910_v45, %v2911_v4  ;;  %v685_v43 = vld [vmem:[%s10685_s22 + $0xe0] sm:$0xff] }
 0x21e   : > { %v3545_v44 = vpop.permute.xlu0 %3544  ;;  %v2587_v3 = vsel %vm12787_vm8, %v2582_v63, %v2586_v29  ;;  %1200 = vst [vmem:[#allocation2 + $0xa4] sm:$0x1] %v1199_v30  ;;  %v9506_v9 = vld [vmem:[#allocation2 + $0x98] ss:$0 sps:$4 sm:$0x11]   ;;  %v3474_v53 = vrot.slane %v3472_v5, 1  ;;  %v11304_v0 = vpack.c.bf16 %v685_v43, %v685_v43 }
 0x21f   : > { %3589 = vst.msk [vmem:[#allocation3 + $0x20] sm:$0xff] %vm12828_vm3, %v3545_v44  ;;  %2658 = vrot.lane.b32.xlu1 %v2587_v3, %s10277_s24  ;;  %v3470_v42 = vor.u32 %v3469_v52, %v3465_v61  ;;  %v1689_v36 = vshrl.u32 %v11268_v56, 16  ;;  %v9500_v11 = vld [vmem:[#allocation2 + $0x9c] sm:$0xff]   ;;  %v3807_v49 = vrot.slane %v9505_v48, 1  ;;  %v3808_v13 = vrot.slane %v9506_v9, 1  ;;  %v3547_v18 = vpop.permute.xlu1 %3546 }
 0x220   : > { %v9503_v12 = vld [vmem:[#allocation2 + $0x9c] sm:$0xff]   ;;  %v1693_v16 = vrot.slane %v1691_v37, 1  ;;  %v9508_v21 = vld [vmem:[#allocation2 + $0x98] ss:$0 sps:$4 sm:$0x11]   ;;  %3590 = vst.msk [vmem:[#allocation3 + $0x28] sm:$0xff] %vm12828_vm3, %v3547_v18 }
 0x221   : > { %v3475_v17 = vsel %vm12787_vm8, %v3470_v42, %v3474_v53  ;;  %v3477_v14 = vshrl.u32 %v9503_v12, 16  ;;  %v3479_v20 = vshll.u32 %v9503_v12, 16  ;;  %v9511_v22 = vld [vmem:[#allocation2 + $0x9c] sm:$0xff]   ;;  %v3809_v23 = vsel %vm1977_vm9, %v3807_v49, %v3808_v13  ;;  %v9513_v57 = vld [vmem:[#allocation2 + $0x90] sm:$0xfe]  }
 0x222   : > { %v3834_v7 = vpop.permute.xlu0 %3833  ;;  %3556 = vrot.lane.b32.xlu0 %v3475_v17, %s10278_s25  ;;  %v9509_v25 = vld [vmem:[#allocation2 + $0x9c] sm:$0xfe]   ;;  %v1696_v28 = vshll.u32 %v9508_v21, 16  ;;  %vm12830_vm3 = vcmask 64544   ;;  %v1701_v50 = vshrl.u32 %v9511_v22, 16  ;;  %v1694_v54 = vor.u32 %v1693_v16, %v1689_v36 }
 0x223   : > { %3878 = vst.msk [vmem:[#allocation3 + $0x20] sm:$0xff] %vm12829_vm12, %v3834_v7  ;;  %2947 = vrot.lane.b32.xlu1 %v2912_v8, %s10275_s12  ;;  %v3481_v27 = vrot.slane %v3479_v20, 1  ;;  %v1749_v34 = vpop.permute.xlu1 %1748  ;;  %v3810_v62 = vrot.slane %v9509_v25, 1  ;;  %v1703_v56 = vshll.u32 %v9511_v22, 16  ;;  %v1024_v10 = vrot.slane %v11259_v35, 4  ;;  %v9517_v37 = vld [vmem:[#allocation2 + $0x9c] sm:$0xff]  }
 0x224   : > { %1791 = vst.msk [vmem:[#allocation3 + $0x30] sm:$0xff] %vm12830_vm3, %v1749_v34  ;;  %v1698_v45 = vrot.slane %v1696_v28, 1  ;;  %v9514_v4 = vld [vmem:[#allocation2 + $0x98] ss:$0 sps:$4 sm:$0x11]   ;;  %v2014_v29 = vrot.slane %v9513_v57, 1 }
 0x225   : > { %v9504_v26 = vld [vmem:[#allocation2 + $0xa4] ss:$0 sps:$4 sm:$0x11]   ;;  %v3482_v39 = vor.u32 %v3481_v27, %v3477_v14  ;;  %v1705_v63 = vrot.slane %v1703_v56, 1  ;;  %v2015_v30 = vrot.slane %v9514_v4, 1  ;;  %v9519_v60 = vld [vmem:[#allocation2 + $0x9c] sm:$0xff]  }
 0x226   : > { %v3836_v19 = vpop.permute.xlu0 %3835  ;;  %v9510_v32 = vld [vmem:[#allocation2 + $0xa4] ss:$0 sps:$4 sm:$0x11]   ;;  %v3484_v41 = vshll.u32 %v9504_v26, 16  ;;  %3845 = vrot.lane.b32.xlu0 %v3809_v23, %s10276_s0  ;;  %v1699_v35 = vsel %vm12787_vm8, %v1694_v54, %v1698_v45  ;;  %v9515_v3 = vld [vmem:[#allocation2 + $0x9c] sm:$0xfe]  }
 0x227   : > { %3879 = vst.msk [vmem:[#allocation3 + $0x28] sm:$0xff] %vm12829_vm12, %v3836_v19  ;;  %3125 = vrot.lane.b32.xlu1 %v9500_v11, %s10274_s29  ;;  %v3811_v33 = vrot.slane %v9510_v32, 1  ;;  %v9512_v47 = vld [vmem:[#allocation2 + $0xa4] ss:$0 sps:$4 sm:$0x11]   ;;  %v1751_v61 = vpop.permute.xlu1 %1750  ;;  %vm12831_vm12 = vmmov %vm12830_vm3  ;;  %v1706_v52 = vor.u32 %v1705_v63, %v1701_v50  ;;  %v2016_v48 = vsel %vm1977_vm9, %v2014_v29, %v2015_v30  ;;  %v2017_v9 = vrot.slane %v9515_v3, 1 }
 0x228   : > { %v3486_v51 = vrot.slane %v3484_v41, 1  ;;  %v1708_v59 = vshll.u32 %v9512_v47, 16  ;;  %1792 = vst.msk [vmem:[#allocation3 + $0x38] sm:$0xff] %vm12831_vm12, %v1751_v61  ;;  %v9516_v5 = vld [vmem:[#allocation2 + $0xa4] ss:$0 sps:$4 sm:$0x11]  }
 0x229   : > { %v3812_v58 = vsel %vm1977_vm9, %v3810_v62, %v3811_v33  ;;  %v1201_v6 = vld [vmem:[#allocation2 + $0xa8] sm:$0xf]  ;;  %v2018_v8 = vrot.slane %v9516_v5, 1  ;;  %v1026_v53 = vshrl.u32 %v11304_v0, 16  ;;  %v1205_v12 = vld [vmem:[#allocation2 + $0xb0] sm:$0x1] }
 0x22a   : > { %v2039_v38 = vpop.permute.xlu0 %2038  ;;  %v3487_v44 = vsel %vm12787_vm8, %v3482_v39, %v3486_v51  ;;  %3847 = vrot.lane.b32.xlu0 %v3812_v58, %s10276_s0  ;;  %v1710_v40 = vrot.slane %v1708_v59, 1  ;;  %v1202_v31 = vsel %vm10762_vm10, %v1014_v55, %v1201_v6  ;;  %v9520_v11 = vld [vmem:[#allocation2 + $0xa4] ss:$0 sps:$4 sm:$0x11]   ;;  %v2589_v13 = vshrl.u32 %v9519_v60, 16  ;;  %v3894_v41 = vld [vmem:[#allocation3 + $0x20] sm:$0xff] }
 0x22b   : > { %2081 = vst.msk [vmem:[#allocation3 + $0x30] sm:$0xff] %vm2074_vm13, %v2039_v38  ;;  %3558 = vrot.lane.b32.xlu1 %v3487_v44, %s10278_s25  ;;  %v2041_v7 = vpop.permute.xlu1 %2040  ;;  %1203 = vst [vmem:[#allocation2 + $0xa8] sm:$0xf] %v1202_v31  ;;  %v686_v49 = vld [vmem:[%s10685_s22 + $0xe8] sm:$0xff]  ;;  %v2591_v16 = vshll.u32 %v9519_v60, 16  ;;  %v1206_v17 = vsel %vm10716_vm4, %v1024_v10, %v1205_v12  ;;  %v2596_v14 = vshll.u32 %v9520_v11, 16  ;;  %v2019_v26 = vsel %vm1977_vm9, %v2017_v9, %v2018_v8 }
 0x22c   : > { %2082 = vst.msk [vmem:[#allocation3 + $0x38] sm:$0xff] %vm2074_vm13, %v2041_v7  ;;  %v1711_v36 = vsel %vm12787_vm8, %v1706_v52, %v1710_v40  ;;  %1207 = vst [vmem:[#allocation2 + $0xb0] sm:$0x1] %v1206_v17  ;;  %v9001_v20 = vpack.c.bf16 %v686_v49, %v686_v49  ;;  %v1028_v21 = vrot.slane %v1026_v53, 7  ;;  %v9524_v23 = vld [vmem:[#allocation2 + $0x9c] sm:$0xfe]   ;;  %9093 = vmatprep.mubr.msk.bf16.mxu0 %vm3926_vm6, %v3894_v41 }
 0x22d   : > { %v2593_v22 = vrot.slane %v2591_v16, 1  ;;  %v9525_v25 = vld [vmem:[#allocation2 + $0xa4] ss:$0 sps:$4 sm:$0x11]   ;;  %v2598_v27 = vrot.slane %v2596_v14, 1  ;;  %v2913_v32 = vrot.slane %v9524_v23, 1 }
 0x22e   : > { %v2216_v15 = vpop.permute.xlu0 %2215  ;;  %2050 = vrot.lane.b32.xlu0 %v2016_v48, %s10271_s13  ;;  %v2914_v34 = vrot.slane %v9525_v25, 1  ;;  %v592_v38 = vld [vmem:[#allocation2 + $0xb4] sm:$0x1]  ;;  %v1029_v39 = vshll.u32 %v11304_v0, 16  ;;  %v1034_v45 = vshrl.u32 %v9001_v20, 16  ;;  %v1037_v33 = vshll.u32 %v9001_v20, 16 }
 0x22f   : > { %2258 = vst.msk [vmem:[#allocation3 + $0x30] sm:$0xff] %vm2251_vm14, %v2216_v15  ;;  %1760 = vrot.lane.b32.xlu1 %v1699_v35, %s10272_s21  ;;  %v2218_v18 = vpop.permute.xlu1 %2217  ;;  %v2594_v28 = vor.u32 %v2593_v22, %v2589_v13  ;;  %v593_v43 = vsel %vm10716_vm4, 0, %v592_v38  ;;  %v3895_v47 = vld [vmem:[#allocation3 + $0x28] sm:$0xff]  ;;  %v1032_v54 = vrot.slane %v1028_v21, 4  ;;  %v648_v8 = vld [vmem:[#allocation2 + $0xbc] sm:$0x1] }
 0x230   : > { %2259 = vst.msk [vmem:[#allocation3 + $0x38] sm:$0xff] %vm2251_vm14, %v2218_v18  ;;  %594 = vst [vmem:[#allocation2 + $0xb4] sm:$0x1] %v593_v43  ;;  %9094 = vmatmul.mubr.msk.bf16.gmra.mrb[8].mxu0 %vm3926_vm6, %v3895_v47  ;;  %v11333_v59 = vrot.slane %v1034_v45, 7  ;;  %v2915_v10 = vsel %vm1977_vm9, %v2913_v32, %v2914_v34  ;;  %v1031_v55 = vor.u32 %v1029_v39, %v1028_v21  ;;  %vm12832_vm3 = vcmask 261344   ;;  %v687_v32 = vld [vmem:[%s10685_s22 + $0xf0] sm:$0xff] }
 0x231   : > { %v2599_v51 = vsel %vm12787_vm8, %v2594_v28, %v2598_v27  ;;  %vm12833_vm12 = vcmask 294144   ;;  %v688_v38 = vld [vmem:[%s10685_s22 + $0xf8] sm:$0xff]  ;;  %v9002_v39 = vpack.c.bf16 %v687_v32, %v687_v32 }
 0x232   : > { %v2649_v42 = vpop.permute.xlu0 %2648  ;;  %2227 = vrot.lane.b32.xlu0 %v9517_v37, %s10273_s16  ;;  %v9518_v50 = vld [vmem:[#allocation2 + $0xa8] sm:$0xff]   ;;  %v1039_v63 = vor.u32 %v1037_v33, %v11333_v59  ;;  %v1041_v49 = vrot.slane %v11333_v59, 4 }
 0x233   : > { %2691 = vst.msk [vmem:[#allocation3 + $0x30] sm:$0xff] %vm2684_vm15, %v2649_v42  ;;  %1762 = vrot.lane.b32.xlu1 %v1711_v36, %s10272_s21  ;;  %v9521_v56 = vld [vmem:[#allocation2 + $0xa8] sm:$0xff]   ;;  %v9522_v57 = vld [vmem:[#allocation2 + $0xb0] ss:$0 sps:$4 sm:$0x11]   ;;  %v2651_v0 = vpop.permute.xlu1 %2650  ;;  %v649_v36 = vsel %vm10721_vm5, 0, %v648_v8 }
 0x234   : > { %v9526_v58 = vld [vmem:[#allocation2 + $0xa8] sm:$0xfe]   ;;  %v2601_v61 = vshrl.u32 %v9521_v56, 16  ;;  %v2603_v15 = vshll.u32 %v9521_v56, 16  ;;  %v2608_v40 = vshll.u32 %v9522_v57, 16  ;;  %v1040_v30 = vsel %vm10743_vm7, %v1032_v54, %v1039_v63  ;;  %2692 = vst.msk [vmem:[#allocation3 + $0x38] sm:$0xff] %vm2684_vm15, %v2651_v0 }
 0x235   : > { %v9529_v44 = vld [vmem:[#allocation2 + $0xa8] sm:$0xff]   ;;  %v9527_v29 = vld [vmem:[#allocation2 + $0xb0] ss:$0 sps:$4 sm:$0x11]   ;;  %v2916_v52 = vrot.slane %v9526_v58, 1  ;;  %v1043_v57 = vshrl.u32 %v9002_v39, 16 }
 0x236   : > { %v2938_v19 = vpop.permute.xlu0 %2937  ;;  %2660 = vrot.lane.b32.xlu0 %v2599_v51, %s10277_s24  ;;  %v9531_v4 = vld [vmem:[#allocation2 + $0xa8] sm:$0xff]   ;;  %v2605_v35 = vrot.slane %v2603_v15, 1  ;;  %v2610_v3 = vrot.slane %v2608_v40, 1  ;;  %v2917_v5 = vrot.slane %v9527_v29, 1  ;;  %1211 = vst.msk [vmem:[#allocation2 + $0xb8] sm:$0xf] %vm12788_vm0, %v1040_v30 }
 0x237   : > { %2980 = vst.msk [vmem:[#allocation3 + $0x30] sm:$0xff] %vm2973_vm1, %v2938_v19  ;;  %2052 = vrot.lane.b32.xlu1 %v2019_v26, %s10271_s13  ;;  %v9532_v37 = vld [vmem:[#allocation2 + $0xb0] ss:$0 sps:$4 sm:$0x11]   ;;  %v3489_v6 = vshrl.u32 %v9531_v4, 16  ;;  %v3491_v9 = vshll.u32 %v9531_v4, 16  ;;  %v9003_v4 = vpack.c.bf16 %v688_v38, %v688_v38 }
 0x238   : > { %v2606_v42 = vor.u32 %v2605_v35, %v2601_v61  ;;  %v1208_v48 = vld [vmem:[#allocation2 + $0xb4] sm:$0xf]  ;;  %v11343_v31 = vld [vmem:[#allocation2 + $0xa8] sm:$0xff]   ;;  %v3496_v53 = vshll.u32 %v9532_v37, 16  ;;  %650 = vst [vmem:[#allocation2 + $0xbc] sm:$0x1] %v649_v36  ;;  %v2918_v14 = vsel %vm1977_vm9, %v2916_v52, %v2917_v5 }
 0x239   : > { %v1209_v60 = vsel %vm10762_vm10, %v1031_v55, %v1208_v48  ;;  %v3493_v13 = vrot.slane %v3491_v9, 1  ;;  %v9535_v16 = vld [vmem:[#allocation2 + $0xa8] sm:$0xfe]   ;;  %v9536_v18 = vld [vmem:[#allocation2 + $0xb0] ss:$0 sps:$4 sm:$0x11]  }
 0x23a   : > { %v3116_v62 = vpop.permute.xlu0 %3115  ;;  %2949 = vrot.lane.b32.xlu0 %v2915_v10, %s10275_s12  ;;  %v2611_v12 = vsel %vm12787_vm8, %v2606_v42, %v2610_v3  ;;  %1210 = vst [vmem:[#allocation2 + $0xb4] sm:$0xf] %v1209_v60  ;;  %v3498_v17 = vrot.slane %v3496_v53, 1  ;;  %v3813_v21 = vrot.slane %v9535_v16, 1  ;;  %v1715_v22 = vshll.u32 %v11343_v31, 16  ;;  %v9553_v60 = vld [vmem:[#allocation2 + $0x60] sm:$0xff]  }
 0x23b   : > { %3158 = vst.msk [vmem:[#allocation3 + $0x30] sm:$0xff] %vm3151_vm2, %v3116_v62  ;;  %2229 = vrot.lane.b32.xlu1 %v9518_v50, %s10273_s16  ;;  %v3494_v20 = vor.u32 %v3493_v13, %v3489_v6  ;;  %v3814_v23 = vrot.slane %v9536_v18, 1  ;;  %v9538_v25 = vld [vmem:[#allocation2 + $0xb0] ss:$0 sps:$4 sm:$0x11]   ;;  %v1713_v28 = vshrl.u32 %v11343_v31, 16 }
 0x23c   : > { %v2940_v11 = vpop.permute.xlu1 %2939  ;;  %v1720_v34 = vshll.u32 %v9538_v25, 16  ;;  %v11366_v43 = vld [vmem:[#allocation2 + $0xa8] sm:$0xfe]   ;;  %v1717_v47 = vrot.slane %v1715_v22, 1  ;;  %v1045_v0 = vrot.slane %v1043_v57, 7  ;;  %v1046_v37 = vshll.u32 %v9002_v39, 16 }
 0x23d   : > { %2981 = vst.msk [vmem:[#allocation3 + $0x38] sm:$0xff] %vm2973_vm1, %v2940_v11  ;;  %v3499_v27 = vsel %vm12787_vm8, %v3494_v20, %v3498_v17  ;;  %v3815_v62 = vsel %vm1977_vm9, %v3813_v21, %v3814_v23  ;;  %v2020_v63 = vrot.slane %v11366_v43, 1  ;;  %v595_v42 = vld [vmem:[#allocation2 + $0xc0] sm:$0x1]  ;;  %v1051_v8 = vshrl.u32 %v9003_v4, 16 }
 0x23e   : > { %3127 = vrot.lane.b32.xlu0 %v9529_v44, %s10274_s29  ;;  %v11370_v56 = vrot.slane %v1720_v34, 1  ;;  %v9544_v44 = vld [vmem:[#allocation2 + $0xb0] ss:$0 sps:$4 sm:$0x11]   ;;  %v1049_v48 = vrot.slane %v1045_v0, 4  ;;  %v596_v9 = vsel %vm10716_vm4, 0, %v595_v42  ;;  %v1048_v21 = vor.u32 %v1046_v37, %v1045_v0 }
 0x23f   : > { %2662 = vrot.lane.b32.xlu1 %v2611_v12, %s10277_s24  ;;  %v1212_v33 = vld [vmem:[#allocation2 + $0xbc] sm:$0x1]  ;;  %v2021_v30 = vrot.slane %v9544_v44, 1  ;;  %597 = vst [vmem:[#allocation2 + $0xc0] sm:$0x1] %v596_v9  ;;  %v1054_v11 = vshll.u32 %v9003_v4, 16 }
 0x240   : > { %v3118_v26 = vpop.permute.xlu1 %3117  ;;  %v1213_v51 = vsel %vm10716_vm4, %v1041_v49, %v1212_v33  ;;  %v11388_v49 = vrot.slane %v1051_v8, 7  ;;  %1359 = vst.msk [vmem:[#allocation3 + $0x40] sm:$0xff] %vm12786_vm11, %v9553_v60  ;;  %v651_v33 = vld [vmem:[#allocation2 + $0xc8] sm:$0x1]  ;;  %v9569_v0 = vld [vmem:[#allocation2 + $0x78] sm:$0xff]  }
 0x241   : > { %3159 = vst.msk [vmem:[#allocation3 + $0x38] sm:$0xff] %vm3151_vm2, %v3118_v26  ;;  %v9530_v45 = vld [vmem:[#allocation2 + $0xb4] sm:$0xff]   ;;  %1214 = vst [vmem:[#allocation2 + $0xbc] sm:$0x1] %v1213_v51  ;;  %v2022_v51 = vsel %vm1977_vm9, %v2020_v63, %v2021_v30  ;;  %v598_v30 = vld [vmem:[#allocation2 + $0xcc] sm:$0x1] }
 0x242   : > { %3560 = vrot.lane.b32.xlu0 %v3499_v27, %s10278_s25  ;;  %v9533_v54 = vld [vmem:[#allocation2 + $0xb4] sm:$0xff]   ;;  %v1056_v22 = vor.u32 %v1054_v11, %v11388_v49  ;;  %v1058_v26 = vrot.slane %v11388_v49, 4  ;;  %1361 = vst.msk [vmem:[#allocation3 + $0x50] sm:$0xff] %vm12786_vm11, %v9569_v0  ;;  %v599_v42 = vsel %vm10716_vm4, 0, %v598_v30 }
 0x243   : > { %v3549_v7 = vpop.permute.xlu0 %3548  ;;  %2951 = vrot.lane.b32.xlu1 %v2918_v14, %s10275_s12  ;;  %v9539_v58 = vld [vmem:[#allocation2 + $0xb4] sm:$0xfe]   ;;  %v3501_v61 = vshrl.u32 %v9533_v54, 16  ;;  %v3503_v15 = vshll.u32 %v9533_v54, 16  ;;  %600 = vst [vmem:[#allocation2 + $0xcc] sm:$0x1] %v599_v42 }
 0x244   : > { %3591 = vst.msk [vmem:[#allocation3 + $0x30] sm:$0xff] %vm12832_vm3, %v3549_v7  ;;  %v3551_v50 = vpop.permute.xlu1 %3550  ;;  %v11375_v59 = vld [vmem:[#allocation2 + $0xb4] sm:$0xff]   ;;  %v3816_v40 = vrot.slane %v9539_v58, 1  ;;  %v1057_v38 = vsel %vm10743_vm7, %v1049_v48, %v1056_v22 }
 0x245   : > { %3592 = vst.msk [vmem:[#allocation3 + $0x38] sm:$0xff] %vm12832_vm3, %v3551_v50  ;;  %v1725_v29 = vshrl.u32 %v11375_v59, 16  ;;  %v1727_v55 = vshll.u32 %v11375_v59, 16  ;;  %v3505_v52 = vrot.slane %v3503_v15, 1  ;;  %v11381_v3 = vld [vmem:[#allocation2 + $0xb4] sm:$0xfe]  }
 0x246   : > { %3849 = vrot.lane.b32.xlu0 %v3815_v62, %s10276_s0  ;;  %v2023_v7 = vrot.slane %v11381_v3, 1  ;;  %v11386_v31 = vld [vmem:[#allocation2 + $0xb4] sm:$0xff]   ;;  %vm12834_vm3 = vcmask 64544   ;;  %v9558_v62 = vld [vmem:[#allocation2 + $0x6c] sm:$0xff]   ;;  %1218 = vst.msk [vmem:[#allocation2 + $0xc4] sm:$0xf] %vm12788_vm0, %v1057_v38 }
 0x247   : > { %v3838_v19 = vpop.permute.xlu0 %3837  ;;  %3129 = vrot.lane.b32.xlu1 %v9530_v45, %s10274_s29  ;;  %v1729_v5 = vrot.slane %v1727_v55, 1  ;;  %v3506_v13 = vor.u32 %v3505_v52, %v3501_v61  ;;  %v2613_v27 = vshrl.u32 %v11386_v31, 16  ;;  %v1215_v54 = vld [vmem:[#allocation2 + $0xc0] sm:$0xf]  ;;  %1360 = vst.msk [vmem:[#allocation3 + $0x48] sm:$0xff] %vm12786_vm11, %v9558_v62  ;;  %v9547_v63 = vld [vmem:[#allocation2 + $0xb4] sm:$0xff]  }
 0x248   : > { %3880 = vst.msk [vmem:[#allocation3 + $0x30] sm:$0xff] %vm12833_vm12, %v3838_v19  ;;  %v1753_v35 = vpop.permute.xlu1 %1752  ;;  %v9534_v36 = vld [vmem:[#allocation2 + $0xbc] ss:$0 sps:$4 sm:$0x11]   ;;  %v1718_v19 = vor.u32 %v1717_v47, %v1713_v28  ;;  %v1216_v4 = vsel %vm10762_vm10, %v1048_v21, %v1215_v54  ;;  %v9554_v55 = vld [vmem:[#allocation2 + $0xb4] sm:$0xfe]  }
 0x249   : > { %v9540_v12 = vld [vmem:[#allocation2 + $0xbc] ss:$0 sps:$4 sm:$0x11]   ;;  %v3508_v16 = vshll.u32 %v9534_v36, 16  ;;  %1793 = vst.msk [vmem:[#allocation3 + $0x40] sm:$0xff] %vm12834_vm3, %v1753_v35  ;;  %v1730_v44 = vor.u32 %v1729_v5, %v1725_v29  ;;  %v9570_v29 = vld [vmem:[#allocation2 + $0x84] sm:$0xff]  }
 0x24a   : > { %v9542_v17 = vld [vmem:[#allocation2 + $0xbc] ss:$0 sps:$4 sm:$0x11]   ;;  %v3817_v14 = vrot.slane %v9540_v12, 1  ;;  %v1723_v15 = vsel %vm12787_vm8, %v1718_v19, %v11370_v56  ;;  %1217 = vst [vmem:[#allocation2 + $0xc0] sm:$0xf] %v1216_v4 }
 0x24b   : > { %v3840_v41 = vpop.permute.xlu0 %3839  ;;  %v11392_v20 = vld [vmem:[#allocation2 + $0xbc] ss:$0 sps:$4 sm:$0x11]   ;;  %v3510_v23 = vrot.slane %v3508_v16, 1  ;;  %v1732_v25 = vshll.u32 %v9542_v17, 16  ;;  %v2919_v52 = vrot.slane %v9554_v55, 1 }
 0x24c   : > { %3881 = vst.msk [vmem:[#allocation3 + $0x38] sm:$0xff] %vm12833_vm12, %v3840_v41  ;;  %v1755_v53 = vpop.permute.xlu1 %1754  ;;  %v3818_v34 = vsel %vm1977_vm9, %v3816_v40, %v3817_v14  ;;  %v2024_v28 = vrot.slane %v11392_v20, 1  ;;  %v9550_v39 = vld [vmem:[#allocation2 + $0xbc] ss:$0 sps:$4 sm:$0x11]   ;;  %v2615_v41 = vshll.u32 %v11386_v31, 16  ;;  %vm12835_vm12 = vmmov %vm12834_vm3 }
 0x24d   : > { %v3511_v43 = vsel %vm12787_vm8, %v3506_v13, %v3510_v23  ;;  %3851 = vrot.lane.b32.xlu0 %v3818_v34, %s10276_s0  ;;  %v1734_v45 = vrot.slane %v1732_v25, 1  ;;  %v2620_v57 = vshll.u32 %v9550_v39, 16  ;;  %1794 = vst.msk [vmem:[#allocation3 + $0x48] sm:$0xff] %vm12835_vm12, %v1755_v53  ;;  %v9555_v56 = vld [vmem:[#allocation2 + $0xbc] ss:$0 sps:$4 sm:$0x11]  }
 0x24e   : > { %3562 = vrot.lane.b32.xlu1 %v3511_v43, %s10278_s25  ;;  %v2617_v58 = vrot.slane %v2615_v41, 1  ;;  %v9571_v5 = vld [vmem:[#allocation2 + $0x90] sm:$0xff]   ;;  %1362 = vst.msk [vmem:[#allocation3 + $0x58] sm:$0xff] %vm12786_vm11, %v9570_v29  ;;  %v9572_v31 = vld [vmem:[#allocation2 + $0x9c] sm:$0xff]   ;;  %v2025_v36 = vsel %vm1977_vm9, %v2023_v7, %v2024_v28  ;;  %v9573_v20 = vld [vmem:[#allocation2 + $0xa8] sm:$0xff]   ;;  %vm12837_vm3 = vcmask 294144  }
 0x24f   : > { %v2043_v10 = vpop.permute.xlu0 %2042  ;;  %v3896_v47 = vld [vmem:[#allocation3 + $0x30] sm:$0xff]  ;;  %v2622_v40 = vrot.slane %v2620_v57, 1  ;;  %v1735_v37 = vsel %vm12787_vm8, %v1730_v44, %v1734_v45  ;;  %v654_v48 = vld [vmem:[#allocation2 + $0xd4] sm:$0x1]  ;;  %1363 = vst.msk [vmem:[#allocation3 + $0x60] sm:$0xff] %vm12786_vm11, %v9571_v5  ;;  %1364 = vst.msk [vmem:[#allocation3 + $0x68] sm:$0xff] %vm12786_vm11, %v9572_v31 }
 0x250   : > { %2083 = vst.msk [vmem:[#allocation3 + $0x40] sm:$0xff] %vm2074_vm13, %v2043_v10  ;;  %v652_v10 = vsel %vm10721_vm5, 0, %v651_v33  ;;  %9097 = vmatprep.mubr.msk.bf16.mxu0 %vm3926_vm6, %v3896_v47  ;;  %v2618_v35 = vor.u32 %v2617_v58, %v2613_v27  ;;  %v655_v8 = vsel %vm10721_vm5, 0, %v654_v48  ;;  %v9563_v22 = vld [vmem:[#allocation2 + $0xcc] sm:$0xff]   ;;  %v9574_v25 = vld [vmem:[#allocation2 + $0xb4] sm:$0xff]   ;;  %vm12836_vm5 = vcmask 261344  }
 0x251   : > { %653 = vst [vmem:[#allocation2 + $0xc8] sm:$0x1] %v652_v10  ;;  %2054 = vrot.lane.b32.xlu0 %v2022_v51, %s10271_s13  ;;  %656 = vst [vmem:[#allocation2 + $0xd4] sm:$0x1] %v655_v8  ;;  %v9551_v2 = vld [vmem:[#allocation2 + $0xc0] sm:$0xff]   ;;  %v3527_v45 = vshll.u32 %v9563_v22, 16 }
 0x252   : > { %1764 = vrot.lane.b32.xlu1 %v1723_v15, %s10272_s21  ;;  %v2623_v60 = vsel %vm12787_vm8, %v2618_v35, %v2622_v40  ;;  %v9548_v12 = vld [vmem:[#allocation2 + $0xc0] sm:$0xff]   ;;  %v2627_v13 = vshll.u32 %v9551_v2, 16  ;;  %v2625_v49 = vshrl.u32 %v9551_v2, 16  ;;  %1365 = vst.msk [vmem:[#allocation3 + $0x70] sm:$0xff] %vm12786_vm11, %v9573_v20  ;;  %1366 = vst.msk [vmem:[#allocation3 + $0x78] sm:$0xff] %vm12786_vm11, %v9574_v25  ;;  %v3525_v57 = vshrl.u32 %v9563_v22, 16 }
 0x253   : > { %v2220_v6 = vpop.permute.xlu0 %2219  ;;  %v3897_v61 = vld [vmem:[#allocation3 + $0x38] sm:$0xff]  ;;  %v9561_v3 = vld [vmem:[#allocation2 + $0xc0] sm:$0xff]   ;;  %v3529_v4 = vrot.slane %v3527_v45, 1  ;;  %vm12838_vm12 = vmmov %vm12836_vm5 }
 0x254   : > { %2260 = vst.msk [vmem:[#allocation3 + $0x40] sm:$0xff] %vm2251_vm14, %v2220_v6  ;;  %9098 = vmatmul.mubr.msk.bf16.gmra.mrb[12].mxu0 %vm3926_vm6, %v3897_v61  ;;  %v2920_v6 = vrot.slane %v9555_v56, 1  ;;  %v9556_v17 = vld [vmem:[#allocation2 + $0xc0] sm:$0xfe]   ;;  %v3515_v7 = vshll.u32 %v9561_v3, 16  ;;  %v2629_v19 = vrot.slane %v2627_v13, 1 }
 0x255   : > { %2231 = vrot.lane.b32.xlu0 %v9547_v63, %s10273_s16  ;;  %v9559_v14 = vld [vmem:[#allocation2 + $0xc0] sm:$0xff]   ;;  %v3513_v21 = vshrl.u32 %v9561_v3, 16  ;;  %v2922_v28 = vrot.slane %v9556_v17, 1  ;;  %v9560_v29 = vld [vmem:[#allocation2 + $0xcc] sm:$0xff]  }
 0x256   : > { %1766 = vrot.lane.b32.xlu1 %v1735_v37, %s10272_s21  ;;  %v2921_v16 = vsel %vm1977_vm9, %v2919_v52, %v2920_v6  ;;  %v3517_v27 = vrot.slane %v3515_v7, 1  ;;  %v2630_v39 = vor.u32 %v2629_v19, %v2625_v49  ;;  %v3530_v37 = vor.u32 %v3529_v4, %v3525_v57  ;;  %v9578_v7 = vld [vmem:[#allocation2 + $0x8] ss:$0 sps:$4 sm:$0x11]  }
 0x257   : > { %v2045_v32 = vpop.permute.xlu1 %2044  ;;  %v5531_v22 = vrot.slane %v9578_v7, 1 }
 0x258   : > { %2084 = vst.msk [vmem:[#allocation3 + $0x48] sm:$0xff] %vm2074_vm13, %v2045_v32  ;;  %v1219_v53 = vld [vmem:[#allocation2 + $0xc8] sm:$0x1]  ;;  %v9565_v32 = vld [vmem:[#allocation2 + $0xc0] sm:$0xfe]   ;;  %v3518_v51 = vor.u32 %v3517_v27, %v3513_v21 }
 0x259   : > { %v1220_v11 = vsel %vm10716_vm4, %v1058_v26, %v1219_v53  ;;  %2664 = vrot.lane.b32.xlu0 %v2623_v60, %s10277_s24  ;;  %v9564_v43 = vld [vmem:[#allocation2 + $0xd4] ss:$0 sps:$4 sm:$0x11]   ;;  %v3819_v44 = vrot.slane %v9565_v32, 1 }
 0x25a   : > { %1221 = vst [vmem:[#allocation2 + $0xc8] sm:$0x1] %v1220_v11  ;;  %2056 = vrot.lane.b32.xlu1 %v2025_v36, %s10271_s13  ;;  %v3532_v40 = vshll.u32 %v9564_v43, 16  ;;  %v9568_v55 = vld [vmem:[#allocation2 + $0xd4] ss:$0 sps:$4 sm:$0x11]  }
 0x25b   : > { %v3823_v48 = vrot.slane %v9568_v55, 1  ;;  %v9575_v36 = vld [vmem:[#allocation2] sm:$0xff]   ;;  %v9576_v11 = vld [vmem:[#allocation2 + $0x8] ss:$0 sps:$4 sm:$0x11]  }
 0x25c   : > { %v3534_v6 = vrot.slane %v3532_v40, 1  ;;  %v5101_v3 = vshll.u32 %v9575_v36, 16  ;;  %v5106_v17 = vshll.u32 %v9576_v11, 16 }
 0x25d   : > { %v2653_v18 = vpop.permute.xlu0 %2652  ;;  %2953 = vrot.lane.b32.xlu0 %v2921_v16, %s10275_s12  ;;  %v5099_v16 = vshrl.u32 %v9575_v36, 16 }
 0x25e   : > { %2693 = vst.msk [vmem:[#allocation3 + $0x40] sm:$0xff] %vm2684_vm15, %v2653_v18  ;;  %2233 = vrot.lane.b32.xlu1 %v9548_v12, %s10273_s16  ;;  %v3535_v31 = vsel %vm12787_vm8, %v3530_v37, %v3534_v6  ;;  %v9577_v12 = vld [vmem:[#allocation2] sm:$0xfe]   ;;  %v5103_v19 = vrot.slane %v5101_v3, 1 }
 0x25f   : > { %v5530_v21 = vrot.slane %v9577_v12, 1 }
 0x260   : > { %v5104_v20 = vor.u32 %v5103_v19, %v5099_v16 }
 0x261   : > { %v2942_v50 = vpop.permute.xlu0 %2941  ;;  %v9552_v26 = vld [vmem:[#allocation2 + $0xc8] ss:$0 sps:$4 sm:$0x11]   ;;  %3131 = vrot.lane.b32.xlu0 %v9559_v14, %s10274_s29  ;;  %v5108_v14 = vrot.slane %v5106_v17, 1 }
 0x262   : > { %2982 = vst.msk [vmem:[#allocation3 + $0x40] sm:$0xff] %vm2973_vm1, %v2942_v50  ;;  %v9557_v34 = vld [vmem:[#allocation2 + $0xc8] ss:$0 sps:$4 sm:$0x11]   ;;  %v2632_v41 = vshll.u32 %v9552_v26, 16  ;;  %v5532_v26 = vsel %vm1977_vm9, %v5530_v21, %v5531_v22 }
 0x263   : > { %v2222_v59 = vpop.permute.xlu1 %2221  ;;  %v9562_v62 = vld [vmem:[#allocation2 + $0xc8] ss:$0 sps:$4 sm:$0x11]   ;;  %v2923_v50 = vrot.slane %v9557_v34, 1  ;;  %v5109_v25 = vsel %vm12787_vm8, %v5104_v20, %v5108_v14  ;;  %v4673_v21 = vld [vmem:[#allocation2 + $0x18] sm:$0xf] }
 0x264   : > { %2261 = vst.msk [vmem:[#allocation3 + $0x48] sm:$0xff] %vm2251_vm14, %v2222_v59  ;;  %v2634_v47 = vrot.slane %v2632_v41, 1  ;;  %v3520_v54 = vshll.u32 %v9562_v62, 16  ;;  %v9566_v58 = vld [vmem:[#allocation2 + $0xc8] ss:$0 sps:$4 sm:$0x11]  }
 0x265   : > { %v3120_v9 = vpop.permute.xlu0 %3119  ;;  %v3820_v63 = vrot.slane %v9566_v58, 1  ;;  %v2924_v0 = vsel %vm1977_vm9, %v2922_v28, %v2923_v50  ;;  %v9567_v59 = vld [vmem:[#allocation2 + $0xcc] sm:$0xfe]  }
 0x266   : > { %3160 = vst.msk [vmem:[#allocation3 + $0x40] sm:$0xff] %vm3151_vm2, %v3120_v9  ;;  %v2635_v61 = vsel %vm12787_vm8, %v2630_v39, %v2634_v47  ;;  %v3522_v15 = vrot.slane %v3520_v54, 1  ;;  %v3822_v42 = vrot.slane %v9567_v59, 1  ;;  %v11517_v59 = vld [vmem:[#allocation10] ss:$0 sm:$0xff] }
 0x267   : > { %2666 = vrot.lane.b32.xlu1 %v2635_v61, %s10277_s24  ;;  %v3821_v52 = vsel %vm1977_vm9, %v3819_v44, %v3820_v63 }
 0x268   : > { %v3523_v56 = vsel %vm12787_vm8, %v3518_v51, %v3522_v15  ;;  %v3824_v13 = vsel %vm1977_vm9, %v3822_v42, %v3823_v48  ;;  %vm12846_vm8 = vcmask 64544  }
 0x269   : > { %3564 = vrot.lane.b32.xlu0 %v3523_v56, %s10278_s25 }
 0x26b   : > { %2955 = vrot.lane.b32.xlu1 %v2924_v0, %s10275_s12  ;;  %v11515_v0 = vld [vmem:[#allocation9] ss:$0 sm:$0xff] }
 0x26d   : > { %3853 = vrot.lane.b32.xlu0 %v3821_v52, %s10276_s0 }
 0x26f   : > { %v2655_v18 = vpop.permute.xlu1 %2654  ;;  %3133 = vrot.lane.b32.xlu1 %v9560_v29, %s10274_s29 }
 0x270   : > { %2694 = vst.msk [vmem:[#allocation3 + $0x48] sm:$0xff] %vm2684_vm15, %v2655_v18 }
 0x271   : > { %v3553_v23 = vpop.permute.xlu0 %3552  ;;  %5290 = vrot.lane.b32.xlu0 %v5109_v25, %s10272_s21 }
 0x272   : > { %3593 = vst.msk [vmem:[#allocation3 + $0x40] sm:$0xff] %vm12836_vm5, %v3553_v23  ;;  %vm12839_vm5 = vmmov %vm12837_vm3 }
 0x273   : > { %v2944_v38 = vpop.permute.xlu1 %2943  ;;  %3566 = vrot.lane.b32.xlu1 %v3535_v31, %s10278_s25 }
 0x274   : > { %2983 = vst.msk [vmem:[#allocation3 + $0x48] sm:$0xff] %vm2973_vm1, %v2944_v38 }
 0x275   : > { %v3842_v33 = vpop.permute.xlu0 %3841  ;;  %5578 = vrot.lane.b32.xlu0 %v5532_v26, %s10271_s13 }
 0x276   : > { %3882 = vst.msk [vmem:[#allocation3 + $0x40] sm:$0xff] %vm12837_vm3, %v3842_v33  ;;  %vm12840_vm3 = vcmask 64544  }
 0x277   : > { %v3122_v10 = vpop.permute.xlu1 %3121  ;;  %3855 = vrot.lane.b32.xlu1 %v3824_v13, %s10276_s0 }
 0x278   : > { %3161 = vst.msk [vmem:[#allocation3 + $0x48] sm:$0xff] %vm3151_vm2, %v3122_v10 }
 0x279   : > { %v3844_v35 = vpop.permute.xlu0 %3843 }
 0x27b   : > { %v3555_v30 = vpop.permute.xlu1 %3554 }
 0x27c   : > { %3594 = vst.msk [vmem:[#allocation3 + $0x48] sm:$0xff] %vm12838_vm12, %v3555_v30  ;;  %vm12841_vm12 = vmmov %vm12840_vm3 }
 0x27d   : > { %v3898_v5 = vld [vmem:[#allocation3 + $0x40] sm:$0xff]  ;;  %3883 = vst.msk [vmem:[#allocation3 + $0x48] sm:$0xff] %vm12839_vm5, %v3844_v35  ;;  %v2047_v9 = vpop.permute.xlu0 %2046  ;;  %vm12842_vm5 = vcmask 261344  }
 0x27e   : > { %9101 = vmatprep.mubr.msk.bf16.mxu0 %vm3926_vm6, %v3898_v5 }
 0x27f   : > { %v1757_v8 = vpop.permute.xlu1 %1756 }
 0x280   : > { %1795 = vst.msk [vmem:[#allocation3 + $0x50] sm:$0xff] %vm12840_vm3, %v1757_v8  ;;  %vm12843_vm3 = vcmask 294144  }
 0x281   : > { %2085 = vst.msk [vmem:[#allocation3 + $0x50] sm:$0xff] %vm2074_vm13, %v2047_v9  ;;  %v2224_v60 = vpop.permute.xlu0 %2223  ;;  %vm12845_vm11 = vmmov %vm12843_vm3 }
 0x282   : > { %2262 = vst.msk [vmem:[#allocation3 + $0x50] sm:$0xff] %vm2251_vm14, %v2224_v60 }
 0x283   : > { %v1759_v53 = vpop.permute.xlu1 %1758 }
 0x284   : > { %1796 = vst.msk [vmem:[#allocation3 + $0x58] sm:$0xff] %vm12841_vm12, %v1759_v53  ;;  %v3899_v2 = vld [vmem:[#allocation3 + $0x48] sm:$0xff]  ;;  %vm12844_vm12 = vmmov %vm12842_vm5 }
 0x285   : > { %9102 = vmatmul.mubr.msk.bf16.gmra.mrb[16].mxu0 %vm3926_vm6, %v3899_v2  ;;  %v2657_v49 = vpop.permute.xlu0 %2656 }
 0x286   : > { %2695 = vst.msk [vmem:[#allocation3 + $0x50] sm:$0xff] %vm2684_vm15, %v2657_v49 }
 0x287   : > { %v2049_v18 = vpop.permute.xlu1 %2048 }
 0x288   : > { %2086 = vst.msk [vmem:[#allocation3 + $0x58] sm:$0xff] %vm2074_vm13, %v2049_v18 }
 0x289   : > { %v2946_v23 = vpop.permute.xlu0 %2945 }
 0x28a   : > { %2984 = vst.msk [vmem:[#allocation3 + $0x50] sm:$0xff] %vm2973_vm1, %v2946_v23 }
 0x28b   : > { %v2226_v27 = vpop.permute.xlu1 %2225 }
 0x28c   : > { %2263 = vst.msk [vmem:[#allocation3 + $0x58] sm:$0xff] %vm2251_vm14, %v2226_v27 }
 0x28d   : > { %v3124_v32 = vpop.permute.xlu0 %3123 }
 0x28e   : > { %3162 = vst.msk [vmem:[#allocation3 + $0x50] sm:$0xff] %vm3151_vm2, %v3124_v32  ;;  %v4666_v32 = vld [vmem:[#allocation2 + $0xc] sm:$0xf] }
 0x291   : > { %v2659_v34 = vpop.permute.xlu1 %2658 }
 0x292   : > { %2696 = vst.msk [vmem:[#allocation3 + $0x58] sm:$0xff] %vm2684_vm15, %v2659_v34 }
 0x294   : > { %v3557_v38 = vpop.permute.xlu0 %3556 }
 0x295   : > { %v2948_v28 = vpop.permute.xlu1 %2947  ;;  %3595 = vst.msk [vmem:[#allocation3 + $0x50] sm:$0xff] %vm12842_vm5, %v3557_v38  ;;  %vm12847_vm5 = vmmov %vm12846_vm8 }
 0x296   : > { %2985 = vst.msk [vmem:[#allocation3 + $0x58] sm:$0xff] %vm2973_vm1, %v2948_v28 }
 0x298   : > { %v3846_v41 = vpop.permute.xlu0 %3845 }
 0x299   : > { %v3126_v39 = vpop.permute.xlu1 %3125  ;;  %3884 = vst.msk [vmem:[#allocation3 + $0x50] sm:$0xff] %vm12843_vm3, %v3846_v41 }
 0x29a   : > { %3163 = vst.msk [vmem:[#allocation3 + $0x58] sm:$0xff] %vm3151_vm2, %v3126_v39  ;;  %v4677_v39 = vld [vmem:[#allocation2 + $0x20] sm:$0x1] }
 0x29c   : > { %v3848_v62 = vpop.permute.xlu0 %3847 }
 0x29d   : > { %v3559_v43 = vpop.permute.xlu1 %3558 }
 0x29e   : > { %3596 = vst.msk [vmem:[#allocation3 + $0x58] sm:$0xff] %vm12844_vm12, %v3559_v43 }
 0x29f   : > { %3885 = vst.msk [vmem:[#allocation3 + $0x58] sm:$0xff] %vm12845_vm11, %v3848_v62  ;;  %vm12849_vm11 = vmmov %vm12843_vm3 }
 0x2a0   : > { %v3900_v45 = vld [vmem:[#allocation3 + $0x50] sm:$0xff]  ;;  %v2051_v47 = vpop.permute.xlu0 %2050 }
 0x2a1   : > { %v1761_v33 = vpop.permute.xlu1 %1760  ;;  %9105 = vmatprep.mubr.msk.bf16.mxu0 %vm3926_vm6, %v3900_v45 }
 0x2a2   : > { %1797 = vst.msk [vmem:[#allocation3 + $0x60] sm:$0xff] %vm12846_vm8, %v1761_v33  ;;  %vm12848_vm8 = vmmov %vm12844_vm12 }
 0x2a3   : > { %2087 = vst.msk [vmem:[#allocation3 + $0x60] sm:$0xff] %vm2074_vm13, %v2051_v47  ;;  %vm12850_vm3 = vmmov %vm12848_vm8 }
 0x2a4   : > { %v2228_v51 = vpop.permute.xlu0 %2227  ;;  %vm12851_vm12 = vmmov %vm12849_vm11 }
 0x2a5   : > { %v1763_v50 = vpop.permute.xlu1 %1762  ;;  %2264 = vst.msk [vmem:[#allocation3 + $0x60] sm:$0xff] %vm2251_vm14, %v2228_v51 }
 0x2a6   : > { %1798 = vst.msk [vmem:[#allocation3 + $0x68] sm:$0xff] %vm12847_vm5, %v1763_v50  ;;  %v3901_v54 = vld [vmem:[#allocation3 + $0x58] sm:$0xff] }
 0x2a7   : > { %9106 = vmatmul.mubr.msk.bf16.gmra.mrb[20].mxu0 %vm3926_vm6, %v3901_v54  ;;  %v4670_v50 = vld [vmem:[#allocation2 + $0x14] sm:$0x1] }
 0x2a8   : > { %v2661_v57 = vpop.permute.xlu0 %2660 }
 0x2a9   : > { %v2053_v58 = vpop.permute.xlu1 %2052  ;;  %2697 = vst.msk [vmem:[#allocation3 + $0x60] sm:$0xff] %vm2684_vm15, %v2661_v57 }
 0x2aa   : > { %2088 = vst.msk [vmem:[#allocation3 + $0x68] sm:$0xff] %vm2074_vm13, %v2053_v58 }
 0x2ac   : > { %v2950_v61 = vpop.permute.xlu0 %2949 }
 0x2ad   : > { %v2230_v10 = vpop.permute.xlu1 %2229  ;;  %2986 = vst.msk [vmem:[#allocation3 + $0x60] sm:$0xff] %vm2973_vm1, %v2950_v61 }
 0x2ae   : > { %2265 = vst.msk [vmem:[#allocation3 + $0x68] sm:$0xff] %vm2251_vm14, %v2230_v10 }
 0x2b0   : > { %v3128_v15 = vpop.permute.xlu0 %3127 }
 0x2b1   : > { %v2663_v44 = vpop.permute.xlu1 %2662  ;;  %3164 = vst.msk [vmem:[#allocation3 + $0x60] sm:$0xff] %vm3151_vm2, %v3128_v15 }
 0x2b2   : > { %2698 = vst.msk [vmem:[#allocation3 + $0x68] sm:$0xff] %vm2684_vm15, %v2663_v44 }
 0x2b4   : > { %v3561_v4 = vpop.permute.xlu0 %3560 }
 0x2b5   : > { %v2952_v63 = vpop.permute.xlu1 %2951  ;;  %3597 = vst.msk [vmem:[#allocation3 + $0x60] sm:$0xff] %vm12848_vm8, %v3561_v4  ;;  %vm12852_vm8 = vmmov %vm12847_vm5 }
 0x2b6   : > { %2987 = vst.msk [vmem:[#allocation3 + $0x68] sm:$0xff] %vm2973_vm1, %v2952_v63 }
 0x2b8   : > { %v3850_v55 = vpop.permute.xlu0 %3849 }
 0x2b9   : > { %v3130_v40 = vpop.permute.xlu1 %3129  ;;  %3886 = vst.msk [vmem:[#allocation3 + $0x60] sm:$0xff] %vm12849_vm11, %v3850_v55  ;;  %vm12853_vm11 = vmmov %vm12850_vm3 }
 0x2ba   : > { %3165 = vst.msk [vmem:[#allocation3 + $0x68] sm:$0xff] %vm3151_vm2, %v3130_v40 }
 0x2bf   : > { %v3852_v2 = vpop.permute.xlu0 %3851 }
 0x2c0   : > { %v3902_v5 = vld [vmem:[#allocation3 + $0x60] sm:$0xff]  ;;  %v3563_v16 = vpop.permute.xlu1 %3562 }
 0x2c1   : > { %9109 = vmatprep.mubr.msk.bf16.mxu0 %vm3926_vm6, %v3902_v5  ;;  %3598 = vst.msk [vmem:[#allocation3 + $0x68] sm:$0xff] %vm12850_vm3, %v3563_v16  ;;  %vm12854_vm3 = vmmov %vm12851_vm12 }
 0x2c2   : > { %3887 = vst.msk [vmem:[#allocation3 + $0x68] sm:$0xff] %vm12851_vm12, %v3852_v2  ;;  %vm12855_vm12 = vsmask.f32 7424 }
 0x2c3   : > { %v2055_v20 = vpop.permute.xlu0 %2054 }
 0x2c4   : > { %v1765_v26 = vpop.permute.xlu1 %1764 }
 0x2c5   : > { %1799 = vst.msk [vmem:[#allocation3 + $0x70] sm:$0xff] %vm12847_vm5, %v1765_v26  ;;  %vm12856_vm5 = vmmov %vm12853_vm11 }
 0x2c6   : > { %2089 = vst.msk [vmem:[#allocation3 + $0x70] sm:$0xff] %vm2074_vm13, %v2055_v20 }
 0x2c7   : > { %v2232_v51 = vpop.permute.xlu0 %2231 }
 0x2c8   : > { %v1767_v61 = vpop.permute.xlu1 %1766  ;;  %2266 = vst.msk [vmem:[#allocation3 + $0x70] sm:$0xff] %vm2251_vm14, %v2232_v51 }
 0x2c9   : > { %1800 = vst.msk [vmem:[#allocation3 + $0x78] sm:$0xff] %vm12852_vm8, %v1767_v61  ;;  %v3903_v63 = vld [vmem:[#allocation3 + $0x68] sm:$0xff]  ;;  %vm12857_vm8 = vmmov %vm12854_vm3 }
 0x2ca   : > { %9110 = vmatmul.mubr.msk.bf16.gmra.mrb[24].mxu0 %vm3926_vm6, %v3903_v63 }
 0x2cb   : > { %v2665_v55 = vpop.permute.xlu0 %2664 }
 0x2cc   : > { %v9087_v56 = vpop.f32.mrb[0].mxu0  ;;  %2699 = vst.msk [vmem:[#allocation3 + $0x70] sm:$0xff] %vm2684_vm15, %v2665_v55 }
 0x2cd   : > { %v4149_v29 = vmul.f32 %v9087_v56, %v11515_v0  ;;  %v4013_v35 = vpop.f32.mrb[1].mxu0  ;;  %v2057_v56 = vpop.permute.xlu1 %2056 }
 0x2ce   : > { %v4147_v52 = vmul.f32 %v11515_v0, %v4013_v35  ;;  %v9088_v30 = vpop.f32.mrb[2].mxu0  ;;  %2090 = vst.msk [vmem:[#allocation3 + $0x78] sm:$0xff] %vm2074_vm13, %v2057_v56 }
 0x2cf   : > { %v4188_v37 = vadd.f32 %v11517_v59, %v4149_v29  ;;  %v4150_v6 = vmul.f32 %v9088_v30, %v11515_v0  ;;  %v4016_v42 = vpop.f32.mrb[3].mxu0  ;;  %v2954_v29 = vpop.permute.xlu0 %2953 }
 0x2d0   : > { %v4186_v48 = vadd.f32 %v11517_v59, %v4147_v52  ;;  %v4148_v9 = vmul.f32 %v11515_v0, %v4016_v42  ;;  %2988 = vst.msk [vmem:[#allocation3 + $0x70] sm:$0xff] %vm2973_vm1, %v2954_v29 }
 0x2d1   : > { %v4220_v8 = vmax.f32 %v4188_v37, 0.0  ;;  %v4189_v31 = vadd.f32 %v11517_v59, %v4150_v6  ;;  %v2234_v35 = vpop.permute.xlu1 %2233 }
 0x2d2   : > { %v4218_v60 = vmax.f32 %v4186_v48, 0.0  ;;  %v4187_v53 = vadd.f32 %v11517_v59, %v4148_v9  ;;  %2267 = vst.msk [vmem:[#allocation3 + $0x78] sm:$0xff] %vm2251_vm14, %v2234_v35 }
 0x2d3   : > { %v9006_v36 = vpack.c.bf16 %v4220_v8, %v4220_v8  ;;  %v4221_v11 = vmax.f32 %v4189_v31, 0.0  ;;  %v3132_v42 = vpop.permute.xlu0 %3131 }
 0x2d4   : > { %v9004_v12 = vpack.c.bf16 %v4218_v60, %v4218_v60  ;;  %v4219_v13 = vmax.f32 %v4187_v53, 0.0  ;;  %3166 = vst.msk [vmem:[#allocation3 + $0x70] sm:$0xff] %vm3151_vm2, %v3132_v42 }
 0x2d5   : > { %v4364_v3 = vshrl.u32 %v9006_v36, 16  ;;  %v9007_v17 = vpack.c.bf16 %v4221_v11, %v4221_v11  ;;  %v4367_v19 = vshll.u32 %v9006_v36, 16 }
 0x2d6   : > { %v4347_v7 = vshrl.u32 %v9004_v12, 16  ;;  %v9005_v18 = vpack.c.bf16 %v4219_v13, %v4219_v13  ;;  %v4350_v23 = vshll.u32 %v9004_v12, 16 }
 0x2d7   : > { %v4366_v49 = vrot.slane %v4364_v3, 7  ;;  %v4372_v14 = vshrl.u32 %v9007_v17, 16  ;;  %v4375_v28 = vshll.u32 %v9007_v17, 16 }
 0x2d8   : > { %v4349_v22 = vrot.slane %v4347_v7, 7  ;;  %v4355_v25 = vshrl.u32 %v9005_v18, 16  ;;  %v4358_v62 = vshll.u32 %v9005_v18, 16 }
 0x2d9   : > { %v4369_v27 = vor.u32 %v4367_v19, %v4366_v49  ;;  %v4374_v34 = vrot.slane %v4372_v14, 7  ;;  %v4370_v43 = vrot.slane %v4366_v49, 4  ;;  %v2667_v13 = vpop.permute.xlu1 %2666 }
 0x2da   : > { %v4352_v38 = vor.u32 %v4350_v23, %v4349_v22  ;;  %v4357_v41 = vrot.slane %v4355_v25, 7  ;;  %v4353_v54 = vrot.slane %v4349_v22, 4  ;;  %2700 = vst.msk [vmem:[#allocation3 + $0x78] sm:$0xff] %vm2684_vm15, %v2667_v13 }
 0x2db   : > { %v4674_v45 = vsel %vm10762_vm10, %v4369_v27, %v4673_v21  ;;  %v4377_v33 = vor.u32 %v4375_v28, %v4374_v34  ;;  %v4379_v47 = vrot.slane %v4374_v34, 4  ;;  %v3565_v21 = vpop.permute.xlu0 %3564 }
 0x2dc   : > { %4675 = vst [vmem:[#allocation2 + $0x18] sm:$0xf] %v4674_v45  ;;  %v4667_v58 = vsel %vm10762_vm10, %v4352_v38, %v4666_v32  ;;  %v4360_v57 = vor.u32 %v4358_v62, %v4357_v41  ;;  %v4362_v10 = vrot.slane %v4357_v41, 4  ;;  %3599 = vst.msk [vmem:[#allocation3 + $0x70] sm:$0xff] %vm12853_vm11, %v3565_v21  ;;  %v4684_v21 = vld [vmem:[#allocation2 + $0x2c] sm:$0x1] }
 0x2dd   : > { %4668 = vst [vmem:[#allocation2 + $0xc] sm:$0xf] %v4667_v58  ;;  %v4378_v15 = vsel %vm10743_vm7, %v4370_v43, %v4377_v33  ;;  %v4678_v44 = vsel %vm10716_vm4, %v4379_v47, %v4677_v39  ;;  %v2956_v41 = vpop.permute.xlu1 %2955  ;;  %vm12858_vm11 = vmmov %vm12855_vm12 }
 0x2de   : > { %4676 = vst.msk [vmem:[#allocation2 + $0x1c] sm:$0xf] %vm12788_vm0, %v4378_v15  ;;  %4679 = vst [vmem:[#allocation2 + $0x20] sm:$0x1] %v4678_v44  ;;  %v4361_v4 = vsel %vm10743_vm7, %v4353_v54, %v4360_v57  ;;  %v4671_v40 = vsel %vm10716_vm4, %v4362_v10, %v4670_v50 }
 0x2df   : > { %4669 = vst.msk [vmem:[#allocation2 + $0x10] sm:$0xf] %vm12788_vm0, %v4361_v4  ;;  %4672 = vst [vmem:[#allocation2 + $0x14] sm:$0x1] %v4671_v40  ;;  %v3854_v58 = vpop.permute.xlu0 %3853 }
 0x2e0   : > { %2989 = vst.msk [vmem:[#allocation3 + $0x78] sm:$0xff] %vm2973_vm1, %v2956_v41 }
 0x2e1   : > { %3888 = vst.msk [vmem:[#allocation3 + $0x70] sm:$0xff] %vm12854_vm3, %v3854_v58  ;;  %v3134_v55 = vpop.permute.xlu1 %3133  ;;  %vm12859_vm3 = vcmask 64544  }
 0x2e2   : > { %v9091_v16 = vpop.f32.mrb[4].mxu0  ;;  %3167 = vst.msk [vmem:[#allocation3 + $0x78] sm:$0xff] %vm3151_vm2, %v3134_v55 }
 0x2e3   : > { %v4153_v18 = vmul.f32 %v9091_v16, %v11515_v0  ;;  %v4029_v49 = vpop.f32.mrb[5].mxu0 }
 0x2e4   : > { %v4151_v22 = vmul.f32 %v11515_v0, %v4029_v49  ;;  %v9092_v23 = vpop.f32.mrb[6].mxu0 }
 0x2e5   : > { %v9579_v52 = vld [vmem:[#allocation2 + $0x18] sm:$0xff]   ;;  %v9582_v37 = vld [vmem:[#allocation2 + $0x20] ss:$0 sps:$4 sm:$0x11]   ;;  %v4192_v27 = vadd.f32 %v11517_v59, %v4153_v18  ;;  %v4154_v32 = vmul.f32 %v9092_v23, %v11515_v0  ;;  %v4032_v34 = vpop.f32.mrb[7].mxu0  ;;  %v3567_v16 = vpop.permute.xlu1 %3566 }
 0x2e6   : > { %v9580_v30 = vld [vmem:[#allocation2 + $0x18] sm:$0xff]   ;;  %6650 = vrot.lane.b32.xlu0 %v9579_v52, %s10274_s29  ;;  %v9583_v6 = vld [vmem:[#allocation2 + $0xc] sm:$0xff]   ;;  %v6430_v9 = vrot.slane %v9582_v37, 1  ;;  %v9585_v31 = vld [vmem:[#allocation2 + $0x20] ss:$0 sps:$4 sm:$0x11]   ;;  %v4190_v62 = vadd.f32 %v11517_v59, %v4151_v22  ;;  %v4152_v43 = vmul.f32 %v11515_v0, %v4032_v34 }
 0x2e7   : > { %v9581_v5 = vld [vmem:[#allocation2 + $0x18] sm:$0xfe]   ;;  %5756 = vrot.lane.b32.xlu1 %v9580_v30, %s10273_s16  ;;  %v9586_v11 = vld [vmem:[#allocation2 + $0xc] sm:$0xfe]   ;;  %v7323_v12 = vrot.slane %v9585_v31, 1  ;;  %v4224_v47 = vmax.f32 %v4192_v27, 0.0  ;;  %v4193_v50 = vadd.f32 %v11517_v59, %v4154_v32 }
 0x2e8   : > { %v6429_v48 = vrot.slane %v9581_v5, 1  ;;  %v9584_v8 = vld [vmem:[#allocation2 + $0x18] sm:$0xfe]   ;;  %v9587_v2 = vld [vmem:[#allocation2 + $0x14] ss:$0 sps:$4 sm:$0x11]   ;;  %v4191_v10 = vadd.f32 %v11517_v59, %v4152_v43 }
 0x2e9   : > { %v9590_v60 = vld [vmem:[#allocation2 + $0x18] sm:$0xff]   ;;  %v7322_v36 = vrot.slane %v9584_v8, 1  ;;  %v5533_v3 = vrot.slane %v9586_v11, 1  ;;  %v5534_v17 = vrot.slane %v9587_v2, 1  ;;  %v4222_v57 = vmax.f32 %v4190_v62, 0.0  ;;  %3600 = vst.msk [vmem:[#allocation3 + $0x78] sm:$0xff] %vm12856_vm5, %v3567_v16 }
 0x2ea   : > { %v6431_v53 = vsel %vm1977_vm9, %v6429_v48, %v6430_v9  ;;  %5754 = vrot.lane.b32.xlu0 %v9583_v6, %s10273_s16  ;;  %v6009_v7 = vshll.u32 %v9590_v60, 16  ;;  %v9588_v14 = vld [vmem:[#allocation2 + $0x18] sm:$0xfe]   ;;  %v9589_v20 = vld [vmem:[#allocation2 + $0x20] ss:$0 sps:$4 sm:$0x11]   ;;  %v9010_v63 = vpack.c.bf16 %v4224_v47, %v4224_v47 }
 0x2eb   : > { %6476 = vrot.lane.b32.xlu1 %v6431_v53, %s10275_s12  ;;  %v7324_v19 = vsel %vm1977_vm9, %v7322_v36, %v7323_v12  ;;  %v5535_v25 = vsel %vm1977_vm9, %v5533_v3, %v5534_v17  ;;  %v5536_v28 = vrot.slane %v9588_v14, 1  ;;  %v5537_v38 = vrot.slane %v9589_v20, 1  ;;  %v11569_v39 = vld [vmem:[#allocation2 + $0x18] sm:$0xff]   ;;  %v9591_v45 = vld [vmem:[#allocation2 + $0x20] ss:$0 sps:$4 sm:$0x11]  }
 0x2ec   : > { %v6011_v26 = vrot.slane %v6009_v7, 1  ;;  %v6007_v33 = vshrl.u32 %v9590_v60, 16  ;;  %v5123_v54 = vshrl.u32 %v11569_v39, 16  ;;  %v6014_v15 = vshll.u32 %v9591_v45, 16  ;;  %v9592_v44 = vld [vmem:[#allocation2 + $0xc] sm:$0xfe]  }
 0x2ed   : > { %v5538_v51 = vsel %vm1977_vm9, %v5536_v28, %v5537_v38  ;;  %v4225_v4 = vmax.f32 %v4193_v50, 0.0  ;;  %v9593_v40 = vld [vmem:[#allocation2 + $0x14] ss:$0 sps:$4 sm:$0x11]   ;;  %v9008_v56 = vpack.c.bf16 %v4222_v57, %v4222_v57  ;;  %v4223_v29 = vmax.f32 %v4191_v10, 0.0  ;;  %v9596_v13 = vld [vmem:[#allocation2 + $0x18] sm:$0xff]  }
 0x2ee   : > { %7370 = vrot.lane.b32.xlu0 %v7324_v19, %s10276_s0  ;;  %v6012_v61 = vor.u32 %v6011_v26, %v6007_v33  ;;  %v6016_v35 = vrot.slane %v6014_v15, 1  ;;  %v6426_v52 = vrot.slane %v9592_v44, 1  ;;  %v4398_v30 = vshrl.u32 %v9010_v63, 16  ;;  %v9595_v42 = vld [vmem:[#allocation2 + $0x20] ss:$0 sps:$4 sm:$0x11]   ;;  %v3856_v33 = vpop.permute.xlu1 %3855 }
 0x2ef   : > { %5580 = vrot.lane.b32.xlu1 %v5535_v25, %s10271_s13  ;;  %v4401_v5 = vshll.u32 %v9010_v63, 16  ;;  %v9011_v37 = vpack.c.bf16 %v4225_v4, %v4225_v4  ;;  %v6427_v6 = vrot.slane %v9593_v40, 1  ;;  %v4687_v48 = vld [vmem:[#allocation2 + $0x30] sm:$0xf]  ;;  %v4381_v9 = vshrl.u32 %v9008_v56, 16  ;;  %v3904_v26 = vld [vmem:[#allocation3 + $0x70] sm:$0xff] }
 0x2f0   : > { %v4384_v8 = vshll.u32 %v9008_v56, 16  ;;  %v9009_v31 = vpack.c.bf16 %v4223_v29, %v4223_v29  ;;  %v6017_v60 = vsel %vm12855_vm12, %v6012_v61, %v6016_v35  ;;  %v4400_v53 = vrot.slane %v4398_v30, 7  ;;  %v4680_v36 = vld [vmem:[#allocation2 + $0x24] sm:$0xf]  ;;  %v4691_v17 = vld [vmem:[#allocation2 + $0x38] sm:$0x1]  ;;  %9113 = vmatprep.mubr.msk.bf16.mxu0 %vm3926_vm6, %v3904_v26  ;;  %vm12860_vm12 = vmmov %vm12858_vm11 }
 0x2f1   : > { %v4406_v11 = vshrl.u32 %v9011_v37, 16  ;;  %v4409_v2 = vshll.u32 %v9011_v37, 16  ;;  %v6428_v12 = vsel %vm1977_vm9, %v6426_v52, %v6427_v6  ;;  %v4383_v3 = vrot.slane %v4381_v9, 7  ;;  %v9597_v23 = vld [vmem:[#allocation2 + $0x20] ss:$0 sps:$4 sm:$0x11]   ;;  %v5291_v37 = vpop.permute.xlu0 %5290 }
 0x2f2   : > { %5582 = vrot.lane.b32.xlu0 %v5538_v51, %s10271_s13  ;;  %v4389_v7 = vshrl.u32 %v9009_v31, 16  ;;  %v4392_v18 = vshll.u32 %v9009_v31, 16  ;;  %v5125_v49 = vshll.u32 %v11569_v39, 16  ;;  %v4403_v19 = vor.u32 %v4401_v5, %v4400_v53  ;;  %v9598_v25 = vld [vmem:[#allocation2 + $0xc] sm:$0xff]   ;;  %3889 = vst.msk [vmem:[#allocation3 + $0x78] sm:$0xff] %vm12857_vm8, %v3856_v33  ;;  %v9688_v31 = vld [vmem:[#allocation2 + $0x18] sm:$0xff]  }
 0x2f3   : > { %6188 = vrot.lane.b32.xlu1 %v6017_v60, %s10277_s24  ;;  %v4404_v14 = vrot.slane %v4400_v53, 4  ;;  %v4408_v20 = vrot.slane %v4406_v11, 7  ;;  %v5130_v22 = vshll.u32 %v9595_v42, 16  ;;  %v4386_v27 = vor.u32 %v4384_v8, %v4383_v3  ;;  %v9600_v38 = vld [vmem:[#allocation2 + $0xc] sm:$0xff]   ;;  %5338 = vst.msk [vmem:[#allocation3] sm:$0xff] %vm12859_vm3, %v5291_v37  ;;  %vm12863_vm3 = vmmov %vm12858_vm11 }
 0x2f4   : > { %v4387_v32 = vrot.slane %v4383_v3, 4  ;;  %v4391_v34 = vrot.slane %v4389_v7, 7  ;;  %v5127_v28 = vrot.slane %v5125_v49, 1  ;;  %v4688_v41 = vsel %vm10762_vm10, %v4403_v19, %v4687_v48  ;;  %v9599_v57 = vld [vmem:[#allocation2 + $0x14] ss:$0 sps:$4 sm:$0x11]  }
 0x2f5   : > { %v4411_v62 = vor.u32 %v4409_v2, %v4408_v20  ;;  %v4413_v43 = vrot.slane %v4408_v20, 4  ;;  %v5132_v45 = vrot.slane %v5130_v22, 1  ;;  %4689 = vst [vmem:[#allocation2 + $0x30] sm:$0xf] %v4688_v41  ;;  %v4681_v47 = vsel %vm10762_vm10, %v4386_v27, %v4680_v36  ;;  %v9691_v60 = vld [vmem:[#allocation2 + $0xc] sm:$0xff]  }
 0x2f6   : > { %6474 = vrot.lane.b32.xlu0 %v6428_v12, %s10275_s12  ;;  %v4394_v50 = vor.u32 %v4392_v18, %v4391_v34  ;;  %v4396_v51 = vrot.slane %v4391_v34, 4  ;;  %v5128_v58 = vor.u32 %v5127_v28, %v5123_v54  ;;  %4682 = vst [vmem:[#allocation2 + $0x24] sm:$0xf] %v4681_v47  ;;  %v6893_v15 = vshll.u32 %v9596_v13, 16  ;;  %v5579_v12 = vpop.permute.xlu0 %5578 }
 0x2f7   : > { %v4412_v10 = vsel %vm10743_vm7, %v4404_v14, %v4411_v62  ;;  %v4692_v61 = vsel %vm10716_vm4, %v4413_v43, %v4691_v17  ;;  %v6898_v63 = vshll.u32 %v9597_v23, 16  ;;  %v9601_v4 = vld [vmem:[#allocation2 + $0x14] ss:$0 sps:$4 sm:$0x11]   ;;  %v6891_v40 = vshrl.u32 %v9596_v13, 16  ;;  %5626 = vst.msk [vmem:[#allocation3] sm:$0xff] %vm2074_vm13, %v5579_v12 }
 0x2f8   : > { %4690 = vst.msk [vmem:[#allocation2 + $0x34] sm:$0xf] %vm12788_vm0, %v4412_v10  ;;  %4693 = vst [vmem:[#allocation2 + $0x38] sm:$0x1] %v4692_v61  ;;  %v4395_v44 = vsel %vm10743_vm7, %v4387_v32, %v4394_v50  ;;  %v4685_v39 = vsel %vm10716_vm4, %v4396_v51, %v4684_v21  ;;  %v5133_v54 = vsel %vm12858_vm11, %v5128_v58, %v5132_v45  ;;  %v6895_v55 = vrot.slane %v6893_v15, 1 }
 0x2f9   : > { %4683 = vst.msk [vmem:[#allocation2 + $0x28] sm:$0xf] %vm12788_vm0, %v4395_v44  ;;  %4686 = vst [vmem:[#allocation2 + $0x2c] sm:$0x1] %v4685_v39  ;;  %5294 = vrot.lane.b32.xlu1 %v5133_v54, %s10272_s21  ;;  %v5113_v56 = vshll.u32 %v9598_v25, 16  ;;  %v5118_v29 = vshll.u32 %v9599_v57, 16 }
 0x2fa   : > { %v6900_v35 = vrot.slane %v6898_v63, 1  ;;  %v5111_v52 = vshrl.u32 %v9598_v25, 16  ;;  %v5995_v30 = vshrl.u32 %v9600_v38, 16  ;;  %v5997_v5 = vshll.u32 %v9600_v38, 16  ;;  %v3905_v11 = vld [vmem:[#allocation3 + $0x78] sm:$0xff] }
 0x2fb   : > { %v6896_v6 = vor.u32 %v6895_v55, %v6891_v40  ;;  %v5115_v42 = vrot.slane %v5113_v56, 1  ;;  %v6002_v48 = vshll.u32 %v9601_v4, 16  ;;  %v5120_v9 = vrot.slane %v5118_v29, 1  ;;  %9114 = vmatmul.mubr.msk.bf16.gmra.mrb[28].mxu0 %vm3926_vm6, %v3905_v11 }
 0x2fc   : > { %v5999_v8 = vrot.slane %v5997_v5, 1  ;;  %vm12861_vm5 = vcmask 31744  }
 0x2fd   : > { %v6901_v53 = vsel %vm12860_vm12, %v6896_v6, %v6900_v35  ;;  %v5116_v36 = vor.u32 %v5115_v42, %v5111_v52  ;;  %4908 = vst.msk [vmem:[#allocation3 + $0x10] sm:$0xff] %vm12861_vm5, %v9688_v31  ;;  %vm12862_vm8 = vmmov %vm12861_vm5  ;;  %v6004_v16 = vrot.slane %v6002_v48, 1 }
 0x2fe   : > { %7082 = vrot.lane.b32.xlu0 %v6901_v53, %s10278_s25  ;;  %v6000_v2 = vor.u32 %v5999_v8, %v5995_v30  ;;  %4907 = vst.msk [vmem:[#allocation3 + $0x8] sm:$0xff] %vm12862_vm8, %v9691_v60  ;;  %vm12864_vm12 = vmmov %vm12863_vm3 }
 0x2ff   : > { %v5121_v13 = vsel %vm12858_vm11, %v5116_v36, %v5120_v9  ;;  %v9603_v3 = vld [vmem:[#allocation2 + $0x30] sm:$0xff]   ;;  %v9607_v49 = vld [vmem:[#allocation2 + $0x38] ss:$0 sps:$4 sm:$0x11]   ;;  %vm12865_vm5 = vmmov %vm12863_vm3 }
 0x300   : > { %5292 = vrot.lane.b32.xlu1 %v5121_v13, %s10272_s21  ;;  %v6005_v17 = vsel %vm12863_vm3, %v6000_v2, %v6004_v16  ;;  %v9602_v7 = vld [vmem:[#allocation2 + $0x30] sm:$0xff]   ;;  %v9604_v14 = vld [vmem:[#allocation2 + $0x24] sm:$0xff]   ;;  %v6436_v22 = vrot.slane %v9607_v49, 1  ;;  %v9609_v23 = vld [vmem:[#allocation2 + $0x38] ss:$0 sps:$4 sm:$0x11]  }
 0x301   : > { %v9606_v18 = vld [vmem:[#allocation2 + $0x30] sm:$0xfe]   ;;  %v9605_v26 = vld [vmem:[#allocation2 + $0x24] sm:$0xff]   ;;  %v7329_v34 = vrot.slane %v9609_v23, 1  ;;  %vm12866_vm11 = vmmov %vm12862_vm8 }
 0x302   : > { %6186 = vrot.lane.b32.xlu0 %v6005_v17, %s10277_s24  ;;  %v9616_v19 = vld [vmem:[#allocation2 + $0x30] sm:$0xff]   ;;  %v6435_v20 = vrot.slane %v9606_v18, 1  ;;  %v9611_v38 = vld [vmem:[#allocation2 + $0x38] ss:$0 sps:$4 sm:$0x11]  }
 0x303   : > { %v9608_v21 = vld [vmem:[#allocation2 + $0x30] sm:$0xfe]   ;;  %v6031_v32 = vshrl.u32 %v9616_v19, 16  ;;  %v5543_v62 = vrot.slane %v9611_v38, 1  ;;  %v9612_v43 = vld [vmem:[#allocation2 + $0x24] sm:$0xfe]  }
 0x304   : > { %5760 = vrot.lane.b32.xlu1 %v9603_v3, %s10273_s16  ;;  %v9620_v25 = vld [vmem:[#allocation2 + $0x30] sm:$0xff]   ;;  %v7328_v27 = vrot.slane %v9608_v21, 1  ;;  %v9613_v45 = vld [vmem:[#allocation2 + $0x2c] ss:$0 sps:$4 sm:$0x11]   ;;  %v6033_v33 = vshll.u32 %v9616_v19, 16  ;;  %v6437_v47 = vsel %vm1977_vm9, %v6435_v20, %v6436_v22 }
 0x305   : > { %v9610_v28 = vld [vmem:[#allocation2 + $0x30] sm:$0xfe]   ;;  %v5539_v50 = vrot.slane %v9612_v43, 1  ;;  %v9614_v51 = vld [vmem:[#allocation2 + $0x24] sm:$0xfe]   ;;  %v5147_v58 = vshrl.u32 %v9620_v25, 16 }
 0x306   : > { %6654 = vrot.lane.b32.xlu0 %v9602_v7, %s10274_s29  ;;  %v5542_v41 = vrot.slane %v9610_v28, 1  ;;  %v5540_v57 = vrot.slane %v9613_v45, 1  ;;  %v9615_v10 = vld [vmem:[#allocation2 + $0x2c] ss:$0 sps:$4 sm:$0x11]   ;;  %v7330_v61 = vsel %vm1977_vm9, %v7328_v27, %v7329_v34  ;;  %v7325_v15 = vrot.slane %v9614_v51, 1 }
 0x307   : > { %v6035_v44 = vrot.slane %v6033_v33, 1  ;;  %v7326_v39 = vrot.slane %v9615_v10, 1  ;;  %v9617_v54 = vld [vmem:[#allocation2 + $0x38] ss:$0 sps:$4 sm:$0x11]   ;;  %v9095_v63 = vpop.f32.mrb[8].mxu0 }
 0x308   : > { %6652 = vrot.lane.b32.xlu1 %v9604_v14, %s10274_s29  ;;  %v5541_v4 = vsel %vm1977_vm9, %v5539_v50, %v5540_v57  ;;  %v5149_v40 = vshll.u32 %v9620_v25, 16  ;;  %v4157_v55 = vmul.f32 %v9095_v63, %v11515_v0  ;;  %v4045_v56 = vpop.f32.mrb[9].mxu0  ;;  %v6038_v35 = vshll.u32 %v9617_v54, 16  ;;  %v9618_v52 = vld [vmem:[#allocation2 + $0x24] sm:$0xfe]   ;;  %v9622_v60 = vld [vmem:[#allocation2 + $0x30] sm:$0xff]  }
 0x309   : > { %v6036_v29 = vor.u32 %v6035_v44, %v6031_v32  ;;  %v4155_v30 = vmul.f32 %v11515_v0, %v4045_v56  ;;  %v9096_v5 = vpop.f32.mrb[10].mxu0  ;;  %v5544_v37 = vsel %vm1977_vm9, %v5542_v41, %v5543_v62  ;;  %v9619_v6 = vld [vmem:[#allocation2 + $0x2c] ss:$0 sps:$4 sm:$0x11]   ;;  %v6432_v31 = vrot.slane %v9618_v52, 1  ;;  %v9624_v45 = vld [vmem:[#allocation2 + $0x24] sm:$0xff]  }
 0x30a   : > { %5758 = vrot.lane.b32.xlu0 %v9605_v26, %s10273_s16  ;;  %v4196_v42 = vadd.f32 %v11517_v59, %v4157_v55  ;;  %v4158_v48 = vmul.f32 %v9096_v5, %v11515_v0  ;;  %v4048_v9 = vpop.f32.mrb[11].mxu0  ;;  %v6040_v8 = vrot.slane %v6038_v35, 1  ;;  %v6433_v11 = vrot.slane %v9619_v6, 1  ;;  %v9621_v2 = vld [vmem:[#allocation2 + $0x38] ss:$0 sps:$4 sm:$0x11]  }
 0x30b   : > { %v4194_v53 = vadd.f32 %v11517_v59, %v4155_v30  ;;  %v4156_v36 = vmul.f32 %v11515_v0, %v4048_v9  ;;  %v5151_v12 = vrot.slane %v5149_v40, 1  ;;  %v7327_v18 = vsel %vm1977_vm9, %v7325_v15, %v7326_v39  ;;  %v9623_v19 = vld [vmem:[#allocation2 + $0x38] ss:$0 sps:$4 sm:$0x11]   ;;  %v4701_v38 = vld [vmem:[#allocation2 + $0x48] sm:$0xf] }
 0x30c   : > { %6480 = vrot.lane.b32.xlu1 %v6437_v47, %s10275_s12  ;;  %v4228_v13 = vmax.f32 %v4196_v42, 0.0  ;;  %v4197_v16 = vadd.f32 %v11517_v59, %v4158_v48  ;;  %v6041_v3 = vsel %vm12864_vm12, %v6036_v29, %v6040_v8  ;;  %v5154_v0 = vshll.u32 %v9621_v2, 16  ;;  %v4694_v50 = vld [vmem:[#allocation2 + $0x3c] sm:$0xf]  ;;  %v9720_v10 = vld [vmem:[#allocation2 + $0x30] sm:$0xff]   ;;  %v9731_v63 = vld [vmem:[#allocation2 + $0x24] sm:$0xff]  }
 0x30d   : > { %v4226_v17 = vmax.f32 %v4194_v53, 0.0  ;;  %v4195_v7 = vadd.f32 %v11517_v59, %v4156_v36  ;;  %v5152_v49 = vor.u32 %v5151_v12, %v5147_v58  ;;  %v6917_v21 = vshll.u32 %v9622_v60, 16  ;;  %v9625_v57 = vld [vmem:[#allocation2 + $0x2c] ss:$0 sps:$4 sm:$0x11]   ;;  %4910 = vst.msk [vmem:[#allocation3 + $0x20] sm:$0xff] %vm12862_vm8, %v9720_v10  ;;  %vm12867_vm12 = vmmov %vm12863_vm3 }
 0x30e   : > { %7374 = vrot.lane.b32.xlu0 %v7330_v61, %s10276_s0  ;;  %v9014_v14 = vpack.c.bf16 %v4228_v13, %v4228_v13  ;;  %v4229_v20 = vmax.f32 %v4197_v16, 0.0  ;;  %v6434_v25 = vsel %vm1977_vm9, %v6432_v31, %v6433_v11  ;;  %v6915_v26 = vshrl.u32 %v9622_v60, 16  ;;  %v4705_v44 = vld [vmem:[#allocation2 + $0x50] sm:$0x1]  ;;  %v4698_v56 = vld [vmem:[#allocation2 + $0x44] sm:$0x1]  ;;  %vm12869_vm8 = vmmov %vm12863_vm3 }
 0x30f   : > { %v9012_v22 = vpack.c.bf16 %v4226_v17, %v4226_v17  ;;  %v4227_v23 = vmax.f32 %v4195_v7, 0.0  ;;  %v5156_v59 = vrot.slane %v5154_v0, 1  ;;  %v6922_v34 = vshll.u32 %v9623_v19, 16  ;;  %v9627_v35 = vld [vmem:[#allocation2 + $0x2c] ss:$0 sps:$4 sm:$0x11]  }
 0x310   : > { %5584 = vrot.lane.b32.xlu1 %v5541_v4, %s10271_s13  ;;  %v4432_v27 = vshrl.u32 %v9014_v14, 16  ;;  %v9015_v32 = vpack.c.bf16 %v4229_v20, %v4229_v20  ;;  %v4435_v28 = vshll.u32 %v9014_v14, 16  ;;  %v6919_v43 = vrot.slane %v6917_v21, 1  ;;  %v9626_v6 = vld [vmem:[#allocation2 + $0x24] sm:$0xff]   ;;  %4909 = vst.msk [vmem:[#allocation3 + $0x18] sm:$0xff] %vm12866_vm11, %v9731_v63  ;;  %vm12870_vm11 = vmmov %vm12863_vm3 }
 0x311   : > { %v4415_v41 = vshrl.u32 %v9012_v22, 16  ;;  %v9013_v62 = vpack.c.bf16 %v4227_v23, %v4227_v23  ;;  %v4418_v47 = vshll.u32 %v9012_v22, 16  ;;  %v5157_v58 = vsel %vm12865_vm5, %v5152_v49, %v5156_v59  ;;  %v9628_v31 = vld [vmem:[#allocation2 + $0x24] sm:$0xff]   ;;  %v9629_v2 = vld [vmem:[#allocation2 + $0x2c] ss:$0 sps:$4 sm:$0x11]   ;;  %vm12868_vm5 = vmmov %vm12863_vm3 }
 0x312   : > { %5586 = vrot.lane.b32.xlu0 %v5544_v37, %s10271_s13  ;;  %v4434_v33 = vrot.slane %v4432_v27, 7  ;;  %v4440_v51 = vshrl.u32 %v9015_v32, 16  ;;  %v4443_v15 = vshll.u32 %v9015_v32, 16  ;;  %v6920_v54 = vor.u32 %v6919_v43, %v6915_v26 }
 0x313   : > { %v4417_v61 = vrot.slane %v4415_v41, 7  ;;  %v4423_v39 = vshrl.u32 %v9013_v62, 16  ;;  %v4426_v55 = vshll.u32 %v9013_v62, 16  ;;  %v6924_v29 = vrot.slane %v6922_v34, 1 }
 0x314   : > { %6192 = vrot.lane.b32.xlu1 %v6041_v3, %s10277_s24  ;;  %v4437_v4 = vor.u32 %v4435_v28, %v4434_v33  ;;  %v4442_v40 = vrot.slane %v4440_v51, 7  ;;  %v4438_v52 = vrot.slane %v4434_v33, 4  ;;  %v6905_v11 = vshll.u32 %v9624_v45, 16 }
 0x315   : > { %v4420_v30 = vor.u32 %v4418_v47, %v4417_v61  ;;  %v4421_v5 = vrot.slane %v4417_v61, 4  ;;  %v4425_v37 = vrot.slane %v4423_v39, 7  ;;  %v6925_v8 = vsel %vm12863_vm3, %v6920_v54, %v6924_v29 }
 0x316   : > { %7372 = vrot.lane.b32.xlu0 %v7327_v18, %s10276_s0  ;;  %v4702_v42 = vsel %vm10762_vm10, %v4437_v4, %v4701_v38  ;;  %v4445_v48 = vor.u32 %v4443_v15, %v4442_v40  ;;  %v4447_v9 = vrot.slane %v4442_v40, 4  ;;  %v6903_v16 = vshrl.u32 %v9624_v45, 16  ;;  %v11676_v40 = vld [vmem:[#allocation9] ss:$0 sm:$0xff] }
 0x317   : > { %4703 = vst [vmem:[#allocation2 + $0x48] sm:$0xf] %v4702_v42  ;;  %v4695_v60 = vsel %vm10762_vm10, %v4420_v30, %v4694_v50  ;;  %v4428_v53 = vor.u32 %v4426_v55, %v4425_v37  ;;  %v4430_v36 = vrot.slane %v4425_v37, 4  ;;  %v6910_v3 = vshll.u32 %v9625_v57, 16  ;;  %v11681_v37 = vld [vmem:[#allocation10] ss:$0 sm:$0xff] }
 0x318   : > { %5298 = vrot.lane.b32.xlu1 %v5157_v58, %s10272_s21  ;;  %4696 = vst [vmem:[#allocation2 + $0x3c] sm:$0xf] %v4695_v60  ;;  %v4446_v12 = vsel %vm10743_vm7, %v4438_v52, %v4445_v48  ;;  %v4706_v13 = vsel %vm10716_vm4, %v4447_v9, %v4705_v44  ;;  %v6907_v18 = vrot.slane %v6905_v11, 1  ;;  %v6021_v49 = vshll.u32 %v9626_v6, 16 }
 0x319   : > { %4704 = vst.msk [vmem:[#allocation2 + $0x4c] sm:$0xf] %vm12788_vm0, %v4446_v12  ;;  %4707 = vst [vmem:[#allocation2 + $0x50] sm:$0x1] %v4706_v13  ;;  %v4429_v17 = vsel %vm10743_vm7, %v4421_v5, %v4428_v53  ;;  %v4699_v7 = vsel %vm10716_vm4, %v4430_v36, %v4698_v56  ;;  %v6912_v19 = vrot.slane %v6910_v3, 1  ;;  %v6019_v14 = vshrl.u32 %v9626_v6, 16 }
 0x31a   : > { %6478 = vrot.lane.b32.xlu0 %v6434_v25, %s10275_s12  ;;  %4697 = vst.msk [vmem:[#allocation2 + $0x40] sm:$0xf] %vm12788_vm0, %v4429_v17  ;;  %4700 = vst [vmem:[#allocation2 + $0x44] sm:$0x1] %v4699_v7  ;;  %v6026_v20 = vshll.u32 %v9627_v35, 16  ;;  %v5137_v0 = vshll.u32 %v9628_v31, 16  ;;  %v6908_v21 = vor.u32 %v6907_v18, %v6903_v16 }
 0x31b   : > { %v6023_v22 = vrot.slane %v6021_v49, 1  ;;  %v5142_v23 = vshll.u32 %v9629_v2, 16  ;;  %v5135_v25 = vshrl.u32 %v9628_v31, 16 }
 0x31c   : > { %v5139_v26 = vrot.slane %v5137_v0, 1  ;;  %v6913_v27 = vsel %vm12867_vm12, %v6908_v21, %v6912_v19  ;;  %v6028_v59 = vrot.slane %v6026_v20, 1  ;;  %vm12871_vm12 = vmmov %vm12863_vm3 }
 0x31d   : > { %v6024_v32 = vor.u32 %v6023_v22, %v6019_v14  ;;  %v5144_v34 = vrot.slane %v5142_v23, 1  ;;  %7084 = vrot.lane.b32.xlu1 %v6913_v27, %s10278_s25 }
 0x31e   : > { %7086 = vrot.lane.b32.xlu0 %v6925_v8, %s10278_s25  ;;  %v5140_v28 = vor.u32 %v5139_v26, %v5135_v25 }
 0x31f   : > { %v6029_v38 = vsel %vm12868_vm5, %v6024_v32, %v6028_v59  ;;  %vm12872_vm5 = vmmov %vm12863_vm3 }
 0x320   : > { %v9630_v41 = vld [vmem:[#allocation2 + $0x48] sm:$0xff]   ;;  %v5145_v62 = vsel %vm12869_vm8, %v5140_v28, %v5144_v34  ;;  %v9635_v47 = vld [vmem:[#allocation2 + $0x50] ss:$0 sps:$4 sm:$0x11]   ;;  %vm12873_vm8 = vmmov %vm12863_vm3 }
 0x321   : > { %5296 = vrot.lane.b32.xlu1 %v5145_v62, %s10272_s21  ;;  %v9631_v43 = vld [vmem:[#allocation2 + $0x48] sm:$0xff]   ;;  %v9633_v33 = vld [vmem:[#allocation2 + $0x3c] sm:$0xff]   ;;  %v9637_v57 = vld [vmem:[#allocation2 + $0x50] ss:$0 sps:$4 sm:$0x11]   ;;  %v6442_v61 = vrot.slane %v9635_v47, 1 }
 0x322   : > { %6190 = vrot.lane.b32.xlu0 %v6029_v38, %s10277_s24  ;;  %v9634_v45 = vld [vmem:[#allocation2 + $0x48] sm:$0xfe]   ;;  %v9632_v10 = vld [vmem:[#allocation2 + $0x3c] sm:$0xff]   ;;  %v7335_v39 = vrot.slane %v9637_v57, 1 }
 0x323   : > { %v11671_v50 = vld [vmem:[#allocation2 + $0x48] sm:$0xff]   ;;  %v6441_v51 = vrot.slane %v9634_v45, 1  ;;  %v9639_v4 = vld [vmem:[#allocation2 + $0x50] ss:$0 sps:$4 sm:$0x11]  }
 0x324   : > { %v9636_v58 = vld [vmem:[#allocation2 + $0x48] sm:$0xfe]   ;;  %v6055_v15 = vshrl.u32 %v11671_v50, 16  ;;  %v5549_v30 = vrot.slane %v9639_v4, 1  ;;  %v9640_v5 = vld [vmem:[#allocation2 + $0x3c] sm:$0xfe]  }
 0x325   : > { %5764 = vrot.lane.b32.xlu1 %v9631_v43, %s10273_s16  ;;  %v7334_v44 = vrot.slane %v9636_v58, 1  ;;  %v9638_v54 = vld [vmem:[#allocation2 + $0x48] sm:$0xfe]   ;;  %v9641_v8 = vld [vmem:[#allocation2 + $0x44] ss:$0 sps:$4 sm:$0x11]   ;;  %v6443_v53 = vsel %vm1977_vm9, %v6441_v51, %v6442_v61 }
 0x326   : > { %6658 = vrot.lane.b32.xlu0 %v9630_v41, %s10274_s29  ;;  %v5548_v29 = vrot.slane %v9638_v54, 1  ;;  %v5545_v36 = vrot.slane %v9640_v5, 1  ;;  %v9642_v11 = vld [vmem:[#allocation2 + $0x3c] sm:$0xfe]   ;;  %v11690_v2 = vld [vmem:[#allocation2 + $0x48] sm:$0xff]   ;;  %v5546_v16 = vrot.slane %v9641_v8, 1 }
 0x327   : > { %v9099_v63 = vpop.f32.mrb[12].mxu0  ;;  %v7336_v9 = vsel %vm1977_vm9, %v7334_v44, %v7335_v39  ;;  %v9643_v3 = vld [vmem:[#allocation2 + $0x44] ss:$0 sps:$4 sm:$0x11]   ;;  %v6057_v17 = vshll.u32 %v11671_v50, 16  ;;  %v7331_v19 = vrot.slane %v9642_v11, 1 }
 0x328   : > { %v4161_v55 = vmul.f32 %v11676_v40, %v9099_v63  ;;  %v4061_v56 = vpop.f32.mrb[13].mxu0  ;;  %v5550_v49 = vsel %vm1977_vm9, %v5548_v29, %v5549_v30  ;;  %v5547_v0 = vsel %vm1977_vm9, %v5545_v36, %v5546_v16  ;;  %v7332_v21 = vrot.slane %v9643_v3, 1  ;;  %v9645_v25 = vld [vmem:[#allocation2 + $0x50] ss:$0 sps:$4 sm:$0x11]  }
 0x329   : > { %6656 = vrot.lane.b32.xlu1 %v9632_v10, %s10274_s29  ;;  %v4159_v35 = vmul.f32 %v11676_v40, %v4061_v56  ;;  %v9100_v52 = vpop.f32.mrb[14].mxu0  ;;  %v6059_v26 = vrot.slane %v6057_v17, 1  ;;  %v5171_v27 = vshrl.u32 %v11690_v2, 16  ;;  %v4715_v38 = vld [vmem:[#allocation2 + $0x60] sm:$0xf]  ;;  %v6062_v57 = vshll.u32 %v9645_v25, 16 }
 0x32a   : > { %5762 = vrot.lane.b32.xlu0 %v9633_v33, %s10273_s16  ;;  %v4200_v6 = vadd.f32 %v11681_v37, %v4161_v55  ;;  %v4162_v42 = vmul.f32 %v11676_v40, %v9100_v52  ;;  %v4064_v48 = vpop.f32.mrb[15].mxu0  ;;  %v7333_v28 = vsel %vm1977_vm9, %v7331_v19, %v7332_v21  ;;  %v9646_v33 = vld [vmem:[#allocation2 + $0x3c] sm:$0xfe]   ;;  %v4708_v50 = vld [vmem:[#allocation2 + $0x54] sm:$0xf]  ;;  %v5173_v16 = vshll.u32 %v11690_v2, 16 }
 0x32b   : > { %v4198_v31 = vadd.f32 %v11681_v37, %v4159_v35  ;;  %v4160_v60 = vmul.f32 %v11676_v40, %v4064_v48  ;;  %v6060_v45 = vor.u32 %v6059_v26, %v6055_v15  ;;  %v4719_v61 = vld [vmem:[#allocation2 + $0x68] sm:$0x1]  ;;  %v9647_v54 = vld [vmem:[#allocation2 + $0x44] ss:$0 sps:$4 sm:$0x11]   ;;  %v6064_v29 = vrot.slane %v6062_v57, 1 }
 0x32c   : > { %v4232_v12 = vmax.f32 %v4200_v6, 0.0  ;;  %v4201_v13 = vadd.f32 %v11681_v37, %v4162_v42  ;;  %v4712_v56 = vld [vmem:[#allocation2 + $0x5c] sm:$0x1]  ;;  %v9650_v35 = vld [vmem:[#allocation2 + $0x48] sm:$0xff]   ;;  %v6438_v5 = vrot.slane %v9646_v33, 1  ;;  %v6439_v11 = vrot.slane %v9647_v54, 1 }
 0x32d   : > { %v4230_v7 = vmax.f32 %v4198_v31, 0.0  ;;  %v4199_v18 = vadd.f32 %v11681_v37, %v4160_v60  ;;  %6484 = vrot.lane.b32.xlu1 %v6443_v53, %s10275_s12  ;;  %v9649_v6 = vld [vmem:[#allocation2 + $0x50] ss:$0 sps:$4 sm:$0x11]   ;;  %v6065_v8 = vsel %vm12870_vm11, %v6060_v45, %v6064_v29  ;;  %v9652_v31 = vld [vmem:[#allocation2 + $0x3c] sm:$0xff]   ;;  %v6939_v19 = vshrl.u32 %v9650_v35, 16  ;;  %vm12874_vm11 = vmmov %vm12863_vm3 }
 0x32e   : > { %7378 = vrot.lane.b32.xlu0 %v7336_v9, %s10276_s0  ;;  %v9018_v14 = vpack.c.bf16 %v4232_v12, %v4232_v12  ;;  %v4233_v20 = vmax.f32 %v4201_v13, 0.0  ;;  %v5178_v3 = vshll.u32 %v9649_v6, 16  ;;  %v9651_v17 = vld [vmem:[#allocation2 + $0x50] ss:$0 sps:$4 sm:$0x11]   ;;  %v6927_v26 = vshrl.u32 %v9652_v31, 16 }
 0x32f   : > { %v9016_v22 = vpack.c.bf16 %v4230_v7, %v4230_v7  ;;  %v4231_v23 = vmax.f32 %v4199_v18, 0.0  ;;  %v6946_v21 = vshll.u32 %v9651_v17, 16  ;;  %v9653_v25 = vld [vmem:[#allocation2 + $0x44] ss:$0 sps:$4 sm:$0x11]  }
 0x330   : > { %v4466_v32 = vshrl.u32 %v9018_v14, 16  ;;  %v4469_v59 = vshll.u32 %v9018_v14, 16  ;;  %v9019_v34 = vpack.c.bf16 %v4233_v20, %v4233_v20  ;;  %v9654_v14 = vld [vmem:[#allocation2 + $0x3c] sm:$0xff]   ;;  %v5175_v20 = vrot.slane %v5173_v16, 1 }
 0x331   : > { %v4449_v41 = vshrl.u32 %v9016_v22, 16  ;;  %v4452_v62 = vshll.u32 %v9016_v22, 16  ;;  %v9017_v43 = vpack.c.bf16 %v4231_v23, %v4231_v23  ;;  %5588 = vrot.lane.b32.xlu1 %v5547_v0, %s10271_s13  ;;  %v6941_v0 = vshll.u32 %v9650_v35, 16  ;;  %v9656_v22 = vld [vmem:[#allocation2 + $0x3c] sm:$0xff]  }
 0x332   : > { %5590 = vrot.lane.b32.xlu0 %v5550_v49, %s10271_s13  ;;  %v4468_v47 = vrot.slane %v4466_v32, 7  ;;  %v4474_v51 = vshrl.u32 %v9019_v34, 16  ;;  %v4477_v58 = vshll.u32 %v9019_v34, 16  ;;  %v6440_v49 = vsel %vm1977_vm9, %v6438_v5, %v6439_v11  ;;  %v9657_v57 = vld [vmem:[#allocation2 + $0x44] ss:$0 sps:$4 sm:$0x11]  }
 0x333   : > { %v4451_v10 = vrot.slane %v4449_v41, 7  ;;  %v4457_v44 = vshrl.u32 %v9017_v43, 16  ;;  %v4460_v39 = vshll.u32 %v9017_v43, 16  ;;  %v5180_v23 = vrot.slane %v5178_v3, 1 }
 0x334   : > { %v4471_v63 = vor.u32 %v4469_v59, %v4468_v47  ;;  %v4472_v4 = vrot.slane %v4468_v47, 4  ;;  %v4476_v55 = vrot.slane %v4474_v51, 7  ;;  %v6929_v32 = vshll.u32 %v9652_v31, 16 }
 0x335   : > { %v4454_v15 = vor.u32 %v4452_v62, %v4451_v10  ;;  %v4455_v52 = vrot.slane %v4451_v10, 4  ;;  %v4459_v30 = vrot.slane %v4457_v44, 7  ;;  %6196 = vrot.lane.b32.xlu1 %v6065_v8, %s10277_s24  ;;  %v5176_v59 = vor.u32 %v5175_v20, %v5171_v27  ;;  %v9655_v62 = vld [vmem:[#allocation2 + $0x44] ss:$0 sps:$4 sm:$0x11]  }
 0x336   : > { %7376 = vrot.lane.b32.xlu0 %v7333_v28, %s10276_s0  ;;  %v4716_v42 = vsel %vm10762_vm10, %v4471_v63, %v4715_v38  ;;  %v4479_v48 = vor.u32 %v4477_v58, %v4476_v55  ;;  %v4481_v9 = vrot.slane %v4476_v55, 4  ;;  %v6943_v34 = vrot.slane %v6941_v0, 1 }
 0x337   : > { %4717 = vst [vmem:[#allocation2 + $0x60] sm:$0xf] %v4716_v42  ;;  %v4709_v60 = vsel %vm10762_vm10, %v4454_v15, %v4708_v50  ;;  %v4462_v53 = vor.u32 %v4460_v39, %v4459_v30  ;;  %v4464_v36 = vrot.slane %v4459_v30, 4  ;;  %v6948_v28 = vrot.slane %v6946_v21, 1 }
 0x338   : > { %4710 = vst [vmem:[#allocation2 + $0x54] sm:$0xf] %v4709_v60  ;;  %v4480_v12 = vsel %vm10743_vm7, %v4472_v4, %v4479_v48  ;;  %v4720_v13 = vsel %vm10716_vm4, %v4481_v9, %v4719_v61  ;;  %v6931_v38 = vrot.slane %v6929_v32, 1  ;;  %v6934_v41 = vshll.u32 %v9653_v25, 16 }
 0x339   : > { %4718 = vst.msk [vmem:[#allocation2 + $0x64] sm:$0xf] %vm12788_vm0, %v4480_v12  ;;  %4721 = vst [vmem:[#allocation2 + $0x68] sm:$0x1] %v4720_v13  ;;  %v4463_v7 = vsel %vm10743_vm7, %v4455_v52, %v4462_v53  ;;  %v4713_v18 = vsel %vm10716_vm4, %v4464_v36, %v4712_v56  ;;  %v6045_v43 = vshll.u32 %v9654_v14, 16  ;;  %v5181_v45 = vsel %vm12863_vm3, %v5176_v59, %v5180_v23 }
 0x33a   : > { %4711 = vst.msk [vmem:[#allocation2 + $0x58] sm:$0xf] %vm12788_vm0, %v4463_v7  ;;  %4714 = vst [vmem:[#allocation2 + $0x5c] sm:$0x1] %v4713_v18  ;;  %6482 = vrot.lane.b32.xlu0 %v6440_v49, %s10275_s12  ;;  %v6944_v33 = vor.u32 %v6943_v34, %v6939_v19  ;;  %5302 = vrot.lane.b32.xlu1 %v5181_v45, %s10272_s21  ;;  %v6932_v47 = vor.u32 %v6931_v38, %v6927_v26  ;;  %v6043_v50 = vshrl.u32 %v9654_v14, 16 }
 0x33b   : > { %v6047_v51 = vrot.slane %v6045_v43, 1  ;;  %v6050_v58 = vshll.u32 %v9655_v62, 16  ;;  %v6936_v2 = vrot.slane %v6934_v41, 1  ;;  %v5161_v27 = vshll.u32 %v9656_v22, 16 }
 0x33c   : > { %v6949_v10 = vsel %vm12871_vm12, %v6944_v33, %v6948_v28  ;;  %v5159_v44 = vshrl.u32 %v9656_v22, 16  ;;  %v5166_v39 = vshll.u32 %v9657_v57, 16  ;;  %vm12875_vm12 = vmmov %vm12863_vm3 }
 0x33d   : > { %v6048_v61 = vor.u32 %v6047_v51, %v6043_v50  ;;  %v6937_v54 = vsel %vm12872_vm5, %v6932_v47, %v6936_v2  ;;  %v6052_v63 = vrot.slane %v6050_v58, 1  ;;  %v5163_v4 = vrot.slane %v5161_v27, 1 }
 0x33e   : > { %7090 = vrot.lane.b32.xlu0 %v6949_v10, %s10278_s25  ;;  %7088 = vrot.lane.b32.xlu1 %v6937_v54, %s10278_s25  ;;  %v5168_v55 = vrot.slane %v5166_v39, 1  ;;  %vm12876_vm5 = vcmask 31744  }
 0x33f   : > { %v6053_v29 = vsel %vm12873_vm8, %v6048_v61, %v6052_v63  ;;  %v5164_v35 = vor.u32 %v5163_v4, %v5159_v44  ;;  %vm12877_vm8 = vmmov %vm12863_vm3 }
 0x340   : > { %v9658_v56 = vld [vmem:[#allocation2 + $0x60] sm:$0xff]   ;;  %v9663_v30 = vld [vmem:[#allocation2 + $0x68] ss:$0 sps:$4 sm:$0x11]  }
 0x341   : > { %v9662_v15 = vld [vmem:[#allocation2 + $0x60] sm:$0xfe]   ;;  %v5169_v52 = vsel %vm12874_vm11, %v5164_v35, %v5168_v55  ;;  %v9665_v9 = vld [vmem:[#allocation2 + $0x68] ss:$0 sps:$4 sm:$0x11]   ;;  %v9661_v8 = vld [vmem:[#allocation2 + $0x54] sm:$0xff]  }
 0x342   : > { %6194 = vrot.lane.b32.xlu0 %v6053_v29, %s10277_s24  ;;  %v9672_v5 = vld [vmem:[#allocation2 + $0x60] sm:$0xff]   ;;  %5300 = vrot.lane.b32.xlu1 %v5169_v52, %s10272_s21  ;;  %v6447_v48 = vrot.slane %v9662_v15, 1  ;;  %v6448_v31 = vrot.slane %v9663_v30, 1  ;;  %v9667_v11 = vld [vmem:[#allocation2 + $0x68] ss:$0 sps:$4 sm:$0x11]  }
 0x343   : > { %v9659_v6 = vld [vmem:[#allocation2 + $0x60] sm:$0xff]   ;;  %v6079_v12 = vshrl.u32 %v9672_v5, 16  ;;  %v9660_v16 = vld [vmem:[#allocation2 + $0x54] sm:$0xff]   ;;  %v6081_v17 = vshll.u32 %v9672_v5, 16  ;;  %v7341_v49 = vrot.slane %v9665_v9, 1  ;;  %v5555_v14 = vrot.slane %v9667_v11, 1 }
 0x344   : > { %v9664_v42 = vld [vmem:[#allocation2 + $0x60] sm:$0xfe]   ;;  %v9668_v22 = vld [vmem:[#allocation2 + $0x54] sm:$0xfe]   ;;  %v6449_v34 = vsel %vm1977_vm9, %v6447_v48, %v6448_v31  ;;  %vm12878_vm11 = vcmask 64544  }
 0x345   : > { %v7340_v60 = vrot.slane %v9664_v42, 1  ;;  %v9666_v36 = vld [vmem:[#allocation2 + $0x60] sm:$0xfe]   ;;  %v9669_v23 = vld [vmem:[#allocation2 + $0x5c] ss:$0 sps:$4 sm:$0x11]  }
 0x346   : > { %6662 = vrot.lane.b32.xlu0 %v9658_v56, %s10274_s29  ;;  %5768 = vrot.lane.b32.xlu1 %v9659_v6, %s10273_s16  ;;  %v5554_v19 = vrot.slane %v9666_v36, 1  ;;  %v11741_v20 = vld [vmem:[#allocation2 + $0x60] sm:$0xff]   ;;  %v6083_v28 = vrot.slane %v6081_v17, 1  ;;  %v5551_v62 = vrot.slane %v9668_v22, 1  ;;  %v5552_v43 = vrot.slane %v9669_v23, 1 }
 0x347   : > { %v9670_v45 = vld [vmem:[#allocation2 + $0x54] sm:$0xfe]   ;;  %v7342_v50 = vsel %vm1977_vm9, %v7340_v60, %v7341_v49  ;;  %v9671_v58 = vld [vmem:[#allocation2 + $0x5c] ss:$0 sps:$4 sm:$0x11]   ;;  %v5195_v4 = vshrl.u32 %v11741_v20, 16 }
 0x348   : > { %v5556_v51 = vsel %vm1977_vm9, %v5554_v19, %v5555_v14  ;;  %v7337_v27 = vrot.slane %v9670_v45, 1  ;;  %v6084_v61 = vor.u32 %v6083_v28, %v6079_v12  ;;  %v7338_v54 = vrot.slane %v9671_v58, 1  ;;  %v9673_v63 = vld [vmem:[#allocation2 + $0x68] ss:$0 sps:$4 sm:$0x11]  }
 0x349   : > { %v5553_v29 = vsel %vm1977_vm9, %v5551_v62, %v5552_v43  ;;  %v5197_v35 = vshll.u32 %v11741_v20, 16  ;;  %v9674_v6 = vld [vmem:[#allocation2 + $0x54] sm:$0xfe]   ;;  %v6086_v31 = vshll.u32 %v9673_v63, 16  ;;  %v4722_v12 = vld [vmem:[#allocation2 + $0x6c] sm:$0xf] }
 0x34a   : > { %5766 = vrot.lane.b32.xlu0 %v9661_v8, %s10273_s16  ;;  %6660 = vrot.lane.b32.xlu1 %v9660_v16, %s10274_s29  ;;  %v7339_v5 = vsel %vm1977_vm9, %v7337_v27, %v7338_v54  ;;  %v4729_v42 = vld [vmem:[#allocation2 + $0x78] sm:$0xf]  ;;  %v9675_v60 = vld [vmem:[#allocation2 + $0x5c] ss:$0 sps:$4 sm:$0x11]   ;;  %v6444_v17 = vrot.slane %v9674_v6, 1 }
 0x34b   : > { %v4733_v49 = vld [vmem:[#allocation2 + $0x80] sm:$0x1]  ;;  %v9680_v62 = vld [vmem:[#allocation2 + $0x54] sm:$0xff]   ;;  %v9679_v63 = vld [vmem:[#allocation2 + $0x68] ss:$0 sps:$4 sm:$0x11]  }
 0x34c   : > { %v9684_v27 = vld [vmem:[#allocation2 + $0x54] sm:$0xff]  }
 0x34e   : > { %7382 = vrot.lane.b32.xlu0 %v7342_v50, %s10276_s0  ;;  %6488 = vrot.lane.b32.xlu1 %v6449_v34, %s10275_s12  ;;  %v11775_v50 = vld [vmem:[#allocation2 + $0x54] sm:$0xff]  }
 0x34f   : > { %v6067_v20 = vshrl.u32 %v11775_v50, 16 }
 0x352   : > { %5594 = vrot.lane.b32.xlu0 %v5556_v51, %s10271_s13  ;;  %5592 = vrot.lane.b32.xlu1 %v5553_v29, %s10271_s13  ;;  %v9721_v29 = vld [vmem:[#allocation12] sm:$0xff]  }
 0x353   : > { %9117 = vmatprep.subr.bf16.mxu1 %v9721_v29 }
 0x354   : > { %9118 = vmatpush3.bf16.msra.mxu1 %v9721_v29 }
 0x356   : > { %7380 = vrot.lane.b32.xlu0 %v7339_v5, %s10276_s0  ;;  %v9726_v5 = vld [vmem:[#allocation12 + $0x8] sm:$0xff]  }
 0x357   : > { %9119 = vmatprep.subr.bf16.mxu1 %v9726_v5 }
 0x358   : > { %v11735_v53 = vpop.permute.xlu0 %6650  ;;  %v9103_v3 = vpop.f32.mrb[16].mxu0  ;;  %9120 = vmatpush3.bf16.msra.mxu1 %v9726_v5 }
 0x359   : > { %v11737_v13 = vpop.permute.xlu1 %5756  ;;  %v4165_v7 = vmul.f32 %v11676_v40, %v9103_v3  ;;  %v4077_v18 = vpop.f32.mrb[17].mxu0 }
 0x35a   : > { %v4163_v0 = vmul.f32 %v11676_v40, %v4077_v18  ;;  %v9104_v21 = vpop.f32.mrb[18].mxu0 }
 0x35b   : > { %v4204_v26 = vadd.f32 %v11681_v37, %v4165_v7  ;;  %v4166_v32 = vmul.f32 %v11676_v40, %v9104_v21  ;;  %v4080_v59 = vpop.f32.mrb[19].mxu0 }
 0x35c   : > { %v5755_v25 = vpop.permute.xlu0 %5754  ;;  %v4202_v38 = vadd.f32 %v11681_v37, %v4163_v0  ;;  %v4164_v41 = vmul.f32 %v11676_v40, %v4080_v59  ;;  %v6088_v0 = vrot.slane %v6086_v31, 1  ;;  %v6953_v31 = vshll.u32 %v9680_v62, 16 }
 0x35d   : > { %5802 = vst.msk [vmem:[#allocation3] sm:$0xff] %vm2251_vm14, %v5755_v25  ;;  %v4236_v33 = vmax.f32 %v4204_v26, 0.0  ;;  %v4205_v47 = vadd.f32 %v11681_v37, %v4166_v32  ;;  %v11755_v57 = vpop.permute.xlu1 %6476  ;;  %v4726_v25 = vld [vmem:[#allocation2 + $0x74] sm:$0x1]  ;;  %v6445_v26 = vrot.slane %v9675_v60, 1  ;;  %v9678_v32 = vld [vmem:[#allocation2 + $0x60] sm:$0xff]  }
 0x35e   : > { %v4234_v10 = vmax.f32 %v4202_v38, 0.0  ;;  %v4203_v2 = vadd.f32 %v11681_v37, %v4164_v41  ;;  %v6089_v38 = vsel %vm12863_vm3, %v6084_v61, %v6088_v0  ;;  %v9677_v41 = vld [vmem:[#allocation2 + $0x68] ss:$0 sps:$4 sm:$0x11]   ;;  %v5185_v0 = vshll.u32 %v9684_v27, 16 }
 0x35f   : > { %v9022_v44 = vpack.c.bf16 %v4236_v33, %v4236_v33  ;;  %v4237_v39 = vmax.f32 %v4205_v47, 0.0  ;;  %v6446_v47 = vsel %vm1977_vm9, %v6444_v17, %v6445_v26  ;;  %6200 = vrot.lane.b32.xlu1 %v6089_v38, %s10277_s24  ;;  %v5202_v54 = vshll.u32 %v9677_v41, 16  ;;  %v9683_v17 = vld [vmem:[#allocation2 + $0x5c] ss:$0 sps:$4 sm:$0x11]  }
 0x360   : > { %v9020_v55 = vpack.c.bf16 %v4234_v10, %v4234_v10  ;;  %v4235_v56 = vmax.f32 %v4203_v2, 0.0  ;;  %v11765_v36 = vpop.permute.xlu0 %7370  ;;  %v5199_v2 = vrot.slane %v5197_v35, 1  ;;  %6486 = vrot.lane.b32.xlu0 %v6446_v47, %s10275_s12  ;;  %v6074_v26 = vshll.u32 %v9683_v17, 16 }
 0x361   : > { %v4500_v15 = vshrl.u32 %v9022_v44, 16  ;;  %v4503_v52 = vshll.u32 %v9022_v44, 16  ;;  %v9023_v30 = vpack.c.bf16 %v4237_v39, %v4237_v39  ;;  %v11767_v7 = vpop.permute.xlu1 %5580  ;;  %v5204_v6 = vrot.slane %v5202_v54, 1 }
 0x362   : > { %v4483_v48 = vshrl.u32 %v9020_v55, 16  ;;  %v4486_v9 = vshll.u32 %v9020_v55, 16  ;;  %v9021_v8 = vpack.c.bf16 %v4235_v56, %v4235_v56  ;;  %v6963_v55 = vshrl.u32 %v9678_v32, 16 }
 0x363   : > { %v4502_v11 = vrot.slane %v4500_v15, 7  ;;  %v4508_v16 = vshrl.u32 %v9023_v30, 16  ;;  %v4511_v3 = vshll.u32 %v9023_v30, 16  ;;  %v6965_v30 = vshll.u32 %v9678_v32, 16 }
 0x364   : > { %v4485_v18 = vrot.slane %v4483_v48, 7  ;;  %v4491_v19 = vshrl.u32 %v9021_v8, 16  ;;  %v4494_v14 = vshll.u32 %v9021_v8, 16  ;;  %v5583_v61 = vpop.permute.xlu0 %5582  ;;  %v9681_v48 = vld [vmem:[#allocation2 + $0x5c] ss:$0 sps:$4 sm:$0x11]  }
 0x365   : > { %v4505_v21 = vor.u32 %v4503_v52, %v4502_v11  ;;  %v4506_v22 = vrot.slane %v4502_v11, 4  ;;  %v4510_v23 = vrot.slane %v4508_v16, 7  ;;  %v11784_v56 = vpop.permute.xlu1 %6188  ;;  %v5200_v52 = vor.u32 %v5199_v2, %v5195_v4  ;;  %v9754_v4 = vld [vmem:[#allocation2 + $0x48] sm:$0xff]   ;;  %v9685_v32 = vld [vmem:[#allocation2 + $0x5c] ss:$0 sps:$4 sm:$0x11]  }
 0x366   : > { %v4488_v59 = vor.u32 %v4486_v9, %v4485_v18  ;;  %v4489_v34 = vrot.slane %v4485_v18, 4  ;;  %v4493_v28 = vrot.slane %v4491_v19, 7  ;;  %v6951_v9 = vshrl.u32 %v9680_v62, 16  ;;  %4912 = vst.msk [vmem:[#allocation3 + $0x30] sm:$0xff] %vm12876_vm5, %v9754_v4  ;;  %vm12880_vm5 = vmmov %vm12863_vm3 }
 0x367   : > { %v4730_v43 = vsel %vm10762_vm10, %v4505_v21, %v4729_v42  ;;  %v4513_v45 = vor.u32 %v4511_v3, %v4510_v23  ;;  %v4515_v33 = vrot.slane %v4510_v23, 4  ;;  %v6970_v42 = vshll.u32 %v9679_v63, 16 }
 0x368   : > { %4731 = vst [vmem:[#allocation2 + $0x78] sm:$0xf] %v4730_v43  ;;  %v4723_v51 = vsel %vm10762_vm10, %v4488_v59, %v4722_v12  ;;  %v4496_v58 = vor.u32 %v4494_v14, %v4493_v28  ;;  %v4498_v10 = vrot.slane %v4493_v28, 4  ;;  %v6967_v8 = vrot.slane %v6965_v30, 1  ;;  %v6475_v19 = vpop.permute.xlu0 %6474 }
 0x369   : > { %4724 = vst [vmem:[#allocation2 + $0x6c] sm:$0xf] %v4723_v51  ;;  %v4514_v44 = vsel %vm10743_vm7, %v4506_v22, %v4513_v45  ;;  %v4734_v39 = vsel %vm10716_vm4, %v4515_v33, %v4733_v49  ;;  %v5205_v60 = vsel %vm12875_vm12, %v5200_v52, %v5204_v6  ;;  %v6972_v11 = vrot.slane %v6970_v42, 1  ;;  %vm12879_vm12 = vmmov %vm12863_vm3 }
 0x36a   : > { %4732 = vst.msk [vmem:[#allocation2 + $0x7c] sm:$0xf] %vm12788_vm0, %v4514_v44  ;;  %4735 = vst [vmem:[#allocation2 + $0x80] sm:$0x1] %v4734_v39  ;;  %v4497_v35 = vsel %vm10743_vm7, %v4489_v34, %v4496_v58  ;;  %v4727_v15 = vsel %vm10716_vm4, %v4498_v10, %v4726_v25  ;;  %v6958_v12 = vshll.u32 %v9681_v48, 16  ;;  %5306 = vrot.lane.b32.xlu1 %v5205_v60, %s10272_s21  ;;  %v6955_v3 = vrot.slane %v6953_v31, 1 }
 0x36b   : > { %4725 = vst.msk [vmem:[#allocation2 + $0x70] sm:$0xf] %vm12788_vm0, %v4497_v35  ;;  %4728 = vst [vmem:[#allocation2 + $0x74] sm:$0x1] %v4727_v15  ;;  %v6968_v16 = vor.u32 %v6967_v8, %v6963_v55  ;;  %v6069_v18 = vshll.u32 %v11775_v50, 16  ;;  %v5183_v49 = vshrl.u32 %v9684_v27, 16  ;;  %v5295_v21 = vpop.permute.xlu1 %5294 }
 0x36c   : > { %v6960_v14 = vrot.slane %v6958_v12, 1  ;;  %v6956_v23 = vor.u32 %v6955_v3, %v6951_v9  ;;  %5340 = vst.msk [vmem:[#allocation3 + $0x10] sm:$0xff] %vm12878_vm11, %v5295_v21  ;;  %v5187_v59 = vrot.slane %v5185_v0, 1  ;;  %v6076_v38 = vrot.slane %v6074_v26, 1 }
 0x36d   : > { %v6973_v22 = vsel %vm12877_vm8, %v6968_v16, %v6972_v11  ;;  %v6071_v25 = vrot.slane %v6069_v18, 1  ;;  %5628 = vst.msk [vmem:[#allocation3 + $0x10] sm:$0xff] %vm2074_vm13, %v5583_v61  ;;  %v5190_v62 = vshll.u32 %v9685_v32, 16  ;;  %vm12881_vm8 = vmmov %vm12878_vm11  ;;  %vm12882_vm11 = vcmask 261344  }
 0x36e   : > { %7094 = vrot.lane.b32.xlu0 %v6973_v22, %s10278_s25  ;;  %v6961_v34 = vsel %vm12863_vm3, %v6956_v23, %v6960_v14  ;;  %v5188_v41 = vor.u32 %v5187_v59, %v5183_v49  ;;  %vm12883_vm3 = vcmask 294144  }
 0x36f   : > { %v6072_v28 = vor.u32 %v6071_v25, %v6067_v20  ;;  %7092 = vrot.lane.b32.xlu1 %v6961_v34, %s10278_s25  ;;  %v5192_v33 = vrot.slane %v5190_v62, 1 }
 0x370   : > { %v7083_v45 = vpop.permute.xlu0 %7082 }
 0x371   : > { %v6077_v43 = vsel %vm12879_vm12, %v6072_v28, %v6076_v38  ;;  %v9686_v47 = vld [vmem:[#allocation2 + $0x78] sm:$0xff]   ;;  %v5193_v58 = vsel %vm12880_vm5, %v5188_v41, %v5192_v33  ;;  %v9693_v10 = vld [vmem:[#allocation2 + $0x80] ss:$0 sps:$4 sm:$0x11]   ;;  %vm12884_vm12 = vmmov %vm12880_vm5 }
 0x372   : > { %6198 = vrot.lane.b32.xlu0 %v6077_v43, %s10277_s24  ;;  %v5293_v50 = vpop.permute.xlu1 %5292  ;;  %v9692_v51 = vld [vmem:[#allocation2 + $0x78] sm:$0xfe]   ;;  %v9690_v54 = vld [vmem:[#allocation2 + $0x6c] sm:$0xff]   ;;  %v6454_v63 = vrot.slane %v9693_v10, 1 }
 0x373   : > { %5339 = vst.msk [vmem:[#allocation3 + $0x8] sm:$0xff] %vm12881_vm8, %v5293_v50  ;;  %v11810_v2 = vld [vmem:[#allocation2 + $0x78] sm:$0xff]   ;;  %5304 = vrot.lane.b32.xlu1 %v5193_v58, %s10272_s21  ;;  %v6453_v61 = vrot.slane %v9692_v51, 1  ;;  %v9695_v55 = vld [vmem:[#allocation2 + $0x80] ss:$0 sps:$4 sm:$0x11]  }
 0x374   : > { %v9687_v27 = vld [vmem:[#allocation2 + $0x78] sm:$0xff]   ;;  %5627 = vst.msk [vmem:[#allocation3 + $0x8] sm:$0xff] %vm2074_vm13, %v11767_v7  ;;  %v6187_v39 = vpop.permute.xlu0 %6186  ;;  %v6103_v7 = vshrl.u32 %v11810_v2, 16  ;;  %v9697_v30 = vld [vmem:[#allocation2 + $0x80] ss:$0 sps:$4 sm:$0x11]  }
 0x375   : > { %v9694_v44 = vld [vmem:[#allocation2 + $0x78] sm:$0xfe]   ;;  %5803 = vst.msk [vmem:[#allocation3 + $0x8] sm:$0xff] %vm2251_vm14, %v11737_v13  ;;  %v7347_v13 = vrot.slane %v9695_v55, 1  ;;  %v9689_v5 = vld [vmem:[#allocation2 + $0x6c] sm:$0xff]   ;;  %vm12885_vm8 = vcmask 31744  }
 0x376   : > { %6666 = vrot.lane.b32.xlu0 %v9686_v47, %s10274_s29  ;;  %6234 = vst.msk [vmem:[#allocation3] sm:$0xff] %vm2684_vm15, %v6187_v39  ;;  %v11819_v29 = vld [vmem:[#allocation2 + $0x78] sm:$0xff]   ;;  %6235 = vst.msk [vmem:[#allocation3 + $0x8] sm:$0xff] %vm2684_vm15, %v11784_v56  ;;  %v7346_v35 = vrot.slane %v9694_v44, 1  ;;  %v11825_v15 = vpop.permute.xlu1 %5760  ;;  %v9698_v42 = vld [vmem:[#allocation2 + $0x6c] sm:$0xfe]  }
 0x377   : > { %6522 = vst.msk [vmem:[#allocation3] sm:$0xff] %vm2973_vm1, %v6475_v19  ;;  %6523 = vst.msk [vmem:[#allocation3 + $0x8] sm:$0xff] %vm2973_vm1, %v11755_v57  ;;  %v9696_v52 = vld [vmem:[#allocation2 + $0x78] sm:$0xfe]   ;;  %5772 = vrot.lane.b32.xlu1 %v9687_v27, %s10273_s16  ;;  %v5561_v57 = vrot.slane %v9697_v30, 1  ;;  %v5557_v8 = vrot.slane %v9698_v42, 1  ;;  %v6455_v19 = vsel %vm1977_vm9, %v6453_v61, %v6454_v63 }
 0x378   : > { %6698 = vst.msk [vmem:[#allocation3] sm:$0xff] %vm3151_vm2, %v11735_v53  ;;  %v11833_v56 = vpop.permute.xlu0 %6654  ;;  %v5560_v6 = vrot.slane %v9696_v52, 1  ;;  %v9699_v48 = vld [vmem:[#allocation2 + $0x74] ss:$0 sps:$4 sm:$0x11]   ;;  %v6105_v53 = vshll.u32 %v11810_v2, 16  ;;  %v7348_v11 = vsel %vm1977_vm9, %v7346_v35, %v7347_v13 }
 0x379   : > { %7130 = vst.msk [vmem:[#allocation3] sm:$0xff] %vm12882_vm11, %v7083_v45  ;;  %v9700_v31 = vld [vmem:[#allocation2 + $0x6c] sm:$0xfe]   ;;  %v5219_v60 = vshrl.u32 %v11819_v29, 16  ;;  %v5558_v12 = vrot.slane %v9699_v48, 1  ;;  %v5221_v14 = vshll.u32 %v11819_v29, 16  ;;  %vm12886_vm11 = vmmov %vm12880_vm5 }
 0x37a   : > { %5770 = vrot.lane.b32.xlu0 %v9690_v54, %s10273_s16  ;;  %7418 = vst.msk [vmem:[#allocation3] sm:$0xff] %vm12883_vm3, %v11765_v36  ;;  %v6653_v9 = vpop.permute.xlu1 %6652  ;;  %v9701_v20 = vld [vmem:[#allocation2 + $0x74] ss:$0 sps:$4 sm:$0x11]   ;;  %v7343_v4 = vrot.slane %v9700_v31, 1  ;;  %v6107_v16 = vrot.slane %v6105_v53, 1  ;;  %v5562_v22 = vsel %vm1977_vm9, %v5560_v6, %v5561_v57 }
 0x37b   : > { %6699 = vst.msk [vmem:[#allocation3 + $0x8] sm:$0xff] %vm3151_vm2, %v6653_v9  ;;  %6664 = vrot.lane.b32.xlu1 %v9689_v5, %s10274_s29  ;;  %v7344_v3 = vrot.slane %v9701_v20, 1  ;;  %v9703_v17 = vld [vmem:[#allocation2 + $0x80] ss:$0 sps:$4 sm:$0x11]   ;;  %v9107_v49 = vpop.f32.mrb[20].mxu0  ;;  %v5559_v34 = vsel %vm1977_vm9, %v5557_v8, %v5558_v12 }
 0x37c   : > { %v5759_v36 = vpop.permute.xlu0 %5758  ;;  %v4169_v0 = vmul.f32 %v11676_v40, %v9107_v49  ;;  %v4093_v21 = vpop.f32.mrb[21].mxu0  ;;  %v6110_v23 = vshll.u32 %v9703_v17, 16  ;;  %v9704_v25 = vld [vmem:[#allocation2 + $0x6c] sm:$0xfe]   ;;  %v6108_v28 = vor.u32 %v6107_v16, %v6103_v7  ;;  %v9708_v47 = vld [vmem:[#allocation2 + $0x78] sm:$0xff]   ;;  %v5223_v27 = vrot.slane %v5221_v14, 1 }
 0x37d   : > { %5804 = vst.msk [vmem:[#allocation3 + $0x10] sm:$0xff] %vm2251_vm14, %v5759_v36  ;;  %v4167_v32 = vmul.f32 %v11676_v40, %v4093_v21  ;;  %v9108_v59 = vpop.f32.mrb[22].mxu0  ;;  %v9705_v38 = vld [vmem:[#allocation2 + $0x74] ss:$0 sps:$4 sm:$0x11]   ;;  %v6450_v33 = vrot.slane %v9704_v25, 1  ;;  %v7345_v39 = vsel %vm1977_vm9, %v7343_v4, %v7344_v3 }
 0x37e   : > { %7386 = vrot.lane.b32.xlu0 %v7348_v11, %s10276_s0  ;;  %v11845_v18 = vpop.permute.xlu1 %6480  ;;  %v4208_v41 = vadd.f32 %v11681_v37, %v4169_v0  ;;  %v4170_v62 = vmul.f32 %v11676_v40, %v9108_v59  ;;  %v4096_v43 = vpop.f32.mrb[23].mxu0  ;;  %v6112_v45 = vrot.slane %v6110_v23, 1  ;;  %v6451_v10 = vrot.slane %v9705_v38, 1  ;;  %v9707_v2 = vld [vmem:[#allocation2 + $0x80] ss:$0 sps:$4 sm:$0x11]  }
 0x37f   : > { %6492 = vrot.lane.b32.xlu1 %v6455_v19, %s10275_s12  ;;  %v4206_v51 = vadd.f32 %v11681_v37, %v4167_v32  ;;  %v4168_v58 = vmul.f32 %v11676_v40, %v4096_v43  ;;  %v6987_v54 = vshrl.u32 %v9708_v47, 16  ;;  %v9709_v35 = vld [vmem:[#allocation2 + $0x80] ss:$0 sps:$4 sm:$0x11]   ;;  %v5226_v52 = vshll.u32 %v9707_v2, 16  ;;  %v9712_v59 = vld [vmem:[#allocation2 + $0x6c] sm:$0xff]  }
 0x380   : > { %v11852_v26 = vpop.permute.xlu0 %7374  ;;  %v4240_v61 = vmax.f32 %v4208_v41, 0.0  ;;  %v4209_v44 = vadd.f32 %v11681_v37, %v4170_v62  ;;  %v6113_v40 = vsel %vm12884_vm12, %v6108_v28, %v6112_v45  ;;  %v6989_v30 = vshll.u32 %v9708_v47, 16  ;;  %v4743_v12 = vld [vmem:[#allocation2 + $0x90] sm:$0xf]  ;;  %v4736_v49 = vld [vmem:[#allocation2 + $0x84] sm:$0xf]  ;;  %vm12888_vm12 = vmmov %vm12885_vm8 }
 0x381   : > { %v4238_v55 = vmax.f32 %v4206_v51, 0.0  ;;  %v4207_v29 = vadd.f32 %v11681_v37, %v4168_v58  ;;  %v7434_v5 = vld [vmem:[#allocation3] sm:$0xff]  ;;  %v6452_v42 = vsel %vm1977_vm9, %v6450_v33, %v6451_v10  ;;  %v5224_v48 = vor.u32 %v5223_v27, %v5219_v60  ;;  %v11879_v60 = vld [vmem:[#allocation2 + $0x6c] sm:$0xff]   ;;  %v9711_v0 = vld [vmem:[#allocation2 + $0x74] ss:$0 sps:$4 sm:$0x11]  }
 0x382   : > { %5598 = vrot.lane.b32.xlu0 %v5562_v22, %s10271_s13  ;;  %v11859_v50 = vpop.permute.xlu1 %5584  ;;  %v9026_v7 = vpack.c.bf16 %v4240_v61, %v4240_v61  ;;  %v4241_v13 = vmax.f32 %v4209_v44, 0.0  ;;  %9123 = vmatprep.mubr.msk.bf16.mxu1 %vm3926_vm6, %v7434_v5  ;;  %v6994_v31 = vshll.u32 %v9709_v35, 16  ;;  %v5228_v4 = vrot.slane %v5226_v52, 1  ;;  %v4747_v22 = vld [vmem:[#allocation2 + $0x98] sm:$0x1]  ;;  %v9714_v33 = vld [vmem:[#allocation2 + $0x6c] sm:$0xff]  }
 0x383   : > { %5596 = vrot.lane.b32.xlu1 %v5559_v34, %s10271_s13  ;;  %v9024_v6 = vpack.c.bf16 %v4238_v55, %v4238_v55  ;;  %v4239_v57 = vmax.f32 %v4207_v29, 0.0  ;;  %v6991_v16 = vrot.slane %v6989_v30, 1  ;;  %v9763_v34 = vld [vmem:[#allocation2 + $0x3c] sm:$0xff]   ;;  %v4740_v62 = vld [vmem:[#allocation2 + $0x8c] sm:$0x1]  ;;  %vm12887_vm3 = vcmask 64544  }
 0x384   : > { %v11866_v63 = vpop.permute.xlu0 %5586  ;;  %v4534_v37 = vshrl.u32 %v9026_v7, 16  ;;  %v4537_v9 = vshll.u32 %v9026_v7, 16  ;;  %v9027_v8 = vpack.c.bf16 %v4241_v13, %v4241_v13  ;;  %v5229_v25 = vsel %vm12880_vm5, %v5224_v48, %v5228_v4  ;;  %v9713_v45 = vld [vmem:[#allocation2 + $0x74] ss:$0 sps:$4 sm:$0x11]   ;;  %4911 = vst.msk [vmem:[#allocation3 + $0x28] sm:$0xff] %vm12885_vm8, %v9763_v34  ;;  %vm12889_vm5 = vmmov %vm12885_vm8 }
 0x385   : > { %v4517_v20 = vshrl.u32 %v9024_v6, 16  ;;  %v9025_v36 = vpack.c.bf16 %v4239_v57, %v4239_v57  ;;  %v4520_v17 = vshll.u32 %v9024_v6, 16  ;;  %v6992_v32 = vor.u32 %v6991_v16, %v6987_v54  ;;  %v9782_v27 = vld [vmem:[#allocation2 + $0x60] sm:$0xff]   ;;  %v9790_v29 = vld [vmem:[#allocation2 + $0x54] sm:$0xff]   ;;  %vm12890_vm8 = vmmov %vm12886_vm11 }
 0x386   : > { %7384 = vrot.lane.b32.xlu0 %v7345_v39, %s10276_s0  ;;  %v11873_v53 = vpop.permute.xlu1 %6192  ;;  %v4536_v3 = vrot.slane %v4534_v37, 7  ;;  %v4542_v19 = vshrl.u32 %v9027_v8, 16  ;;  %v4545_v14 = vshll.u32 %v9027_v8, 16  ;;  %v6996_v43 = vrot.slane %v6994_v31, 1  ;;  %4914 = vst.msk [vmem:[#allocation3 + $0x40] sm:$0xff] %vm12888_vm12, %v9782_v27  ;;  %vm12893_vm12 = vmmov %vm12890_vm8 }
 0x387   : > { %6204 = vrot.lane.b32.xlu1 %v6113_v40, %s10277_s24  ;;  %v4519_v21 = vrot.slane %v4517_v20, 7  ;;  %v4525_v23 = vshrl.u32 %v9025_v36, 16  ;;  %v4528_v41 = vshll.u32 %v9025_v36, 16  ;;  %v6977_v13 = vshll.u32 %v11879_v60, 16  ;;  %4913 = vst.msk [vmem:[#allocation3 + $0x38] sm:$0xff] %vm12889_vm5, %v9790_v29  ;;  %vm12894_vm5 = vmmov %vm12890_vm8 }
 0x388   : > { %v11876_v11 = vpop.permute.xlu0 %7372  ;;  %v4539_v28 = vor.u32 %v4537_v9, %v4536_v3  ;;  %v4544_v38 = vrot.slane %v4542_v19, 7  ;;  %v4540_v47 = vrot.slane %v4536_v3, 4  ;;  %v6997_v54 = vsel %vm12886_vm11, %v6992_v32, %v6996_v43  ;;  %v9715_v52 = vld [vmem:[#allocation2 + $0x74] ss:$0 sps:$4 sm:$0x11]  }
 0x389   : > { %v4522_v51 = vor.u32 %v4520_v17, %v4519_v21  ;;  %v4523_v58 = vrot.slane %v4519_v21, 4  ;;  %v4527_v10 = vrot.slane %v4525_v23, 7  ;;  %v6975_v6 = vshrl.u32 %v11879_v60, 16  ;;  %v9732_v16 = vld [vmem:[#allocation12 + $0x10] ss:$0 sps:$4 sm:$0x33]  }
 0x38a   : > { %6490 = vrot.lane.b32.xlu0 %v6452_v42, %s10275_s12  ;;  %v5299_v2 = vpop.permute.xlu1 %5298  ;;  %v4744_v61 = vsel %vm10762_vm10, %v4539_v28, %v4743_v12  ;;  %v4547_v44 = vor.u32 %v4545_v14, %v4544_v38  ;;  %v4549_v39 = vrot.slane %v4544_v38, 4  ;;  %v6982_v57 = vshll.u32 %v9711_v0, 16 }
 0x38b   : > { %5310 = vrot.lane.b32.xlu1 %v5229_v25, %s10272_s21  ;;  %5342 = vst.msk [vmem:[#allocation3 + $0x20] sm:$0xff] %vm12887_vm3, %v5299_v2  ;;  %4745 = vst [vmem:[#allocation2 + $0x90] sm:$0xf] %v4744_v61  ;;  %v4737_v40 = vsel %vm10762_vm10, %v4522_v51, %v4736_v49  ;;  %v4530_v35 = vor.u32 %v4528_v41, %v4527_v10  ;;  %v4532_v7 = vrot.slane %v4527_v10, 4  ;;  %v6979_v48 = vrot.slane %v6977_v13, 1 }
 0x38c   : > { %v6479_v55 = vpop.permute.xlu0 %6478  ;;  %5630 = vst.msk [vmem:[#allocation3 + $0x20] sm:$0xff] %vm2074_vm13, %v11866_v63  ;;  %4738 = vst [vmem:[#allocation2 + $0x84] sm:$0xf] %v4737_v40  ;;  %v4548_v30 = vsel %vm10743_vm7, %v4540_v47, %v4547_v44  ;;  %v4748_v5 = vsel %vm10716_vm4, %v4549_v39, %v4747_v22  ;;  %v6093_v37 = vshll.u32 %v9712_v59, 16  ;;  %v6091_v9 = vshrl.u32 %v9712_v59, 16 }
 0x38d   : > { %4746 = vst.msk [vmem:[#allocation2 + $0x94] sm:$0xf] %vm12788_vm0, %v4548_v30  ;;  %4749 = vst [vmem:[#allocation2 + $0x98] sm:$0x1] %v4748_v5  ;;  %v4531_v63 = vsel %vm10743_vm7, %v4523_v58, %v4530_v35  ;;  %v4741_v42 = vsel %vm10716_vm4, %v4532_v7, %v4740_v62  ;;  %v6098_v8 = vshll.u32 %v9713_v45, 16  ;;  %v5209_v31 = vshll.u32 %v9714_v33, 16 }
 0x38e   : > { %7098 = vrot.lane.b32.xlu0 %v6997_v54, %s10278_s25  ;;  %4739 = vst.msk [vmem:[#allocation2 + $0x88] sm:$0xf] %vm12788_vm0, %v4531_v63  ;;  %4742 = vst [vmem:[#allocation2 + $0x8c] sm:$0x1] %v4741_v42  ;;  %v6980_v12 = vor.u32 %v6979_v48, %v6975_v6  ;;  %v6984_v20 = vrot.slane %v6982_v57, 1  ;;  %v6095_v36 = vrot.slane %v6093_v37, 1 }
 0x38f   : > { %v5214_v4 = vshll.u32 %v9715_v52, 16  ;;  %v6100_v60 = vrot.slane %v6098_v8, 1  ;;  %v5207_v3 = vshrl.u32 %v9714_v33, 16  ;;  %v5211_v17 = vrot.slane %v5209_v31, 1  ;;  %v7085_v32 = vpop.permute.xlu1 %7084 }
 0x390   : > { %v7087_v49 = vpop.permute.xlu0 %7086  ;;  %v6985_v19 = vsel %vm12890_vm8, %v6980_v12, %v6984_v20  ;;  %v6096_v14 = vor.u32 %v6095_v36, %v6091_v9  ;;  %vm12891_vm11 = vcmask 1041408   ;;  %vm12895_vm0 = vcmask 261344  }
 0x391   : > { %v5216_v0 = vrot.slane %v5214_v4, 1  ;;  %9166 = vmatprep.subr.msk.bf16.mxu1 %vm12891_vm11, %v9732_v16  ;;  %vm12892_vm3 = vmmov %vm12891_vm11  ;;  %7096 = vrot.lane.b32.xlu1 %v6985_v19, %s10278_s25  ;;  %v5212_v22 = vor.u32 %v5211_v17, %v5207_v3  ;;  %7131 = vst.msk [vmem:[#allocation3 + $0x8] sm:$0xff] %vm12895_vm0, %v7085_v32  ;;  %vm12896_vm8 = vcmask 294144   ;;  %vm12897_vm0 = vcmask 64544  }
 0x392   : > { %v7519_v21 = vsel %vm12892_vm3, %v9732_v16, 0  ;;  %v6101_v23 = vsel %vm12893_vm12, %v6096_v14, %v6100_v60  ;;  %7419 = vst.msk [vmem:[#allocation3 + $0x8] sm:$0xff] %vm12896_vm8, %v11876_v11  ;;  %vm12898_vm11 = vcmask 261344   ;;  %vm12899_vm3 = vmmov %vm12896_vm8  ;;  %vm12901_vm8 = vcmask 31744  }
 0x393   : > { %9122 = vmatpush3.bf16.msra.mxu1 %v7519_v21  ;;  %6202 = vrot.lane.b32.xlu0 %v6101_v23, %s10277_s24  ;;  %v5217_v59 = vsel %vm12894_vm5, %v5212_v22, %v5216_v0  ;;  %v5297_v43 = vpop.permute.xlu1 %5296  ;;  %v11960_v21 = vld [vmem:[#allocation9] ss:$0 sm:$0xff]  ;;  %vm12900_vm12 = vmmov %vm12894_vm5 }
 0x394   : > { %v9716_v25 = vld [vmem:[#allocation2 + $0x90] sm:$0xff]   ;;  %v6191_v28 = vpop.permute.xlu0 %6190  ;;  %v9723_v62 = vld [vmem:[#allocation2 + $0x98] ss:$0 sps:$4 sm:$0x11]   ;;  %5341 = vst.msk [vmem:[#allocation3 + $0x18] sm:$0xff] %vm12897_vm0, %v5297_v43  ;;  %vm12902_vm0 = vmmov %vm12894_vm5 }
 0x395   : > { %5308 = vrot.lane.b32.xlu1 %v5217_v59, %s10272_s21  ;;  %v9717_v34 = vld [vmem:[#allocation2 + $0x90] sm:$0xff]   ;;  %6236 = vst.msk [vmem:[#allocation3 + $0x10] sm:$0xff] %vm2684_vm15, %v6191_v28  ;;  %v9719_v41 = vld [vmem:[#allocation2 + $0x84] sm:$0xff]   ;;  %v9725_v51 = vld [vmem:[#allocation2 + $0x98] ss:$0 sps:$4 sm:$0x11]  }
 0x396   : > { %v9722_v38 = vld [vmem:[#allocation2 + $0x90] sm:$0xfe]   ;;  %6524 = vst.msk [vmem:[#allocation3 + $0x10] sm:$0xff] %vm2973_vm1, %v6479_v55  ;;  %v9718_v11 = vld [vmem:[#allocation2 + $0x84] sm:$0xff]   ;;  %v6460_v58 = vrot.slane %v9723_v62, 1  ;;  %v7353_v61 = vrot.slane %v9725_v51, 1 }
 0x397   : > { %6670 = vrot.lane.b32.xlu0 %v9716_v25, %s10274_s29  ;;  %v9735_v45 = vld [vmem:[#allocation2 + $0x90] sm:$0xff]   ;;  %v6459_v33 = vrot.slane %v9722_v38, 1  ;;  %6700 = vst.msk [vmem:[#allocation3 + $0x10] sm:$0xff] %vm3151_vm2, %v11833_v56  ;;  %v9728_v56 = vld [vmem:[#allocation2 + $0x98] ss:$0 sps:$4 sm:$0x11]  }
 0x398   : > { %v9724_v47 = vld [vmem:[#allocation2 + $0x90] sm:$0xfe]   ;;  %7132 = vst.msk [vmem:[#allocation3 + $0x10] sm:$0xff] %vm12898_vm11, %v7087_v49  ;;  %v6127_v10 = vshrl.u32 %v9735_v45, 16  ;;  %v11928_v2 = vpop.permute.xlu0 %6658  ;;  %v6129_v39 = vshll.u32 %v9735_v45, 16  ;;  %vm12903_vm11 = vmmov %vm12901_vm8 }
 0x399   : > { %5776 = vrot.lane.b32.xlu1 %v9717_v34, %s10273_s16  ;;  %5629 = vst.msk [vmem:[#allocation3 + $0x18] sm:$0xff] %vm2074_vm13, %v11859_v50  ;;  %v7352_v27 = vrot.slane %v9724_v47, 1  ;;  %v9727_v44 = vld [vmem:[#allocation2 + $0x90] sm:$0xfe]   ;;  %v11937_v50 = vpop.permute.xlu1 %5764  ;;  %v7435_v55 = vld [vmem:[#allocation3 + $0x8] sm:$0xff] }
 0x39a   : > { %7420 = vst.msk [vmem:[#allocation3 + $0x10] sm:$0xff] %vm12899_vm3, %v11852_v26  ;;  %v5566_v54 = vrot.slane %v9727_v44, 1  ;;  %v5567_v26 = vrot.slane %v9728_v56, 1  ;;  %v9729_v29 = vld [vmem:[#allocation2 + $0x84] sm:$0xfe]   ;;  %9124 = vmatmul.mubr.msk.bf16.vlgmr.msra.gmra.mrb[0].mxu1 %vm3926_vm6, %v7435_v55  ;;  %v6131_v5 = vrot.slane %v6129_v39, 1  ;;  %vm12904_vm3 = vmmov %vm12901_vm8 }
 0x39b   : > { %5805 = vst.msk [vmem:[#allocation3 + $0x18] sm:$0xff] %vm2251_vm14, %v11825_v15  ;;  %5774 = vrot.lane.b32.xlu0 %v9719_v41, %s10273_s16  ;;  %v9730_v40 = vld [vmem:[#allocation2 + $0x8c] ss:$0 sps:$4 sm:$0x11]   ;;  %v7354_v35 = vsel %vm1977_vm9, %v7352_v27, %v7353_v61  ;;  %v9733_v13 = vld [vmem:[#allocation2 + $0x84] sm:$0xfe]  }
 0x39c   : > { %6237 = vst.msk [vmem:[#allocation3 + $0x18] sm:$0xff] %vm2684_vm15, %v11873_v53  ;;  %v5763_v15 = vpop.permute.xlu0 %5762  ;;  %v5563_v53 = vrot.slane %v9729_v29, 1  ;;  %v5564_v7 = vrot.slane %v9730_v40, 1  ;;  %v9734_v30 = vld [vmem:[#allocation2 + $0x8c] ss:$0 sps:$4 sm:$0x11]   ;;  %v5568_v42 = vsel %vm1977_vm9, %v5566_v54, %v5567_v26  ;;  %v6132_v9 = vor.u32 %v6131_v5, %v6127_v10 }
 0x39d   : > { %6525 = vst.msk [vmem:[#allocation3 + $0x18] sm:$0xff] %vm2973_vm1, %v11845_v18  ;;  %6668 = vrot.lane.b32.xlu1 %v9718_v11, %s10274_s29  ;;  %v6657_v52 = vpop.permute.xlu1 %6656  ;;  %v6461_v18 = vsel %vm1977_vm9, %v6459_v33, %v6460_v58  ;;  %v7349_v6 = vrot.slane %v9733_v13, 1  ;;  %v9736_v57 = vld [vmem:[#allocation2 + $0x98] ss:$0 sps:$4 sm:$0x11]   ;;  %v7350_v48 = vrot.slane %v9734_v30, 1 }
 0x39e   : > { %5806 = vst.msk [vmem:[#allocation3 + $0x20] sm:$0xff] %vm2251_vm14, %v5763_v15  ;;  %v9739_v37 = vld [vmem:[#allocation2 + $0x90] sm:$0xff]   ;;  %v6134_v8 = vshll.u32 %v9736_v57, 16  ;;  %v9737_v31 = vld [vmem:[#allocation2 + $0x84] sm:$0xfe]   ;;  %v5565_v20 = vsel %vm1977_vm9, %v5563_v53, %v5564_v7  ;;  %v9111_v17 = vpop.f32.mrb[24].mxu0 }
 0x39f   : > { %7390 = vrot.lane.b32.xlu0 %v7354_v35, %s10276_s0  ;;  %6701 = vst.msk [vmem:[#allocation3 + $0x18] sm:$0xff] %vm3151_vm2, %v6657_v52  ;;  %v9738_v36 = vld [vmem:[#allocation2 + $0x8c] ss:$0 sps:$4 sm:$0x11]   ;;  %v9741_v4 = vld [vmem:[#allocation2 + $0x90] sm:$0xff]   ;;  %v6456_v60 = vrot.slane %v9737_v31, 1  ;;  %v7351_v49 = vsel %vm1977_vm9, %v7349_v6, %v7350_v48  ;;  %v4173_v22 = vmul.f32 %v11960_v21, %v9111_v17 }
 0x3a0   : > { %v11949_v63 = vpop.permute.xlu0 %7378  ;;  %v6136_v16 = vrot.slane %v6134_v8, 1  ;;  %v6457_v19 = vrot.slane %v9738_v36, 1  ;;  %v9740_v14 = vld [vmem:[#allocation2 + $0x98] ss:$0 sps:$4 sm:$0x11]   ;;  %v5245_v0 = vshll.u32 %v9739_v37, 16 }
 0x3a1   : > { %6496 = vrot.lane.b32.xlu1 %v6461_v18, %s10275_s12  ;;  %v11953_v12 = vpop.permute.xlu1 %6484  ;;  %v4109_v23 = vpop.f32.mrb[25].mxu0  ;;  %v5243_v32 = vshrl.u32 %v9739_v37, 16  ;;  %v5250_v38 = vshll.u32 %v9740_v14, 16  ;;  %v7011_v41 = vshrl.u32 %v9741_v4, 16  ;;  %v11966_v62 = vld [vmem:[#allocation10] ss:$0 sm:$0xff] }
 0x3a2   : > { %v6137_v25 = vsel %vm12900_vm12, %v6132_v9, %v6136_v16  ;;  %v4171_v59 = vmul.f32 %v11960_v21, %v4109_v23  ;;  %v9112_v34 = vpop.f32.mrb[26].mxu0  ;;  %v5247_v28 = vrot.slane %v5245_v0, 1  ;;  %v4212_v43 = vadd.f32 %v11966_v62, %v4173_v22  ;;  %v9742_v51 = vld [vmem:[#allocation2 + $0x98] ss:$0 sps:$4 sm:$0x11]   ;;  %v7436_v58 = vld [vmem:[#allocation3 + $0x10] sm:$0xff]  ;;  %vm12905_vm12 = vmmov %vm12904_vm3 }
 0x3a3   : > { %5602 = vrot.lane.b32.xlu0 %v5568_v42, %s10271_s13  ;;  %v4174_v45 = vmul.f32 %v11960_v21, %v9112_v34  ;;  %v4112_v33 = vpop.f32.mrb[27].mxu0  ;;  %v6458_v47 = vsel %vm1977_vm9, %v6456_v60, %v6457_v19  ;;  %v7013_v11 = vshll.u32 %v9741_v4, 16  ;;  %v5252_v56 = vrot.slane %v5250_v38, 1  ;;  %v9743_v39 = vld [vmem:[#allocation2 + $0x84] sm:$0xff]   ;;  %9127 = vmatprep.mubr.msk.bf16.mxu1 %vm3926_vm6, %v7436_v58  ;;  %v9808_v13 = vld [vmem:[#allocation2 + $0x78] sm:$0xff]   ;;  %v9811_v37 = vld [vmem:[#allocation2 + $0x6c] sm:$0xff]  }
 0x3a4   : > { %v11957_v3 = vpop.permute.xlu0 %5590  ;;  %v4210_v27 = vadd.f32 %v11966_v62, %v4171_v59  ;;  %v4172_v61 = vmul.f32 %v11960_v21, %v4112_v33  ;;  %v5248_v44 = vor.u32 %v5247_v28, %v5243_v32  ;;  %v4244_v54 = vmax.f32 %v4212_v43, 0.0  ;;  %v9744_v7 = vld [vmem:[#allocation2 + $0x8c] ss:$0 sps:$4 sm:$0x11]   ;;  %4916 = vst.msk [vmem:[#allocation3 + $0x50] sm:$0xff] %vm12901_vm8, %v9808_v13  ;;  %v11986_v36 = vld [vmem:[#allocation2 + $0x84] sm:$0xff]  }
 0x3a5   : > { %5600 = vrot.lane.b32.xlu1 %v5565_v20, %s10271_s13  ;;  %v11972_v10 = vpop.permute.xlu1 %5588  ;;  %v4213_v55 = vadd.f32 %v11966_v62, %v4174_v45  ;;  %v7015_v26 = vrot.slane %v7013_v11, 1  ;;  %v7018_v29 = vshll.u32 %v9742_v51, 16  ;;  %v7001_v42 = vshll.u32 %v9743_v39, 16  ;;  %v9812_v16 = vld [vmem:[#allocation2 + $0x90] sm:$0xff]   ;;  %v4757_v17 = vld [vmem:[#allocation2 + $0xa8] sm:$0xf] }
 0x3a6   : > { %v4242_v15 = vmax.f32 %v4210_v27, 0.0  ;;  %v4211_v35 = vadd.f32 %v11966_v62, %v4172_v61  ;;  %v5253_v53 = vsel %vm12894_vm5, %v5248_v44, %v5252_v56  ;;  %v9030_v52 = vpack.c.bf16 %v4244_v54, %v4244_v54  ;;  %v9746_v0 = vld [vmem:[#allocation2 + $0x8c] ss:$0 sps:$4 sm:$0x11]   ;;  %4915 = vst.msk [vmem:[#allocation3 + $0x48] sm:$0xff] %vm12903_vm11, %v9811_v37  ;;  %v9813_v22 = vld [vmem:[#allocation2 + $0x84] sm:$0xff]   ;;  %vm12906_vm5 = vmmov %vm12902_vm0 }
 0x3a7   : > { %7388 = vrot.lane.b32.xlu0 %v7351_v49, %s10276_s0  ;;  %v4245_v18 = vmax.f32 %v4213_v55, 0.0  ;;  %v7016_v30 = vor.u32 %v7015_v26, %v7011_v41  ;;  %v7020_v5 = vrot.slane %v7018_v29, 1  ;;  %v7006_v48 = vshll.u32 %v9744_v7, 16  ;;  %v4750_v32 = vld [vmem:[#allocation2 + $0x9c] sm:$0xf]  ;;  %4918 = vst.msk [vmem:[#allocation3 + $0x60] sm:$0xff] %vm12904_vm3, %v9812_v16 }
 0x3a8   : > { %v11979_v40 = vpop.permute.xlu0 %7376  ;;  %v9028_v6 = vpack.c.bf16 %v4242_v15, %v4242_v15  ;;  %v4243_v57 = vmax.f32 %v4211_v35, 0.0  ;;  %v4568_v9 = vshrl.u32 %v9030_v52, 16  ;;  %v6999_v20 = vshrl.u32 %v9743_v39, 16  ;;  %v4761_v41 = vld [vmem:[#allocation2 + $0xb0] sm:$0x1]  ;;  %4917 = vst.msk [vmem:[#allocation3 + $0x58] sm:$0xff] %vm12905_vm12, %v9813_v22  ;;  %vm12911_vm12 = vmmov %vm12906_vm5 }
 0x3a9   : > { %6208 = vrot.lane.b32.xlu1 %v6137_v25, %s10277_s24  ;;  %v9031_v8 = vpack.c.bf16 %v4245_v18, %v4245_v18  ;;  %v7021_v31 = vsel %vm12902_vm0, %v7016_v30, %v7020_v5  ;;  %v11988_v4 = vpop.permute.xlu1 %6196  ;;  %v4571_v60 = vshll.u32 %v9030_v52, 16  ;;  %v7003_v14 = vrot.slane %v7001_v42, 1  ;;  %v4754_v61 = vld [vmem:[#allocation2 + $0xa4] sm:$0x1] }
 0x3aa   : > { %v4551_v49 = vshrl.u32 %v9028_v6, 16  ;;  %v9029_v19 = vpack.c.bf16 %v4243_v57, %v4243_v57  ;;  %v4570_v23 = vrot.slane %v4568_v9, 7  ;;  %v4554_v25 = vshll.u32 %v9028_v6, 16  ;;  %v9748_v44 = vld [vmem:[#allocation2 + $0x8c] ss:$0 sps:$4 sm:$0x11]  }
 0x3ab   : > { %6494 = vrot.lane.b32.xlu0 %v6458_v47, %s10275_s12  ;;  %v4576_v59 = vshrl.u32 %v9031_v8, 16  ;;  %v4579_v34 = vshll.u32 %v9031_v8, 16  ;;  %v7004_v45 = vor.u32 %v7003_v14, %v6999_v20  ;;  %v7008_v33 = vrot.slane %v7006_v48, 1  ;;  %v9747_v47 = vld [vmem:[#allocation2 + $0x84] sm:$0xff]  }
 0x3ac   : > { %v6483_v28 = vpop.permute.xlu0 %6482  ;;  %v4553_v38 = vrot.slane %v4551_v49, 7  ;;  %v4559_v43 = vshrl.u32 %v9029_v19, 16  ;;  %v4573_v51 = vor.u32 %v4571_v60, %v4570_v23  ;;  %v4574_v11 = vrot.slane %v4570_v23, 4 }
 0x3ad   : > { %5314 = vrot.lane.b32.xlu1 %v5253_v53, %s10272_s21  ;;  %v4578_v58 = vrot.slane %v4576_v59, 7  ;;  %v4562_v27 = vshll.u32 %v9029_v19, 16  ;;  %v7009_v55 = vsel %vm12906_vm5, %v7004_v45, %v7008_v33  ;;  %v6117_v35 = vshll.u32 %v11986_v36, 16  ;;  %v5303_v53 = vpop.permute.xlu1 %5302 }
 0x3ae   : > { %v4556_v56 = vor.u32 %v4554_v25, %v4553_v38  ;;  %v4557_v39 = vrot.slane %v4553_v38, 4  ;;  %v4561_v54 = vrot.slane %v4559_v43, 7  ;;  %v4758_v26 = vsel %vm10762_vm10, %v4573_v51, %v4757_v17 }
 0x3af   : > { %7102 = vrot.lane.b32.xlu0 %v7021_v31, %s10278_s25  ;;  %v4581_v29 = vor.u32 %v4579_v34, %v4578_v58  ;;  %v4583_v15 = vrot.slane %v4578_v58, 4  ;;  %4759 = vst [vmem:[#allocation2 + $0xa8] sm:$0xf] %v4758_v26  ;;  %v6122_v18 = vshll.u32 %v9746_v0, 16  ;;  %vm12907_vm8 = vcmask 64544  }
 0x3b0   : > { %v4751_v7 = vsel %vm10762_vm10, %v4556_v56, %v4750_v32  ;;  %v4564_v13 = vor.u32 %v4562_v27, %v4561_v54  ;;  %v4566_v52 = vrot.slane %v4561_v54, 4  ;;  %5344 = vst.msk [vmem:[#allocation3 + $0x30] sm:$0xff] %vm12907_vm8, %v5303_v53  ;;  %v6115_v6 = vshrl.u32 %v11986_v36, 16  ;;  %v7091_v42 = vpop.permute.xlu0 %7090  ;;  %vm12913_vm8 = vmmov %vm12911_vm12 }
 0x3b1   : > { %7100 = vrot.lane.b32.xlu1 %v7009_v55, %s10278_s25  ;;  %4752 = vst [vmem:[#allocation2 + $0x9c] sm:$0xf] %v4751_v7  ;;  %v4582_v30 = vsel %vm10743_vm7, %v4574_v11, %v4581_v29  ;;  %v4762_v5 = vsel %vm10716_vm4, %v4583_v15, %v4761_v41  ;;  %v6119_v57 = vrot.slane %v6117_v35, 1  ;;  %5632 = vst.msk [vmem:[#allocation3 + $0x30] sm:$0xff] %vm2074_vm13, %v11957_v3  ;;  %vm12908_vm0 = vcmask 27648   ;;  %v7089_v36 = vpop.permute.xlu1 %7088 }
 0x3b2   : > { %4760 = vst.msk [vmem:[#allocation2 + $0xac] sm:$0xf] %vm12908_vm0, %v4582_v30  ;;  %4763 = vst [vmem:[#allocation2 + $0xb0] sm:$0x1] %v4762_v5  ;;  %v4565_v48 = vsel %vm10743_vm7, %v4557_v39, %v4564_v13  ;;  %v4755_v37 = vsel %vm10716_vm4, %v4566_v52, %v4754_v61  ;;  %v5233_v9 = vshll.u32 %v9747_v47, 16  ;;  %v6124_v31 = vrot.slane %v6122_v18, 1 }
 0x3b3   : > { %vm12909_vm11 = vmmov %vm12908_vm0  ;;  %4756 = vst [vmem:[#allocation2 + $0xa4] sm:$0x1] %v4755_v37  ;;  %v6120_v8 = vor.u32 %v6119_v57, %v6115_v6  ;;  %v5238_v20 = vshll.u32 %v9748_v44, 16  ;;  %v5231_v16 = vshrl.u32 %v9747_v47, 16  ;;  %vm12910_vm3 = vcmask 261344  }
 0x3b4   : > { %4753 = vst.msk [vmem:[#allocation2 + $0xa0] sm:$0xf] %vm12909_vm11, %v4565_v48  ;;  %v5235_v3 = vrot.slane %v5233_v9, 1  ;;  %vm12912_vm5 = vcmask 294144   ;;  %v6195_v17 = vpop.permute.xlu0 %6194  ;;  %vm12914_vm0 = vcmask 64544   ;;  %vm12915_vm11 = vmmov %vm12910_vm3 }
 0x3b5   : > { %7133 = vst.msk [vmem:[#allocation3 + $0x18] sm:$0xff] %vm12910_vm3, %v7089_v36  ;;  %v6125_v60 = vsel %vm12911_vm12, %v6120_v8, %v6124_v31  ;;  %v5240_v19 = vrot.slane %v5238_v20, 1  ;;  %v5301_v14 = vpop.permute.xlu1 %5300  ;;  %vm12916_vm3 = vmmov %vm12912_vm5 }
 0x3b6   : > { %7421 = vst.msk [vmem:[#allocation3 + $0x18] sm:$0xff] %vm12912_vm5, %v11979_v40  ;;  %6206 = vrot.lane.b32.xlu0 %v6125_v60, %s10277_s24  ;;  %v5236_v49 = vor.u32 %v5235_v3, %v5231_v16  ;;  %vm12917_vm12 = vmmov %vm12913_vm8 }
 0x3b7   : > { %6238 = vst.msk [vmem:[#allocation3 + $0x20] sm:$0xff] %vm2684_vm15, %v6195_v17  ;;  %vm12918_vm5 = vmmov %vm12913_vm8 }
 0x3b8   : > { %6526 = vst.msk [vmem:[#allocation3 + $0x20] sm:$0xff] %vm2973_vm1, %v6483_v28  ;;  %v5241_v0 = vsel %vm12913_vm8, %v5236_v49, %v5240_v19  ;;  %v12030_v22 = vpop.permute.xlu0 %6662  ;;  %vm12919_vm8 = vmmov %vm12918_vm5 }
 0x3b9   : > { %6702 = vst.msk [vmem:[#allocation3 + $0x20] sm:$0xff] %vm3151_vm2, %v11928_v2  ;;  %5312 = vrot.lane.b32.xlu1 %v5241_v0, %s10272_s21  ;;  %v9749_v40 = vld [vmem:[#allocation2 + $0xa8] sm:$0xff]   ;;  %v12038_v2 = vpop.permute.xlu1 %5768  ;;  %v9760_v61 = vld [vmem:[#allocation2 + $0xb0] ss:$0 sps:$4 sm:$0x11]  }
 0x3ba   : > { %5343 = vst.msk [vmem:[#allocation3 + $0x28] sm:$0xff] %vm12914_vm0, %v5301_v14  ;;  %v9753_v32 = vld [vmem:[#allocation2 + $0xa4] ss:$0 sps:$4 sm:$0x11]   ;;  %v9759_v11 = vld [vmem:[#allocation2 + $0xa8] sm:$0xff]   ;;  %v6158_v29 = vshll.u32 %v9760_v61, 16 }
 0x3bb   : > { %7134 = vst.msk [vmem:[#allocation3 + $0x20] sm:$0xff] %vm12915_vm11, %v7091_v42  ;;  %v9750_v23 = vld [vmem:[#allocation2 + $0x9c] sm:$0xff]   ;;  %v9756_v38 = vld [vmem:[#allocation2 + $0xa4] ss:$0 sps:$4 sm:$0x11]   ;;  %v6151_v56 = vshrl.u32 %v9759_v11, 16  ;;  %vm12921_vm11 = vmmov %vm12918_vm5 }
 0x3bc   : > { %5631 = vst.msk [vmem:[#allocation3 + $0x28] sm:$0xff] %vm2074_vm13, %v11972_v10  ;;  %5778 = vrot.lane.b32.xlu0 %v9750_v23, %s10273_s16  ;;  %v9752_v25 = vld [vmem:[#allocation2 + $0x9c] sm:$0xfe]   ;;  %v5767_v34 = vpop.permute.xlu0 %5766  ;;  %v5570_v47 = vrot.slane %v9756_v38, 1  ;;  %v6153_v39 = vshll.u32 %v9759_v11, 16  ;;  %v6160_v52 = vrot.slane %v6158_v29, 1 }
 0x3bd   : > { %7422 = vst.msk [vmem:[#allocation3 + $0x20] sm:$0xff] %vm12916_vm3, %v11949_v63  ;;  %v9757_v59 = vld [vmem:[#allocation2 + $0x9c] sm:$0xff]   ;;  %5780 = vrot.lane.b32.xlu1 %v9749_v40, %s10273_s16  ;;  %v7355_v28 = vrot.slane %v9752_v25, 1  ;;  %v6661_v45 = vpop.permute.xlu1 %6660  ;;  %v9758_v51 = vld [vmem:[#allocation2 + $0xa4] ss:$0 sps:$4 sm:$0x11]  }
 0x3be   : > { %5807 = vst.msk [vmem:[#allocation3 + $0x28] sm:$0xff] %vm2251_vm14, %v11937_v50  ;;  %v9751_v10 = vld [vmem:[#allocation2 + $0x9c] sm:$0xff]   ;;  %v7356_v50 = vrot.slane %v9753_v32, 1  ;;  %v6139_v41 = vshrl.u32 %v9757_v59, 16  ;;  %5808 = vst.msk [vmem:[#allocation3 + $0x30] sm:$0xff] %vm2251_vm14, %v5767_v34  ;;  %v6141_v43 = vshll.u32 %v9757_v59, 16 }
 0x3bf   : > { %6239 = vst.msk [vmem:[#allocation3 + $0x28] sm:$0xff] %vm2684_vm15, %v11988_v4  ;;  %v9755_v63 = vld [vmem:[#allocation2 + $0x9c] sm:$0xfe]   ;;  %v6146_v27 = vshll.u32 %v9758_v51, 16  ;;  %v6155_v35 = vrot.slane %v6153_v39, 1  ;;  %v7437_v48 = vld [vmem:[#allocation3 + $0x18] sm:$0xff] }
 0x3c0   : > { %6527 = vst.msk [vmem:[#allocation3 + $0x28] sm:$0xff] %vm2973_vm1, %v11953_v12  ;;  %v5569_v4 = vrot.slane %v9755_v63, 1  ;;  %v7357_v33 = vsel %vm1977_vm9, %v7355_v28, %v7356_v50  ;;  %v6143_v12 = vrot.slane %v6141_v43, 1  ;;  %v12049_v58 = vpop.permute.xlu0 %7382  ;;  %v9761_v15 = vld [vmem:[#allocation2 + $0x9c] sm:$0xfe]   ;;  %9128 = vmatmul.mubr.msk.bf16.gmra.mrb[4].mxu1 %vm3926_vm6, %v7437_v48  ;;  %v9769_v32 = vld [vmem:[#allocation2 + $0xa8] sm:$0xff]  }
 0x3c1   : > { %6703 = vst.msk [vmem:[#allocation3 + $0x28] sm:$0xff] %vm3151_vm2, %v6661_v45  ;;  %6672 = vrot.lane.b32.xlu1 %v9751_v10, %s10274_s29  ;;  %7392 = vrot.lane.b32.xlu0 %v7357_v33, %s10276_s0  ;;  %v12051_v54 = vpop.permute.xlu1 %6488  ;;  %v6148_v26 = vrot.slane %v6146_v27, 1  ;;  %v9762_v53 = vld [vmem:[#allocation2 + $0xa4] ss:$0 sps:$4 sm:$0x11]   ;;  %v6462_v18 = vrot.slane %v9761_v15, 1  ;;  %v6156_v6 = vor.u32 %v6155_v35, %v6151_v56 }
 0x3c2   : > { %v6144_v44 = vor.u32 %v6143_v12, %v6139_v41  ;;  %v5571_v55 = vsel %vm1977_vm9, %v5569_v4, %v5570_v47  ;;  %v9764_v30 = vld [vmem:[#allocation2 + $0x9c] sm:$0xff]   ;;  %v6463_v57 = vrot.slane %v9762_v53, 1  ;;  %v9765_v42 = vld [vmem:[#allocation2 + $0xa4] ss:$0 sps:$4 sm:$0x11]   ;;  %v7035_v45 = vshrl.u32 %v9769_v32, 16 }
 0x3c3   : > { %v7023_v31 = vshrl.u32 %v9764_v30, 16  ;;  %v7025_v20 = vshll.u32 %v9764_v30, 16  ;;  %v9767_v36 = vld [vmem:[#allocation2 + $0x9c] sm:$0xff]   ;;  %v6161_v60 = vsel %vm12918_vm5, %v6156_v6, %v6160_v52  ;;  %v7030_v49 = vshll.u32 %v9765_v42, 16  ;;  %v9766_v51 = vld [vmem:[#allocation2 + $0xa8] sm:$0xff]  }
 0x3c4   : > { %v12055_v7 = vpop.permute.xlu0 %5594  ;;  %v6149_v13 = vsel %vm12917_vm12, %v6144_v44, %v6148_v26  ;;  %v6464_v17 = vsel %vm1977_vm9, %v6462_v18, %v6463_v57  ;;  %v5255_v25 = vshrl.u32 %v9767_v36, 16  ;;  %v9768_v34 = vld [vmem:[#allocation2 + $0xa4] ss:$0 sps:$4 sm:$0x11]   ;;  %v5257_v28 = vshll.u32 %v9767_v36, 16  ;;  %v7438_v50 = vld [vmem:[#allocation3 + $0x20] sm:$0xff] }
 0x3c5   : > { %5604 = vrot.lane.b32.xlu1 %v5571_v55, %s10271_s13  ;;  %6210 = vrot.lane.b32.xlu0 %v6149_v13, %s10277_s24  ;;  %v12059_v37 = vpop.permute.xlu1 %5592  ;;  %v7027_v23 = vrot.slane %v7025_v20, 1  ;;  %v7032_v63 = vrot.slane %v7030_v49, 1  ;;  %v5262_v12 = vshll.u32 %v9768_v34, 16  ;;  %v9770_v44 = vld [vmem:[#allocation2 + $0xb0] ss:$0 sps:$4 sm:$0x11]  }
 0x3c6   : > { %9131 = vmatprep.mubr.msk.bf16.mxu1 %vm3926_vm6, %v7438_v50  ;;  %v7037_v56 = vshll.u32 %v9769_v32, 16  ;;  %v9814_v55 = vld [vmem:[#allocation2 + $0x9c] sm:$0xff]   ;;  %vm12920_vm0 = vcmask 31744   ;;  %v9815_v18 = vld [vmem:[#allocation2 + $0xa8] sm:$0xff]   ;;  %vm12922_vm3 = vcmask 64544  }
 0x3c7   : > { %v7028_v43 = vor.u32 %v7027_v23, %v7023_v31  ;;  %4919 = vst.msk [vmem:[#allocation3 + $0x68] sm:$0xff] %vm12920_vm0, %v9814_v55  ;;  %v4771_v30 = vld [vmem:[#allocation2 + $0xc0] sm:$0xf]  ;;  %v9771_v48 = vld [vmem:[#allocation2 + $0xa8] sm:$0xfe]   ;;  %vm12923_vm12 = vmmov %vm12920_vm0  ;;  %vm12926_vm0 = vcmask 27648  }
 0x3c8   : > { %v12066_v19 = vpop.permute.xlu0 %7380  ;;  %v7039_v52 = vrot.slane %v7037_v56, 1  ;;  %v4764_v31 = vld [vmem:[#allocation2 + $0xb4] sm:$0xf]  ;;  %4920 = vst.msk [vmem:[#allocation3 + $0x70] sm:$0xff] %vm12923_vm12, %v9815_v18  ;;  %v4768_v32 = vld [vmem:[#allocation2 + $0xbc] sm:$0x1]  ;;  %vm12931_vm12 = vmmov %vm12918_vm5 }
 0x3c9   : > { %6212 = vrot.lane.b32.xlu1 %v6161_v60, %s10277_s24  ;;  %6498 = vrot.lane.b32.xlu0 %v6464_v17, %s10275_s12  ;;  %v7033_v61 = vsel %vm12919_vm8, %v7028_v43, %v7032_v63  ;;  %v4775_v17 = vld [vmem:[#allocation2 + $0xc8] sm:$0x1]  ;;  %vm12924_vm8 = vcmask 261344   ;;  %v9779_v24 = vld [vmem:[#allocation2 + $0xb0] ss:$0 sps:$4 sm:$0x11]  }
 0x3cd   : > { %7104 = vrot.lane.b32.xlu1 %v7033_v61, %s10278_s25  ;;  %6674 = vrot.lane.b32.xlu0 %v9766_v51, %s10274_s29 }
 0x3ce   : > { %v9115_v5 = vpop.f32.mrb[28].mxu0 }
 0x3cf   : > { %v4177_v9 = vmul.f32 %v11960_v21, %v9115_v5  ;;  %v4125_v8 = vpop.f32.mrb[29].mxu0 }
 0x3d0   : > { %v4175_v16 = vmul.f32 %v11960_v21, %v4125_v8  ;;  %v9116_v3 = vpop.f32.mrb[30].mxu0 }
 0x3d1   : > { %v4216_v14 = vadd.f32 %v11966_v62, %v4177_v9  ;;  %v4178_v0 = vmul.f32 %v11960_v21, %v9116_v3  ;;  %v4128_v40 = vpop.f32.mrb[31].mxu0  ;;  %v12074_v38 = vpop.permute.xlu1 %6200  ;;  %v9772_v3 = vld [vmem:[#allocation2 + $0xb0] ss:$0 sps:$4 sm:$0x11]  }
 0x3d2   : > { %v4214_v59 = vadd.f32 %v11966_v62, %v4175_v16  ;;  %v4176_v10 = vmul.f32 %v11960_v21, %v4128_v40  ;;  %v5259_v21 = vrot.slane %v5257_v28, 1  ;;  %v12080_v39 = vpop.permute.xlu0 %6486  ;;  %v7040_v16 = vor.u32 %v7039_v52, %v7035_v45 }
 0x3d3   : > { %v4248_v41 = vmax.f32 %v4216_v14, 0.0  ;;  %v4217_v4 = vadd.f32 %v11966_v62, %v4178_v0  ;;  %v7042_v0 = vshll.u32 %v9770_v44, 16  ;;  %v5573_v52 = vrot.slane %v9779_v24, 1 }
 0x3d4   : > { %v4246_v33 = vmax.f32 %v4214_v59, 0.0  ;;  %v4215_v47 = vadd.f32 %v11966_v62, %v4176_v10  ;;  %v5260_v15 = vor.u32 %v5259_v21, %v5255_v25  ;;  %v5264_v62 = vrot.slane %v5262_v12, 1 }
 0x3d5   : > { %v9034_v11 = vpack.c.bf16 %v4248_v41, %v4248_v41  ;;  %v4249_v27 = vmax.f32 %v4217_v4, 0.0  ;;  %v6465_v59 = vrot.slane %v9771_v48, 1  ;;  %v7044_v50 = vrot.slane %v7042_v0, 1  ;;  %v9773_v41 = vld [vmem:[#allocation2 + $0xa8] sm:$0xfe]  }
 0x3d6   : > { %v9032_v26 = vpack.c.bf16 %v4246_v33, %v4246_v33  ;;  %v4247_v29 = vmax.f32 %v4215_v47, 0.0  ;;  %v5265_v42 = vsel %vm12921_vm11, %v5260_v15, %v5264_v62  ;;  %v6466_v33 = vrot.slane %v9772_v3, 1  ;;  %v9774_v47 = vld [vmem:[#allocation2 + $0xb0] ss:$0 sps:$4 sm:$0x11]   ;;  %v9783_v62 = vld [vmem:[#allocation2 + $0xa8] sm:$0xff]   ;;  %vm12927_vm11 = vmmov %vm12926_vm0 }
 0x3d7   : > { %v4602_v35 = vshrl.u32 %v9034_v11, 16  ;;  %v4605_v53 = vshll.u32 %v9034_v11, 16  ;;  %v9035_v13 = vpack.c.bf16 %v4249_v27, %v4249_v27  ;;  %5316 = vrot.lane.b32.xlu1 %v5265_v42, %s10272_s21  ;;  %v7045_v11 = vsel %vm12918_vm5, %v7040_v16, %v7044_v50  ;;  %v9778_v15 = vld [vmem:[#allocation2 + $0xa8] sm:$0xfe]  }
 0x3d8   : > { %v4585_v5 = vshrl.u32 %v9032_v26, 16  ;;  %v4588_v6 = vshll.u32 %v9032_v26, 16  ;;  %v9033_v57 = vpack.c.bf16 %v4247_v29, %v4247_v29  ;;  %7106 = vrot.lane.b32.xlu0 %v7045_v11, %s10278_s25  ;;  %v6467_v44 = vsel %vm1977_vm9, %v6465_v59, %v6466_v33 }
 0x3d9   : > { %v4604_v8 = vrot.slane %v4602_v35, 7  ;;  %v4610_v20 = vshrl.u32 %v9035_v13, 16  ;;  %v4613_v36 = vshll.u32 %v9035_v13, 16  ;;  %v7358_v56 = vrot.slane %v9773_v41, 1 }
 0x3da   : > { %v4587_v60 = vrot.slane %v4585_v5, 7  ;;  %v4593_v49 = vshrl.u32 %v9033_v57, 16  ;;  %v4596_v14 = vshll.u32 %v9033_v57, 16  ;;  %v7359_v29 = vrot.slane %v9774_v47, 1 }
 0x3db   : > { %v4607_v40 = vor.u32 %v4605_v53, %v4604_v8  ;;  %v4608_v23 = vrot.slane %v4604_v8, 4  ;;  %v4612_v25 = vrot.slane %v4610_v20, 7  ;;  %6500 = vrot.lane.b32.xlu1 %v6467_v44, %s10275_s12  ;;  %v5572_v53 = vrot.slane %v9778_v15, 1 }
 0x3dc   : > { %v5307_v9 = vpop.permute.xlu1 %5306  ;;  %v4590_v63 = vor.u32 %v4588_v6, %v4587_v60  ;;  %v4591_v34 = vrot.slane %v4587_v60, 4  ;;  %v4595_v28 = vrot.slane %v4593_v49, 7  ;;  %v5269_v13 = vshll.u32 %v9783_v62, 16 }
 0x3dd   : > { %5346 = vst.msk [vmem:[#allocation3 + $0x40] sm:$0xff] %vm12922_vm3, %v5307_v9  ;;  %v4772_v4 = vsel %vm10762_vm10, %v4607_v40, %v4771_v30  ;;  %v4615_v43 = vor.u32 %v4613_v36, %v4612_v25  ;;  %v4617_v45 = vrot.slane %v4612_v25, 4  ;;  %v5267_v49 = vshrl.u32 %v9783_v62, 16 }
 0x3de   : > { %5634 = vst.msk [vmem:[#allocation3 + $0x40] sm:$0xff] %vm2074_vm13, %v12055_v7  ;;  %4773 = vst [vmem:[#allocation2 + $0xc0] sm:$0xf] %v4772_v4  ;;  %v4765_v7 = vsel %vm10762_vm10, %v4590_v63, %v4764_v31  ;;  %v4598_v21 = vor.u32 %v4596_v14, %v4595_v28  ;;  %v4600_v12 = vrot.slane %v4595_v28, 4  ;;  %vm12925_vm10 = vcmask 294144  }
 0x3df   : > { %4766 = vst [vmem:[#allocation2 + $0xb4] sm:$0xf] %v4765_v7  ;;  %v4616_v27 = vsel %vm10743_vm7, %v4608_v23, %v4615_v43  ;;  %v4776_v61 = vsel %vm10716_vm4, %v4617_v45, %v4775_v17  ;;  %v5574_v59 = vsel %vm1977_vm9, %v5572_v53, %v5573_v52 }
 0x3e0   : > { %v7095_v10 = vpop.permute.xlu0 %7094  ;;  %4774 = vst.msk [vmem:[#allocation2 + $0xc4] sm:$0xf] %vm12926_vm0, %v4616_v27  ;;  %4777 = vst [vmem:[#allocation2 + $0xc8] sm:$0x1] %v4776_v61  ;;  %v4599_v55 = vsel %vm10743_vm7, %v4591_v34, %v4598_v21  ;;  %v4769_v26 = vsel %vm10716_vm4, %v4600_v12, %v4768_v32 }
 0x3e1   : > { %v7093_v51 = vpop.permute.xlu1 %7092  ;;  %4767 = vst.msk [vmem:[#allocation2 + $0xb8] sm:$0xf] %vm12927_vm11, %v4599_v55  ;;  %4770 = vst [vmem:[#allocation2 + $0xbc] sm:$0x1] %v4769_v26  ;;  %vm12935_vm11 = vcmask 31744  }
 0x3e2   : > { %7135 = vst.msk [vmem:[#allocation3 + $0x28] sm:$0xff] %vm12924_vm8, %v7093_v51  ;;  %vm12928_vm4 = vmmov %vm12924_vm8 }
 0x3e3   : > { %7423 = vst.msk [vmem:[#allocation3 + $0x28] sm:$0xff] %vm12925_vm10, %v12066_v19  ;;  %v7360_v19 = vsel %vm1977_vm9, %v7358_v56, %v7359_v29  ;;  %vm12929_vm7 = vmmov %vm12922_vm3 }
 0x3e4   : > { %v6199_v46 = vpop.permute.xlu0 %6198  ;;  %7394 = vrot.lane.b32.xlu0 %v7360_v19, %s10276_s0  ;;  %vm12930_vm3 = vmmov %vm12925_vm10 }
 0x3e5   : > { %6240 = vst.msk [vmem:[#allocation3 + $0x30] sm:$0xff] %vm2684_vm15, %v6199_v46  ;;  %v5305_v1 = vpop.permute.xlu1 %5304  ;;  %vm12932_vm8 = vmmov %vm12918_vm5 }
 0x3e6   : > { %6528 = vst.msk [vmem:[#allocation3 + $0x30] sm:$0xff] %vm2973_vm1, %v12080_v39  ;;  %vm12933_vm10 = vmmov %vm12918_vm5 }
 0x3e7   : > { %6704 = vst.msk [vmem:[#allocation3 + $0x30] sm:$0xff] %vm3151_vm2, %v12030_v22  ;;  %v9784_v22 = vld [vmem:[#allocation2 + $0xb0] ss:$0 sps:$4 sm:$0x11]   ;;  %v9797_v15 = vld [vmem:[#allocation2 + $0xc0] sm:$0xff]   ;;  %vm12934_vm0 = vmmov %vm12929_vm7 }
 0x3e8   : > { %7136 = vst.msk [vmem:[#allocation3 + $0x30] sm:$0xff] %vm12928_vm4, %v7095_v10  ;;  %v12121_v35 = vpop.permute.xlu0 %6666  ;;  %v9775_v5 = vld [vmem:[#allocation2 + $0xb4] sm:$0xff]   ;;  %v9781_v42 = vld [vmem:[#allocation2 + $0xbc] ss:$0 sps:$4 sm:$0x11]   ;;  %v5274_v31 = vshll.u32 %v9784_v22, 16  ;;  %vm12936_vm4 = vmmov %vm12918_vm5 }
 0x3e9   : > { %5345 = vst.msk [vmem:[#allocation3 + $0x38] sm:$0xff] %vm12929_vm7, %v5305_v1  ;;  %v12131_v39 = vpop.permute.xlu1 %5772  ;;  %6676 = vrot.lane.b32.xlu1 %v9775_v5, %s10274_s29  ;;  %v9780_v6 = vld [vmem:[#allocation2 + $0xb4] sm:$0xff]   ;;  %v7054_v20 = vshll.u32 %v9781_v42, 16  ;;  %v9787_v60 = vld [vmem:[#allocation2 + $0xbc] ss:$0 sps:$4 sm:$0x11]  }
 0x3ea   : > { %7424 = vst.msk [vmem:[#allocation3 + $0x30] sm:$0xff] %vm12930_vm3, %v12049_v58  ;;  %v7439_v18 = vld [vmem:[#allocation3 + $0x28] sm:$0xff]  ;;  %v5271_v58 = vrot.slane %v5269_v13, 1  ;;  %v7047_v9 = vshrl.u32 %v9780_v6, 16  ;;  %v7049_v8 = vshll.u32 %v9780_v6, 16  ;;  %v9786_v36 = vld [vmem:[#allocation2 + $0xb4] sm:$0xff]   ;;  %vm12938_vm3 = vmmov %vm12936_vm4 }
 0x3eb   : > { %5633 = vst.msk [vmem:[#allocation3 + $0x38] sm:$0xff] %vm2074_vm13, %v12059_v37  ;;  %9132 = vmatmul.mubr.msk.bf16.gmra.mrb[8].mxu1 %vm3926_vm6, %v7439_v18  ;;  %v9776_v37 = vld [vmem:[#allocation2 + $0xb4] sm:$0xfe]   ;;  %v6165_v14 = vshll.u32 %v9786_v36, 16  ;;  %v7056_v25 = vrot.slane %v7054_v20, 1  ;;  %v5276_v50 = vrot.slane %v5274_v31, 1 }
 0x3ec   : > { %5809 = vst.msk [vmem:[#allocation3 + $0x38] sm:$0xff] %vm2251_vm14, %v12038_v2  ;;  %v5771_v30 = vpop.permute.xlu0 %5770  ;;  %v9777_v2 = vld [vmem:[#allocation2 + $0xbc] ss:$0 sps:$4 sm:$0x11]   ;;  %v7361_v57 = vrot.slane %v9776_v37, 1  ;;  %v7051_v3 = vrot.slane %v7049_v8, 1  ;;  %v5272_v28 = vor.u32 %v5271_v58, %v5267_v49 }
 0x3ed   : > { %6241 = vst.msk [vmem:[#allocation3 + $0x38] sm:$0xff] %vm2684_vm15, %v12074_v38  ;;  %v6665_v38 = vpop.permute.xlu1 %6664  ;;  %v9788_v0 = vld [vmem:[#allocation2 + $0xb4] sm:$0xff]   ;;  %v9789_v32 = vld [vmem:[#allocation2 + $0xbc] ss:$0 sps:$4 sm:$0x11]   ;;  %v6167_v10 = vrot.slane %v6165_v14, 1 }
 0x3ee   : > { %6529 = vst.msk [vmem:[#allocation3 + $0x38] sm:$0xff] %vm2973_vm1, %v12051_v54  ;;  %v7362_v54 = vrot.slane %v9777_v2, 1  ;;  %v7052_v23 = vor.u32 %v7051_v3, %v7047_v9  ;;  %v5281_v63 = vshll.u32 %v9788_v0, 16  ;;  %v6163_v41 = vshrl.u32 %v9786_v36, 16  ;;  %v9785_v43 = vld [vmem:[#allocation2 + $0xb4] sm:$0xff]   ;;  %v9799_v24 = vld [vmem:[#allocation2 + $0xc0] sm:$0xff]  }
 0x3ef   : > { %5810 = vst.msk [vmem:[#allocation3 + $0x40] sm:$0xff] %vm2251_vm14, %v5771_v30  ;;  %v6170_v45 = vshll.u32 %v9787_v60, 16  ;;  %v5279_v33 = vshrl.u32 %v9788_v0, 16  ;;  %v5286_v51 = vshll.u32 %v9789_v32, 16  ;;  %v9791_v7 = vld [vmem:[#allocation2 + $0xb4] sm:$0xfe]   ;;  %v5277_v61 = vsel %vm12918_vm5, %v5272_v28, %v5276_v50  ;;  %vm12940_vm5 = vmmov %vm12934_vm0 }
 0x3f0   : > { %6705 = vst.msk [vmem:[#allocation3 + $0x38] sm:$0xff] %vm3151_vm2, %v6665_v38  ;;  %v12139_v48 = vpop.permute.xlu0 %7386  ;;  %v7363_v16 = vsel %vm1977_vm9, %v7361_v57, %v7362_v54  ;;  %v7057_v34 = vsel %vm12931_vm12, %v7052_v23, %v7056_v25  ;;  %v5283_v47 = vrot.slane %v5281_v63, 1  ;;  %v6168_v12 = vor.u32 %v6167_v10, %v6163_v41  ;;  %v9792_v11 = vld [vmem:[#allocation2 + $0xbc] ss:$0 sps:$4 sm:$0x11]   ;;  %v9816_v37 = vld [vmem:[#allocation2 + $0xb4] sm:$0xff]  }
 0x3f1   : > { %v12142_v17 = vpop.permute.xlu1 %6492  ;;  %7396 = vrot.lane.b32.xlu0 %v7363_v16, %s10276_s0  ;;  %7108 = vrot.lane.b32.xlu1 %v7057_v34, %s10278_s25  ;;  %v9794_v27 = vld [vmem:[#allocation2 + $0xbc] ss:$0 sps:$4 sm:$0x11]   ;;  %v9793_v56 = vld [vmem:[#allocation2 + $0xb4] sm:$0xfe]   ;;  %v6172_v55 = vrot.slane %v6170_v45, 1 }
 0x3f2   : > { %v5284_v44 = vor.u32 %v5283_v47, %v5279_v33  ;;  %v5288_v26 = vrot.slane %v5286_v51, 1  ;;  %v6468_v29 = vrot.slane %v9791_v7, 1  ;;  %v6469_v19 = vrot.slane %v9792_v11, 1  ;;  %v9798_v22 = vld [vmem:[#allocation2 + $0xc8] ss:$0 sps:$4 sm:$0x11]  }
 0x3f3   : > { %v6173_v62 = vsel %vm12932_vm8, %v6168_v12, %v6172_v55  ;;  %v5575_v53 = vrot.slane %v9793_v56, 1  ;;  %v5576_v13 = vrot.slane %v9794_v27, 1  ;;  %v7061_v52 = vshll.u32 %v9797_v15, 16  ;;  %v7440_v58 = vld [vmem:[#allocation3 + $0x30] sm:$0xff]  ;;  %4921 = vst.msk [vmem:[#allocation3 + $0x78] sm:$0xff] %vm12935_vm11, %v9816_v37  ;;  %v9795_v8 = vld [vmem:[#allocation2 + $0xc0] sm:$0xff]   ;;  %vm12944_vm11 = vmmov %vm12940_vm5 }
 0x3f4   : > { %v5599_v40 = vpop.permute.xlu0 %5598  ;;  %v5289_v1 = vsel %vm12933_vm10, %v5284_v44, %v5288_v26  ;;  %v6177_v5 = vshll.u32 %v9799_v24, 16  ;;  %v9800_v2 = vld [vmem:[#allocation2 + $0xc8] ss:$0 sps:$4 sm:$0x11]   ;;  %9135 = vmatprep.mubr.msk.bf16.mxu1 %vm3926_vm6, %v7440_v58  ;;  %v6470_v38 = vsel %vm1977_vm9, %v6468_v29, %v6469_v19  ;;  %v7059_v42 = vshrl.u32 %v9797_v15, 16  ;;  %v9806_v9 = vld [vmem:[#allocation2 + $0xcc] sm:$0xff]  }
 0x3f5   : > { %v12147_v4 = vpop.permute.xlu1 %5596  ;;  %5606 = vrot.lane.b32.xlu0 %v5574_v59, %s10271_s13  ;;  %5318 = vrot.lane.b32.xlu1 %v5277_v61, %s10272_s21  ;;  %v7063_v6 = vrot.slane %v7061_v52, 1  ;;  %v5577_v57 = vsel %vm1977_vm9, %v5575_v53, %v5576_v13  ;;  %v9796_v31 = vld [vmem:[#allocation2 + $0xc0] sm:$0xff]   ;;  %v7066_v20 = vshll.u32 %v9798_v22, 16  ;;  %v6175_v36 = vshrl.u32 %v9799_v24, 16  ;;  %v9805_v61 = vld [vmem:[#allocation2 + $0xcc] sm:$0xff]  }
 0x3f6   : > { %v6179_v54 = vrot.slane %v6177_v5, 1  ;;  %v6182_v16 = vshll.u32 %v9800_v2, 16  ;;  %v9801_v3 = vld [vmem:[#allocation2 + $0xc0] sm:$0xfe]   ;;  %v7073_v10 = vshll.u32 %v9806_v9, 16  ;;  %vm12937_vm7 = vcmask 261344  }
 0x3f7   : > { %v9802_v60 = vld [vmem:[#allocation2 + $0xc8] ss:$0 sps:$4 sm:$0x11]   ;;  %v7064_v14 = vor.u32 %v7063_v6, %v7059_v42  ;;  %v7068_v25 = vrot.slane %v7066_v20, 1  ;;  %v7364_v28 = vrot.slane %v9801_v3, 1  ;;  %vm12939_vm12 = vcmask 294144   ;;  %vm12941_vm8 = vmmov %vm12937_vm7 }
 0x3f8   : > { %v12151_v21 = vpop.permute.xlu0 %7384  ;;  %v6180_v0 = vor.u32 %v6179_v54, %v6175_v36  ;;  %v9804_v23 = vld [vmem:[#allocation2 + $0xc8] ss:$0 sps:$4 sm:$0x11]   ;;  %v6184_v32 = vrot.slane %v6182_v16, 1  ;;  %v7365_v41 = vrot.slane %v9802_v60, 1  ;;  %v7071_v47 = vshrl.u32 %v9806_v9, 16  ;;  %vm12942_vm10 = vmmov %vm12939_vm12 }
 0x3f9   : > { %v12154_v46 = vpop.permute.xlu1 %6204  ;;  %5782 = vrot.lane.b32.xlu0 %v9785_v43, %s10273_s16  ;;  %5320 = vrot.lane.b32.xlu1 %v5289_v1, %s10272_s21  ;;  %v9807_v59 = vld [vmem:[#allocation2 + $0xd4] ss:$0 sps:$4 sm:$0x11]   ;;  %v7069_v34 = vsel %vm12936_vm4, %v7064_v14, %v7068_v25  ;;  %v6472_v45 = vrot.slane %v9804_v23, 1  ;;  %v7075_v51 = vrot.slane %v7073_v10, 1  ;;  %vm12945_vm4 = vmmov %vm12937_vm7 }
 0x3fa   : > { %v6185_v50 = vsel %vm12938_vm3, %v6180_v0, %v6184_v32  ;;  %v7078_v7 = vshll.u32 %v9807_v59, 16  ;;  %v9809_v56 = vld [vmem:[#allocation2 + $0xcc] sm:$0xfe]   ;;  %v9810_v55 = vld [vmem:[#allocation2 + $0xd4] ss:$0 sps:$4 sm:$0x11]  }
 0x3fb   : > { %v7368_v15 = vrot.slane %v9810_v55, 1 }
 0x3fc   : > { %v6491_v18 = vpop.permute.xlu0 %6490  ;;  %v7080_v44 = vrot.slane %v7078_v7, 1 }
 0x3fd   : > { %v5311_v30 = vpop.permute.xlu1 %5310  ;;  %6214 = vrot.lane.b32.xlu0 %v6173_v62, %s10277_s24  ;;  %5608 = vrot.lane.b32.xlu1 %v5577_v57, %s10271_s13 }
 0x3fe   : > { %5348 = vst.msk [vmem:[#allocation3 + $0x50] sm:$0xff] %vm12934_vm0, %v5311_v30  ;;  %vm12943_vm0 = vmmov %vm12938_vm3 }
 0x3ff   : > { %5636 = vst.msk [vmem:[#allocation3 + $0x50] sm:$0xff] %vm2074_vm13, %v5599_v40  ;;  %v9803_v40 = vld [vmem:[#allocation2 + $0xc0] sm:$0xfe]   ;;  %vm12948_vm3 = vmmov %vm12940_vm5 }
 0x400   : > { %v7099_v49 = vpop.permute.xlu0 %7098  ;;  %v6471_v43 = vrot.slane %v9803_v40, 1 }
 0x401   : > { %6502 = vrot.lane.b32.xlu0 %v6470_v38, %s10275_s12  ;;  %5784 = vrot.lane.b32.xlu1 %v9796_v31, %s10273_s16 }
 0x402   : > { %v6473_v11 = vsel %vm1977_vm9, %v6471_v43, %v6472_v45 }
 0x403   : > { %v7097_v63 = vpop.permute.xlu1 %7096 }
 0x404   : > { %7137 = vst.msk [vmem:[#allocation3 + $0x38] sm:$0xff] %vm12937_vm7, %v7097_v63  ;;  %vm12946_vm7 = vmmov %vm12942_vm10 }
 0x405   : > { %6678 = vrot.lane.b32.xlu0 %v9795_v8, %s10274_s29  ;;  %7425 = vst.msk [vmem:[#allocation3 + $0x38] sm:$0xff] %vm12939_vm12, %v12151_v21  ;;  %v6203_v33 = vpop.permute.xlu0 %6202  ;;  %6216 = vrot.lane.b32.xlu1 %v6185_v50, %s10277_s24  ;;  %v7366_v21 = vsel %vm1977_vm9, %v7364_v28, %v7365_v41  ;;  %vm12949_vm12 = vmmov %vm12946_vm7 }
 0x406   : > { %6242 = vst.msk [vmem:[#allocation3 + $0x40] sm:$0xff] %vm2684_vm15, %v6203_v33 }
 0x407   : > { %6530 = vst.msk [vmem:[#allocation3 + $0x40] sm:$0xff] %vm2973_vm1, %v6491_v18  ;;  %v5309_v12 = vpop.permute.xlu1 %5308 }
 0x408   : > { %6706 = vst.msk [vmem:[#allocation3 + $0x40] sm:$0xff] %vm3151_vm2, %v12121_v35  ;;  %v7076_v35 = vor.u32 %v7075_v51, %v7071_v47 }
 0x409   : > { %7110 = vrot.lane.b32.xlu0 %v7069_v34, %s10278_s25  ;;  %5347 = vst.msk [vmem:[#allocation3 + $0x48] sm:$0xff] %vm12940_vm5, %v5309_v12  ;;  %v6671_v27 = vpop.permute.xlu0 %6670  ;;  %6504 = vrot.lane.b32.xlu1 %v6473_v11, %s10275_s12  ;;  %vm12950_vm5 = vmmov %vm12945_vm4 }
 0x40a   : > { %7138 = vst.msk [vmem:[#allocation3 + $0x40] sm:$0xff] %vm12941_vm8, %v7099_v49  ;;  %vm12951_vm8 = vmmov %vm12946_vm7 }
 0x40b   : > { %5635 = vst.msk [vmem:[#allocation3 + $0x48] sm:$0xff] %vm2074_vm13, %v12147_v4  ;;  %v5777_v4 = vpop.permute.xlu1 %5776 }
 0x40c   : > { %7426 = vst.msk [vmem:[#allocation3 + $0x40] sm:$0xff] %vm12942_vm10, %v12139_v48  ;;  %v7441_v26 = vld [vmem:[#allocation3 + $0x38] sm:$0xff]  ;;  %v7367_v48 = vrot.slane %v9809_v56, 1  ;;  %vm12952_vm10 = vmmov %vm12948_vm3 }
 0x40d   : > { %7398 = vrot.lane.b32.xlu0 %v7366_v21, %s10276_s0  ;;  %5811 = vst.msk [vmem:[#allocation3 + $0x48] sm:$0xff] %vm2251_vm14, %v12131_v39  ;;  %9136 = vmatmul.mubr.msk.bf16.gmra.mrb[12].mxu1 %vm3926_vm6, %v7441_v26  ;;  %v5775_v29 = vpop.permute.xlu0 %5774  ;;  %v7081_v39 = vsel %vm12943_vm0, %v7076_v35, %v7080_v44  ;;  %vm12953_vm0 = vmmov %vm12945_vm4 }
 0x40e   : > { %6243 = vst.msk [vmem:[#allocation3 + $0x48] sm:$0xff] %vm2684_vm15, %v12154_v46  ;;  %6680 = vrot.lane.b32.xlu1 %v9805_v61, %s10274_s29  ;;  %s13011_s29 = sld [smem:[#allocation33_spill]] }
 0x40f   : > { %6531 = vst.msk [vmem:[#allocation3 + $0x48] sm:$0xff] %vm2973_vm1, %v12142_v17  ;;  %v6669_v62 = vpop.permute.xlu1 %6668  ;;  %v7369_v17 = vsel %vm1977_vm9, %v7367_v48, %v7368_v15  ;;  %vm12947_vm9 = vmmov %vm12945_vm4  ;;  %v10279_v15 = vmov 0.0  }
 0x410   : > { %5812 = vst.msk [vmem:[#allocation3 + $0x50] sm:$0xff] %vm2251_vm14, %v5775_v29  ;;  %9155 = vmatprep.subr.mxu0 %v10279_v15  ;;  %9160 = vmatprep.subr.mxu1 %v10279_v15 }
 0x411   : > { %6707 = vst.msk [vmem:[#allocation3 + $0x48] sm:$0xff] %vm3151_vm2, %v6669_v62  ;;  %v7391_v46 = vpop.permute.xlu0 %7390 }
 0x412   : > { %7112 = vrot.lane.b32.xlu1 %v7081_v39, %s10278_s25  ;;  %s10282_s25 = smov [#allocation22]  }
 0x413   : > { %v7442_v19 = vld [vmem:[#allocation3 + $0x40] sm:$0xff]  ;;  %v6497_v24 = vpop.permute.xlu1 %6496 }
 0x414   : > { %9139 = vmatprep.mubr.msk.bf16.mxu1 %vm3926_vm6, %v7442_v19 }
 0x415   : > { %v5603_v1 = vpop.permute.xlu0 %5602 }
 0x416   : > { %7400 = vrot.lane.b32.xlu1 %v7369_v17, %s10276_s0 }
 0x417   : > { %v5601_v53 = vpop.permute.xlu1 %5600 }
 0x419   : > { %v7389_v22 = vpop.permute.xlu0 %7388 }
 0x41b   : > { %v6209_v13 = vpop.permute.xlu1 %6208 }
 0x41d   : > { %v6495_v18 = vpop.permute.xlu0 %6494 }
 0x41f   : > { %v5315_v52 = vpop.permute.xlu1 %5314 }
 0x420   : > { %5350 = vst.msk [vmem:[#allocation3 + $0x60] sm:$0xff] %vm12944_vm11, %v5315_v52  ;;  %vm12954_vm11 = vmmov %vm12946_vm7  ;;  %v12268_v52 = vld [vmem:[#allocation13] ss:$0 sm:$0xff] }
 0x421   : > { %5638 = vst.msk [vmem:[#allocation3 + $0x60] sm:$0xff] %vm2074_vm13, %v5603_v1  ;;  %v7103_v5 = vpop.permute.xlu0 %7102 }
 0x423   : > { %v7101_v30 = vpop.permute.xlu1 %7100 }
 0x424   : > { %7139 = vst.msk [vmem:[#allocation3 + $0x48] sm:$0xff] %vm12945_vm4, %v7101_v30  ;;  %vm12955_vm4 = vmmov %vm12953_vm0 }
 0x425   : > { %7427 = vst.msk [vmem:[#allocation3 + $0x48] sm:$0xff] %vm12946_vm7, %v7389_v22 }
 0x428   : > { %v6207_v58 = vpop.permute.xlu0 %6206 }
 0x429   : > { %6244 = vst.msk [vmem:[#allocation3 + $0x50] sm:$0xff] %vm2684_vm15, %v6207_v58 }
 0x42a   : > { %6532 = vst.msk [vmem:[#allocation3 + $0x50] sm:$0xff] %vm2973_vm1, %v6495_v18  ;;  %v7911_v18 = vld [vmem:[#allocation19] sm:$0xff] }
 0x42b   : > { %6708 = vst.msk [vmem:[#allocation3 + $0x50] sm:$0xff] %vm3151_vm2, %v6671_v27  ;;  %v5313_v2 = vpop.permute.xlu1 %5312  ;;  %9161 = vmatpush3.msra.mxu1 %v7911_v18 }
 0x42c   : > { %v7443_v37 = vld [vmem:[#allocation3 + $0x48] sm:$0xff]  ;;  %7140 = vst.msk [vmem:[#allocation3 + $0x50] sm:$0xff] %vm12947_vm9, %v7103_v5  ;;  %vm12956_vm9 = vmmov %vm12948_vm3 }
 0x42d   : > { %9140 = vmatmul.mubr.msk.bf16.gmra.mrb[16].mxu1 %vm3926_vm6, %v7443_v37  ;;  %5349 = vst.msk [vmem:[#allocation3 + $0x58] sm:$0xff] %vm12948_vm3, %v5313_v2  ;;  %v12274_v37 = vld [vmem:[#allocation15] ss:$0 sm:$0xff] }
 0x42e   : > { %7428 = vst.msk [vmem:[#allocation3 + $0x50] sm:$0xff] %vm12949_vm12, %v7391_v46  ;;  %v5779_v6 = vpop.permute.xlu0 %5778  ;;  %vm12957_vm12 = vmmov %vm12953_vm0 }
 0x42f   : > { %5637 = vst.msk [vmem:[#allocation3 + $0x58] sm:$0xff] %vm2074_vm13, %v5601_v53  ;;  %v5781_v38 = vpop.permute.xlu1 %5780 }
 0x430   : > { %5813 = vst.msk [vmem:[#allocation3 + $0x58] sm:$0xff] %vm2251_vm14, %v5777_v4  ;;  %5814 = vst.msk [vmem:[#allocation3 + $0x60] sm:$0xff] %vm2251_vm14, %v5779_v6 }
 0x431   : > { %6245 = vst.msk [vmem:[#allocation3 + $0x58] sm:$0xff] %vm2684_vm15, %v6209_v13 }
 0x432   : > { %6533 = vst.msk [vmem:[#allocation3 + $0x58] sm:$0xff] %vm2973_vm1, %v6497_v24  ;;  %v7831_v24 = vld [vmem:[#allocation16] sm:$0xf] }
 0x433   : > { %v6673_v57 = vpop.permute.xlu1 %6672  ;;  %v7393_v42 = vpop.permute.xlu0 %7392 }
 0x434   : > { %6709 = vst.msk [vmem:[#allocation3 + $0x58] sm:$0xff] %vm3151_vm2, %v6673_v57 }
 0x435   : > { %v7444_v54 = vld [vmem:[#allocation3 + $0x50] sm:$0xff] }
 0x436   : > { %9143 = vmatprep.mubr.msk.bf16.mxu1 %vm3926_vm6, %v7444_v54 }
 0x437   : > { %v5605_v9 = vpop.permute.xlu1 %5604  ;;  %v6211_v8 = vpop.permute.xlu0 %6210 }
 0x438   : > { %6246 = vst.msk [vmem:[#allocation3 + $0x60] sm:$0xff] %vm2684_vm15, %v6211_v8 }
 0x43b   : > { %v6213_v31 = vpop.permute.xlu1 %6212  ;;  %v6499_v20 = vpop.permute.xlu0 %6498 }
 0x43c   : > { %6534 = vst.msk [vmem:[#allocation3 + $0x60] sm:$0xff] %vm2973_vm1, %v6499_v20 }
 0x43f   : > { %v7105_v36 = vpop.permute.xlu1 %7104  ;;  %v6675_v16 = vpop.permute.xlu0 %6674 }
 0x440   : > { %7141 = vst.msk [vmem:[#allocation3 + $0x58] sm:$0xff] %vm12950_vm5, %v7105_v36  ;;  %vm12958_vm5 = vmmov %vm12946_vm7 }
 0x441   : > { %6710 = vst.msk [vmem:[#allocation3 + $0x60] sm:$0xff] %vm3151_vm2, %v6675_v16 }
 0x442   : > { %7429 = vst.msk [vmem:[#allocation3 + $0x58] sm:$0xff] %vm12951_vm8, %v7393_v42 }
 0x449   : > { %v5317_v3 = vpop.permute.xlu1 %5316  ;;  %v7445_v49 = vld [vmem:[#allocation3 + $0x58] sm:$0xff] }
 0x44a   : > { %5351 = vst.msk [vmem:[#allocation3 + $0x68] sm:$0xff] %vm12952_vm10, %v5317_v3  ;;  %v7107_v60 = vpop.permute.xlu0 %7106  ;;  %9144 = vmatmul.mubr.msk.bf16.gmra.mrb[20].mxu1 %vm3926_vm6, %v7445_v49 }
 0x44b   : > { %5639 = vst.msk [vmem:[#allocation3 + $0x68] sm:$0xff] %vm2074_vm13, %v5605_v9 }
 0x44c   : > { %5815 = vst.msk [vmem:[#allocation3 + $0x68] sm:$0xff] %vm2251_vm14, %v5781_v38 }
 0x44d   : > { %6247 = vst.msk [vmem:[#allocation3 + $0x68] sm:$0xff] %vm2684_vm15, %v6213_v31  ;;  %v6501_v14 = vpop.permute.xlu1 %6500 }
 0x44e   : > { %7142 = vst.msk [vmem:[#allocation3 + $0x60] sm:$0xff] %vm12953_vm0, %v7107_v60 }
 0x44f   : > { %6535 = vst.msk [vmem:[#allocation3 + $0x68] sm:$0xff] %vm2973_vm1, %v6501_v14 }
 0x456   : > { %v7395_v0 = vpop.permute.xlu0 %7394 }
 0x457   : > { %7430 = vst.msk [vmem:[#allocation3 + $0x60] sm:$0xff] %vm12954_vm11, %v7395_v0 }
 0x45b   : > { %v6677_v40 = vpop.permute.xlu1 %6676 }
 0x45c   : > { %6711 = vst.msk [vmem:[#allocation3 + $0x68] sm:$0xff] %vm3151_vm2, %v6677_v40 }
 0x45e   : > { %v7446_v23 = vld [vmem:[#allocation3 + $0x60] sm:$0xff] }
 0x45f   : > { %9147 = vmatprep.mubr.msk.bf16.mxu1 %vm3926_vm6, %v7446_v23 }
 0x463   : > { %v7397_v25 = vpop.permute.xlu0 %7396  ;;  %v7109_v59 = vpop.permute.xlu1 %7108 }
 0x464   : > { %7143 = vst.msk [vmem:[#allocation3 + $0x68] sm:$0xff] %vm12955_vm4, %v7109_v59 }
 0x465   : > { %7431 = vst.msk [vmem:[#allocation3 + $0x68] sm:$0xff] %vm12946_vm7, %v7397_v25 }
 0x467   : > { %v5607_v32 = vpop.permute.xlu0 %5606  ;;  %v5319_v10 = vpop.permute.xlu1 %5318 }
 0x468   : > { %5352 = vst.msk [vmem:[#allocation3 + $0x70] sm:$0xff] %vm12956_vm9, %v5319_v10 }
 0x469   : > { %5640 = vst.msk [vmem:[#allocation3 + $0x70] sm:$0xff] %vm2074_vm13, %v5607_v32 }
 0x46b   : > { %v5783_v63 = vpop.permute.xlu0 %5782  ;;  %v5321_v28 = vpop.permute.xlu1 %5320 }
 0x46c   : > { %5816 = vst.msk [vmem:[#allocation3 + $0x70] sm:$0xff] %vm2251_vm14, %v5783_v63  ;;  %v7447_v50 = vld [vmem:[#allocation3 + $0x68] sm:$0xff] }
 0x46d   : > { %5353 = vst.msk [vmem:[#allocation3 + $0x78] sm:$0xff] %vm12948_vm3, %v5321_v28  ;;  %9148 = vmatmul.mubr.msk.bf16.gmra.mrb[24].mxu1 %vm3926_vm6, %v7447_v50  ;;  %v9125_v45 = vpop.f32.mrb[0].mxu1 }
 0x46e   : > { %v7555_v33 = vpop.f32.mrb[1].mxu1  ;;  %v7691_v42 = vmul.f32 %v9125_v45, %v12268_v52 }
 0x46f   : > { %v6215_v34 = vpop.permute.xlu0 %6214  ;;  %v5609_v43 = vpop.permute.xlu1 %5608  ;;  %v7689_v5 = vmul.f32 %v12268_v52, %v7555_v33 }
 0x470   : > { %6248 = vst.msk [vmem:[#allocation3 + $0x70] sm:$0xff] %vm2684_vm15, %v6215_v34  ;;  %v9126_v47 = vpop.f32.mrb[2].mxu1  ;;  %v12290_v8 = vadd.f32 %v12274_v37, %v7691_v42 }
 0x471   : > { %5641 = vst.msk [vmem:[#allocation3 + $0x78] sm:$0xff] %vm2074_vm13, %v5609_v43  ;;  %v7558_v12 = vpop.f32.mrb[3].mxu1  ;;  %vm12959_vm13 = vmmov %vm12953_vm0  ;;  %v12285_v54 = vadd.f32 %v12274_v37, %v7689_v5  ;;  %v7692_v20 = vmul.f32 %v9126_v47, %v12268_v52 }
 0x472   : > { %v7690_v30 = vmul.f32 %v12268_v52, %v7558_v12 }
 0x473   : > { %v6503_v41 = vpop.permute.xlu0 %6502  ;;  %v5785_v7 = vpop.permute.xlu1 %5784  ;;  %v12299_v60 = vadd.f32 %v12274_v37, %v7692_v20 }
 0x474   : > { %6536 = vst.msk [vmem:[#allocation3 + $0x70] sm:$0xff] %vm2973_vm1, %v6503_v41  ;;  %v12277_v6 = vadd.f32 %v12274_v37, %v7690_v30 }
 0x475   : > { %5817 = vst.msk [vmem:[#allocation3 + $0x78] sm:$0xff] %vm2251_vm14, %v5785_v7  ;;  %vm12960_vm14 = vmmov %vm12958_vm5 }
 0x477   : > { %v6679_v51 = vpop.permute.xlu0 %6678  ;;  %v6217_v11 = vpop.permute.xlu1 %6216 }
 0x478   : > { %6712 = vst.msk [vmem:[#allocation3 + $0x70] sm:$0xff] %vm3151_vm2, %v6679_v51 }
 0x479   : > { %6249 = vst.msk [vmem:[#allocation3 + $0x78] sm:$0xff] %vm2684_vm15, %v6217_v11  ;;  %vm7836_vm15 = vcmask 1043456  }
 0x47a   : > { %9156 = vmatpush3.msk.msra.mxu0 %vm7836_vm15, %v7831_v24 }
 0x47b   : > { %v7111_v21 = vpop.permute.xlu0 %7110  ;;  %v6505_v61 = vpop.permute.xlu1 %6504 }
 0x47c   : > { %7144 = vst.msk [vmem:[#allocation3 + $0x70] sm:$0xff] %vm12957_vm12, %v7111_v21 }
 0x47d   : > { %6537 = vst.msk [vmem:[#allocation3 + $0x78] sm:$0xff] %vm2973_vm1, %v6505_v61  ;;  %vm10280_vm1 = vmmov 0  }
 0x47e   : > { %9157 = vmatprep.mubr.msk.f32.mxu0 %vm10280_vm1, %v10279_v15 }
 0x47f   : > { %v7399_v27 = vpop.permute.xlu0 %7398 }
 0x480   : > { %7432 = vst.msk [vmem:[#allocation3 + $0x70] sm:$0xff] %vm12958_vm5, %v7399_v27  ;;  %v6681_v35 = vpop.permute.xlu1 %6680 }
 0x481   : > { %6713 = vst.msk [vmem:[#allocation3 + $0x78] sm:$0xff] %vm3151_vm2, %v6681_v35  ;;  %vm12961_vm2 = vcmask 31744  }
 0x482   : > { %v7761_v9 = vsel %vm12961_vm2, %v12277_v6, 0.0  ;;  %vm12963_vm8 = vmmov %vm12961_vm2 }
 0x483   : > { %v7763_v3 = vsel %vm12963_vm8, %v12290_v8, 0.0  ;;  %vm12964_vm10 = vmmov %vm12961_vm2 }
 0x484   : > { %v7113_v44 = vpop.permute.xlu1 %7112  ;;  %v7765_v40 = vsel %vm12964_vm10, %v12299_v60, 0.0  ;;  %vm12965_vm0 = vmmov %vm12961_vm2 }
 0x485   : > { %7145 = vst.msk [vmem:[#allocation3 + $0x78] sm:$0xff] %vm12959_vm13, %v7113_v44  ;;  %vm12966_vm11 = vmmov %vm12965_vm0 }
 0x486   : > { %vm12967_vm4 = vmmov %vm12965_vm0 }
 0x487   : > { %v7448_v56 = vld [vmem:[#allocation3 + $0x70] sm:$0xff]  ;;  %vm12968_vm7 = vmmov %vm12965_vm0 }
 0x488   : > { %9151 = vmatprep.mubr.msk.bf16.mxu1 %vm3926_vm6, %v7448_v56  ;;  %v7401_v55 = vpop.permute.xlu1 %7400  ;;  %vm12969_vm9 = vmmov %vm12965_vm0 }
 0x489   : > { %7433 = vst.msk [vmem:[#allocation3 + $0x78] sm:$0xff] %vm12960_vm14, %v7401_v55  ;;  %vm12970_vm3 = vmmov %vm12965_vm0 }
 0x48a   : > { %vm12971_vm12 = vmmov %vm12965_vm0 }
 0x48b   : > { %vm12972_vm5 = vmmov %vm12965_vm0 }
 0x48c   : > { %vm12973_vm13 = vmmov %vm12965_vm0 }
 0x48d   : > { %vm12974_vm14 = vmmov %vm12965_vm0 }
 0x48e   : > { %vm12975_vm15 = vmmov %vm12965_vm0 }
 0x48f   : > { %vm12979_vm8 = vmmov %vm12965_vm0 }
 0x490   : > { %v7449_v4 = vld [vmem:[#allocation3 + $0x78] sm:$0xff]  ;;  %vm12980_vm10 = vmmov %vm12965_vm0 }
 0x491   : > { %9152 = vmatmul.mubr.msk.bf16.gmra.mrb[28].mxu1 %vm3926_vm6, %v7449_v4  ;;  %vm12962_vm6 = vmmov %vm12961_vm2 }
 0x492   : > { %9162 = vmatprep.mubr.msk.f32.mxu1 %vm10280_vm1, %v10279_v15  ;;  %v7760_v31 = vsel %vm12962_vm6, %v12285_v54, 0.0  ;;  %vm12976_vm1 = vmmov %vm12965_vm0 }
 0x493   : > { %v9129_v26 = vpop.f32.mrb[4].mxu1  ;;  %v7762_v16 = vadd.f32 %v7761_v9, %v7760_v31  ;;  %vm12977_vm2 = vmmov %vm12965_vm0 }
 0x494   : > { %v7571_v29 = vpop.f32.mrb[5].mxu1  ;;  %v7695_v59 = vmul.f32 %v9129_v26, %v12268_v52  ;;  %vm12978_vm6 = vmmov %vm12965_vm0 }
 0x495   : > { %v9130_v39 = vpop.f32.mrb[6].mxu1  ;;  %v7693_v36 = vmul.f32 %v12268_v52, %v7571_v29  ;;  %v7764_v0 = vadd.f32 %v7763_v3, %v7762_v16 }
 0x496   : > { %v7574_v48 = vpop.f32.mrb[7].mxu1  ;;  %v12316_v34 = vadd.f32 %v12274_v37, %v7695_v59  ;;  %v7696_v28 = vmul.f32 %v9130_v39, %v12268_v52 }
 0x497   : > { %v12302_v49 = vadd.f32 %v12274_v37, %v7693_v36  ;;  %v7694_v14 = vmul.f32 %v12268_v52, %v7574_v48  ;;  %v7766_v32 = vadd.f32 %v7765_v40, %v7764_v0 }
 0x498   : > { %v7771_v43 = vsel %vm12967_vm4, %v12316_v34, 0.0  ;;  %v12323_v45 = vadd.f32 %v12274_v37, %v7696_v28  ;;  %vm12982_vm4 = vmmov %vm12965_vm0 }
 0x499   : > { %v7767_v23 = vsel %vm12965_vm0, %v12302_v49, 0.0  ;;  %v12310_v25 = vadd.f32 %v12274_v37, %v7694_v14 }
 0x49a   : > { %v7768_v10 = vadd.f32 %v7767_v23, %v7766_v32  ;;  %v7773_v7 = vsel %vm12968_vm7, %v12323_v45, 0.0  ;;  %vm12983_vm7 = vmmov %vm12965_vm0 }
 0x49b   : > { %v7769_v63 = vsel %vm12966_vm11, %v12310_v25, 0.0  ;;  %vm12981_vm11 = vmmov %vm12965_vm0 }
 0x49c   : > { %v7770_v41 = vadd.f32 %v7769_v63, %v7768_v10 }
 0x49e   : > { %v7772_v51 = vadd.f32 %v7771_v43, %v7770_v41 }
 0x4a0   : > { %v7774_v11 = vadd.f32 %v7773_v7, %v7772_v51 }
 0x4be   : > { %v9133_v62 = vpop.f32.mrb[8].mxu1 }
 0x4bf   : > { %v7587_v46 = vpop.f32.mrb[9].mxu1  ;;  %v7699_v27 = vmul.f32 %v9133_v62, %v12268_v52 }
 0x4c0   : > { %v12262_v19 = vpop.f32.mrb[10].mxu1  ;;  %v7697_v50 = vmul.f32 %v12268_v52, %v7587_v46 }
 0x4c1   : > { %v7590_v17 = vpop.f32.mrb[11].mxu1  ;;  %v12340_v26 = vadd.f32 %v12274_v37, %v7699_v27  ;;  %v7700_v29 = vmul.f32 %v12262_v19, %v12268_v52 }
 0x4c2   : > { %v12326_v33 = vadd.f32 %v12274_v37, %v7697_v50  ;;  %v7698_v47 = vmul.f32 %v12268_v52, %v7590_v17 }
 0x4c3   : > { %v7779_v15 = vsel %vm12971_vm12, %v12340_v26, 0.0  ;;  %v12348_v62 = vadd.f32 %v12274_v37, %v7700_v29  ;;  %vm12986_vm12 = vmmov %vm12965_vm0 }
 0x4c4   : > { %v7775_v12 = vsel %vm12969_vm9, %v12326_v33, 0.0  ;;  %v12334_v21 = vadd.f32 %v12274_v37, %v7698_v47  ;;  %vm12984_vm9 = vmmov %vm12965_vm0 }
 0x4c5   : > { %v7776_v35 = vadd.f32 %v7775_v12, %v7774_v11  ;;  %v7781_v18 = vsel %vm12972_vm5, %v12348_v62, 0.0  ;;  %vm12987_vm5 = vmmov %vm12965_vm0 }
 0x4c6   : > { %v7777_v56 = vsel %vm12970_vm3, %v12334_v21, 0.0  ;;  %vm12985_vm3 = vmmov %vm12965_vm0 }
 0x4c7   : > { %v7778_v48 = vadd.f32 %v7777_v56, %v7776_v35 }
 0x4c9   : > { %v7780_v24 = vadd.f32 %v7779_v15, %v7778_v48 }
 0x4cb   : > { %v7782_v30 = vadd.f32 %v7781_v18, %v7780_v24 }
 0x4e0   : > { %v12264_v1 = vpop.f32.mrb[12].mxu1 }
 0x4e1   : > { %v7603_v53 = vpop.f32.mrb[13].mxu1  ;;  %v7703_v5 = vmul.f32 %v12264_v1, %v12268_v52 }
 0x4e2   : > { %v12266_v13 = vpop.f32.mrb[14].mxu1  ;;  %v7701_v39 = vmul.f32 %v12268_v52, %v7603_v53 }
 0x4e3   : > { %v7606_v22 = vpop.f32.mrb[15].mxu1  ;;  %v7704_v31 = vmul.f32 %v12266_v13, %v12268_v52 }
 0x4e4   : > { %v12351_v46 = vadd.f32 %v12274_v37, %v7701_v39  ;;  %v7702_v17 = vmul.f32 %v12268_v52, %v7606_v22  ;;  %v12366_v22 = vadd.f32 %v12274_v37, %v7703_v5 }
 0x4e5   : > { %v12374_v3 = vadd.f32 %v12274_v37, %v7704_v31 }
 0x4e6   : > { %v7783_v19 = vsel %vm12973_vm13, %v12351_v46, 0.0  ;;  %v12359_v53 = vadd.f32 %v12274_v37, %v7702_v17  ;;  %v7787_v16 = vsel %vm12975_vm15, %v12366_v22, 0.0  ;;  %vm12988_vm13 = vmmov %vm12965_vm0 }
 0x4e7   : > { %v7784_v42 = vadd.f32 %v7783_v19, %v7782_v30  ;;  %v7789_v40 = vsel %vm12976_vm1, %v12374_v3, 0.0  ;;  %vm12990_vm15 = vmmov %vm12965_vm0 }
 0x4e8   : > { %v7785_v9 = vsel %vm12974_vm14, %v12359_v53, 0.0  ;;  %vm12989_vm14 = vmmov %vm12965_vm0 }
 0x4e9   : > { %v7786_v36 = vadd.f32 %v7785_v9, %v7784_v42  ;;  %vm12991_vm1 = vmmov %vm12965_vm0 }
 0x4eb   : > { %v7788_v0 = vadd.f32 %v7787_v16, %v7786_v36 }
 0x4ed   : > { %v7790_v23 = vadd.f32 %v7789_v40, %v7788_v0 }
 0x500   : > { %v12272_v58 = vpop.f32.mrb[16].mxu1 }
 0x501   : > { %v7619_v2 = vpop.f32.mrb[17].mxu1  ;;  %v7707_v32 = vmul.f32 %v12272_v58, %v12268_v52 }
 0x502   : > { %v12279_v38 = vpop.f32.mrb[18].mxu1  ;;  %v7705_v20 = vmul.f32 %v12268_v52, %v7619_v2 }
 0x503   : > { %v12281_v57 = vpop.f32.mrb[19].mxu1  ;;  %v12393_v50 = vadd.f32 %v12274_v37, %v7707_v32  ;;  %v7708_v41 = vmul.f32 %v12279_v38, %v12268_v52 }
 0x504   : > { %v12377_v1 = vadd.f32 %v12274_v37, %v7705_v20  ;;  %v7706_v14 = vmul.f32 %v12268_v52, %v12281_v57 }
 0x505   : > { %v7795_v58 = vsel %vm12979_vm8, %v12393_v50, 0.0  ;;  %v12401_v7 = vadd.f32 %v12274_v37, %v7708_v41  ;;  %vm12993_vm8 = vmmov %vm12965_vm0 }
 0x506   : > { %v7791_v13 = vsel %vm12977_vm2, %v12377_v1, 0.0  ;;  %v12386_v2 = vadd.f32 %v12274_v37, %v7706_v14  ;;  %vm12992_vm2 = vmmov %vm12965_vm0 }
 0x507   : > { %v7792_v59 = vadd.f32 %v7791_v13, %v7790_v23  ;;  %v7797_v35 = vsel %vm12980_vm10, %v12401_v7, 0.0  ;;  %vm12994_vm10 = vmmov %vm12965_vm0 }
 0x508   : > { %v7793_v63 = vsel %vm12978_vm6, %v12386_v2, 0.0  ;;  %vm7913_vm6 = vcmask 64512  }
 0x509   : > { %v7794_v51 = vadd.f32 %v7793_v63, %v7792_v59 }
 0x50b   : > { %v7796_v27 = vadd.f32 %v7795_v58, %v7794_v51 }
 0x50d   : > { %v7798_v56 = vadd.f32 %v7797_v35, %v7796_v27 }
 0x51d   : > { %v9145_v61 = vpop.f32.mrb[20].mxu1 }
 0x51e   : > { %v7635_v44 = vpop.f32.mrb[21].mxu1  ;;  %v7711_v29 = vmul.f32 %v9145_v61, %v12268_v52 }
 0x51f   : > { %v9146_v55 = vpop.f32.mrb[22].mxu1  ;;  %v7709_v43 = vmul.f32 %v12268_v52, %v7635_v44 }
 0x520   : > { %v7638_v4 = vpop.f32.mrb[23].mxu1  ;;  %v12418_v15 = vadd.f32 %v12274_v37, %v7711_v29 }
 0x521   : > { %v12404_v12 = vadd.f32 %v12274_v37, %v7709_v43  ;;  %v7710_v11 = vmul.f32 %v12268_v52, %v7638_v4  ;;  %v7712_v4 = vmul.f32 %v9146_v55, %v12268_v52 }
 0x522   : > { %v7803_v18 = vsel %vm12982_vm4, %v12418_v15, 0.0  ;;  %vm12996_vm4 = vmmov %vm12965_vm0 }
 0x523   : > { %v7799_v38 = vsel %vm12965_vm0, %v12404_v12, 0.0  ;;  %v12412_v44 = vadd.f32 %v12274_v37, %v7710_v11  ;;  %v12425_v19 = vadd.f32 %v12274_v37, %v7712_v4 }
 0x524   : > { %v7800_v39 = vadd.f32 %v7799_v38, %v7798_v56 }
 0x525   : > { %v7801_v48 = vsel %vm12981_vm11, %v12412_v44, 0.0  ;;  %v7805_v42 = vsel %vm12983_vm7, %v12425_v19, 0.0  ;;  %vm12995_vm11 = vmmov %vm12965_vm0 }
 0x526   : > { %v7802_v24 = vadd.f32 %v7801_v48, %v7800_v39  ;;  %vm12997_vm7 = vmmov %vm12965_vm0 }
 0x528   : > { %v7804_v5 = vadd.f32 %v7803_v18, %v7802_v24 }
 0x52a   : > { %v7806_v31 = vadd.f32 %v7805_v42, %v7804_v5 }
 0x540   : > { %v9149_v10 = vpop.f32.mrb[24].mxu1 }
 0x541   : > { %v7651_v57 = vpop.f32.mrb[25].mxu1  ;;  %v7715_v20 = vmul.f32 %v9149_v10, %v12268_v52 }
 0x542   : > { %v9150_v28 = vpop.f32.mrb[26].mxu1  ;;  %v7713_v17 = vmul.f32 %v12268_v52, %v7651_v57 }
 0x543   : > { %v7654_v47 = vpop.f32.mrb[27].mxu1  ;;  %v12442_v14 = vadd.f32 %v12274_v37, %v7715_v20  ;;  %v7716_v0 = vmul.f32 %v9150_v28, %v12268_v52  ;;  %v7832_v20 = vld [vmem:[#allocation18] sm:$0x1] }
 0x544   : > { %v12428_v61 = vadd.f32 %v12274_v37, %v7713_v17  ;;  %v7714_v30 = vmul.f32 %v12268_v52, %v7654_v47 }
 0x545   : > { %v7811_v13 = vsel %vm12986_vm12, %v12442_v14, 0.0  ;;  %v12448_v23 = vadd.f32 %v12274_v37, %v7716_v0  ;;  %vm13000_vm12 = vmmov %vm12965_vm0 }
 0x546   : > { %v7807_v55 = vsel %vm12984_vm9, %v12428_v61, 0.0  ;;  %v12436_v9 = vadd.f32 %v12274_v37, %v7714_v30  ;;  %vm12998_vm9 = vmmov %vm12965_vm0 }
 0x547   : > { %v7808_v36 = vadd.f32 %v7807_v55, %v7806_v31  ;;  %v7813_v47 = vsel %vm12987_vm5, %v12448_v23, 0.0  ;;  %vm13001_vm5 = vmmov %vm12965_vm0 }
 0x548   : > { %v7809_v16 = vsel %vm12985_vm3, %v12436_v9, 0.0  ;;  %vm12999_vm3 = vmmov %vm12965_vm0 }
 0x549   : > { %v7810_v40 = vadd.f32 %v7809_v16, %v7808_v36 }
 0x54b   : > { %v7812_v59 = vadd.f32 %v7811_v13, %v7810_v40  ;;  %v7993_v13 = vlaneseq }
 0x54d   : > { %v7814_v11 = vadd.f32 %v7813_v47, %v7812_v59  ;;  %v7912_v59 = vld [vmem:[#allocation21] sm:$0x1] }
 0x564   : > { %v9153_v32 = vpop.f32.mrb[28].mxu1 }
 0x565   : > { %v7667_v63 = vpop.f32.mrb[29].mxu1  ;;  %v7719_v10 = vmul.f32 %v9153_v32, %v12268_v52  ;;  %v7994_v32 = vshrl.u32 %v7993_v13, 7 }
 0x566   : > { %v7717_v57 = vmul.f32 %v12268_v52, %v7667_v63  ;;  %v9154_v41 = vpop.f32.mrb[30].mxu1 }
 0x567   : > { %v7670_v43 = vpop.f32.mrb[31].mxu1  ;;  %v7720_v51 = vmul.f32 %v9154_v41, %v12268_v52  ;;  %v12460_v27 = vadd.f32 %v12274_v37, %v7719_v10  ;;  %v7995_v63 = vsub.s32 0, %v7994_v32 }
 0x568   : > { %v12455_v28 = vadd.f32 %v12274_v37, %v7717_v57  ;;  %v7718_v58 = vmul.f32 %v12268_v52, %v7670_v43 }
 0x569   : > { %v12468_v29 = vadd.f32 %v12274_v37, %v7720_v51  ;;  %v7819_v52 = vsel %vm12990_vm15, %v12460_v27, 0.0  ;;  %vm13004_vm15 = vmmov %vm12965_vm0 }
 0x56a   : > { %v7815_v35 = vsel %vm12988_vm13, %v12455_v28, 0.0  ;;  %v12465_v38 = vadd.f32 %v12274_v37, %v7718_v58  ;;  %vm13002_vm13 = vmmov %vm12965_vm0 }
 0x56b   : > { %v7816_v56 = vadd.f32 %v7815_v35, %v7814_v11  ;;  %v7821_v17 = vsel %vm12991_vm1, %v12468_v29, 0.0  ;;  %vm13005_vm1 = vmmov %vm12965_vm0 }
 0x56c   : > { %v7817_v39 = vsel %vm12989_vm14, %v12465_v38, 0.0  ;;  %vm13003_vm14 = vmmov %vm12965_vm0 }
 0x56d   : > { %v7818_v48 = vadd.f32 %v7817_v39, %v7816_v56 }
 0x56f   : > { %v7820_v4 = vadd.f32 %v7819_v52, %v7818_v48 }
 0x571   : > { %v7822_v24 = vadd.f32 %v7821_v17, %v7820_v4 }
 0x573   : > { %v7823_v18 = vrot.slane %v7822_v24, 4 }
 0x575   : > { %v7824_v30 = vadd.f32 %v7823_v18, %v7822_v24 }
 0x577   : > { %v7825_v5 = vrot.slane %v7824_v30, 2 }
 0x579   : > { %v7826_v42 = vadd.f32 %v7825_v5, %v7824_v30 }
 0x57b   : > { %v7827_v55 = vrot.slane %v7826_v42, 1 }
 0x57d   : > { %v7828_v31 = vadd.f32 %v7827_v55, %v7826_v42 }
 0x57f   : > { %v7830_v37 = vmul.f32 0.00390625, %v7828_v31 }
 0x581   : > { %9158 = vmatmul.mubr.msk.f32.vlgmr.msra.gmra.mrb[32].mxu0 %vm12992_vm2, %v7830_v37  ;;  %vm13006_vm2 = vmmov %vm12965_vm0 }
 0x654   : > { %v7906_v36 = vpop.f32.mrb[32].mxu0 }
 0x655   : > { %v7907_v16 = vadd.f32 %v7906_v36, %v7832_v20  ;;  %v9159_v0 = vpop.f32.mrb[33].mxu0 }
 0x657   : > { %v7910_v40 = vmax.f32 %v7907_v16, 0.0 }
 0x659   : > { %9163 = vmatmul.mubr.msk.f32.vlgmr.msra.gmra.mrb[32].mxu1 %vm7913_vm6, %v7910_v40  ;;  %vm13007_vm6 = vmmov %vm12965_vm0 }
 0x72c   : > { %v7983_v10 = vpop.f32.mrb[32].mxu1 }
 0x72d   : > { %v7984_v57 = vadd.f32 %v7983_v10, %v7912_v59  ;;  %v9164_v41 = vpop.f32.mrb[33].mxu1 }
 0x72f   : > { %v8965_v43 = vmul.f32 -1.442695, %v7984_v57  ;;  %v8032_v47 = vrot.slane %v7984_v57, %v7995_v63 }
 0x731   : > { %9817 = vpow2.f32 %v8965_v43  ;;  %8034 = vrot.lane.b32.xlu0 %v8032_v47, %s10281_s11  ;;  %s10171_s11 = sshll.u32 %s10282_s25, 4  ;;  %s10172_s11 = int_to_ptr.vmem [resolvable:$false] %s10171_s11 }
 0x73b   : > { %v9818_v51 = vpop.eup %9817 }
 0x73c   : > { %v7990_v58 = vadd.f32 1.0, %v9818_v51 }
 0x73e   : > { %9819 = vrcp.f32 %v7990_v58 }
 0x748   : > { %v9820_v11 = vpop.eup %9819 }
 0x749   : > { %v7996_v35 = vrot.slane %v9820_v11, %v7995_v63 }
 0x74b   : > { %v7997_v56 = vmul.f32 %v7996_v35, %v12285_v54  ;;  %v7998_v39 = vmul.f32 %v7996_v35, %v12277_v6  ;;  %v7999_v48 = vmul.f32 %v7996_v35, %v12290_v8  ;;  %v8000_v52 = vmul.f32 %v7996_v35, %v12299_v60 }
 0x74c   : > { %v8001_v4 = vmul.f32 %v7996_v35, %v12302_v49  ;;  %v8002_v17 = vmul.f32 %v7996_v35, %v12310_v25  ;;  %v8003_v24 = vmul.f32 %v7996_v35, %v12316_v34  ;;  %v8004_v18 = vmul.f32 %v7996_v35, %v12323_v45 }
 0x74d   : > { %v8005_v30 = vmul.f32 %v7996_v35, %v12326_v33  ;;  %v8006_v5 = vmul.f32 %v7996_v35, %v12334_v21  ;;  %v8007_v54 = vmul.f32 %v7996_v35, %v12340_v26  ;;  %v8008_v6 = vmul.f32 %v7996_v35, %v12348_v62 }
 0x74e   : > { %v8009_v8 = vmul.f32 %v7996_v35, %v12351_v46  ;;  %v8010_v60 = vmul.f32 %v7996_v35, %v12359_v53  ;;  %v8011_v49 = vmul.f32 %v7996_v35, %v12366_v22  ;;  %v8012_v25 = vmul.f32 %v7996_v35, %v12374_v3 }
 0x74f   : > { %v8013_v34 = vmul.f32 %v7996_v35, %v12377_v1  ;;  %v8014_v45 = vmul.f32 %v7996_v35, %v12386_v2  ;;  %v8015_v33 = vmul.f32 %v7996_v35, %v12393_v50  ;;  %v8016_v21 = vmul.f32 %v7996_v35, %v12401_v7 }
 0x750   : > { %v8017_v26 = vmul.f32 %v7996_v35, %v12404_v12  ;;  %v8018_v62 = vmul.f32 %v7996_v35, %v12412_v44  ;;  %v8019_v46 = vmul.f32 %v7996_v35, %v12418_v15  ;;  %v8020_v53 = vmul.f32 %v7996_v35, %v12425_v19 }
 0x751   : > { %v8021_v22 = vmul.f32 %v7996_v35, %v12428_v61  ;;  %v8022_v3 = vmul.f32 %v7996_v35, %v12436_v9  ;;  %v8023_v1 = vmul.f32 %v7996_v35, %v12442_v14  ;;  %v8024_v2 = vmul.f32 %v7996_v35, %v12448_v23 }
 0x752   : > { %v8025_v50 = vmul.f32 %v7996_v35, %v12455_v28  ;;  %v8026_v7 = vmul.f32 %v7996_v35, %v12465_v38  ;;  %v8027_v12 = vmul.f32 %v7996_v35, %v12460_v27  ;;  %v8028_v44 = vmul.f32 %v7996_v35, %v12468_v29 }
 0x7a3   : > { %v8035_v42 = vpop.permute.xlu0 %8034 }
 0x7a4   : > { %v8037_v15 = vadd.f32 %v8035_v42, %v7997_v56  ;;  %v8038_v55 = vadd.f32 %v8035_v42, %v7998_v39  ;;  %v8039_v19 = vadd.f32 %v8035_v42, %v7999_v48  ;;  %v8040_v31 = vadd.f32 %v8035_v42, %v8000_v52  ;;  %v9825_v39 = vld [vmem:[%s10685_s22] sm:$0xff]  ;;  %v9826_v52 = vld [vmem:[%s10685_s22 + $0x8] sm:$0xff] }
 0x7a5   : > { %v8041_v61 = vadd.f32 %v8035_v42, %v8001_v4  ;;  %v8042_v37 = vadd.f32 %v8035_v42, %v8002_v17  ;;  %v8043_v9 = vadd.f32 %v8035_v42, %v8003_v24  ;;  %v8044_v20 = vadd.f32 %v8035_v42, %v8004_v18  ;;  %v9827_v17 = vld [vmem:[%s10685_s22 + $0x10] sm:$0xff]  ;;  %v9828_v18 = vld [vmem:[%s10685_s22 + $0x18] sm:$0xff] }
 0x7a6   : > { %v8045_v14 = vadd.f32 %v8035_v42, %v8005_v30  ;;  %v8046_v36 = vadd.f32 %v8035_v42, %v8006_v5  ;;  %v8047_v23 = vadd.f32 %v8035_v42, %v8007_v54  ;;  %v8048_v16 = vadd.f32 %v8035_v42, %v8008_v6  ;;  %v9829_v5 = vld [vmem:[%s10685_s22 + $0x20] sm:$0xff]  ;;  %v9830_v6 = vld [vmem:[%s10685_s22 + $0x28] sm:$0xff] }
 0x7a7   : > { %v8049_v28 = vadd.f32 %v8035_v42, %v8009_v8  ;;  %v8050_v0 = vadd.f32 %v8035_v42, %v8010_v60  ;;  %v8051_v38 = vadd.f32 %v8035_v42, %v8011_v49  ;;  %v8052_v40 = vadd.f32 %v8035_v42, %v8012_v25  ;;  %v9831_v60 = vld [vmem:[%s10685_s22 + $0x30] sm:$0xff]  ;;  %v9832_v25 = vld [vmem:[%s10685_s22 + $0x38] sm:$0xff] }
 0x7a8   : > { %v8053_v27 = vadd.f32 %v8035_v42, %v8013_v34  ;;  %v8054_v29 = vadd.f32 %v8035_v42, %v8014_v45  ;;  %v8055_v13 = vadd.f32 %v8035_v42, %v8015_v33  ;;  %v8056_v32 = vadd.f32 %v8035_v42, %v8016_v21  ;;  %v9833_v45 = vld [vmem:[%s10685_s22 + $0x40] sm:$0xff]  ;;  %v9834_v21 = vld [vmem:[%s10685_s22 + $0x48] sm:$0xff] }
 0x7a9   : > { %v8057_v59 = vadd.f32 %v8035_v42, %v8017_v26  ;;  %v8058_v63 = vadd.f32 %v8035_v42, %v8018_v62  ;;  %v8059_v10 = vadd.f32 %v8035_v42, %v8019_v46  ;;  %v8060_v57 = vadd.f32 %v8035_v42, %v8020_v53  ;;  %v9835_v62 = vld [vmem:[%s10685_s22 + $0x50] sm:$0xff]  ;;  %v9836_v53 = vld [vmem:[%s10685_s22 + $0x58] sm:$0xff] }
 0x7aa   : > { %v8061_v41 = vadd.f32 %v8035_v42, %v8021_v22  ;;  %v8062_v43 = vadd.f32 %v8035_v42, %v8022_v3  ;;  %v8063_v47 = vadd.f32 %v8035_v42, %v8023_v1  ;;  %v8064_v51 = vadd.f32 %v8035_v42, %v8024_v2  ;;  %v9837_v3 = vld [vmem:[%s10685_s22 + $0x60] sm:$0xff]  ;;  %v9838_v2 = vld [vmem:[%s10685_s22 + $0x68] sm:$0xff] }
 0x7ab   : > { %v8065_v58 = vadd.f32 %v8035_v42, %v8025_v50  ;;  %v8066_v11 = vadd.f32 %v8035_v42, %v8026_v7  ;;  %v12509_v35 = vadd.f32 %v8035_v42, %v8027_v12  ;;  %v12511_v56 = vadd.f32 %v8035_v42, %v8028_v44  ;;  %v9839_v7 = vld [vmem:[%s10685_s22 + $0x70] sm:$0xff]  ;;  %v9840_v44 = vld [vmem:[%s10685_s22 + $0x78] sm:$0xff] }
 0x7ac   : > { %v12514_v48 = vadd.f32 %v9825_v39, %v8037_v15  ;;  %v12517_v4 = vadd.f32 %v9826_v52, %v8038_v55  ;;  %v12520_v24 = vadd.f32 %v9827_v17, %v8039_v19  ;;  %v12523_v30 = vadd.f32 %v9828_v18, %v8040_v31  ;;  %v9841_v15 = vld [vmem:[%s10685_s22 + $0x80] sm:$0xff]  ;;  %v9842_v19 = vld [vmem:[%s10685_s22 + $0x88] sm:$0xff]  ;;  %v9852_v52 = vld [vmem:[%s10685_s22 + $0xd8] sm:$0xff] }
 0x7ad   : > { %v12526_v54 = vadd.f32 %v9829_v5, %v8041_v61  ;;  %v12529_v8 = vadd.f32 %v9830_v6, %v8042_v37  ;;  %v12532_v49 = vadd.f32 %v9831_v60, %v8043_v9  ;;  %v12535_v34 = vadd.f32 %v9832_v25, %v8044_v20  ;;  %v9843_v61 = vld [vmem:[%s10685_s22 + $0x90] sm:$0xff]  ;;  %v9844_v9 = vld [vmem:[%s10685_s22 + $0x98] sm:$0xff]  ;;  %v9853_v17 = vld [vmem:[%s10685_s22 + $0xe0] sm:$0xff] }
 0x7ae   : > { %v12538_v33 = vadd.f32 %v9833_v45, %v8045_v14  ;;  %v12541_v26 = vadd.f32 %v9834_v21, %v8046_v36  ;;  %v12544_v46 = vadd.f32 %v9835_v62, %v8047_v23  ;;  %v12547_v22 = vadd.f32 %v9836_v53, %v8048_v16  ;;  %v9845_v14 = vld [vmem:[%s10685_s22 + $0xa0] sm:$0xff]  ;;  %v9846_v23 = vld [vmem:[%s10685_s22 + $0xa8] sm:$0xff]  ;;  %v9856_v6 = vld [vmem:[%s10685_s22 + $0xf8] sm:$0xff] }
 0x7af   : > { %v12550_v1 = vadd.f32 %v9837_v3, %v8049_v28  ;;  %v12553_v50 = vadd.f32 %v9838_v2, %v8050_v0  ;;  %v12556_v12 = vadd.f32 %v9839_v7, %v8051_v38  ;;  %v12559_v42 = vadd.f32 %v9840_v44, %v8052_v40  ;;  %v9847_v28 = vld [vmem:[%s10685_s22 + $0xb0] sm:$0xff]  ;;  %v9848_v38 = vld [vmem:[%s10685_s22 + $0xb8] sm:$0xff] }
 0x7b0   : > { %v12562_v55 = vadd.f32 %v9841_v15, %v8053_v27  ;;  %v12565_v31 = vadd.f32 %v9842_v19, %v8054_v29  ;;  %v12568_v37 = vadd.f32 %v9843_v61, %v8055_v13  ;;  %v12571_v20 = vadd.f32 %v9844_v9, %v8056_v32  ;;  %v9849_v27 = vld [vmem:[%s10685_s22 + $0xc0] sm:$0xff]  ;;  %v9850_v13 = vld [vmem:[%s10685_s22 + $0xc8] sm:$0xff] }
 0x7b1   : > { %v12574_v36 = vadd.f32 %v9845_v14, %v8057_v59  ;;  %v12577_v16 = vadd.f32 %v9846_v23, %v8058_v63  ;;  %v12580_v0 = vadd.f32 %v9847_v28, %v8059_v10  ;;  %v12583_v40 = vadd.f32 %v9848_v38, %v8060_v57  ;;  %v9851_v59 = vld [vmem:[%s10685_s22 + $0xd0] sm:$0xff]  ;;  %v9854_v10 = vld [vmem:[%s10685_s22 + $0xe8] sm:$0xff] }
 0x7b2   : > { %v12586_v29 = vadd.f32 %v9849_v27, %v8061_v41  ;;  %v12589_v32 = vadd.f32 %v9850_v13, %v8062_v43  ;;  %v12592_v39 = vadd.f32 %v9851_v59, %v8063_v47  ;;  %v12595_v63 = vadd.f32 %v9852_v52, %v8064_v51  ;;  %v9855_v57 = vld [vmem:[%s10685_s22 + $0xf0] sm:$0xff]  ;;  %s12625_s22 = scalar_lea.vmem [#allocation22], %s8364_s1  ;;  %s9036_s1 = sshll.u32 %s10365_s23, 12 }
 0x7b3   : > { %v12598_v18 = vadd.f32 %v9853_v17, %v8065_v58  ;;  %v12601_v5 = vadd.f32 %v9854_v10, %v8066_v11  ;;  %v12605_v41 = vadd.f32 %v9855_v57, %v12509_v35  ;;  %v12609_v43 = vadd.f32 %v9856_v6, %v12511_v56  ;;  %s8179_s23 = sshll.u32 %s12625_s22, 4  ;;  %s12688_s12 = scalar_lea.hbm %s13011_s29, %s9036_s1  ;;  %s12702_s23 = int_to_ptr.vmem [resolvable:$true] %s8179_s23 }
 0x7b4   : > { %v8101_v47 = vmax.f32 %v12514_v48, 0.0  ;;  %v8102_v51 = vmax.f32 %v12517_v4, 0.0  ;;  %v8103_v60 = vmax.f32 %v12520_v24, 0.0  ;;  %v8104_v58 = vmax.f32 %v12523_v30, 0.0  ;;  %s10167_s24 = scalar_lea.vmem %s12702_s23, 4096  ;;  %s10173_s1 = scalar_lea.vmem %s10172_s11, 8192 }
 0x7b5   : > { %v8105_v11 = vmax.f32 %v12526_v54, 0.0  ;;  %v8106_v25 = vmax.f32 %v12529_v8, 0.0  ;;  %v8107_v45 = vmax.f32 %v12532_v49, 0.0  ;;  %v8108_v35 = vmax.f32 %v12535_v34, 0.0  ;;  %p10168_p1 = scmp.ne.s32.totalorder %s12702_s23, %s10167_s24  ;;  %p10174_p4 = scmp.lt.s32.totalorder %s12702_s23, %s10172_s11 }
 0x7b6   : > { %v8109_v21 = vmax.f32 %v12538_v33, 0.0  ;;  %v8110_v56 = vmax.f32 %v12541_v26, 0.0  ;;  %v8111_v48 = vmax.f32 %v12544_v46, 0.0  ;;  %v8112_v4 = vmax.f32 %v12547_v22, 0.0  ;;  %8133 = vst.msk [vmem:[%s12625_s22] sm:$0xff] %vm12993_vm8, %v8101_v47  ;;  %vm13008_vm8 = vmmov %vm12965_vm0  ;;  %p10175_p10 = scmp.lt.s32.totalorder %s10173_s1, %s10167_s24 }
 0x7b7   : > { %8134 = vst.msk [vmem:[%s12625_s22 + $0x8] sm:$0xff] %vm12994_vm10, %v8102_v51  ;;  %v8113_v24 = vmax.f32 %v12550_v1, 0.0  ;;  %v8114_v30 = vmax.f32 %v12553_v50, 0.0  ;;  %v8115_v54 = vmax.f32 %v12556_v12, 0.0  ;;  %v8116_v8 = vmax.f32 %v12559_v42, 0.0  ;;  %vm13009_vm10 = vmmov %vm12965_vm0  ;;  %p10169_p2 = pnand %p10168_p1, %p13024_p3 }
 0x7b8   : > { %8135 = vst.msk [vmem:[%s12625_s22 + $0x10] sm:$0xff] %vm12965_vm0, %v8103_v60  ;;  %v8117_v49 = vmax.f32 %v12562_v55, 0.0  ;;  %v8118_v34 = vmax.f32 %v12565_v31, 0.0  ;;  %v8119_v33 = vmax.f32 %v12568_v37, 0.0  ;;  %v8120_v26 = vmax.f32 %v12571_v20, 0.0  ;;  %p10176_p11 = por %p10175_p10, %p10174_p4 }
 0x7b9   : > { %8136 = vst.msk [vmem:[%s12625_s22 + $0x18] sm:$0xff] %vm12995_vm11, %v8104_v58  ;;  %v8121_v62 = vmax.f32 %v12574_v36, 0.0  ;;  %v8122_v46 = vmax.f32 %v12577_v16, 0.0  ;;  %v8123_v53 = vmax.f32 %v12580_v0, 0.0  ;;  %v8124_v22 = vmax.f32 %v12583_v40, 0.0  ;;  %vm13010_vm11 = vmmov %vm12965_vm0  ;;  %p10170_p8 = pneg %p10169_p2 }
 0x7ba   : > { %8137 = vst.msk [vmem:[%s12625_s22 + $0x20] sm:$0xff] %vm12996_vm4, %v8105_v11  ;;  %v8125_v3 = vmax.f32 %v12586_v29, 0.0  ;;  %v8126_v1 = vmax.f32 %v12589_v32, 0.0  ;;  %v8127_v2 = vmax.f32 %v12592_v39, 0.0  ;;  %v8128_v50 = vmax.f32 %v12595_v63, 0.0  ;;  %vm13012_vm4 = vmmov %vm12965_vm0 }
 0x7bb   : > { %8138 = vst.msk [vmem:[%s12625_s22 + $0x28] sm:$0xff] %vm12997_vm7, %v8106_v25  ;;  %v8129_v7 = vmax.f32 %v12598_v18, 0.0  ;;  %v8130_v12 = vmax.f32 %v12601_v5, 0.0  ;;  %v8131_v44 = vmax.f32 %v12605_v41, 0.0  ;;  %v8132_v42 = vmax.f32 %v12609_v43, 0.0  ;;  %vm13013_vm7 = vmmov %vm12965_vm0  ;;  %p10177_p0 = pnand %p10176_p11, %p10170_p8 }
 0x7bc   : > { %8139 = vst.msk [vmem:[%s12625_s22 + $0x30] sm:$0xff] %vm12998_vm9, %v8107_v45  ;;  %vm13014_vm9 = vmmov %vm12965_vm0 }
 0x7bd   : > { %8140 = vst.msk [vmem:[%s12625_s22 + $0x38] sm:$0xff] %vm12999_vm3, %v8108_v35  ;;  %vm13015_vm3 = vmmov %vm12965_vm0 }
 0x7be   : > { %8141 = vst.msk [vmem:[%s12625_s22 + $0x40] sm:$0xff] %vm13000_vm12, %v8109_v21  ;;  %vm13016_vm12 = vmmov %vm12965_vm0 }
 0x7bf   : > { %8142 = vst.msk [vmem:[%s12625_s22 + $0x48] sm:$0xff] %vm13001_vm5, %v8110_v56  ;;  %vm13017_vm5 = vmmov %vm12965_vm0 }
 0x7c0   : > { %8143 = vst.msk [vmem:[%s12625_s22 + $0x50] sm:$0xff] %vm13002_vm13, %v8111_v48  ;;  %vm13018_vm13 = vmmov %vm12965_vm0 }
 0x7c1   : > { %8144 = vst.msk [vmem:[%s12625_s22 + $0x58] sm:$0xff] %vm13003_vm14, %v8112_v4  ;;  %vm13019_vm14 = vmmov %vm12965_vm0 }
 0x7c2   : > { %8145 = vst.msk [vmem:[%s12625_s22 + $0x60] sm:$0xff] %vm13004_vm15, %v8113_v24  ;;  %vm13020_vm15 = vmmov %vm12965_vm0 }
 0x7c3   : > { %8146 = vst.msk [vmem:[%s12625_s22 + $0x68] sm:$0xff] %vm13005_vm1, %v8114_v30  ;;  %vm13021_vm1 = vmmov %vm12965_vm0 }
 0x7c4   : > { %8147 = vst.msk [vmem:[%s12625_s22 + $0x70] sm:$0xff] %vm13006_vm2, %v8115_v54  ;;  %vm13022_vm2 = vmmov %vm12965_vm0 }
 0x7c5   : > { %8148 = vst.msk [vmem:[%s12625_s22 + $0x78] sm:$0xff] %vm13007_vm6, %v8116_v8  ;;  %vm13023_vm6 = vmmov %vm12965_vm0 }
 0x7c6   : > { %8149 = vst.msk [vmem:[%s12625_s22 + $0x80] sm:$0xff] %vm13008_vm8, %v8117_v49 }
 0x7c7   : > { %8150 = vst.msk [vmem:[%s12625_s22 + $0x88] sm:$0xff] %vm13009_vm10, %v8118_v34 }
 0x7c8   : > { %8151 = vst.msk [vmem:[%s12625_s22 + $0x90] sm:$0xff] %vm12965_vm0, %v8119_v33 }
 0x7c9   : > { %8152 = vst.msk [vmem:[%s12625_s22 + $0x98] sm:$0xff] %vm13010_vm11, %v8120_v26 }
 0x7ca   : > { %8153 = vst.msk [vmem:[%s12625_s22 + $0xa0] sm:$0xff] %vm13012_vm4, %v8121_v62 }
 0x7cb   : > { %8154 = vst.msk [vmem:[%s12625_s22 + $0xa8] sm:$0xff] %vm13013_vm7, %v8122_v46 }
 0x7cc   : > { %8155 = vst.msk [vmem:[%s12625_s22 + $0xb0] sm:$0xff] %vm13014_vm9, %v8123_v53 }
 0x7cd   : > { %8156 = vst.msk [vmem:[%s12625_s22 + $0xb8] sm:$0xff] %vm13015_vm3, %v8124_v22 }
 0x7ce   : > { %8157 = vst.msk [vmem:[%s12625_s22 + $0xc0] sm:$0xff] %vm13016_vm12, %v8125_v3 }
 0x7cf   : > { %8158 = vst.msk [vmem:[%s12625_s22 + $0xc8] sm:$0xff] %vm13017_vm5, %v8126_v1 }
 0x7d0   : > { %8159 = vst.msk [vmem:[%s12625_s22 + $0xd0] sm:$0xff] %vm13018_vm13, %v8127_v2 }
 0x7d1   : > { %8160 = vst.msk [vmem:[%s12625_s22 + $0xd8] sm:$0xff] %vm13019_vm14, %v8128_v50 }
 0x7d2   : > { %8161 = vst.msk [vmem:[%s12625_s22 + $0xe0] sm:$0xff] %vm13020_vm15, %v8129_v7 }
 0x7d3   : > { %8162 = vst.msk [vmem:[%s12625_s22 + $0xe8] sm:$0xff] %vm13021_vm1, %v8130_v12 }
 0x7d4   : > { %8163 = vst.msk [vmem:[%s12625_s22 + $0xf0] sm:$0xff] %vm13022_vm2, %v8131_v44 }
 0x7d5   : > { %8164 = vst.msk [vmem:[%s12625_s22 + $0xf8] sm:$0xff] %vm13023_vm6, %v8132_v42 }
 0x7d6   : > { %10180 = shalt.err (!%p10177_p0)
}
 0x7d7   : > { %s10181_s22 = scalar_lea.hbm %s12688_s12, 4096  ;;  %s10185_s25 = scalar_lea.hbm %s13011_s29, 8192 }
 0x7d8   : > { %p10182_p5 = scmp.ne.s32.totalorder %s12688_s12, %s10181_s22  ;;  %p10186_p9 = scmp.lt.u32.totalorder %s12688_s12, %s13011_s29 }
 0x7d9   : > { %p10187_p12 = scmp.lt.u32.totalorder %s10185_s25, %s10181_s22  ;;  %p10189_p1 = scmp.lt.u32.totalorder %s10181_s22, %s12688_s12 }
 0x7da   : > { %p10183_p7 = pnand %p10182_p5, %p13024_p3 }
 0x7db   : > { %p10188_p13 = por %p10187_p12, %p10186_p9 }
 0x7dc   : > { %p10184_p6 = pneg %p10183_p7 }
 0x7dd   : > { %p10190_p2 = por %p10189_p1, %p10188_p13 }
 0x7df   : > { %p10191_p8 = pnand %p10190_p2, %p10184_p6 }
 0x7e1   : > { %10194 = shalt.err (!%p10191_p8)
}
 0x7e2   : > { %s10283_s24 = smov 128   ;;  %s13025_s1 = scalar_lea.sflag [#allocation6], %s10679_s26 }
 0x7e3   : > { %9209 = dma.vmem_to_hbm [thread:$0]  (%p13024_p3), %s12702_s23, 4096, %s12688_s12, %s13025_s1, %s10283_s24, %s10283_s24, %s10271_s13  }
 0x7e4 PF: > { %s8194_s0 = sand.u32 1, %s10241_s17   ;;  %p13026_p4 = scmp.ne.s32.totalorder %s12802_s28, 0 }
 0x7e5   : > { %p13027_p10 = scmp.ge.s32.totalorder %s10253_s20, 2  ;;  %s8195_s22 = scalar_lea.sflag [#allocation6], %s8194_s0 }
 0x7e7   : > { %p9247_p11 = pnand %p13027_p10, %p13026_p4 }
 0x7e9   : > { %10236 = dma.done.wait (!%p9247_p11), %s8195_s22, 4096  }
 0x7ea   : > { %10238 = vsyncadd (!%p9247_p11), %s8195_s22, 4294963200  ;;  %p29_p0 = scmp.ge.s32.totalorder %s10600_s27, 4   ;;  %s13028_s17 = smov %s10245_s18 }
 0x7eb   : > { %s13029_s18 = smov %s10249_s19  ;;  %s13030_s19 = smov %s10611_s15 }
 0x7ec   : > { %s13031_s20 = smov %s10600_s27  ;;  %31 = sbr.rel (!%p29_p0) target bundleno = 14 (0xe), region = 152 }
 0x7f3   :  { %8200 = vsyncpa [#allocation5], 1 }
 0x7f4   :  { %8202 = vsyncpa [#allocation5 + $0x1], 1 }
 0x7f5   :  { %8203 = vsyncpa [#allocation8], 1 }
 0x7f6   :  { %8204 = vsyncpa [#allocation11], 1 }
 0x7f7   :  { %8205 = vsyncpa [#allocation14], 1 }
 0x7f8   :  { %8206 = vsyncpa [#allocation17], 1 }
 0x7f9   :  { %8207 = vsyncpa [#allocation20], 1 }
 0x7fa   :  { %8208 = vsyncpa [#allocation6], 1 }
 0x7fb   :  { %8210 = vsyncpa [#allocation6 + $0x1], 1 }

</bundles_post_ra>
